<compile_context>
chip_gen: v7x
topology: tpu7x:2x2x1
jax: 0.10.0
libtpu: 0.0.40
codegen_flags: <defaults>
</compile_context>

<pallas_src>
import jax
import jax.numpy as jnp
import numpy as np
from jax.experimental import pallas as pl
from jax.experimental.pallas import tpu as pltpu

C1 = 32  # conv channel width (both convs), fixed by the module


# ----------------------------------------------------------------------------
# Kernel 1: fused conv1 + ReLU + conv2 + ReLU (one batch element per grid step)
# ----------------------------------------------------------------------------
def conv_stack_kernel(x_ref, w1_ref, b1_ref, w2_ref, b2_ref, o_ref,
                      pad1_ref, pad2_ref):
    """
    x_ref : (1, H, W, Cin)       NHWC input tile
    w1_ref: (9*Cin, 32)          conv1 weights, im2col rows ordered (dy, dx, ci)
    b1_ref: (1, 32)
    w2_ref: (9*32, 32)           conv2 weights, same row ordering
    b2_ref: (1, 32)
    o_ref : (1, H*W, 32)         conv2 output, rows in (h, w) order, channels minor
    pad1_ref, pad2_ref: VMEM scratch (H+2, W+2, Cin) / (H+2, W+2, 32)
    """
    _, H, W, Cin = x_ref.shape

    def conv3x3_relu(pad_ref, interior, cin, w_ref, b_ref):
        # in-kernel zero padding: zero the scratch, write the interior.
        pad_ref[...] = jnp.zeros_like(pad_ref)
        pad_ref[1:H + 1, 1:W + 1, :] = interior
        # im2col: one (H*W, 9*cin) patch matrix, one MXU matmul.
        cols = [pad_ref[dy:dy + H, dx:dx + W, :].reshape(H * W, cin)
                for dy in range(3) for dx in range(3)]
        patches = jnp.concatenate(cols, axis=-1)               # (H*W, 9*cin)
        acc = jnp.dot(patches, w_ref[...],
                      preferred_element_type=jnp.float32)      # (H*W, 32)
        return jnp.maximum(acc + b_ref[...], 0.0)              # bias + ReLU

    h1 = conv3x3_relu(pad1_ref, x_ref[0], Cin, w1_ref, b1_ref)             # (H*W, 32)
    h2 = conv3x3_relu(pad2_ref, h1.reshape(H, W, C1), C1, w2_ref, b2_ref)  # (H*W, 32)
    o_ref[...] = h2[None].astype(o_ref.dtype)


def fused_convs(x_nhwc, w1, b1, w2, b2):
    B, H, W, Cin = x_nhwc.shape
    return pl.pallas_call(
        conv_stack_kernel,
        out_shape=jax.ShapeDtypeStruct((B, H * W, C1), jnp.float32),
        grid=(B,),
        in_specs=[
            pl.BlockSpec((1, H, W, Cin), lambda b: (b, 0, 0, 0)),
            pl.BlockSpec((9 * Cin, C1), lambda b: (0, 0)),
            pl.BlockSpec((1, C1), lambda b: (0, 0)),
            pl.BlockSpec((9 * C1, C1), lambda b: (0, 0)),
            pl.BlockSpec((1, C1), lambda b: (0, 0)),
        ],
        out_specs=pl.BlockSpec((1, H * W, C1), lambda b: (b, 0, 0)),
        scratch_shapes=[
            pltpu.VMEM((H + 2, W + 2, Cin), jnp.float32),
            pltpu.VMEM((H + 2, W + 2, C1), jnp.float32),
        ],
        compiler_params=pltpu.CompilerParams(
            dimension_semantics=("parallel",)),   # 2-way across v7x TCs
    )(x_nhwc, w1, b1, w2, b2)


# ----------------------------------------------------------------------------
# Kernel 2: Linear  (x @ W + b), weights already stored as (K, N)
# ----------------------------------------------------------------------------
def fc_kernel(x_ref, w_ref, b_ref, o_ref):
    o_ref[...] = (jnp.dot(x_ref[...], w_ref[...],
                          preferred_element_type=jnp.float32)
                  + b_ref[...]).astype(o_ref.dtype)


def fc(x, w_kn, b_1n):
    B, K = x.shape
    N = w_kn.shape[1]
    return pl.pallas_call(
        fc_kernel,
        out_shape=jax.ShapeDtypeStruct((B, N), x.dtype),
        grid=(1,),
        in_specs=[
            pl.BlockSpec((B, K), lambda i: (0, 0)),
            pl.BlockSpec((K, N), lambda i: (0, 0)),
            pl.BlockSpec((1, N), lambda i: (0, 0)),
        ],
        out_specs=pl.BlockSpec((B, N), lambda i: (0, 0)),
    )(x, w_kn, b_1n)


# ----------------------------------------------------------------------------
# Forward (matches SimpleEmbedding.forward)
# ----------------------------------------------------------------------------
@jax.jit
def simple_embedding_forward(params, x_nchw):
    if x_nchw.ndim == 3:
        x_nchw = x_nchw[None]
    x = jnp.transpose(x_nchw, (0, 2, 3, 1))     # tiny NCHW -> NHWC (2 KB)
    h = fused_convs(x, params["w1"], params["b1"], params["w2"], params["b2"])
    h = h.reshape(h.shape[0], -1)               # free HBM bitcast, no relayout
    return fc(h, params["fc_w"], params["fc_b"])


# ----------------------------------------------------------------------------
# Parameters: PyTorch-layout init + one-time repack into kernel layout
# ----------------------------------------------------------------------------
def init_torch_params(c, h, w, embedding_dim=64, dtype=jnp.float32):
    key = jax.random.PRNGKey(0)
    k1, k2, k3, k4, k5, k6 = jax.random.split(key, 6)
    conv_out = C1 * h * w
    return {
        "conv1_w": 0.05 * jax.random.normal(k1, (C1, c, 3, 3), dtype),   # (O,I,kh,kw)
        "conv1_b": 0.05 * jax.random.normal(k2, (C1,), dtype),
        "conv2_w": 0.05 * jax.random.normal(k3, (C1, C1, 3, 3), dtype),
        "conv2_b": 0.05 * jax.random.normal(k4, (C1,), dtype),
        "fc_w": 0.01 * jax.random.normal(k5, (embedding_dim, conv_out), dtype),
        "fc_b": 0.01 * jax.random.normal(k6, (embedding_dim,), dtype),
    }


def prepare_params(tp, h, w):
    """One-time repack (module-init time): no per-forward transposes remain."""
    def conv_im2col(wt):                      # (O, I, 3, 3) -> (9*I, O), rows (dy,dx,ci)
        o, i = wt.shape[0], wt.shape[1]
        return jnp.transpose(wt, (2, 3, 1, 0)).reshape(9 * i, o)

    emb = tp["fc_w"].shape[0]
    # PyTorch flatten order is (c, h, w); kernel conv output flattens as (h, w, c).
    fc_w = tp["fc_w"].reshape(emb, C1, h, w)
    fc_w = jnp.transpose(fc_w, (0, 2, 3, 1)).reshape(emb, h * w * C1)
    return {
        "w1": conv_im2col(tp["conv1_w"]),
        "b1": tp["conv1_b"].reshape(1, C1),
        "w2": conv_im2col(tp["conv2_w"]),
        "b2": tp["conv2_b"].reshape(1, C1),
        "fc_w": fc_w.T,                       # (K, N): lane-dense MXU matmul, no runtime .T
        "fc_b": tp["fc_b"].reshape(1, emb),
    }


# ----------------------------------------------------------------------------
# Pure-JAX reference (PyTorch semantics, NCHW flatten)
# ----------------------------------------------------------------------------
def reference_forward(tp, x_nchw):
    def conv(x, wt, b):
        y = jax.lax.conv_general_dilated(
            x, wt, window_strides=(1, 1), padding="SAME",
            dimension_numbers=("NCHW", "OIHW", "NCHW"))
        return jax.nn.relu(y + b[None, :, None, None])

    y = conv(x_nchw, tp["conv1_w"], tp["conv1_b"])
    y = conv(y, tp["conv2_w"], tp["conv2_b"])
    y = y.reshape(y.shape[0], -1)
    return y @ tp["fc_w"].T + tp["fc_b"]


if __name__ == "__main__":
    B, C, H, W = 2, 4, 16, 16
    EMB = 64

    torch_params = init_torch_params(C, H, W, EMB)
    params = prepare_params(torch_params, H, W)
    x = jax.random.normal(jax.random.PRNGKey(0), (B, C, H, W), jnp.float32)

    out = jax.block_until_ready(simple_embedding_forward(params, x))
    assert out.shape == (B, EMB), out.shape

    ref = jax.block_until_ready(reference_forward(torch_params, x))
    np.testing.assert_allclose(np.asarray(out), np.asarray(ref),
                               rtol=1e-3, atol=1e-3)

    print("KERNEL_OK")
</pallas_src>

<mosaic_0001>
module attributes {stable_mosaic.version = 11 : i64} {
  func.func @conv_stack_kernel(%arg0: i32, %arg1: memref<1x16x16x4xf32, #tpu.memory_space<vmem>>, %arg2: memref<36x32xf32, #tpu.memory_space<vmem>>, %arg3: memref<1x32xf32, #tpu.memory_space<vmem>>, %arg4: memref<288x32xf32, #tpu.memory_space<vmem>>, %arg5: memref<1x32xf32, #tpu.memory_space<vmem>>, %arg6: memref<1x256x32xf32, #tpu.memory_space<vmem>>, %arg7: memref<18x18x4xf32, #tpu.memory_space<vmem>>, %arg8: memref<18x18x32xf32, #tpu.memory_space<vmem>>) attributes {dimension_semantics = [#tpu.dimension_semantics<parallel>], iteration_bounds = array<i64: 2>, scalar_prefetch = 0 : i64, scratch_operands = 2 : i64, tpu.core_type = #tpu.core_type<tc>, window_params = [{transform_indices = @transform_0, window_bounds = array<i64: 1, 16, 16, 4>}, {pipeline_mode = #tpu.pipeline_mode<synchronous>, transform_indices = @transform_1, window_bounds = array<i64: 36, 32>}, {pipeline_mode = #tpu.pipeline_mode<synchronous>, transform_indices = @transform_2, window_bounds = array<i64: 1, 32>}, {pipeline_mode = #tpu.pipeline_mode<synchronous>, transform_indices = @transform_3, window_bounds = array<i64: 288, 32>}, {pipeline_mode = #tpu.pipeline_mode<synchronous>, transform_indices = @transform_4, window_bounds = array<i64: 1, 32>}, {transform_indices = @transform_5, window_bounds = array<i64: 1, 256, 32>}]} {
    %c0 = arith.constant 0 : index
    %c0_0 = arith.constant 0 : index
    %c0_1 = arith.constant 0 : index
    %c0_2 = arith.constant 0 : index
    %0 = vector.load %arg1[%c0, %c0_0, %c0_1, %c0_2] : memref<1x16x16x4xf32, #tpu.memory_space<vmem>>, vector<1x16x16x4xf32>
    %1 = vector.shape_cast %0 : vector<1x16x16x4xf32> to vector<16x16x4xf32>
    %cst = arith.constant 0.000000e+00 : f32
    %2 = vector.broadcast %cst : f32 to vector<18x18x4xf32>
    %c0_3 = arith.constant 0 : index
    %c0_4 = arith.constant 0 : index
    %c0_5 = arith.constant 0 : index
    %3 = vector.load %arg7[%c0_3, %c0_4, %c0_5] : memref<18x18x4xf32, #tpu.memory_space<vmem>>, vector<18x18x4xf32>
    tpu.vector_store %arg7[%c0_3, %c0_4, %c0_5], %2 {strides = array<i32>} : memref<18x18x4xf32, #tpu.memory_space<vmem>>, vector<18x18x4xf32>,
    %c1 = arith.constant 1 : index
    %c1_6 = arith.constant 1 : index
    %c0_7 = arith.constant 0 : index
    %4 = vector.load %arg7[%c1, %c1_6, %c0_7] : memref<18x18x4xf32, #tpu.memory_space<vmem>>, vector<16x16x4xf32>
    tpu.vector_store %arg7[%c1, %c1_6, %c0_7], %1 {strides = array<i32>} : memref<18x18x4xf32, #tpu.memory_space<vmem>>, vector<16x16x4xf32>,
    %c0_8 = arith.constant 0 : index
    %c0_9 = arith.constant 0 : index
    %c0_10 = arith.constant 0 : index
    %5 = vector.load %arg7[%c0_8, %c0_9, %c0_10] : memref<18x18x4xf32, #tpu.memory_space<vmem>>, vector<16x16x4xf32>
    %6 = vector.shape_cast %5 : vector<16x16x4xf32> to vector<256x4xf32>
    %c0_11 = arith.constant 0 : index
    %c1_12 = arith.constant 1 : index
    %c0_13 = arith.constant 0 : index
    %7 = vector.load %arg7[%c0_11, %c1_12, %c0_13] : memref<18x18x4xf32, #tpu.memory_space<vmem>>, vector<16x16x4xf32>
    %8 = vector.shape_cast %7 : vector<16x16x4xf32> to vector<256x4xf32>
    %c0_14 = arith.constant 0 : index
    %c2 = arith.constant 2 : index
    %c0_15 = arith.constant 0 : index
    %9 = vector.load %arg7[%c0_14, %c2, %c0_15] : memref<18x18x4xf32, #tpu.memory_space<vmem>>, vector<16x16x4xf32>
    %10 = vector.shape_cast %9 : vector<16x16x4xf32> to vector<256x4xf32>
    %c1_16 = arith.constant 1 : index
    %c0_17 = arith.constant 0 : index
    %c0_18 = arith.constant 0 : index
    %11 = vector.load %arg7[%c1_16, %c0_17, %c0_18] : memref<18x18x4xf32, #tpu.memory_space<vmem>>, vector<16x16x4xf32>
    %12 = vector.shape_cast %11 : vector<16x16x4xf32> to vector<256x4xf32>
    %c1_19 = arith.constant 1 : index
    %c1_20 = arith.constant 1 : index
    %c0_21 = arith.constant 0 : index
    %13 = vector.load %arg7[%c1_19, %c1_20, %c0_21] : memref<18x18x4xf32, #tpu.memory_space<vmem>>, vector<16x16x4xf32>
    %14 = vector.shape_cast %13 : vector<16x16x4xf32> to vector<256x4xf32>
    %c1_22 = arith.constant 1 : index
    %c2_23 = arith.constant 2 : index
    %c0_24 = arith.constant 0 : index
    %15 = vector.load %arg7[%c1_22, %c2_23, %c0_24] : memref<18x18x4xf32, #tpu.memory_space<vmem>>, vector<16x16x4xf32>
    %16 = vector.shape_cast %15 : vector<16x16x4xf32> to vector<256x4xf32>
    %c2_25 = arith.constant 2 : index
    %c0_26 = arith.constant 0 : index
    %c0_27 = arith.constant 0 : index
    %17 = vector.load %arg7[%c2_25, %c0_26, %c0_27] : memref<18x18x4xf32, #tpu.memory_space<vmem>>, vector<16x16x4xf32>
    %18 = vector.shape_cast %17 : vector<16x16x4xf32> to vector<256x4xf32>
    %c2_28 = arith.constant 2 : index
    %c1_29 = arith.constant 1 : index
    %c0_30 = arith.constant 0 : index
    %19 = vector.load %arg7[%c2_28, %c1_29, %c0_30] : memref<18x18x4xf32, #tpu.memory_space<vmem>>, vector<16x16x4xf32>
    %20 = vector.shape_cast %19 : vector<16x16x4xf32> to vector<256x4xf32>
    %c2_31 = arith.constant 2 : index
    %c2_32 = arith.constant 2 : index
    %c0_33 = arith.constant 0 : index
    %21 = vector.load %arg7[%c2_31, %c2_32, %c0_33] : memref<18x18x4xf32, #tpu.memory_space<vmem>>, vector<16x16x4xf32>
    %22 = vector.shape_cast %21 : vector<16x16x4xf32> to vector<256x4xf32>
    %23 = tpu.concatenate %6, %8, %10, %12, %14, %16, %18, %20, %22 in 1 : vector<256x4xf32>, vector<256x4xf32>, vector<256x4xf32>, vector<256x4xf32>, vector<256x4xf32>, vector<256x4xf32>, vector<256x4xf32>, vector<256x4xf32>, vector<256x4xf32> -> vector<256x36xf32>
    %c0_34 = arith.constant 0 : index
    %c0_35 = arith.constant 0 : index
    %24 = vector.load %arg2[%c0_34, %c0_35] : memref<36x32xf32, #tpu.memory_space<vmem>>, vector<36x32xf32>
    %cst_36 = arith.constant dense<0.000000e+00> : vector<256x32xf32>
    %25 = tpu.matmul %23, %24, %cst_36 {dimension_numbers = #tpu.dot_dimension_numbers<[1], [0], [0], [1], [0, 0, 1, 1], [], []>} : vector<256x36xf32>, vector<36x32xf32>, vector<256x32xf32> -> vector<256x32xf32>
    %c0_37 = arith.constant 0 : index
    %c0_38 = arith.constant 0 : index
    %26 = vector.load %arg3[%c0_37, %c0_38] : memref<1x32xf32, #tpu.memory_space<vmem>>, vector<1x32xf32>
    %27 = vector.broadcast %26 : vector<1x32xf32> to vector<256x32xf32>
    %28 = arith.addf %25, %27 : vector<256x32xf32>
    %cst_39 = arith.constant 0.000000e+00 : f32
    %29 = vector.broadcast %cst_39 : f32 to vector<256x32xf32>
    %30 = arith.maximumf %28, %29 : vector<256x32xf32>
    %31 = vector.shape_cast %30 : vector<256x32xf32> to vector<16x16x32xf32>
    %cst_40 = arith.constant 0.000000e+00 : f32
    %32 = vector.broadcast %cst_40 : f32 to vector<18x18x32xf32>
    %c0_41 = arith.constant 0 : index
    %c0_42 = arith.constant 0 : index
    %c0_43 = arith.constant 0 : index
    %33 = vector.load %arg8[%c0_41, %c0_42, %c0_43] : memref<18x18x32xf32, #tpu.memory_space<vmem>>, vector<18x18x32xf32>
    tpu.vector_store %arg8[%c0_41, %c0_42, %c0_43], %32 {strides = array<i32>} : memref<18x18x32xf32, #tpu.memory_space<vmem>>, vector<18x18x32xf32>,
    %c1_44 = arith.constant 1 : index
    %c1_45 = arith.constant 1 : index
    %c0_46 = arith.constant 0 : index
    %34 = vector.load %arg8[%c1_44, %c1_45, %c0_46] : memref<18x18x32xf32, #tpu.memory_space<vmem>>, vector<16x16x32xf32>
    tpu.vector_store %arg8[%c1_44, %c1_45, %c0_46], %31 {strides = array<i32>} : memref<18x18x32xf32, #tpu.memory_space<vmem>>, vector<16x16x32xf32>,
    %c0_47 = arith.constant 0 : index
    %c0_48 = arith.constant 0 : index
    %c0_49 = arith.constant 0 : index
    %35 = vector.load %arg8[%c0_47, %c0_48, %c0_49] : memref<18x18x32xf32, #tpu.memory_space<vmem>>, vector<16x16x32xf32>
    %36 = vector.shape_cast %35 : vector<16x16x32xf32> to vector<256x32xf32>
    %c0_50 = arith.constant 0 : index
    %c1_51 = arith.constant 1 : index
    %c0_52 = arith.constant 0 : index
    %37 = vector.load %arg8[%c0_50, %c1_51, %c0_52] : memref<18x18x32xf32, #tpu.memory_space<vmem>>, vector<16x16x32xf32>
    %38 = vector.shape_cast %37 : vector<16x16x32xf32> to vector<256x32xf32>
    %c0_53 = arith.constant 0 : index
    %c2_54 = arith.constant 2 : index
    %c0_55 = arith.constant 0 : index
    %39 = vector.load %arg8[%c0_53, %c2_54, %c0_55] : memref<18x18x32xf32, #tpu.memory_space<vmem>>, vector<16x16x32xf32>
    %40 = vector.shape_cast %39 : vector<16x16x32xf32> to vector<256x32xf32>
    %c1_56 = arith.constant 1 : index
    %c0_57 = arith.constant 0 : index
    %c0_58 = arith.constant 0 : index
    %41 = vector.load %arg8[%c1_56, %c0_57, %c0_58] : memref<18x18x32xf32, #tpu.memory_space<vmem>>, vector<16x16x32xf32>
    %42 = vector.shape_cast %41 : vector<16x16x32xf32> to vector<256x32xf32>
    %c1_59 = arith.constant 1 : index
    %c1_60 = arith.constant 1 : index
    %c0_61 = arith.constant 0 : index
    %43 = vector.load %arg8[%c1_59, %c1_60, %c0_61] : memref<18x18x32xf32, #tpu.memory_space<vmem>>, vector<16x16x32xf32>
    %44 = vector.shape_cast %43 : vector<16x16x32xf32> to vector<256x32xf32>
    %c1_62 = arith.constant 1 : index
    %c2_63 = arith.constant 2 : index
    %c0_64 = arith.constant 0 : index
    %45 = vector.load %arg8[%c1_62, %c2_63, %c0_64] : memref<18x18x32xf32, #tpu.memory_space<vmem>>, vector<16x16x32xf32>
    %46 = vector.shape_cast %45 : vector<16x16x32xf32> to vector<256x32xf32>
    %c2_65 = arith.constant 2 : index
    %c0_66 = arith.constant 0 : index
    %c0_67 = arith.constant 0 : index
    %47 = vector.load %arg8[%c2_65, %c0_66, %c0_67] : memref<18x18x32xf32, #tpu.memory_space<vmem>>, vector<16x16x32xf32>
    %48 = vector.shape_cast %47 : vector<16x16x32xf32> to vector<256x32xf32>
    %c2_68 = arith.constant 2 : index
    %c1_69 = arith.constant 1 : index
    %c0_70 = arith.constant 0 : index
    %49 = vector.load %arg8[%c2_68, %c1_69, %c0_70] : memref<18x18x32xf32, #tpu.memory_space<vmem>>, vector<16x16x32xf32>
    %50 = vector.shape_cast %49 : vector<16x16x32xf32> to vector<256x32xf32>
    %c2_71 = arith.constant 2 : index
    %c2_72 = arith.constant 2 : index
    %c0_73 = arith.constant 0 : index
    %51 = vector.load %arg8[%c2_71, %c2_72, %c0_73] : memref<18x18x32xf32, #tpu.memory_space<vmem>>, vector<16x16x32xf32>
    %52 = vector.shape_cast %51 : vector<16x16x32xf32> to vector<256x32xf32>
    %53 = tpu.concatenate %36, %38, %40, %42, %44, %46, %48, %50, %52 in 1 : vector<256x32xf32>, vector<256x32xf32>, vector<256x32xf32>, vector<256x32xf32>, vector<256x32xf32>, vector<256x32xf32>, vector<256x32xf32>, vector<256x32xf32>, vector<256x32xf32> -> vector<256x288xf32>
    %c0_74 = arith.constant 0 : index
    %c0_75 = arith.constant 0 : index
    %54 = vector.load %arg4[%c0_74, %c0_75] : memref<288x32xf32, #tpu.memory_space<vmem>>, vector<288x32xf32>
    %cst_76 = arith.constant dense<0.000000e+00> : vector<256x32xf32>
    %55 = tpu.matmul %53, %54, %cst_76 {dimension_numbers = #tpu.dot_dimension_numbers<[1], [0], [0], [1], [0, 0, 1, 1], [], []>} : vector<256x288xf32>, vector<288x32xf32>, vector<256x32xf32> -> vector<256x32xf32>
    %c0_77 = arith.constant 0 : index
    %c0_78 = arith.constant 0 : index
    %56 = vector.load %arg5[%c0_77, %c0_78] : memref<1x32xf32, #tpu.memory_space<vmem>>, vector<1x32xf32>
    %57 = vector.broadcast %56 : vector<1x32xf32> to vector<256x32xf32>
    %58 = arith.addf %55, %57 : vector<256x32xf32>
    %cst_79 = arith.constant 0.000000e+00 : f32
    %59 = vector.broadcast %cst_79 : f32 to vector<256x32xf32>
    %60 = arith.maximumf %58, %59 : vector<256x32xf32>
    %61 = vector.shape_cast %60 : vector<256x32xf32> to vector<1x256x32xf32>
    %c0_80 = arith.constant 0 : index
    %c0_81 = arith.constant 0 : index
    %c0_82 = arith.constant 0 : index
    %62 = vector.load %arg6[%c0_80, %c0_81, %c0_82] : memref<1x256x32xf32, #tpu.memory_space<vmem>>, vector<1x256x32xf32>
    tpu.vector_store %arg6[%c0_80, %c0_81, %c0_82], %61 {strides = array<i32>} : memref<1x256x32xf32, #tpu.memory_space<vmem>>, vector<1x256x32xf32>,
    return
  }
  func.func @transform_0(%arg0: i32) -> (i32, i32, i32, i32) {
    %c0_i32 = arith.constant 0 : i32
    %c0_i32_0 = arith.constant 0 : i32
    %c0_i32_1 = arith.constant 0 : i32
    %c0_i32_2 = arith.constant 0 : i32
    return %arg0, %c0_i32, %c0_i32_0, %c0_i32_1 : i32, i32, i32, i32
  }
  func.func @transform_1(%arg0: i32) -> (i32, i32) {
    %c0_i32 = arith.constant 0 : i32
    %c0_i32_0 = arith.constant 0 : i32
    %c0_i32_1 = arith.constant 0 : i32
    return %c0_i32, %c0_i32_0 : i32, i32
  }
  func.func @transform_2(%arg0: i32) -> (i32, i32) {
    %c0_i32 = arith.constant 0 : i32
    %c0_i32_0 = arith.constant 0 : i32
    %c0_i32_1 = arith.constant 0 : i32
    return %c0_i32, %c0_i32_0 : i32, i32
  }
  func.func @transform_3(%arg0: i32) -> (i32, i32) {
    %c0_i32 = arith.constant 0 : i32
    %c0_i32_0 = arith.constant 0 : i32
    %c0_i32_1 = arith.constant 0 : i32
    return %c0_i32, %c0_i32_0 : i32, i32
  }
  func.func @transform_4(%arg0: i32) -> (i32, i32) {
    %c0_i32 = arith.constant 0 : i32
    %c0_i32_0 = arith.constant 0 : i32
    %c0_i32_1 = arith.constant 0 : i32
    return %c0_i32, %c0_i32_0 : i32, i32
  }
  func.func @transform_5(%arg0: i32) -> (i32, i32, i32) {
    %c0_i32 = arith.constant 0 : i32
    %c0_i32_0 = arith.constant 0 : i32
    %c0_i32_1 = arith.constant 0 : i32
    return %arg0, %c0_i32, %c0_i32_0 : i32, i32, i32
  }
}

module attributes {stable_mosaic.version = 11 : i64} {
  func.func @fc_kernel(%arg0: i32, %arg1: memref<2x8192xf32, #tpu.memory_space<vmem>>, %arg2: memref<8192x64xf32, #tpu.memory_space<vmem>>, %arg3: memref<1x64xf32, #tpu.memory_space<vmem>>, %arg4: memref<2x64xf32, #tpu.memory_space<vmem>>) attributes {dimension_semantics = [#tpu.dimension_semantics<arbitrary>], iteration_bounds = array<i64: 1>, scalar_prefetch = 0 : i64, scratch_operands = 0 : i64, tpu.core_type = #tpu.core_type<tc>, window_params = [{pipeline_mode = #tpu.pipeline_mode<synchronous>, transform_indices = @transform_0, window_bounds = array<i64: 2, 8192>}, {pipeline_mode = #tpu.pipeline_mode<synchronous>, transform_indices = @transform_1, window_bounds = array<i64: 8192, 64>}, {pipeline_mode = #tpu.pipeline_mode<synchronous>, transform_indices = @transform_2, window_bounds = array<i64: 1, 64>}, {pipeline_mode = #tpu.pipeline_mode<synchronous>, transform_indices = @transform_3, window_bounds = array<i64: 2, 64>}]} {
    %c0 = arith.constant 0 : index
    %c0_0 = arith.constant 0 : index
    %0 = vector.load %arg1[%c0, %c0_0] : memref<2x8192xf32, #tpu.memory_space<vmem>>, vector<2x8192xf32>
    %c0_1 = arith.constant 0 : index
    %c0_2 = arith.constant 0 : index
    %1 = vector.load %arg2[%c0_1, %c0_2] : memref<8192x64xf32, #tpu.memory_space<vmem>>, vector<8192x64xf32>
    %cst = arith.constant dense<0.000000e+00> : vector<2x64xf32>
    %2 = tpu.matmul %0, %1, %cst {dimension_numbers = #tpu.dot_dimension_numbers<[1], [0], [0], [1], [0, 0, 1, 1], [], []>} : vector<2x8192xf32>, vector<8192x64xf32>, vector<2x64xf32> -> vector<2x64xf32>
    %c0_3 = arith.constant 0 : index
    %c0_4 = arith.constant 0 : index
    %3 = vector.load %arg3[%c0_3, %c0_4] : memref<1x64xf32, #tpu.memory_space<vmem>>, vector<1x64xf32>
    %4 = vector.broadcast %3 : vector<1x64xf32> to vector<2x64xf32>
    %5 = arith.addf %2, %4 : vector<2x64xf32>
    %c0_5 = arith.constant 0 : index
    %c0_6 = arith.constant 0 : index
    %6 = vector.load %arg4[%c0_5, %c0_6] : memref<2x64xf32, #tpu.memory_space<vmem>>, vector<2x64xf32>
    tpu.vector_store %arg4[%c0_5, %c0_6], %5 {strides = array<i32>} : memref<2x64xf32, #tpu.memory_space<vmem>>, vector<2x64xf32>,
    return
  }
  func.func @transform_0(%arg0: i32) -> (i32, i32) {
    %c0_i32 = arith.constant 0 : i32
    %c0_i32_0 = arith.constant 0 : i32
    %c0_i32_1 = arith.constant 0 : i32
    return %c0_i32, %c0_i32_0 : i32, i32
  }
  func.func @transform_1(%arg0: i32) -> (i32, i32) {
    %c0_i32 = arith.constant 0 : i32
    %c0_i32_0 = arith.constant 0 : i32
    %c0_i32_1 = arith.constant 0 : i32
    return %c0_i32, %c0_i32_0 : i32, i32
  }
  func.func @transform_2(%arg0: i32) -> (i32, i32) {
    %c0_i32 = arith.constant 0 : i32
    %c0_i32_0 = arith.constant 0 : i32
    %c0_i32_1 = arith.constant 0 : i32
    return %c0_i32, %c0_i32_0 : i32, i32
  }
  func.func @transform_3(%arg0: i32) -> (i32, i32) {
    %c0_i32 = arith.constant 0 : i32
    %c0_i32_0 = arith.constant 0 : i32
    %c0_i32_1 = arith.constant 0 : i32
    return %c0_i32, %c0_i32_0 : i32, i32
  }
}

</mosaic_0001>

<bundles_post_ra>
// kernel: simple_embedding_forward.3
= control target key start
LH: loop header
LB: loop body
LE: loop exit
PB: predicated region body
PF: predicated region fallthrough
CT: control target
= control target key end

     0   :  { %v5857_v47 = vmov 1983009808   ;;  %v1082_v49 = vlaneseq  ;;  %s9222_s0 = inlined_call_operand.vmem [shape: f32[2,8192], index: 0, kind: input, shape index: {}]   ;;  %s9223_s1 = inlined_call_operand.vmem [shape: f32[8192,64], index: 1, kind: input, shape index: {}]   ;;  %s9224_s2 = inlined_call_operand.vmem [shape: f32[1,64], index: 2, kind: input, shape index: {}]   ;;  %s9225_s3 = inlined_call_operand.hbm [shape: f32[2,64], index: 3, kind: output, shape index: {}]  }
   0x1   :  { %v47_v0 = vld [vmem:[%s9223_s1 + $0x80] sm:$0xff]  ;;  %v48_v1 = vld [vmem:[%s9223_s1 + $0x88] sm:$0xff]  ;;  %v49_v11 = vld [vmem:[%s9223_s1 + $0x90] sm:$0xff]  ;;  %v1080_v48 = vunpack.c.l.s4 %v5857_v47 }
   0x2   :  { %v31_v2 = vld [vmem:[%s9223_s1] sm:$0xff]  ;;  %v4791_v3 = vpack.c.bf16 %v48_v1, %v47_v0  ;;  %v32_v4 = vld [vmem:[%s9223_s1 + $0x8] sm:$0xff]  ;;  %v50_v13 = vld [vmem:[%s9223_s1 + $0x98] sm:$0xff]  ;;  %v1083_v0 = vshrl.u32 %v1082_v49, 7 }
   0x3   :  { %v79_v5 = vld [vmem:[%s9223_s1 + $0x180] sm:$0xff]  ;;  %v80_v6 = vld [vmem:[%s9223_s1 + $0x188] sm:$0xff]  ;;  %v4793_v7 = vpack.c.bf16 %v32_v4, %v31_v2  ;;  %v33_v14 = vld [vmem:[%s9223_s1 + $0x10] sm:$0xff]  ;;  %v4795_v16 = vpack.c.bf16 %v50_v13, %v49_v11  ;;  %v1081_v63 = vunpack.c.0.s8 %v1080_v48 }
   0x4   :  { %v4823_v8 = vpack.c.bf16 %v80_v6, %v79_v5  ;;  %v63_v9 = vld [vmem:[%s9223_s1 + $0x100] sm:$0xff]  ;;  %v64_v10 = vld [vmem:[%s9223_s1 + $0x108] sm:$0xff]  ;;  %4792 = vmatprep.subr.bf16.mxu0 %v4791_v3  ;;  %v34_v15 = vld [vmem:[%s9223_s1 + $0x18] sm:$0xff] }
   0x5   :  { %v4825_v12 = vpack.c.bf16 %v64_v10, %v63_v9  ;;  %4794 = vmatpush3.bf16.msra.mxu0 %v4793_v7  ;;  %v4797_v17 = vpack.c.bf16 %v34_v15, %v33_v14  ;;  %v81_v18 = vld [vmem:[%s9223_s1 + $0x190] sm:$0xff]  ;;  %v82_v19 = vld [vmem:[%s9223_s1 + $0x198] sm:$0xff]  ;;  %v51_v23 = vld [vmem:[%s9223_s1 + $0xa0] sm:$0xff]  ;;  %v6029_v13 = vsub.s32 %v1081_v63, %v1083_v0 }
   0x6   :  { %4824 = vmatprep.subr.bf16.mxu1 %v4823_v8  ;;  %v65_v20 = vld [vmem:[%s9223_s1 + $0x110] sm:$0xff]  ;;  %v4827_v21 = vpack.c.bf16 %v82_v19, %v81_v18  ;;  %v66_v22 = vld [vmem:[%s9223_s1 + $0x118] sm:$0xff]  ;;  %v52_v24 = vld [vmem:[%s9223_s1 + $0xa8] sm:$0xff]  ;;  %4796 = vmatprep.subr.bf16.mxu0 %v4795_v16 }
   0x7   :  { %4826 = vmatpush3.bf16.msra.mxu1 %v4825_v12  ;;  %v4829_v25 = vpack.c.bf16 %v66_v22, %v65_v20  ;;  %v4799_v26 = vpack.c.bf16 %v52_v24, %v51_v23  ;;  %v35_v27 = vld [vmem:[%s9223_s1 + $0x20] sm:$0xff]  ;;  %v36_v28 = vld [vmem:[%s9223_s1 + $0x28] sm:$0xff]  ;;  %v53_v35 = vld [vmem:[%s9223_s1 + $0xb0] sm:$0xff] }
   0x8   :  { %v83_v29 = vld [vmem:[%s9223_s1 + $0x1a0] sm:$0xff]  ;;  %4828 = vmatprep.subr.bf16.mxu1 %v4827_v21  ;;  %v84_v30 = vld [vmem:[%s9223_s1 + $0x1a8] sm:$0xff]  ;;  %v4801_v33 = vpack.c.bf16 %v36_v28, %v35_v27  ;;  %v54_v36 = vld [vmem:[%s9223_s1 + $0xb8] sm:$0xff] }
   0x9   :  { %v67_v31 = vld [vmem:[%s9223_s1 + $0x120] sm:$0xff]  ;;  %v68_v32 = vld [vmem:[%s9223_s1 + $0x128] sm:$0xff]  ;;  %4798 = vmatpush3.bf16.msra.mxu0 %v4797_v17  ;;  %v4831_v34 = vpack.c.bf16 %v84_v30, %v83_v29  ;;  %v37_v37 = vld [vmem:[%s9223_s1 + $0x30] sm:$0xff]  ;;  %v4803_v39 = vpack.c.bf16 %v54_v36, %v53_v35 }
   0xa   :  { %4800 = vmatprep.subr.bf16.mxu0 %v4799_v26  ;;  %v4833_v38 = vpack.c.bf16 %v68_v32, %v67_v31  ;;  %v38_v40 = vld [vmem:[%s9223_s1 + $0x38] sm:$0xff]  ;;  %v85_v41 = vld [vmem:[%s9223_s1 + $0x1b0] sm:$0xff]  ;;  %v55_v46 = vld [vmem:[%s9223_s1 + $0xc0] sm:$0xff] }
   0xb   :  { %4830 = vmatpush3.bf16.msra.mxu1 %v4829_v25  ;;  %v86_v42 = vld [vmem:[%s9223_s1 + $0x1b8] sm:$0xff]  ;;  %v69_v44 = vld [vmem:[%s9223_s1 + $0x130] sm:$0xff]  ;;  %v56_v50 = vld [vmem:[%s9223_s1 + $0xc8] sm:$0xff]  ;;  %v4805_v51 = vpack.c.bf16 %v38_v40, %v37_v37 }
   0xc   :  { %4832 = vmatprep.subr.bf16.mxu1 %v4831_v34  ;;  %v4835_v43 = vpack.c.bf16 %v86_v42, %v85_v41  ;;  %v70_v45 = vld [vmem:[%s9223_s1 + $0x138] sm:$0xff]  ;;  %v87_v52 = vld [vmem:[%s9223_s1 + $0x1c0] sm:$0xff]  ;;  %v88_v53 = vld [vmem:[%s9223_s1 + $0x1c8] sm:$0xff]  ;;  %v4807_v55 = vpack.c.bf16 %v56_v50, %v55_v46 }
   0xd   :  { %4802 = vmatpush3.bf16.msra.mxu0 %v4801_v33  ;;  %v4837_v54 = vpack.c.bf16 %v70_v45, %v69_v44  ;;  %v39_v56 = vld [vmem:[%s9223_s1 + $0x40] sm:$0xff]  ;;  %v40_v57 = vld [vmem:[%s9223_s1 + $0x48] sm:$0xff]  ;;  %v4839_v59 = vpack.c.bf16 %v88_v53, %v87_v52  ;;  %v57_v61 = vld [vmem:[%s9223_s1 + $0xd0] sm:$0xff] }
   0xe   :  { %4804 = vmatprep.subr.bf16.mxu0 %v4803_v39  ;;  %v71_v58 = vld [vmem:[%s9223_s1 + $0x140] sm:$0xff]  ;;  %v72_v60 = vld [vmem:[%s9223_s1 + $0x148] sm:$0xff]  ;;  %v58_v62 = vld [vmem:[%s9223_s1 + $0xd8] sm:$0xff]  ;;  %v4809_v3 = vpack.c.bf16 %v40_v57, %v39_v56 }
   0xf   :  { %4834 = vmatpush3.bf16.msra.mxu1 %v4833_v38  ;;  %v89_v1 = vld [vmem:[%s9223_s1 + $0x1d0] sm:$0xff]  ;;  %v90_v2 = vld [vmem:[%s9223_s1 + $0x1d8] sm:$0xff]  ;;  %v4841_v4 = vpack.c.bf16 %v72_v60, %v71_v58  ;;  %v4811_v5 = vpack.c.bf16 %v58_v62, %v57_v61  ;;  %v59_v11 = vld [vmem:[%s9223_s1 + $0xe0] sm:$0xff] }
  0x10   :  { %4836 = vmatprep.subr.bf16.mxu1 %v4835_v43  ;;  %v41_v6 = vld [vmem:[%s9223_s1 + $0x50] sm:$0xff]  ;;  %v42_v7 = vld [vmem:[%s9223_s1 + $0x58] sm:$0xff]  ;;  %v4843_v9 = vpack.c.bf16 %v90_v2, %v89_v1  ;;  %v60_v12 = vld [vmem:[%s9223_s1 + $0xe8] sm:$0xff] }
  0x11   :  { %4806 = vmatpush3.bf16.msra.mxu0 %v4805_v51  ;;  %v73_v8 = vld [vmem:[%s9223_s1 + $0x150] sm:$0xff]  ;;  %v74_v10 = vld [vmem:[%s9223_s1 + $0x158] sm:$0xff]  ;;  %v91_v14 = vld [vmem:[%s9223_s1 + $0x1e0] sm:$0xff]  ;;  %v4813_v16 = vpack.c.bf16 %v42_v7, %v41_v6  ;;  %v4815_v19 = vpack.c.bf16 %v60_v12, %v59_v11 }
  0x12   :  { %4808 = vmatprep.subr.bf16.mxu0 %v4807_v55  ;;  %v92_v15 = vld [vmem:[%s9223_s1 + $0x1e8] sm:$0xff]  ;;  %v43_v17 = vld [vmem:[%s9223_s1 + $0x60] sm:$0xff]  ;;  %v4845_v18 = vpack.c.bf16 %v74_v10, %v73_v8  ;;  %v61_v25 = vld [vmem:[%s9223_s1 + $0xf0] sm:$0xff] }
  0x13   :  { %4838 = vmatpush3.bf16.msra.mxu1 %v4837_v54  ;;  %v44_v20 = vld [vmem:[%s9223_s1 + $0x68] sm:$0xff]  ;;  %v75_v21 = vld [vmem:[%s9223_s1 + $0x160] sm:$0xff]  ;;  %v4847_v23 = vpack.c.bf16 %v92_v15, %v91_v14  ;;  %v62_v26 = vld [vmem:[%s9223_s1 + $0xf8] sm:$0xff] }
  0x14   :  { %4840 = vmatprep.subr.bf16.mxu1 %v4839_v59  ;;  %v15_v22 = vld [vmem:[%s9222_s0] sm:$0xff]  ;;  %v76_v24 = vld [vmem:[%s9223_s1 + $0x168] sm:$0xff]  ;;  %v93_v29 = vld [vmem:[%s9223_s1 + $0x1f0] sm:$0xff]  ;;  %v4817_v31 = vpack.c.bf16 %v44_v20, %v43_v17  ;;  %v4819_v35 = vpack.c.bf16 %v62_v26, %v61_v25 }
  0x15   :  { %4810 = vmatpush3.bf16.msra.mxu0 %v4809_v3  ;;  %v1085_v27 = vrot.slane %v15_v22, %v6029_v13  ;;  %v1078_v28 = vcombine.high %v15_v22, %v15_v22  ;;  %v94_v30 = vld [vmem:[%s9223_s1 + $0x1f8] sm:$0xff]  ;;  %v4849_v34 = vpack.c.bf16 %v76_v24, %v75_v21  ;;  %v45_v36 = vld [vmem:[%s9223_s1 + $0x70] sm:$0xff]  ;;  %v111_v41 = vld [vmem:[%s9223_s1 + $0x280] sm:$0xff] }
  0x16   :  { %4812 = vmatprep.subr.bf16.mxu0 %v4811_v5  ;;  %v46_v37 = vld [vmem:[%s9223_s1 + $0x78] sm:$0xff]  ;;  %v77_v38 = vld [vmem:[%s9223_s1 + $0x170] sm:$0xff]  ;;  %v4851_v39 = vpack.c.bf16 %v94_v30, %v93_v29  ;;  %v112_v42 = vld [vmem:[%s9223_s1 + $0x288] sm:$0xff] }
  0x17   :  { %4842 = vmatpush3.bf16.msra.mxu1 %v4841_v4  ;;  %v1093_v32 = vcombine.high %v1085_v27, %v1085_v27  ;;  %v1092_v33 = vrot.slane %v1078_v28, %v6029_v13  ;;  %v78_v40 = vld [vmem:[%s9223_s1 + $0x178] sm:$0xff]  ;;  %v143_v44 = vld [vmem:[%s9223_s1 + $0x380] sm:$0xff]  ;;  %v144_v45 = vld [vmem:[%s9223_s1 + $0x388] sm:$0xff]  ;;  %v4821_v46 = vpack.c.bf16 %v46_v37, %v45_v36  ;;  %v4855_v48 = vpack.c.bf16 %v112_v42, %v111_v41 }
  0x18   :  { %4844 = vmatprep.subr.bf16.mxu1 %v4843_v9  ;;  %v4853_v47 = vpack.c.bf16 %v78_v40, %v77_v38  ;;  %v95_v49 = vld [vmem:[%s9223_s1 + $0x200] sm:$0xff]  ;;  %v96_v50 = vld [vmem:[%s9223_s1 + $0x208] sm:$0xff]  ;;  %v4887_v52 = vpack.c.bf16 %v144_v45, %v143_v44  ;;  %v113_v54 = vld [vmem:[%s9223_s1 + $0x290] sm:$0xff] }
  0x19   :  { %4814 = vmatpush3.bf16.msra.mxu0 %v4813_v16  ;;  %1478 = vmatprep.mubr.f32.mxu0 %v1093_v32  ;;  %v1094_v43 = vcombine.high %v1092_v33, %v1092_v33  ;;  %v127_v51 = vld [vmem:[%s9223_s1 + $0x300] sm:$0xff]  ;;  %v128_v53 = vld [vmem:[%s9223_s1 + $0x308] sm:$0xff]  ;;  %v114_v55 = vld [vmem:[%s9223_s1 + $0x298] sm:$0xff]  ;;  %v4857_v58 = vpack.c.bf16 %v96_v50, %v95_v49 }
  0x1a   :  { %4816 = vmatprep.subr.bf16.mxu0 %v4815_v19  ;;  %v145_v56 = vld [vmem:[%s9223_s1 + $0x390] sm:$0xff]  ;;  %v146_v57 = vld [vmem:[%s9223_s1 + $0x398] sm:$0xff]  ;;  %v4889_v59 = vpack.c.bf16 %v128_v53, %v127_v51  ;;  %v4859_v60 = vpack.c.bf16 %v114_v55, %v113_v54  ;;  %v115_v2 = vld [vmem:[%s9223_s1 + $0x2a0] sm:$0xff] }
  0x1b   :  { %4846 = vmatpush3.bf16.msra.mxu1 %v4845_v18  ;;  %1548 = vmatprep.mubr.f32.mxu1 %v1094_v43  ;;  %v97_v61 = vld [vmem:[%s9223_s1 + $0x210] sm:$0xff]  ;;  %v98_v62 = vld [vmem:[%s9223_s1 + $0x218] sm:$0xff]  ;;  %v4891_v0 = vpack.c.bf16 %v146_v57, %v145_v56  ;;  %v116_v3 = vld [vmem:[%s9223_s1 + $0x2a8] sm:$0xff] }
  0x1c   :  { %4848 = vmatprep.subr.bf16.mxu1 %v4847_v23  ;;  %v129_v63 = vld [vmem:[%s9223_s1 + $0x310] sm:$0xff]  ;;  %v130_v1 = vld [vmem:[%s9223_s1 + $0x318] sm:$0xff]  ;;  %v147_v4 = vld [vmem:[%s9223_s1 + $0x3a0] sm:$0xff]  ;;  %v4861_v6 = vpack.c.bf16 %v98_v62, %v97_v61  ;;  %v4863_v8 = vpack.c.bf16 %v116_v3, %v115_v2 }
  0x1d   :  { %4818 = vmatpush3.bf16.msra.mxu0 %v4817_v31  ;;  %v148_v5 = vld [vmem:[%s9223_s1 + $0x3a8] sm:$0xff]  ;;  %v4893_v7 = vpack.c.bf16 %v130_v1, %v129_v63  ;;  %v99_v9 = vld [vmem:[%s9223_s1 + $0x220] sm:$0xff]  ;;  %v117_v15 = vld [vmem:[%s9223_s1 + $0x2b0] sm:$0xff] }
  0x1e   :  { %4820 = vmatprep.subr.bf16.mxu0 %v4819_v35  ;;  %v100_v10 = vld [vmem:[%s9223_s1 + $0x228] sm:$0xff]  ;;  %v131_v11 = vld [vmem:[%s9223_s1 + $0x320] sm:$0xff]  ;;  %v4895_v12 = vpack.c.bf16 %v148_v5, %v147_v4  ;;  %v118_v16 = vld [vmem:[%s9223_s1 + $0x2b8] sm:$0xff] }
  0x1f   :  { %4850 = vmatpush3.bf16.msra.mxu1 %v4849_v34  ;;  %v132_v14 = vld [vmem:[%s9223_s1 + $0x328] sm:$0xff]  ;;  %v149_v17 = vld [vmem:[%s9223_s1 + $0x3b0] sm:$0xff]  ;;  %v150_v18 = vld [vmem:[%s9223_s1 + $0x3b8] sm:$0xff]  ;;  %v4865_v19 = vpack.c.bf16 %v100_v10, %v99_v9  ;;  %v4867_v21 = vpack.c.bf16 %v118_v16, %v117_v15 }
  0x20   :  { %4852 = vmatprep.subr.bf16.mxu1 %v4851_v39  ;;  %v4897_v20 = vpack.c.bf16 %v132_v14, %v131_v11  ;;  %v101_v22 = vld [vmem:[%s9223_s1 + $0x230] sm:$0xff]  ;;  %v102_v23 = vld [vmem:[%s9223_s1 + $0x238] sm:$0xff]  ;;  %v4899_v25 = vpack.c.bf16 %v150_v18, %v149_v17  ;;  %v120_v28 = vld [vmem:[%s9223_s1 + $0x2c8] sm:$0xff] }
  0x21   :  { %4822 = vmatpush3.bf16.msra.mxu0 %v4821_v46  ;;  %v133_v24 = vld [vmem:[%s9223_s1 + $0x330] sm:$0xff]  ;;  %v134_v26 = vld [vmem:[%s9223_s1 + $0x338] sm:$0xff]  ;;  %v151_v29 = vld [vmem:[%s9223_s1 + $0x3c0] sm:$0xff]  ;;  %v4869_v32 = vpack.c.bf16 %v102_v23, %v101_v22 }
  0x22   :  { %4856 = vmatprep.subr.bf16.mxu0 %v4855_v48  ;;  %v152_v30 = vld [vmem:[%s9223_s1 + $0x3c8] sm:$0xff]  ;;  %v4901_v35 = vpack.c.bf16 %v134_v26, %v133_v24  ;;  %v103_v37 = vld [vmem:[%s9223_s1 + $0x240] sm:$0xff]  ;;  %v121_v42 = vld [vmem:[%s9223_s1 + $0x2d0] sm:$0xff] }
  0x23   :  { %4854 = vmatpush3.bf16.msra.mxu1 %v4853_v47  ;;  %v16_v31 = vld [vmem:[%s9222_s0 + $0x8] sm:$0xff]  ;;  %v135_v39 = vld [vmem:[%s9223_s1 + $0x340] sm:$0xff]  ;;  %v4903_v40 = vpack.c.bf16 %v152_v30, %v151_v29  ;;  %v122_v43 = vld [vmem:[%s9223_s1 + $0x2d8] sm:$0xff] }
  0x24   :  { %4888 = vmatprep.subr.bf16.mxu1 %v4887_v52  ;;  %1479 = vmatmul.mubr.f32.vlgmr.msra.gmra.mrb[0].mxu0 %v1085_v27  ;;  %v119_v27 = vld [vmem:[%s9223_s1 + $0x2c0] sm:$0xff]  ;;  %v1095_v34 = vcombine.high %v16_v31, %v16_v31  ;;  %v104_v38 = vld [vmem:[%s9223_s1 + $0x248] sm:$0xff]  ;;  %v153_v46 = vld [vmem:[%s9223_s1 + $0x3d0] sm:$0xff]  ;;  %v4875_v51 = vpack.c.bf16 %v122_v43, %v121_v42 }
  0x25   :  { %4858 = vmatpush3.bf16.msra.mxu0 %v4857_v58  ;;  %v4871_v36 = vpack.c.bf16 %v120_v28, %v119_v27  ;;  %v136_v41 = vld [vmem:[%s9223_s1 + $0x348] sm:$0xff]  ;;  %v154_v47 = vld [vmem:[%s9223_s1 + $0x3d8] sm:$0xff]  ;;  %v4873_v48 = vpack.c.bf16 %v104_v38, %v103_v37  ;;  %v105_v52 = vld [vmem:[%s9223_s1 + $0x250] sm:$0xff] }
  0x26   :  { %1549 = vmatmul.mubr.f32.vlgmr.msra.gmra.mrb[0].mxu1 %v1092_v33  ;;  %4860 = vmatprep.subr.bf16.mxu0 %v4859_v60  ;;  %v6190_v33 = vrot.slane %v16_v31, %v6029_v13  ;;  %v6213_v45 = vrot.slane %v1095_v34, %v6029_v13  ;;  %v4905_v50 = vpack.c.bf16 %v136_v41, %v135_v39  ;;  %v106_v53 = vld [vmem:[%s9223_s1 + $0x258] sm:$0xff]  ;;  %v137_v54 = vld [vmem:[%s9223_s1 + $0x350] sm:$0xff]  ;;  %v123_v57 = vld [vmem:[%s9223_s1 + $0x2e0] sm:$0xff] }
  0x27   :  { %4890 = vmatpush3.bf16.msra.mxu1 %v4889_v59  ;;  %v4907_v55 = vpack.c.bf16 %v154_v47, %v153_v46  ;;  %v138_v56 = vld [vmem:[%s9223_s1 + $0x358] sm:$0xff]  ;;  %v124_v58 = vld [vmem:[%s9223_s1 + $0x2e8] sm:$0xff]  ;;  %v155_v59 = vld [vmem:[%s9223_s1 + $0x3e0] sm:$0xff]  ;;  %v4877_v61 = vpack.c.bf16 %v106_v53, %v105_v52 }
  0x28   :  { %4892 = vmatprep.subr.bf16.mxu1 %v4891_v0  ;;  %v1110_v44 = vcombine.high %v6190_v33, %v6190_v33  ;;  %v1111_v49 = vcombine.high %v6213_v45, %v6213_v45  ;;  %v156_v60 = vld [vmem:[%s9223_s1 + $0x3e8] sm:$0xff]  ;;  %v4909_v62 = vpack.c.bf16 %v138_v56, %v137_v54  ;;  %v4879_v63 = vpack.c.bf16 %v124_v58, %v123_v57  ;;  %v107_v0 = vld [vmem:[%s9223_s1 + $0x260] sm:$0xff]  ;;  %v125_v5 = vld [vmem:[%s9223_s1 + $0x2f0] sm:$0xff] }
  0x29   :  { %4862 = vmatpush3.bf16.msra.mxu0 %v4861_v6  ;;  %v108_v1 = vld [vmem:[%s9223_s1 + $0x268] sm:$0xff]  ;;  %v139_v2 = vld [vmem:[%s9223_s1 + $0x360] sm:$0xff]  ;;  %v4911_v3 = vpack.c.bf16 %v156_v60, %v155_v59  ;;  %v126_v6 = vld [vmem:[%s9223_s1 + $0x2f8] sm:$0xff] }
  0x2a   :  { %4864 = vmatprep.subr.bf16.mxu0 %v4863_v8  ;;  %1618 = vmatprep.mubr.f32.mxu0 %v1110_v44  ;;  %v140_v4 = vld [vmem:[%s9223_s1 + $0x368] sm:$0xff]  ;;  %v158_v8 = vld [vmem:[%s9223_s1 + $0x3f8] sm:$0xff]  ;;  %v4881_v9 = vpack.c.bf16 %v108_v1, %v107_v0  ;;  %v4883_v11 = vpack.c.bf16 %v126_v6, %v125_v5  ;;  %v141_v15 = vld [vmem:[%s9223_s1 + $0x370] sm:$0xff] }
  0x2b   :  { %4894 = vmatpush3.bf16.msra.mxu1 %v4893_v7  ;;  %1688 = vmatprep.mubr.f32.mxu1 %v1111_v49  ;;  %v157_v7 = vld [vmem:[%s9223_s1 + $0x3f0] sm:$0xff]  ;;  %v4913_v10 = vpack.c.bf16 %v140_v4, %v139_v2  ;;  %v110_v14 = vld [vmem:[%s9223_s1 + $0x278] sm:$0xff]  ;;  %v175_v18 = vld [vmem:[%s9223_s1 + $0x480] sm:$0xff] }
  0x2c   :  { %4896 = vmatprep.subr.bf16.mxu1 %v4895_v12  ;;  %v109_v12 = vld [vmem:[%s9223_s1 + $0x270] sm:$0xff]  ;;  %v4915_v16 = vpack.c.bf16 %v158_v8, %v157_v7  ;;  %v142_v17 = vld [vmem:[%s9223_s1 + $0x378] sm:$0xff]  ;;  %v159_v23 = vld [vmem:[%s9223_s1 + $0x400] sm:$0xff] }
  0x2d   :  { %4866 = vmatpush3.bf16.msra.mxu0 %v4865_v19  ;;  %v176_v19 = vld [vmem:[%s9223_s1 + $0x488] sm:$0xff]  ;;  %v4885_v22 = vpack.c.bf16 %v110_v14, %v109_v12  ;;  %v4917_v24 = vpack.c.bf16 %v142_v17, %v141_v15  ;;  %v191_v27 = vld [vmem:[%s9223_s1 + $0x500] sm:$0xff]  ;;  %v177_v30 = vld [vmem:[%s9223_s1 + $0x490] sm:$0xff] }
  0x2e   :  { %4868 = vmatprep.subr.bf16.mxu0 %v4867_v21  ;;  %v208_v21 = vld [vmem:[%s9223_s1 + $0x588] sm:$0xff]  ;;  %v178_v31 = vld [vmem:[%s9223_s1 + $0x498] sm:$0xff]  ;;  %v17_v37 = vld [vmem:[%s9222_s0 + $0x10] sm:$0xff] }
  0x2f   :  { %4898 = vmatpush3.bf16.msra.mxu1 %v4897_v20  ;;  %v207_v20 = vld [vmem:[%s9223_s1 + $0x580] sm:$0xff]  ;;  %v160_v26 = vld [vmem:[%s9223_s1 + $0x408] sm:$0xff]  ;;  %v210_v34 = vld [vmem:[%s9223_s1 + $0x598] sm:$0xff]  ;;  %v4923_v38 = vpack.c.bf16 %v178_v31, %v177_v30  ;;  %v6332_v42 = vrot.slane %v17_v37, %v6029_v13  ;;  %v1112_v43 = vcombine.high %v17_v37, %v17_v37 }
  0x30   :  { %4900 = vmatprep.subr.bf16.mxu1 %v4899_v25  ;;  %v4919_v25 = vpack.c.bf16 %v176_v19, %v175_v18  ;;  %v192_v28 = vld [vmem:[%s9223_s1 + $0x508] sm:$0xff]  ;;  %v4951_v29 = vpack.c.bf16 %v208_v21, %v207_v20  ;;  %v161_v39 = vld [vmem:[%s9223_s1 + $0x410] sm:$0xff]  ;;  %v194_v46 = vld [vmem:[%s9223_s1 + $0x518] sm:$0xff] }
  0x31   :  { %4870 = vmatpush3.bf16.msra.mxu0 %v4869_v32  ;;  %v209_v32 = vld [vmem:[%s9223_s1 + $0x590] sm:$0xff]  ;;  %v179_v47 = vld [vmem:[%s9223_s1 + $0x4a0] sm:$0xff]  ;;  %v6353_v52 = vrot.slane %v1112_v43, %v6029_v13  ;;  %v164_v56 = vld [vmem:[%s9223_s1 + $0x428] sm:$0xff] }
  0x32   :  { %4872 = vmatprep.subr.bf16.mxu0 %v4871_v36  ;;  %v4953_v36 = vpack.c.bf16 %v192_v28, %v191_v27  ;;  %v193_v41 = vld [vmem:[%s9223_s1 + $0x510] sm:$0xff]  ;;  %v4955_v44 = vpack.c.bf16 %v210_v34, %v209_v32  ;;  %v211_v49 = vld [vmem:[%s9223_s1 + $0x5a0] sm:$0xff]  ;;  %v196_v59 = vld [vmem:[%s9223_s1 + $0x528] sm:$0xff] }
  0x33   :  { %4902 = vmatpush3.bf16.msra.mxu1 %v4901_v35  ;;  %v4921_v35 = vpack.c.bf16 %v160_v26, %v159_v23  ;;  %v195_v57 = vld [vmem:[%s9223_s1 + $0x520] sm:$0xff]  ;;  %v181_v60 = vld [vmem:[%s9223_s1 + $0x4b0] sm:$0xff]  ;;  %v166_v4 = vld [vmem:[%s9223_s1 + $0x438] sm:$0xff] }
  0x34   :  { %4904 = vmatprep.subr.bf16.mxu1 %v4903_v40  ;;  %v162_v40 = vld [vmem:[%s9223_s1 + $0x418] sm:$0xff]  ;;  %v4961_v1 = vpack.c.bf16 %v196_v59, %v195_v57  ;;  %v197_v5 = vld [vmem:[%s9223_s1 + $0x530] sm:$0xff]  ;;  %v183_v8 = vld [vmem:[%s9223_s1 + $0x4c0] sm:$0xff] }
  0x35   :  { %4874 = vmatpush3.bf16.msra.mxu0 %v4873_v48  ;;  %v180_v48 = vld [vmem:[%s9223_s1 + $0x4a8] sm:$0xff]  ;;  %v4925_v53 = vpack.c.bf16 %v162_v40, %v161_v39  ;;  %v198_v7 = vld [vmem:[%s9223_s1 + $0x538] sm:$0xff]  ;;  %v199_v18 = vld [vmem:[%s9223_s1 + $0x540] sm:$0xff] }
  0x36   :  { %4876 = vmatprep.subr.bf16.mxu0 %v4875_v51  ;;  %v1127_v51 = vcombine.high %v6332_v42, %v6332_v42  ;;  %v4927_v54 = vpack.c.bf16 %v180_v48, %v179_v47  ;;  %v4965_v14 = vpack.c.bf16 %v198_v7, %v197_v5  ;;  %v168_v17 = vld [vmem:[%s9223_s1 + $0x448] sm:$0xff]  ;;  %v185_v21 = vld [vmem:[%s9223_s1 + $0x4d0] sm:$0xff]  ;;  %v202_v32 = vld [vmem:[%s9223_s1 + $0x558] sm:$0xff] }
  0x37   :  { %4906 = vmatpush3.bf16.msra.mxu1 %v4905_v50  ;;  %v212_v50 = vld [vmem:[%s9223_s1 + $0x5a8] sm:$0xff]  ;;  %v217_v23 = vld [vmem:[%s9223_s1 + $0x5d0] sm:$0xff]  ;;  %v187_v34 = vld [vmem:[%s9223_s1 + $0x4e0] sm:$0xff] }
  0x38   :  { %4908 = vmatprep.subr.bf16.mxu1 %v4907_v55  ;;  %v163_v55 = vld [vmem:[%s9223_s1 + $0x420] sm:$0xff]  ;;  %v4959_v58 = vpack.c.bf16 %v212_v50, %v211_v49  ;;  %v200_v20 = vld [vmem:[%s9223_s1 + $0x548] sm:$0xff]  ;;  %v169_v28 = vld [vmem:[%s9223_s1 + $0x450] sm:$0xff] }
  0x39   :  { %4878 = vmatpush3.bf16.msra.mxu0 %v4877_v61  ;;  %v182_v61 = vld [vmem:[%s9223_s1 + $0x4b8] sm:$0xff]  ;;  %v4929_v0 = vpack.c.bf16 %v164_v56, %v163_v55  ;;  %v4969_v26 = vpack.c.bf16 %v200_v20, %v199_v18  ;;  %v201_v30 = vld [vmem:[%s9223_s1 + $0x550] sm:$0xff]  ;;  %v220_v37 = vld [vmem:[%s9223_s1 + $0x5e8] sm:$0xff] }
  0x3a   :  { %4880 = vmatprep.subr.bf16.mxu0 %v4879_v63  ;;  %v214_v63 = vld [vmem:[%s9223_s1 + $0x5b8] sm:$0xff]  ;;  %v4931_v2 = vpack.c.bf16 %v182_v61, %v181_v60  ;;  %v4973_v39 = vpack.c.bf16 %v202_v32, %v201_v30  ;;  %v172_v43 = vld [vmem:[%s9223_s1 + $0x468] sm:$0xff]  ;;  %v189_v48 = vld [vmem:[%s9223_s1 + $0x4f0] sm:$0xff] }
  0x3b   :  { %4910 = vmatpush3.bf16.msra.mxu1 %v4909_v62  ;;  %v213_v62 = vld [vmem:[%s9223_s1 + $0x5b0] sm:$0xff]  ;;  %v204_v47 = vld [vmem:[%s9223_s1 + $0x568] sm:$0xff]  ;;  %v190_v49 = vld [vmem:[%s9223_s1 + $0x4f8] sm:$0xff] }
  0x3c   :  { %4912 = vmatprep.subr.bf16.mxu1 %v4911_v3  ;;  %v165_v3 = vld [vmem:[%s9223_s1 + $0x430] sm:$0xff]  ;;  %v4963_v6 = vpack.c.bf16 %v214_v63, %v213_v62  ;;  %v4947_v55 = vpack.c.bf16 %v190_v49, %v189_v48  ;;  %v174_v57 = vld [vmem:[%s9223_s1 + $0x478] sm:$0xff]  ;;  %v239_v60 = vld [vmem:[%s9223_s1 + $0x680] sm:$0xff] }
  0x3d   :  { %4882 = vmatpush3.bf16.msra.mxu0 %v4881_v9  ;;  %v184_v9 = vld [vmem:[%s9223_s1 + $0x4c8] sm:$0xff]  ;;  %v4933_v12 = vpack.c.bf16 %v166_v4, %v165_v3  ;;  %v221_v50 = vld [vmem:[%s9223_s1 + $0x5f0] sm:$0xff]  ;;  %v206_v59 = vld [vmem:[%s9223_s1 + $0x578] sm:$0xff] }
  0x3e   :  { %4884 = vmatprep.subr.bf16.mxu0 %v4883_v11  ;;  %v216_v11 = vld [vmem:[%s9223_s1 + $0x5c8] sm:$0xff]  ;;  %v4935_v15 = vpack.c.bf16 %v184_v9, %v183_v8  ;;  %v173_v56 = vld [vmem:[%s9223_s1 + $0x470] sm:$0xff]  ;;  %v271_v62 = vld [vmem:[%s9223_s1 + $0x780] sm:$0xff] }
  0x3f   :  { %4914 = vmatpush3.bf16.msra.mxu1 %v4913_v10  ;;  %v215_v10 = vld [vmem:[%s9223_s1 + $0x5c0] sm:$0xff]  ;;  %v240_v61 = vld [vmem:[%s9223_s1 + $0x688] sm:$0xff]  ;;  %v241_v9 = vld [vmem:[%s9223_s1 + $0x690] sm:$0xff] }
  0x40   :  { %4916 = vmatprep.subr.bf16.mxu1 %v4915_v16  ;;  %v167_v16 = vld [vmem:[%s9223_s1 + $0x440] sm:$0xff]  ;;  %v4967_v19 = vpack.c.bf16 %v216_v11, %v215_v10  ;;  %v272_v63 = vld [vmem:[%s9223_s1 + $0x788] sm:$0xff]  ;;  %v4983_v3 = vpack.c.bf16 %v240_v61, %v239_v60  ;;  %v242_v10 = vld [vmem:[%s9223_s1 + $0x698] sm:$0xff] }
  0x41   :  { %4886 = vmatpush3.bf16.msra.mxu0 %v4885_v22  ;;  %v186_v22 = vld [vmem:[%s9223_s1 + $0x4d8] sm:$0xff]  ;;  %v223_v4 = vld [vmem:[%s9223_s1 + $0x600] sm:$0xff]  ;;  %v224_v5 = vld [vmem:[%s9223_s1 + $0x608] sm:$0xff]  ;;  %v5015_v7 = vpack.c.bf16 %v272_v63, %v271_v62  ;;  %v4987_v18 = vpack.c.bf16 %v242_v10, %v241_v9 }
  0x42   :  { %4920 = vmatprep.subr.bf16.mxu0 %v4919_v25  ;;  %v4937_v25 = vpack.c.bf16 %v168_v17, %v167_v16  ;;  %v4939_v27 = vpack.c.bf16 %v186_v22, %v185_v21  ;;  %v256_v8 = vld [vmem:[%s9223_s1 + $0x708] sm:$0xff]  ;;  %v4985_v16 = vpack.c.bf16 %v224_v5, %v223_v4  ;;  %v226_v20 = vld [vmem:[%s9223_s1 + $0x618] sm:$0xff]  ;;  %v257_v21 = vld [vmem:[%s9223_s1 + $0x710] sm:$0xff] }
  0x43   :  { %4918 = vmatpush3.bf16.msra.mxu1 %v4917_v24  ;;  %v218_v24 = vld [vmem:[%s9223_s1 + $0x5d8] sm:$0xff]  ;;  %v261_v48 = vld [vmem:[%s9223_s1 + $0x730] sm:$0xff]  ;;  %v264_v61 = vld [vmem:[%s9223_s1 + $0x748] sm:$0xff] }
  0x44   :  { %4952 = vmatprep.subr.bf16.mxu1 %v4951_v29  ;;  %1619 = vmatmul.mubr.f32.vlgmr.msra.gmra.mrb[2].mxu0 %v6190_v33  ;;  %v4957_v33 = vpack.c.bf16 %v194_v46, %v193_v41  ;;  %v170_v29 = vld [vmem:[%s9223_s1 + $0x458] sm:$0xff]  ;;  %v4971_v31 = vpack.c.bf16 %v218_v24, %v217_v23  ;;  %v171_v41 = vld [vmem:[%s9223_s1 + $0x460] sm:$0xff]  ;;  %v249_v62 = vld [vmem:[%s9223_s1 + $0x6d0] sm:$0xff] }
  0x45   :  { %4922 = vmatpush3.bf16.msra.mxu0 %v4921_v35  ;;  %1758 = vmatprep.mubr.f32.mxu0 %v1127_v51  ;;  %v188_v35 = vld [vmem:[%s9223_s1 + $0x4e8] sm:$0xff]  ;;  %v222_v51 = vld [vmem:[%s9223_s1 + $0x5f8] sm:$0xff]  ;;  %v243_v24 = vld [vmem:[%s9223_s1 + $0x6a0] sm:$0xff] }
  0x46   :  { %1689 = vmatmul.mubr.f32.vlgmr.msra.gmra.mrb[2].mxu1 %v6213_v45  ;;  %4924 = vmatprep.subr.bf16.mxu0 %v4923_v38  ;;  %v1128_v45 = vcombine.high %v6353_v52, %v6353_v52  ;;  %v4941_v38 = vpack.c.bf16 %v170_v29, %v169_v28  ;;  %v4943_v40 = vpack.c.bf16 %v188_v35, %v187_v34  ;;  %v258_v23 = vld [vmem:[%s9223_s1 + $0x718] sm:$0xff]  ;;  %v276_v28 = vld [vmem:[%s9223_s1 + $0x7a8] sm:$0xff]  ;;  %v259_v35 = vld [vmem:[%s9223_s1 + $0x720] sm:$0xff] }
  0x47   :  { %4954 = vmatpush3.bf16.msra.mxu1 %v4953_v36  ;;  %v219_v36 = vld [vmem:[%s9223_s1 + $0x5e0] sm:$0xff]  ;;  %v228_v34 = vld [vmem:[%s9223_s1 + $0x628] sm:$0xff]  ;;  %v250_v63 = vld [vmem:[%s9223_s1 + $0x6d8] sm:$0xff] }
  0x48   :  { %4956 = vmatprep.subr.bf16.mxu1 %v4955_v44  ;;  %1828 = vmatprep.mubr.f32.mxu1 %v1128_v45  ;;  %v203_v44 = vld [vmem:[%s9223_s1 + $0x560] sm:$0xff]  ;;  %v4975_v46 = vpack.c.bf16 %v220_v37, %v219_v36  ;;  %v205_v45 = vld [vmem:[%s9223_s1 + $0x570] sm:$0xff]  ;;  %v5003_v4 = vpack.c.bf16 %v250_v63, %v249_v62  ;;  %v266_v9 = vld [vmem:[%s9223_s1 + $0x758] sm:$0xff] }
  0x49   :  { %4926 = vmatpush3.bf16.msra.mxu0 %v4925_v53  ;;  %v4945_v53 = vpack.c.bf16 %v172_v43, %v171_v41  ;;  %v245_v37 = vld [vmem:[%s9223_s1 + $0x6b0] sm:$0xff]  ;;  %v251_v10 = vld [vmem:[%s9223_s1 + $0x6e0] sm:$0xff] }
  0x4a   :  { %4928 = vmatprep.subr.bf16.mxu0 %v4927_v54  ;;  %v4977_v54 = vpack.c.bf16 %v204_v47, %v203_v44  ;;  %v230_v47 = vld [vmem:[%s9223_s1 + $0x638] sm:$0xff]  ;;  %v233_v5 = vld [vmem:[%s9223_s1 + $0x650] sm:$0xff] }
  0x4b   :  { %4958 = vmatpush3.bf16.msra.mxu1 %v4957_v33  ;;  %v18_v33 = vld [vmem:[%s9222_s0 + $0x18] sm:$0xff]  ;;  %v321_v62 = vld [vmem:[%s9223_s1 + $0x910] sm:$0xff] }
  0x4c   :  { %4960 = vmatprep.subr.bf16.mxu1 %v4959_v58  ;;  %v4979_v58 = vpack.c.bf16 %v222_v51, %v221_v50  ;;  %v6524_v11 = vrot.slane %v18_v33, %v6029_v13  ;;  %v262_v50 = vld [vmem:[%s9223_s1 + $0x738] sm:$0xff]  ;;  %v247_v51 = vld [vmem:[%s9223_s1 + $0x6c0] sm:$0xff] }
  0x4d   :  { %4930 = vmatpush3.bf16.msra.mxu0 %v4929_v0  ;;  %v1129_v0 = vcombine.high %v18_v33, %v18_v33  ;;  %v279_v33 = vld [vmem:[%s9223_s1 + $0x7c0] sm:$0xff] }
  0x4e   :  { %4932 = vmatprep.subr.bf16.mxu0 %v4931_v2  ;;  %v4981_v2 = vpack.c.bf16 %v206_v59, %v205_v45  ;;  %v231_v45 = vld [vmem:[%s9223_s1 + $0x640] sm:$0xff] }
  0x4f   :  { %4962 = vmatpush3.bf16.msra.mxu1 %v4961_v1  ;;  %v4949_v1 = vpack.c.bf16 %v174_v57, %v173_v56  ;;  %v5029_v56 = vpack.c.bf16 %v262_v50, %v261_v48  ;;  %v263_v59 = vld [vmem:[%s9223_s1 + $0x740] sm:$0xff]  ;;  %v288_v48 = vld [vmem:[%s9223_s1 + $0x808] sm:$0xff] }
  0x50   :  { %4964 = vmatprep.subr.bf16.mxu1 %v4963_v6  ;;  %v255_v6 = vld [vmem:[%s9223_s1 + $0x700] sm:$0xff] }
  0x51   :  { %4934 = vmatpush3.bf16.msra.mxu0 %v4933_v12  ;;  %v273_v12 = vld [vmem:[%s9223_s1 + $0x790] sm:$0xff]  ;;  %v5017_v17 = vpack.c.bf16 %v256_v8, %v255_v6  ;;  %v234_v6 = vld [vmem:[%s9223_s1 + $0x658] sm:$0xff] }
  0x52   :  { %4936 = vmatprep.subr.bf16.mxu0 %v4935_v15  ;;  %v6533_v15 = vrot.slane %v1129_v0, %v6029_v13  ;;  %v281_v0 = vld [vmem:[%s9223_s1 + $0x7d0] sm:$0xff] }
  0x53   :  { %4966 = vmatpush3.bf16.msra.mxu1 %v4965_v14  ;;  %v274_v14 = vld [vmem:[%s9223_s1 + $0x798] sm:$0xff] }
  0x54   :  { %4968 = vmatprep.subr.bf16.mxu1 %v4967_v19  ;;  %v225_v19 = vld [vmem:[%s9223_s1 + $0x610] sm:$0xff]  ;;  %v5019_v22 = vpack.c.bf16 %v274_v14, %v273_v12  ;;  %v1145_v29 = vcombine.high %v6533_v15, %v6533_v15  ;;  %v252_v12 = vld [vmem:[%s9223_s1 + $0x6e8] sm:$0xff]  ;;  %v283_v14 = vld [vmem:[%s9223_s1 + $0x7e0] sm:$0xff] }
  0x55   :  { %4938 = vmatpush3.bf16.msra.mxu0 %v4937_v25  ;;  %v244_v25 = vld [vmem:[%s9223_s1 + $0x6a8] sm:$0xff]  ;;  %v4989_v30 = vpack.c.bf16 %v226_v20, %v225_v19  ;;  %v5007_v19 = vpack.c.bf16 %v252_v12, %v251_v10  ;;  %v235_v20 = vld [vmem:[%s9223_s1 + $0x660] sm:$0xff] }
  0x56   :  { %4940 = vmatprep.subr.bf16.mxu0 %v4939_v27  ;;  %v275_v27 = vld [vmem:[%s9223_s1 + $0x7a0] sm:$0xff]  ;;  %v4991_v32 = vpack.c.bf16 %v244_v25, %v243_v24  ;;  %v268_v24 = vld [vmem:[%s9223_s1 + $0x768] sm:$0xff]  ;;  %v253_v25 = vld [vmem:[%s9223_s1 + $0x6f0] sm:$0xff] }
  0x57   :  { %4970 = vmatpush3.bf16.msra.mxu1 %v4969_v26  ;;  %v1144_v26 = vcombine.high %v6524_v11, %v6524_v11  ;;  %v5023_v36 = vpack.c.bf16 %v276_v28, %v275_v27  ;;  %v285_v27 = vld [vmem:[%s9223_s1 + $0x7f0] sm:$0xff]  ;;  %v286_v28 = vld [vmem:[%s9223_s1 + $0x7f8] sm:$0xff]  ;;  %v292_v10 = vld [vmem:[%s9223_s1 + $0x828] sm:$0xff] }
  0x58   :  { %4972 = vmatprep.subr.bf16.mxu1 %v4971_v31  ;;  %v5021_v31 = vpack.c.bf16 %v258_v23, %v257_v21  ;;  %v236_v21 = vld [vmem:[%s9223_s1 + $0x668] sm:$0xff]  ;;  %v323_v12 = vld [vmem:[%s9223_s1 + $0x920] sm:$0xff] }
  0x59   :  { %4942 = vmatpush3.bf16.msra.mxu0 %v4941_v38  ;;  %v246_v38 = vld [vmem:[%s9223_s1 + $0x6b8] sm:$0xff] }
  0x5a   :  { %4944 = vmatprep.subr.bf16.mxu0 %v4943_v40  ;;  %v278_v40 = vld [vmem:[%s9223_s1 + $0x7b8] sm:$0xff]  ;;  %v4995_v44 = vpack.c.bf16 %v246_v38, %v245_v37  ;;  %v303_v37 = vld [vmem:[%s9223_s1 + $0x880] sm:$0xff]  ;;  %v304_v38 = vld [vmem:[%s9223_s1 + $0x888] sm:$0xff] }
  0x5b   :  { %4974 = vmatpush3.bf16.msra.mxu1 %v4973_v39  ;;  %v277_v39 = vld [vmem:[%s9223_s1 + $0x7b0] sm:$0xff] }
  0x5c   :  { %4976 = vmatprep.subr.bf16.mxu1 %v4975_v46  ;;  %v229_v46 = vld [vmem:[%s9223_s1 + $0x630] sm:$0xff]  ;;  %v5027_v49 = vpack.c.bf16 %v278_v40, %v277_v39  ;;  %v335_v39 = vld [vmem:[%s9223_s1 + $0x980] sm:$0xff]  ;;  %v336_v40 = vld [vmem:[%s9223_s1 + $0x988] sm:$0xff] }
  0x5d   :  { %4946 = vmatpush3.bf16.msra.mxu0 %v4945_v53  ;;  %v248_v53 = vld [vmem:[%s9223_s1 + $0x6c8] sm:$0xff]  ;;  %v5079_v50 = vpack.c.bf16 %v336_v40, %v335_v39  ;;  %v313_v39 = vld [vmem:[%s9223_s1 + $0x8d0] sm:$0xff]  ;;  %v314_v40 = vld [vmem:[%s9223_s1 + $0x8d8] sm:$0xff] }
  0x5e   :  { %4948 = vmatprep.subr.bf16.mxu0 %v4947_v55  ;;  %v4997_v55 = vpack.c.bf16 %v230_v47, %v229_v46  ;;  %v4999_v57 = vpack.c.bf16 %v248_v53, %v247_v51  ;;  %v5047_v46 = vpack.c.bf16 %v304_v38, %v303_v37  ;;  %v287_v47 = vld [vmem:[%s9223_s1 + $0x800] sm:$0xff]  ;;  %v320_v51 = vld [vmem:[%s9223_s1 + $0x908] sm:$0xff]  ;;  %v305_v53 = vld [vmem:[%s9223_s1 + $0x890] sm:$0xff] }
  0x5f   :  { %4978 = vmatpush3.bf16.msra.mxu1 %v4977_v54  ;;  %v280_v54 = vld [vmem:[%s9223_s1 + $0x7c8] sm:$0xff] }
  0x60   :  { %4980 = vmatprep.subr.bf16.mxu1 %v4979_v58  ;;  %v232_v58 = vld [vmem:[%s9223_s1 + $0x648] sm:$0xff]  ;;  %v5031_v60 = vpack.c.bf16 %v280_v54, %v279_v33  ;;  %v306_v33 = vld [vmem:[%s9223_s1 + $0x898] sm:$0xff] }
  0x61   :  { %4950 = vmatpush3.bf16.msra.mxu0 %v4949_v1  ;;  %v282_v1 = vld [vmem:[%s9223_s1 + $0x7d8] sm:$0xff]  ;;  %v328_v38 = vld [vmem:[%s9223_s1 + $0x948] sm:$0xff] }
  0x62   :  { %4984 = vmatprep.subr.bf16.mxu0 %v4983_v3  ;;  %v5033_v3 = vpack.c.bf16 %v264_v61, %v263_v59  ;;  %v5035_v8 = vpack.c.bf16 %v282_v1, %v281_v0  ;;  %v5051_v59 = vpack.c.bf16 %v306_v33, %v305_v53  ;;  %v290_v61 = vld [vmem:[%s9223_s1 + $0x818] sm:$0xff]  ;;  %v307_v1 = vld [vmem:[%s9223_s1 + $0x8a0] sm:$0xff] }
  0x63   :  { %4982 = vmatpush3.bf16.msra.mxu1 %v4981_v2  ;;  %v5001_v2 = vpack.c.bf16 %v232_v58, %v231_v45  ;;  %v5049_v45 = vpack.c.bf16 %v288_v48, %v287_v47  ;;  %v322_v0 = vld [vmem:[%s9223_s1 + $0x918] sm:$0xff]  ;;  %v5067_v47 = vpack.c.bf16 %v314_v40, %v313_v39  ;;  %v297_v48 = vld [vmem:[%s9223_s1 + $0x850] sm:$0xff]  ;;  %v315_v33 = vld [vmem:[%s9223_s1 + $0x8e0] sm:$0xff] }
  0x64   :  { %5016 = vmatprep.subr.bf16.mxu1 %v5015_v7  ;;  %1759 = vmatmul.mubr.f32.vlgmr.msra.gmra.mrb[4].mxu0 %v6332_v42  ;;  %v227_v42 = vld [vmem:[%s9223_s1 + $0x620] sm:$0xff]  ;;  %v265_v7 = vld [vmem:[%s9223_s1 + $0x750] sm:$0xff]  ;;  %v330_v53 = vld [vmem:[%s9223_s1 + $0x958] sm:$0xff] }
  0x65   :  { %4986 = vmatpush3.bf16.msra.mxu0 %v4985_v16  ;;  %1898 = vmatprep.mubr.f32.mxu0 %v1144_v26  ;;  %v4993_v41 = vpack.c.bf16 %v228_v34, %v227_v42  ;;  %v284_v16 = vld [vmem:[%s9223_s1 + $0x7e8] sm:$0xff]  ;;  %v254_v26 = vld [vmem:[%s9223_s1 + $0x6f8] sm:$0xff]  ;;  %v237_v42 = vld [vmem:[%s9223_s1 + $0x670] sm:$0xff] }
  0x66   :  { %1829 = vmatmul.mubr.f32.vlgmr.msra.gmra.mrb[4].mxu1 %v6353_v52  ;;  %4988 = vmatprep.subr.bf16.mxu0 %v4987_v18  ;;  %v260_v52 = vld [vmem:[%s9223_s1 + $0x728] sm:$0xff]  ;;  %v5037_v18 = vpack.c.bf16 %v266_v9, %v265_v7  ;;  %v5039_v23 = vpack.c.bf16 %v284_v16, %v283_v14  ;;  %v238_v34 = vld [vmem:[%s9223_s1 + $0x678] sm:$0xff]  ;;  %v309_v16 = vld [vmem:[%s9223_s1 + $0x8b0] sm:$0xff] }
  0x67   :  { %5018 = vmatpush3.bf16.msra.mxu1 %v5017_v17  ;;  %1968 = vmatprep.mubr.f32.mxu1 %v1145_v29  ;;  %v5025_v43 = vpack.c.bf16 %v260_v52, %v259_v35  ;;  %v5005_v17 = vpack.c.bf16 %v234_v6, %v233_v5  ;;  %v5009_v29 = vpack.c.bf16 %v236_v21, %v235_v20  ;;  %v269_v35 = vld [vmem:[%s9223_s1 + $0x770] sm:$0xff]  ;;  %v270_v52 = vld [vmem:[%s9223_s1 + $0x778] sm:$0xff]  ;;  %v340_v5 = vld [vmem:[%s9223_s1 + $0x9a8] sm:$0xff] }
  0x68   :  { %5020 = vmatprep.subr.bf16.mxu1 %v5019_v22  ;;  %v267_v22 = vld [vmem:[%s9223_s1 + $0x760] sm:$0xff]  ;;  %v385_v39 = vld [vmem:[%s9223_s1 + $0xb10] sm:$0xff] }
  0x69   :  { %4990 = vmatpush3.bf16.msra.mxu0 %v4989_v30  ;;  %v19_v30 = vld [vmem:[%s9222_s0 + $0x20] sm:$0xff] }
  0x6a   :  { %4992 = vmatprep.subr.bf16.mxu0 %v4991_v32  ;;  %v5011_v32 = vpack.c.bf16 %v254_v26, %v253_v25  ;;  %v6731_v54 = vrot.slane %v19_v30, %v6029_v13  ;;  %v325_v25 = vld [vmem:[%s9223_s1 + $0x930] sm:$0xff] }
  0x6b   :  { %5022 = vmatpush3.bf16.msra.mxu1 %v5021_v31  ;;  %v5041_v31 = vpack.c.bf16 %v268_v24, %v267_v22  ;;  %v294_v24 = vld [vmem:[%s9223_s1 + $0x838] sm:$0xff] }
  0x6c   :  { %5024 = vmatprep.subr.bf16.mxu1 %v5023_v36  ;;  %v5043_v36 = vpack.c.bf16 %v286_v28, %v285_v27  ;;  %v326_v27 = vld [vmem:[%s9223_s1 + $0x938] sm:$0xff]  ;;  %v311_v28 = vld [vmem:[%s9223_s1 + $0x8c0] sm:$0xff] }
  0x6d   :  { %4994 = vmatpush3.bf16.msra.mxu0 %v4993_v41  ;;  %v1146_v41 = vcombine.high %v19_v30, %v19_v30  ;;  %v343_v30 = vld [vmem:[%s9223_s1 + $0x9c0] sm:$0xff] }
  0x6e   :  { %4996 = vmatprep.subr.bf16.mxu0 %v4995_v44  ;;  %v5045_v44 = vpack.c.bf16 %v270_v52, %v269_v35  ;;  %v295_v35 = vld [vmem:[%s9223_s1 + $0x840] sm:$0xff] }
  0x6f   :  { %5026 = vmatpush3.bf16.msra.mxu1 %v5025_v43  ;;  %v5013_v43 = vpack.c.bf16 %v238_v34, %v237_v42  ;;  %v5093_v42 = vpack.c.bf16 %v326_v27, %v325_v25  ;;  %v327_v52 = vld [vmem:[%s9223_s1 + $0x940] sm:$0xff]  ;;  %v352_v25 = vld [vmem:[%s9223_s1 + $0xa08] sm:$0xff] }
  0x70   :  { %5028 = vmatprep.subr.bf16.mxu1 %v5027_v49  ;;  %v319_v49 = vld [vmem:[%s9223_s1 + $0x900] sm:$0xff] }
  0x71   :  { %4998 = vmatpush3.bf16.msra.mxu0 %v4997_v55  ;;  %v337_v55 = vld [vmem:[%s9223_s1 + $0x990] sm:$0xff]  ;;  %v5081_v58 = vpack.c.bf16 %v320_v51, %v319_v49  ;;  %v298_v49 = vld [vmem:[%s9223_s1 + $0x858] sm:$0xff] }
  0x72   :  { %5000 = vmatprep.subr.bf16.mxu0 %v4999_v57  ;;  %v6740_v57 = vrot.slane %v1146_v41, %v6029_v13  ;;  %v345_v41 = vld [vmem:[%s9223_s1 + $0x9d0] sm:$0xff] }
  0x73   :  { %5030 = vmatpush3.bf16.msra.mxu1 %v5029_v56  ;;  %v338_v56 = vld [vmem:[%s9223_s1 + $0x998] sm:$0xff] }
  0x74   :  { %5032 = vmatprep.subr.bf16.mxu1 %v5031_v60  ;;  %v289_v60 = vld [vmem:[%s9223_s1 + $0x810] sm:$0xff]  ;;  %v5083_v63 = vpack.c.bf16 %v338_v56, %v337_v55  ;;  %v1162_v6 = vcombine.high %v6740_v57, %v6740_v57  ;;  %v316_v55 = vld [vmem:[%s9223_s1 + $0x8e8] sm:$0xff]  ;;  %v347_v56 = vld [vmem:[%s9223_s1 + $0x9e0] sm:$0xff] }
  0x75   :  { %5002 = vmatpush3.bf16.msra.mxu0 %v5001_v2  ;;  %v308_v2 = vld [vmem:[%s9223_s1 + $0x8a8] sm:$0xff]  ;;  %v5053_v7 = vpack.c.bf16 %v290_v61, %v289_v60  ;;  %v5071_v60 = vpack.c.bf16 %v316_v55, %v315_v33  ;;  %v299_v61 = vld [vmem:[%s9223_s1 + $0x860] sm:$0xff] }
  0x76   :  { %5004 = vmatprep.subr.bf16.mxu0 %v5003_v4  ;;  %v339_v4 = vld [vmem:[%s9223_s1 + $0x9a0] sm:$0xff]  ;;  %v5055_v9 = vpack.c.bf16 %v308_v2, %v307_v1  ;;  %v332_v1 = vld [vmem:[%s9223_s1 + $0x968] sm:$0xff]  ;;  %v317_v2 = vld [vmem:[%s9223_s1 + $0x8f0] sm:$0xff] }
  0x77   :  { %5034 = vmatpush3.bf16.msra.mxu1 %v5033_v3  ;;  %v1161_v3 = vcombine.high %v6731_v54, %v6731_v54  ;;  %v5087_v14 = vpack.c.bf16 %v340_v5, %v339_v4  ;;  %v349_v4 = vld [vmem:[%s9223_s1 + $0x9f0] sm:$0xff]  ;;  %v350_v5 = vld [vmem:[%s9223_s1 + $0x9f8] sm:$0xff]  ;;  %v356_v33 = vld [vmem:[%s9223_s1 + $0xa28] sm:$0xff] }
  0x78   :  { %5036 = vmatprep.subr.bf16.mxu1 %v5035_v8  ;;  %v5085_v8 = vpack.c.bf16 %v322_v0, %v321_v62  ;;  %v300_v62 = vld [vmem:[%s9223_s1 + $0x868] sm:$0xff]  ;;  %v387_v55 = vld [vmem:[%s9223_s1 + $0xb20] sm:$0xff] }
  0x79   :  { %5006 = vmatpush3.bf16.msra.mxu0 %v5005_v17  ;;  %v310_v17 = vld [vmem:[%s9223_s1 + $0x8b8] sm:$0xff] }
  0x7a   :  { %5008 = vmatprep.subr.bf16.mxu0 %v5007_v19  ;;  %v342_v19 = vld [vmem:[%s9223_s1 + $0x9b8] sm:$0xff]  ;;  %v5059_v22 = vpack.c.bf16 %v310_v17, %v309_v16  ;;  %v367_v16 = vld [vmem:[%s9223_s1 + $0xa80] sm:$0xff]  ;;  %v368_v17 = vld [vmem:[%s9223_s1 + $0xa88] sm:$0xff] }
  0x7b   :  { %5038 = vmatpush3.bf16.msra.mxu1 %v5037_v18  ;;  %v341_v18 = vld [vmem:[%s9223_s1 + $0x9b0] sm:$0xff] }
  0x7c   :  { %5040 = vmatprep.subr.bf16.mxu1 %v5039_v23  ;;  %v293_v23 = vld [vmem:[%s9223_s1 + $0x830] sm:$0xff]  ;;  %v5091_v26 = vpack.c.bf16 %v342_v19, %v341_v18  ;;  %v399_v18 = vld [vmem:[%s9223_s1 + $0xb80] sm:$0xff]  ;;  %v400_v19 = vld [vmem:[%s9223_s1 + $0xb88] sm:$0xff] }
  0x7d   :  { %5010 = vmatpush3.bf16.msra.mxu0 %v5009_v29  ;;  %v312_v29 = vld [vmem:[%s9223_s1 + $0x8c8] sm:$0xff]  ;;  %v5143_v27 = vpack.c.bf16 %v400_v19, %v399_v18  ;;  %v377_v18 = vld [vmem:[%s9223_s1 + $0xad0] sm:$0xff]  ;;  %v378_v19 = vld [vmem:[%s9223_s1 + $0xad8] sm:$0xff] }
  0x7e   :  { %5012 = vmatprep.subr.bf16.mxu0 %v5011_v32  ;;  %v5061_v32 = vpack.c.bf16 %v294_v24, %v293_v23  ;;  %v5063_v34 = vpack.c.bf16 %v312_v29, %v311_v28  ;;  %v5111_v23 = vpack.c.bf16 %v368_v17, %v367_v16  ;;  %v351_v24 = vld [vmem:[%s9223_s1 + $0xa00] sm:$0xff]  ;;  %v384_v28 = vld [vmem:[%s9223_s1 + $0xb08] sm:$0xff]  ;;  %v369_v29 = vld [vmem:[%s9223_s1 + $0xa90] sm:$0xff] }
  0x7f   :  { %5042 = vmatpush3.bf16.msra.mxu1 %v5041_v31  ;;  %v344_v31 = vld [vmem:[%s9223_s1 + $0x9c8] sm:$0xff] }
  0x80   :  { %5044 = vmatprep.subr.bf16.mxu1 %v5043_v36  ;;  %v296_v36 = vld [vmem:[%s9223_s1 + $0x848] sm:$0xff]  ;;  %v5095_v37 = vpack.c.bf16 %v344_v31, %v343_v30  ;;  %v370_v30 = vld [vmem:[%s9223_s1 + $0xa98] sm:$0xff] }
  0x81   :  { %5014 = vmatpush3.bf16.msra.mxu0 %v5013_v43  ;;  %v346_v43 = vld [vmem:[%s9223_s1 + $0x9d8] sm:$0xff]  ;;  %v392_v17 = vld [vmem:[%s9223_s1 + $0xb48] sm:$0xff] }
  0x82   :  { %5048 = vmatprep.subr.bf16.mxu0 %v5047_v46  ;;  %v5097_v46 = vpack.c.bf16 %v328_v38, %v327_v52  ;;  %v5099_v51 = vpack.c.bf16 %v346_v43, %v345_v41  ;;  %v5115_v52 = vpack.c.bf16 %v370_v30, %v369_v29  ;;  %v354_v38 = vld [vmem:[%s9223_s1 + $0xa18] sm:$0xff]  ;;  %v371_v43 = vld [vmem:[%s9223_s1 + $0xaa0] sm:$0xff] }
  0x83   :  { %5046 = vmatpush3.bf16.msra.mxu1 %v5045_v44  ;;  %v5065_v44 = vpack.c.bf16 %v296_v36, %v295_v35  ;;  %v5113_v35 = vpack.c.bf16 %v352_v25, %v351_v24  ;;  %v386_v41 = vld [vmem:[%s9223_s1 + $0xb18] sm:$0xff]  ;;  %v5131_v24 = vpack.c.bf16 %v378_v19, %v377_v18  ;;  %v361_v25 = vld [vmem:[%s9223_s1 + $0xa50] sm:$0xff]  ;;  %v379_v30 = vld [vmem:[%s9223_s1 + $0xae0] sm:$0xff] }
  0x84   :  { %5080 = vmatprep.subr.bf16.mxu1 %v5079_v50  ;;  %1899 = vmatmul.mubr.f32.vlgmr.msra.gmra.mrb[6].mxu0 %v6524_v11  ;;  %v291_v11 = vld [vmem:[%s9223_s1 + $0x820] sm:$0xff]  ;;  %v329_v50 = vld [vmem:[%s9223_s1 + $0x950] sm:$0xff]  ;;  %v394_v29 = vld [vmem:[%s9223_s1 + $0xb58] sm:$0xff] }
  0x85   :  { %5050 = vmatpush3.bf16.msra.mxu0 %v5049_v45  ;;  %2038 = vmatprep.mubr.f32.mxu0 %v1161_v3  ;;  %v5057_v20 = vpack.c.bf16 %v292_v10, %v291_v11  ;;  %v348_v45 = vld [vmem:[%s9223_s1 + $0x9e8] sm:$0xff]  ;;  %v318_v3 = vld [vmem:[%s9223_s1 + $0x8f8] sm:$0xff]  ;;  %v301_v11 = vld [vmem:[%s9223_s1 + $0x870] sm:$0xff] }
  0x86   :  { %1969 = vmatmul.mubr.f32.vlgmr.msra.gmra.mrb[6].mxu1 %v6533_v15  ;;  %5052 = vmatprep.subr.bf16.mxu0 %v5051_v59  ;;  %v324_v15 = vld [vmem:[%s9223_s1 + $0x928] sm:$0xff]  ;;  %v5101_v59 = vpack.c.bf16 %v330_v53, %v329_v50  ;;  %v5103_v0 = vpack.c.bf16 %v348_v45, %v347_v56  ;;  %v302_v10 = vld [vmem:[%s9223_s1 + $0x878] sm:$0xff]  ;;  %v373_v45 = vld [vmem:[%s9223_s1 + $0xab0] sm:$0xff] }
  0x87   :  { %5082 = vmatpush3.bf16.msra.mxu1 %v5081_v58  ;;  %2108 = vmatprep.mubr.f32.mxu1 %v1162_v6  ;;  %v5089_v21 = vpack.c.bf16 %v324_v15, %v323_v12  ;;  %v5069_v58 = vpack.c.bf16 %v298_v49, %v297_v48  ;;  %v5073_v6 = vpack.c.bf16 %v300_v62, %v299_v61  ;;  %v333_v12 = vld [vmem:[%s9223_s1 + $0x970] sm:$0xff]  ;;  %v334_v15 = vld [vmem:[%s9223_s1 + $0x978] sm:$0xff]  ;;  %v404_v48 = vld [vmem:[%s9223_s1 + $0xba8] sm:$0xff] }
  0x88   :  { %5084 = vmatprep.subr.bf16.mxu1 %v5083_v63  ;;  %v331_v63 = vld [vmem:[%s9223_s1 + $0x960] sm:$0xff]  ;;  %v449_v18 = vld [vmem:[%s9223_s1 + $0xd10] sm:$0xff] }
  0x89   :  { %5054 = vmatpush3.bf16.msra.mxu0 %v5053_v7  ;;  %v20_v7 = vld [vmem:[%s9222_s0 + $0x28] sm:$0xff] }
  0x8a   :  { %5056 = vmatprep.subr.bf16.mxu0 %v5055_v9  ;;  %v5075_v9 = vpack.c.bf16 %v318_v3, %v317_v2  ;;  %v6938_v31 = vrot.slane %v20_v7, %v6029_v13  ;;  %v389_v2 = vld [vmem:[%s9223_s1 + $0xb30] sm:$0xff] }
  0x8b   :  { %5086 = vmatpush3.bf16.msra.mxu1 %v5085_v8  ;;  %v5105_v8 = vpack.c.bf16 %v332_v1, %v331_v63  ;;  %v358_v1 = vld [vmem:[%s9223_s1 + $0xa38] sm:$0xff] }
  0x8c   :  { %5088 = vmatprep.subr.bf16.mxu1 %v5087_v14  ;;  %v5107_v14 = vpack.c.bf16 %v350_v5, %v349_v4  ;;  %v390_v4 = vld [vmem:[%s9223_s1 + $0xb38] sm:$0xff]  ;;  %v375_v5 = vld [vmem:[%s9223_s1 + $0xac0] sm:$0xff] }
  0x8d   :  { %5058 = vmatpush3.bf16.msra.mxu0 %v5057_v20  ;;  %v1163_v20 = vcombine.high %v20_v7, %v20_v7  ;;  %v407_v7 = vld [vmem:[%s9223_s1 + $0xbc0] sm:$0xff] }
  0x8e   :  { %5060 = vmatprep.subr.bf16.mxu0 %v5059_v22  ;;  %v5109_v22 = vpack.c.bf16 %v334_v15, %v333_v12  ;;  %v359_v12 = vld [vmem:[%s9223_s1 + $0xa40] sm:$0xff] }
  0x8f   :  { %5090 = vmatpush3.bf16.msra.mxu1 %v5089_v21  ;;  %v5077_v21 = vpack.c.bf16 %v302_v10, %v301_v11  ;;  %v5157_v11 = vpack.c.bf16 %v390_v4, %v389_v2  ;;  %v391_v15 = vld [vmem:[%s9223_s1 + $0xb40] sm:$0xff]  ;;  %v416_v2 = vld [vmem:[%s9223_s1 + $0xc08] sm:$0xff] }
  0x90   :  { %5092 = vmatprep.subr.bf16.mxu1 %v5091_v26  ;;  %v383_v26 = vld [vmem:[%s9223_s1 + $0xb00] sm:$0xff] }
  0x91   :  { %5062 = vmatpush3.bf16.msra.mxu0 %v5061_v32  ;;  %v401_v32 = vld [vmem:[%s9223_s1 + $0xb90] sm:$0xff]  ;;  %v5145_v36 = vpack.c.bf16 %v384_v28, %v383_v26  ;;  %v362_v26 = vld [vmem:[%s9223_s1 + $0xa58] sm:$0xff] }
  0x92   :  { %5064 = vmatprep.subr.bf16.mxu0 %v5063_v34  ;;  %v6947_v34 = vrot.slane %v1163_v20, %v6029_v13  ;;  %v409_v20 = vld [vmem:[%s9223_s1 + $0xbd0] sm:$0xff] }
  0x93   :  { %5094 = vmatpush3.bf16.msra.mxu1 %v5093_v42  ;;  %v402_v42 = vld [vmem:[%s9223_s1 + $0xb98] sm:$0xff] }
  0x94   :  { %5096 = vmatprep.subr.bf16.mxu1 %v5095_v37  ;;  %v353_v37 = vld [vmem:[%s9223_s1 + $0xa10] sm:$0xff]  ;;  %v5147_v40 = vpack.c.bf16 %v402_v42, %v401_v32  ;;  %v1179_v49 = vcombine.high %v6947_v34, %v6947_v34  ;;  %v380_v32 = vld [vmem:[%s9223_s1 + $0xae8] sm:$0xff]  ;;  %v411_v42 = vld [vmem:[%s9223_s1 + $0xbe0] sm:$0xff] }
  0x95   :  { %5066 = vmatpush3.bf16.msra.mxu0 %v5065_v44  ;;  %v372_v44 = vld [vmem:[%s9223_s1 + $0xaa8] sm:$0xff]  ;;  %v5117_v50 = vpack.c.bf16 %v354_v38, %v353_v37  ;;  %v5135_v37 = vpack.c.bf16 %v380_v32, %v379_v30  ;;  %v363_v38 = vld [vmem:[%s9223_s1 + $0xa60] sm:$0xff] }
  0x96   :  { %5068 = vmatprep.subr.bf16.mxu0 %v5067_v47  ;;  %v403_v47 = vld [vmem:[%s9223_s1 + $0xba0] sm:$0xff]  ;;  %v5119_v53 = vpack.c.bf16 %v372_v44, %v371_v43  ;;  %v396_v43 = vld [vmem:[%s9223_s1 + $0xb68] sm:$0xff]  ;;  %v381_v44 = vld [vmem:[%s9223_s1 + $0xaf0] sm:$0xff] }
  0x97   :  { %5098 = vmatpush3.bf16.msra.mxu1 %v5097_v46  ;;  %v1178_v46 = vcombine.high %v6938_v31, %v6938_v31  ;;  %v5151_v56 = vpack.c.bf16 %v404_v48, %v403_v47  ;;  %v413_v47 = vld [vmem:[%s9223_s1 + $0xbf0] sm:$0xff]  ;;  %v414_v48 = vld [vmem:[%s9223_s1 + $0xbf8] sm:$0xff]  ;;  %v420_v30 = vld [vmem:[%s9223_s1 + $0xc28] sm:$0xff] }
  0x98   :  { %5100 = vmatprep.subr.bf16.mxu1 %v5099_v51  ;;  %v5149_v51 = vpack.c.bf16 %v386_v41, %v385_v39  ;;  %v364_v39 = vld [vmem:[%s9223_s1 + $0xa68] sm:$0xff]  ;;  %v451_v32 = vld [vmem:[%s9223_s1 + $0xd20] sm:$0xff] }
  0x99   :  { %5070 = vmatpush3.bf16.msra.mxu0 %v5069_v58  ;;  %v374_v58 = vld [vmem:[%s9223_s1 + $0xab8] sm:$0xff] }
  0x9a   :  { %5072 = vmatprep.subr.bf16.mxu0 %v5071_v60  ;;  %v406_v60 = vld [vmem:[%s9223_s1 + $0xbb8] sm:$0xff]  ;;  %v5123_v63 = vpack.c.bf16 %v374_v58, %v373_v45  ;;  %v431_v45 = vld [vmem:[%s9223_s1 + $0xc80] sm:$0xff]  ;;  %v432_v58 = vld [vmem:[%s9223_s1 + $0xc88] sm:$0xff] }
  0x9b   :  { %5102 = vmatpush3.bf16.msra.mxu1 %v5101_v59  ;;  %v405_v59 = vld [vmem:[%s9223_s1 + $0xbb0] sm:$0xff] }
  0x9c   :  { %5104 = vmatprep.subr.bf16.mxu1 %v5103_v0  ;;  %v357_v0 = vld [vmem:[%s9223_s1 + $0xa30] sm:$0xff]  ;;  %v5155_v3 = vpack.c.bf16 %v406_v60, %v405_v59  ;;  %v463_v59 = vld [vmem:[%s9223_s1 + $0xd80] sm:$0xff]  ;;  %v464_v60 = vld [vmem:[%s9223_s1 + $0xd88] sm:$0xff] }
  0x9d   :  { %5074 = vmatpush3.bf16.msra.mxu0 %v5073_v6  ;;  %v376_v6 = vld [vmem:[%s9223_s1 + $0xac8] sm:$0xff]  ;;  %v5207_v4 = vpack.c.bf16 %v464_v60, %v463_v59  ;;  %v441_v59 = vld [vmem:[%s9223_s1 + $0xcd0] sm:$0xff]  ;;  %v442_v60 = vld [vmem:[%s9223_s1 + $0xcd8] sm:$0xff] }
  0x9e   :  { %5076 = vmatprep.subr.bf16.mxu0 %v5075_v9  ;;  %v5125_v9 = vpack.c.bf16 %v358_v1, %v357_v0  ;;  %v5127_v10 = vpack.c.bf16 %v376_v6, %v375_v5  ;;  %v5175_v0 = vpack.c.bf16 %v432_v58, %v431_v45  ;;  %v415_v1 = vld [vmem:[%s9223_s1 + $0xc00] sm:$0xff]  ;;  %v448_v5 = vld [vmem:[%s9223_s1 + $0xd08] sm:$0xff]  ;;  %v433_v6 = vld [vmem:[%s9223_s1 + $0xc90] sm:$0xff] }
  0x9f   :  { %5106 = vmatpush3.bf16.msra.mxu1 %v5105_v8  ;;  %v408_v8 = vld [vmem:[%s9223_s1 + $0xbc8] sm:$0xff] }
  0xa0   :  { %5108 = vmatprep.subr.bf16.mxu1 %v5107_v14  ;;  %v360_v14 = vld [vmem:[%s9223_s1 + $0xa48] sm:$0xff]  ;;  %v5159_v16 = vpack.c.bf16 %v408_v8, %v407_v7  ;;  %v434_v7 = vld [vmem:[%s9223_s1 + $0xc98] sm:$0xff] }
  0xa1   :  { %5078 = vmatpush3.bf16.msra.mxu0 %v5077_v21  ;;  %v410_v21 = vld [vmem:[%s9223_s1 + $0xbd8] sm:$0xff]  ;;  %v456_v58 = vld [vmem:[%s9223_s1 + $0xd48] sm:$0xff] }
  0xa2   :  { %5112 = vmatprep.subr.bf16.mxu0 %v5111_v23  ;;  %v5161_v23 = vpack.c.bf16 %v392_v17, %v391_v15  ;;  %v5163_v28 = vpack.c.bf16 %v410_v21, %v409_v20  ;;  %v5179_v15 = vpack.c.bf16 %v434_v7, %v433_v6  ;;  %v418_v17 = vld [vmem:[%s9223_s1 + $0xc18] sm:$0xff]  ;;  %v435_v21 = vld [vmem:[%s9223_s1 + $0xca0] sm:$0xff] }
  0xa3   :  { %5110 = vmatpush3.bf16.msra.mxu1 %v5109_v22  ;;  %v5129_v22 = vpack.c.bf16 %v360_v14, %v359_v12  ;;  %v5177_v12 = vpack.c.bf16 %v416_v2, %v415_v1  ;;  %v450_v20 = vld [vmem:[%s9223_s1 + $0xd18] sm:$0xff]  ;;  %v5195_v1 = vpack.c.bf16 %v442_v60, %v441_v59  ;;  %v425_v2 = vld [vmem:[%s9223_s1 + $0xc50] sm:$0xff]  ;;  %v443_v7 = vld [vmem:[%s9223_s1 + $0xce0] sm:$0xff] }
  0xa4   :  { %5144 = vmatprep.subr.bf16.mxu1 %v5143_v27  ;;  %2039 = vmatmul.mubr.f32.vlgmr.msra.gmra.mrb[8].mxu0 %v6731_v54  ;;  %v355_v54 = vld [vmem:[%s9223_s1 + $0xa20] sm:$0xff]  ;;  %v393_v27 = vld [vmem:[%s9223_s1 + $0xb50] sm:$0xff]  ;;  %v458_v6 = vld [vmem:[%s9223_s1 + $0xd58] sm:$0xff] }
  0xa5   :  { %5114 = vmatpush3.bf16.msra.mxu0 %v5113_v35  ;;  %2178 = vmatprep.mubr.f32.mxu0 %v1178_v46  ;;  %v5121_v61 = vpack.c.bf16 %v356_v33, %v355_v54  ;;  %v412_v35 = vld [vmem:[%s9223_s1 + $0xbe8] sm:$0xff]  ;;  %v382_v46 = vld [vmem:[%s9223_s1 + $0xaf8] sm:$0xff]  ;;  %v365_v54 = vld [vmem:[%s9223_s1 + $0xa70] sm:$0xff] }
  0xa6   :  { %2109 = vmatmul.mubr.f32.vlgmr.msra.gmra.mrb[8].mxu1 %v6740_v57  ;;  %5116 = vmatprep.subr.bf16.mxu0 %v5115_v52  ;;  %v388_v57 = vld [vmem:[%s9223_s1 + $0xb28] sm:$0xff]  ;;  %v5165_v52 = vpack.c.bf16 %v394_v29, %v393_v27  ;;  %v5167_v41 = vpack.c.bf16 %v412_v35, %v411_v42  ;;  %v366_v33 = vld [vmem:[%s9223_s1 + $0xa78] sm:$0xff]  ;;  %v437_v35 = vld [vmem:[%s9223_s1 + $0xcb0] sm:$0xff] }
  0xa7   :  { %5146 = vmatpush3.bf16.msra.mxu1 %v5145_v36  ;;  %2248 = vmatprep.mubr.f32.mxu1 %v1179_v49  ;;  %v5153_v62 = vpack.c.bf16 %v388_v57, %v387_v55  ;;  %v5133_v36 = vpack.c.bf16 %v362_v26, %v361_v25  ;;  %v5137_v49 = vpack.c.bf16 %v364_v39, %v363_v38  ;;  %v397_v55 = vld [vmem:[%s9223_s1 + $0xb70] sm:$0xff]  ;;  %v398_v57 = vld [vmem:[%s9223_s1 + $0xb78] sm:$0xff]  ;;  %v468_v25 = vld [vmem:[%s9223_s1 + $0xda8] sm:$0xff] }
  0xa8   :  { %5148 = vmatprep.subr.bf16.mxu1 %v5147_v40  ;;  %v395_v40 = vld [vmem:[%s9223_s1 + $0xb60] sm:$0xff]  ;;  %v513_v59 = vld [vmem:[%s9223_s1 + $0xf10] sm:$0xff] }
  0xa9   :  { %5118 = vmatpush3.bf16.msra.mxu0 %v5117_v50  ;;  %v21_v50 = vld [vmem:[%s9222_s0 + $0x30] sm:$0xff] }
  0xaa   :  { %5120 = vmatprep.subr.bf16.mxu0 %v5119_v53  ;;  %v5139_v53 = vpack.c.bf16 %v382_v46, %v381_v44  ;;  %v7145_v8 = vrot.slane %v21_v50, %v6029_v13  ;;  %v453_v44 = vld [vmem:[%s9223_s1 + $0xd30] sm:$0xff] }
  0xab   :  { %5150 = vmatpush3.bf16.msra.mxu1 %v5149_v51  ;;  %v5169_v51 = vpack.c.bf16 %v396_v43, %v395_v40  ;;  %v422_v43 = vld [vmem:[%s9223_s1 + $0xc38] sm:$0xff] }
  0xac   :  { %5152 = vmatprep.subr.bf16.mxu1 %v5151_v56  ;;  %v5171_v56 = vpack.c.bf16 %v414_v48, %v413_v47  ;;  %v454_v47 = vld [vmem:[%s9223_s1 + $0xd38] sm:$0xff]  ;;  %v439_v48 = vld [vmem:[%s9223_s1 + $0xcc0] sm:$0xff] }
  0xad   :  { %5122 = vmatpush3.bf16.msra.mxu0 %v5121_v61  ;;  %v1180_v61 = vcombine.high %v21_v50, %v21_v50  ;;  %v471_v50 = vld [vmem:[%s9223_s1 + $0xdc0] sm:$0xff] }
  0xae   :  { %5124 = vmatprep.subr.bf16.mxu0 %v5123_v63  ;;  %v5173_v63 = vpack.c.bf16 %v398_v57, %v397_v55  ;;  %v423_v55 = vld [vmem:[%s9223_s1 + $0xc40] sm:$0xff] }
  0xaf   :  { %5154 = vmatpush3.bf16.msra.mxu1 %v5153_v62  ;;  %v5141_v62 = vpack.c.bf16 %v366_v33, %v365_v54  ;;  %v5221_v54 = vpack.c.bf16 %v454_v47, %v453_v44  ;;  %v455_v57 = vld [vmem:[%s9223_s1 + $0xd40] sm:$0xff]  ;;  %v480_v44 = vld [vmem:[%s9223_s1 + $0xe08] sm:$0xff] }
  0xb0   :  { %5156 = vmatprep.subr.bf16.mxu1 %v5155_v3  ;;  %v447_v3 = vld [vmem:[%s9223_s1 + $0xd00] sm:$0xff] }
  0xb1   :  { %5126 = vmatpush3.bf16.msra.mxu0 %v5125_v9  ;;  %v465_v9 = vld [vmem:[%s9223_s1 + $0xd90] sm:$0xff]  ;;  %v5209_v14 = vpack.c.bf16 %v448_v5, %v447_v3  ;;  %v426_v3 = vld [vmem:[%s9223_s1 + $0xc58] sm:$0xff] }
  0xb2   :  { %5128 = vmatprep.subr.bf16.mxu0 %v5127_v10  ;;  %v7154_v10 = vrot.slane %v1180_v61, %v6029_v13  ;;  %v473_v61 = vld [vmem:[%s9223_s1 + $0xdd0] sm:$0xff] }
  0xb3   :  { %5158 = vmatpush3.bf16.msra.mxu1 %v5157_v11  ;;  %v466_v11 = vld [vmem:[%s9223_s1 + $0xd98] sm:$0xff] }
  0xb4   :  { %5160 = vmatprep.subr.bf16.mxu1 %v5159_v16  ;;  %v417_v16 = vld [vmem:[%s9223_s1 + $0xc10] sm:$0xff]  ;;  %v5211_v19 = vpack.c.bf16 %v466_v11, %v465_v9  ;;  %v1196_v26 = vcombine.high %v7154_v10, %v7154_v10  ;;  %v444_v9 = vld [vmem:[%s9223_s1 + $0xce8] sm:$0xff]  ;;  %v475_v11 = vld [vmem:[%s9223_s1 + $0xde0] sm:$0xff] }
  0xb5   :  { %5130 = vmatpush3.bf16.msra.mxu0 %v5129_v22  ;;  %v436_v22 = vld [vmem:[%s9223_s1 + $0xca8] sm:$0xff]  ;;  %v5181_v27 = vpack.c.bf16 %v418_v17, %v417_v16  ;;  %v5199_v16 = vpack.c.bf16 %v444_v9, %v443_v7  ;;  %v427_v17 = vld [vmem:[%s9223_s1 + $0xc60] sm:$0xff] }
  0xb6   :  { %5132 = vmatprep.subr.bf16.mxu0 %v5131_v24  ;;  %v467_v24 = vld [vmem:[%s9223_s1 + $0xda0] sm:$0xff]  ;;  %v5183_v29 = vpack.c.bf16 %v436_v22, %v435_v21  ;;  %v460_v21 = vld [vmem:[%s9223_s1 + $0xd68] sm:$0xff]  ;;  %v445_v22 = vld [vmem:[%s9223_s1 + $0xcf0] sm:$0xff] }
  0xb7   :  { %5162 = vmatpush3.bf16.msra.mxu1 %v5161_v23  ;;  %v1195_v23 = vcombine.high %v7145_v8, %v7145_v8  ;;  %v5215_v42 = vpack.c.bf16 %v468_v25, %v467_v24  ;;  %v477_v24 = vld [vmem:[%s9223_s1 + $0xdf0] sm:$0xff]  ;;  %v478_v25 = vld [vmem:[%s9223_s1 + $0xdf8] sm:$0xff]  ;;  %v484_v7 = vld [vmem:[%s9223_s1 + $0xe28] sm:$0xff] }
  0xb8   :  { %5164 = vmatprep.subr.bf16.mxu1 %v5163_v28  ;;  %v5213_v28 = vpack.c.bf16 %v450_v20, %v449_v18  ;;  %v428_v18 = vld [vmem:[%s9223_s1 + $0xc68] sm:$0xff]  ;;  %v515_v9 = vld [vmem:[%s9223_s1 + $0xf20] sm:$0xff] }
  0xb9   :  { %5134 = vmatpush3.bf16.msra.mxu0 %v5133_v36  ;;  %v438_v36 = vld [vmem:[%s9223_s1 + $0xcb8] sm:$0xff] }
  0xba   :  { %5136 = vmatprep.subr.bf16.mxu0 %v5135_v37  ;;  %v470_v37 = vld [vmem:[%s9223_s1 + $0xdb8] sm:$0xff]  ;;  %v5187_v40 = vpack.c.bf16 %v438_v36, %v437_v35  ;;  %v495_v35 = vld [vmem:[%s9223_s1 + $0xe80] sm:$0xff]  ;;  %v496_v36 = vld [vmem:[%s9223_s1 + $0xe88] sm:$0xff] }
  0xbb   :  { %5166 = vmatpush3.bf16.msra.mxu1 %v5165_v52  ;;  %v469_v52 = vld [vmem:[%s9223_s1 + $0xdb0] sm:$0xff] }
  0xbc   :  { %5168 = vmatprep.subr.bf16.mxu1 %v5167_v41  ;;  %v421_v41 = vld [vmem:[%s9223_s1 + $0xc30] sm:$0xff]  ;;  %v5219_v46 = vpack.c.bf16 %v470_v37, %v469_v52  ;;  %v527_v52 = vld [vmem:[%s9223_s1 + $0xf80] sm:$0xff]  ;;  %v528_v37 = vld [vmem:[%s9223_s1 + $0xf88] sm:$0xff] }
  0xbd   :  { %5138 = vmatpush3.bf16.msra.mxu0 %v5137_v49  ;;  %v440_v49 = vld [vmem:[%s9223_s1 + $0xcc8] sm:$0xff]  ;;  %v5271_v47 = vpack.c.bf16 %v528_v37, %v527_v52  ;;  %v505_v52 = vld [vmem:[%s9223_s1 + $0xed0] sm:$0xff]  ;;  %v506_v37 = vld [vmem:[%s9223_s1 + $0xed8] sm:$0xff] }
  0xbe   :  { %5140 = vmatprep.subr.bf16.mxu0 %v5139_v53  ;;  %v5189_v53 = vpack.c.bf16 %v422_v43, %v421_v41  ;;  %v5191_v33 = vpack.c.bf16 %v440_v49, %v439_v48  ;;  %v5239_v41 = vpack.c.bf16 %v496_v36, %v495_v35  ;;  %v479_v43 = vld [vmem:[%s9223_s1 + $0xe00] sm:$0xff]  ;;  %v512_v48 = vld [vmem:[%s9223_s1 + $0xf08] sm:$0xff]  ;;  %v497_v49 = vld [vmem:[%s9223_s1 + $0xe90] sm:$0xff] }
  0xbf   :  { %5170 = vmatpush3.bf16.msra.mxu1 %v5169_v51  ;;  %v472_v51 = vld [vmem:[%s9223_s1 + $0xdc8] sm:$0xff] }
  0xc0   :  { %5172 = vmatprep.subr.bf16.mxu1 %v5171_v56  ;;  %v424_v56 = vld [vmem:[%s9223_s1 + $0xc48] sm:$0xff]  ;;  %v5223_v45 = vpack.c.bf16 %v472_v51, %v471_v50  ;;  %v498_v50 = vld [vmem:[%s9223_s1 + $0xe98] sm:$0xff] }
  0xc1   :  { %5142 = vmatpush3.bf16.msra.mxu0 %v5141_v62  ;;  %v474_v62 = vld [vmem:[%s9223_s1 + $0xdd8] sm:$0xff]  ;;  %v520_v36 = vld [vmem:[%s9223_s1 + $0xf48] sm:$0xff] }
  0xc2   :  { %5176 = vmatprep.subr.bf16.mxu0 %v5175_v0  ;;  %v5225_v0 = vpack.c.bf16 %v456_v58, %v455_v57  ;;  %v5227_v5 = vpack.c.bf16 %v474_v62, %v473_v61  ;;  %v5243_v57 = vpack.c.bf16 %v498_v50, %v497_v49  ;;  %v482_v58 = vld [vmem:[%s9223_s1 + $0xe18] sm:$0xff]  ;;  %v499_v62 = vld [vmem:[%s9223_s1 + $0xea0] sm:$0xff] }
  0xc3   :  { %5174 = vmatpush3.bf16.msra.mxu1 %v5173_v63  ;;  %v5193_v63 = vpack.c.bf16 %v424_v56, %v423_v55  ;;  %v5241_v55 = vpack.c.bf16 %v480_v44, %v479_v43  ;;  %v514_v61 = vld [vmem:[%s9223_s1 + $0xf18] sm:$0xff]  ;;  %v5259_v43 = vpack.c.bf16 %v506_v37, %v505_v52  ;;  %v489_v44 = vld [vmem:[%s9223_s1 + $0xe50] sm:$0xff]  ;;  %v507_v50 = vld [vmem:[%s9223_s1 + $0xee0] sm:$0xff] }
  0xc4   :  { %5208 = vmatprep.subr.bf16.mxu1 %v5207_v4  ;;  %2179 = vmatmul.mubr.f32.vlgmr.msra.gmra.mrb[10].mxu0 %v6938_v31  ;;  %v419_v31 = vld [vmem:[%s9223_s1 + $0xc20] sm:$0xff]  ;;  %v457_v4 = vld [vmem:[%s9223_s1 + $0xd50] sm:$0xff]  ;;  %v522_v49 = vld [vmem:[%s9223_s1 + $0xf58] sm:$0xff] }
  0xc5   :  { %5178 = vmatpush3.bf16.msra.mxu0 %v5177_v12  ;;  %2318 = vmatprep.mubr.f32.mxu0 %v1195_v23  ;;  %v5185_v38 = vpack.c.bf16 %v420_v30, %v419_v31  ;;  %v476_v12 = vld [vmem:[%s9223_s1 + $0xde8] sm:$0xff]  ;;  %v446_v23 = vld [vmem:[%s9223_s1 + $0xcf8] sm:$0xff]  ;;  %v429_v31 = vld [vmem:[%s9223_s1 + $0xc70] sm:$0xff] }
  0xc6   :  { %2249 = vmatmul.mubr.f32.vlgmr.msra.gmra.mrb[10].mxu1 %v6947_v34  ;;  %5180 = vmatprep.subr.bf16.mxu0 %v5179_v15  ;;  %v452_v34 = vld [vmem:[%s9223_s1 + $0xd28] sm:$0xff]  ;;  %v5229_v15 = vpack.c.bf16 %v458_v6, %v457_v4  ;;  %v5231_v20 = vpack.c.bf16 %v476_v12, %v475_v11  ;;  %v430_v30 = vld [vmem:[%s9223_s1 + $0xc78] sm:$0xff]  ;;  %v501_v12 = vld [vmem:[%s9223_s1 + $0xeb0] sm:$0xff] }
  0xc7   :  { %5210 = vmatpush3.bf16.msra.mxu1 %v5209_v14  ;;  %2388 = vmatprep.mubr.f32.mxu1 %v1196_v26  ;;  %v5217_v39 = vpack.c.bf16 %v452_v34, %v451_v32  ;;  %v5197_v14 = vpack.c.bf16 %v426_v3, %v425_v2  ;;  %v5201_v26 = vpack.c.bf16 %v428_v18, %v427_v17  ;;  %v461_v32 = vld [vmem:[%s9223_s1 + $0xd70] sm:$0xff]  ;;  %v462_v34 = vld [vmem:[%s9223_s1 + $0xd78] sm:$0xff]  ;;  %v532_v2 = vld [vmem:[%s9223_s1 + $0xfa8] sm:$0xff] }
  0xc8   :  { %5212 = vmatprep.subr.bf16.mxu1 %v5211_v19  ;;  %v459_v19 = vld [vmem:[%s9223_s1 + $0xd60] sm:$0xff]  ;;  %v593_v37 = vld [vmem:[%s9223_s1 + $0x1190] sm:$0xff] }
  0xc9   :  { %5182 = vmatpush3.bf16.msra.mxu0 %v5181_v27  ;;  %v22_v27 = vld [vmem:[%s9222_s0 + $0x38] sm:$0xff] }
  0xca   :  { %5184 = vmatprep.subr.bf16.mxu0 %v5183_v29  ;;  %v5203_v29 = vpack.c.bf16 %v446_v23, %v445_v22  ;;  %v7352_v51 = vrot.slane %v22_v27, %v6029_v13  ;;  %v517_v22 = vld [vmem:[%s9223_s1 + $0xf30] sm:$0xff] }
  0xcb   :  { %5214 = vmatpush3.bf16.msra.mxu1 %v5213_v28  ;;  %v5233_v28 = vpack.c.bf16 %v460_v21, %v459_v19  ;;  %v486_v21 = vld [vmem:[%s9223_s1 + $0xe38] sm:$0xff] }
  0xcc   :  { %5216 = vmatprep.subr.bf16.mxu1 %v5215_v42  ;;  %v5235_v42 = vpack.c.bf16 %v478_v25, %v477_v24  ;;  %v518_v24 = vld [vmem:[%s9223_s1 + $0xf38] sm:$0xff]  ;;  %v503_v25 = vld [vmem:[%s9223_s1 + $0xec0] sm:$0xff] }
  0xcd   :  { %5186 = vmatpush3.bf16.msra.mxu0 %v5185_v38  ;;  %v1197_v38 = vcombine.high %v22_v27, %v22_v27  ;;  %v535_v27 = vld [vmem:[%s9223_s1 + $0xfc0] sm:$0xff] }
  0xce   :  { %5188 = vmatprep.subr.bf16.mxu0 %v5187_v40  ;;  %v5237_v40 = vpack.c.bf16 %v462_v34, %v461_v32  ;;  %v487_v32 = vld [vmem:[%s9223_s1 + $0xe40] sm:$0xff] }
  0xcf   :  { %5218 = vmatpush3.bf16.msra.mxu1 %v5217_v39  ;;  %v5205_v39 = vpack.c.bf16 %v430_v30, %v429_v31  ;;  %v5285_v31 = vpack.c.bf16 %v518_v24, %v517_v22  ;;  %v519_v34 = vld [vmem:[%s9223_s1 + $0xf40] sm:$0xff]  ;;  %v560_v22 = vld [vmem:[%s9223_s1 + $0x1088] sm:$0xff] }
  0xd0   :  { %5220 = vmatprep.subr.bf16.mxu1 %v5219_v46  ;;  %v511_v46 = vld [vmem:[%s9223_s1 + $0xf00] sm:$0xff]  ;;  %v592_v24 = vld [vmem:[%s9223_s1 + $0x1188] sm:$0xff] }
  0xd1   :  { %5190 = vmatpush3.bf16.msra.mxu0 %v5189_v53  ;;  %v529_v53 = vld [vmem:[%s9223_s1 + $0xf90] sm:$0xff]  ;;  %v5273_v56 = vpack.c.bf16 %v512_v48, %v511_v46  ;;  %v490_v46 = vld [vmem:[%s9223_s1 + $0xe58] sm:$0xff] }
  0xd2   :  { %5192 = vmatprep.subr.bf16.mxu0 %v5191_v33  ;;  %v7361_v33 = vrot.slane %v1197_v38, %v6029_v13  ;;  %v537_v38 = vld [vmem:[%s9223_s1 + $0xfd0] sm:$0xff] }
  0xd3   :  { %5222 = vmatpush3.bf16.msra.mxu1 %v5221_v54  ;;  %v530_v54 = vld [vmem:[%s9223_s1 + $0xf98] sm:$0xff] }
  0xd4   :  { %5224 = vmatprep.subr.bf16.mxu1 %v5223_v45  ;;  %v481_v45 = vld [vmem:[%s9223_s1 + $0xe10] sm:$0xff]  ;;  %v5275_v60 = vpack.c.bf16 %v530_v54, %v529_v53  ;;  %v1213_v3 = vcombine.high %v7361_v33, %v7361_v33  ;;  %v508_v53 = vld [vmem:[%s9223_s1 + $0xee8] sm:$0xff]  ;;  %v539_v54 = vld [vmem:[%s9223_s1 + $0xfe0] sm:$0xff] }
  0xd5   :  { %5194 = vmatpush3.bf16.msra.mxu0 %v5193_v63  ;;  %v500_v63 = vld [vmem:[%s9223_s1 + $0xea8] sm:$0xff]  ;;  %v5245_v4 = vpack.c.bf16 %v482_v58, %v481_v45  ;;  %v5263_v45 = vpack.c.bf16 %v508_v53, %v507_v50  ;;  %v491_v58 = vld [vmem:[%s9223_s1 + $0xe60] sm:$0xff] }
  0xd6   :  { %5196 = vmatprep.subr.bf16.mxu0 %v5195_v1  ;;  %v531_v1 = vld [vmem:[%s9223_s1 + $0xfa0] sm:$0xff]  ;;  %v5247_v6 = vpack.c.bf16 %v500_v63, %v499_v62  ;;  %v524_v63 = vld [vmem:[%s9223_s1 + $0xf68] sm:$0xff] }
  0xd7   :  { %5226 = vmatpush3.bf16.msra.mxu1 %v5225_v0  ;;  %v1212_v0 = vcombine.high %v7352_v51, %v7352_v51  ;;  %v5279_v11 = vpack.c.bf16 %v532_v2, %v531_v1  ;;  %v510_v1 = vld [vmem:[%s9223_s1 + $0xef8] sm:$0xff]  ;;  %v3670_v2 = vld [vmem:[%s9224_s2] ss:$0 sm:$0xff]  ;;  %v564_v53 = vld [vmem:[%s9223_s1 + $0x10a8] sm:$0xff] }
  0xd8   :  { %5228 = vmatprep.subr.bf16.mxu1 %v5227_v5  ;;  %v5277_v5 = vpack.c.bf16 %v514_v61, %v513_v59  ;;  %v492_v59 = vld [vmem:[%s9223_s1 + $0xe68] sm:$0xff]  ;;  %v563_v50 = vld [vmem:[%s9223_s1 + $0x10a0] sm:$0xff] }
  0xd9   :  { %5198 = vmatpush3.bf16.msra.mxu0 %v5197_v14  ;;  %v502_v14 = vld [vmem:[%s9223_s1 + $0xeb8] sm:$0xff] }
  0xda   :  { %5200 = vmatprep.subr.bf16.mxu0 %v5199_v16  ;;  %v534_v16 = vld [vmem:[%s9223_s1 + $0xfb8] sm:$0xff]  ;;  %v5251_v19 = vpack.c.bf16 %v502_v14, %v501_v12 }
  0xdb   :  { %5230 = vmatpush3.bf16.msra.mxu1 %v5229_v15  ;;  %v533_v15 = vld [vmem:[%s9223_s1 + $0xfb0] sm:$0xff] }
  0xdc   :  { %5232 = vmatprep.subr.bf16.mxu1 %v5231_v20  ;;  %v485_v20 = vld [vmem:[%s9223_s1 + $0xe30] sm:$0xff]  ;;  %v5283_v23 = vpack.c.bf16 %v534_v16, %v533_v15  ;;  %v494_v16 = vld [vmem:[%s9223_s1 + $0xe78] sm:$0xff] }
  0xdd   :  { %5202 = vmatpush3.bf16.msra.mxu0 %v5201_v26  ;;  %v504_v26 = vld [vmem:[%s9223_s1 + $0xec8] sm:$0xff]  ;;  %v493_v15 = vld [vmem:[%s9223_s1 + $0xe70] sm:$0xff] }
  0xde   :  { %5204 = vmatprep.subr.bf16.mxu0 %v5203_v29  ;;  %v5253_v29 = vpack.c.bf16 %v486_v21, %v485_v20  ;;  %v5255_v30 = vpack.c.bf16 %v504_v26, %v503_v25  ;;  %v526_v20 = vld [vmem:[%s9223_s1 + $0xf78] sm:$0xff]  ;;  %v559_v21 = vld [vmem:[%s9223_s1 + $0x1080] sm:$0xff] }
  0xdf   :  { %5234 = vmatpush3.bf16.msra.mxu1 %v5233_v28  ;;  %v536_v28 = vld [vmem:[%s9223_s1 + $0xfc8] sm:$0xff] }
  0xe0   :  { %5236 = vmatprep.subr.bf16.mxu1 %v5235_v42  ;;  %v488_v42 = vld [vmem:[%s9223_s1 + $0xe48] sm:$0xff]  ;;  %v5287_v35 = vpack.c.bf16 %v536_v28, %v535_v27  ;;  %v5269_v27 = vpack.c.bf16 %v494_v16, %v493_v15 }
  0xe1   :  { %5206 = vmatpush3.bf16.msra.mxu0 %v5205_v39  ;;  %v538_v39 = vld [vmem:[%s9223_s1 + $0xfd8] sm:$0xff]  ;;  %v600_v15 = vld [vmem:[%s9223_s1 + $0x11c8] sm:$0xff] }
  0xe2   :  { %5240 = vmatprep.subr.bf16.mxu0 %v5239_v41  ;;  %v5289_v41 = vpack.c.bf16 %v520_v36, %v519_v34  ;;  %v5291_v48 = vpack.c.bf16 %v538_v39, %v537_v38  ;;  %v576_v34 = vld [vmem:[%s9223_s1 + $0x1108] sm:$0xff]  ;;  %v562_v36 = vld [vmem:[%s9223_s1 + $0x1098] sm:$0xff] }
  0xe3   :  { %5238 = vmatpush3.bf16.msra.mxu1 %v5237_v40  ;;  %v5257_v40 = vpack.c.bf16 %v488_v42, %v487_v32  ;;  %v575_v32 = vld [vmem:[%s9223_s1 + $0x1100] sm:$0xff]  ;;  %v594_v38 = vld [vmem:[%s9223_s1 + $0x1198] sm:$0xff] }
  0xe4   :  { %5272 = vmatprep.subr.bf16.mxu1 %v5271_v47  ;;  %2319 = vmatmul.mubr.f32.vlgmr.msra.gmra.mrb[12].mxu0 %v7145_v8  ;;  %v483_v8 = vld [vmem:[%s9223_s1 + $0xe20] sm:$0xff]  ;;  %v521_v47 = vld [vmem:[%s9223_s1 + $0xf50] sm:$0xff] }
  0xe5   :  { %5242 = vmatpush3.bf16.msra.mxu0 %v5241_v55  ;;  %2458 = vmatprep.mubr.f32.mxu0 %v1212_v0  ;;  %v5249_v17 = vpack.c.bf16 %v484_v7, %v483_v8  ;;  %v540_v55 = vld [vmem:[%s9223_s1 + $0xfe8] sm:$0xff]  ;;  %v509_v0 = vld [vmem:[%s9223_s1 + $0xef0] sm:$0xff] }
  0xe6   :  { %2389 = vmatmul.mubr.f32.vlgmr.msra.gmra.mrb[12].mxu1 %v7154_v10  ;;  %5244 = vmatprep.subr.bf16.mxu0 %v5243_v57  ;;  %v516_v10 = vld [vmem:[%s9223_s1 + $0xf28] sm:$0xff]  ;;  %v5293_v57 = vpack.c.bf16 %v522_v49, %v521_v47  ;;  %v5295_v62 = vpack.c.bf16 %v540_v55, %v539_v54  ;;  %v5267_v14 = vpack.c.bf16 %v510_v1, %v509_v0  ;;  %v577_v47 = vld [vmem:[%s9223_s1 + $0x1110] sm:$0xff]  ;;  %v578_v49 = vld [vmem:[%s9223_s1 + $0x1118] sm:$0xff] }
  0xe7   :  { %5274 = vmatpush3.bf16.msra.mxu1 %v5273_v56  ;;  %2528 = vmatprep.mubr.f32.mxu1 %v1213_v3  ;;  %v5281_v18 = vpack.c.bf16 %v516_v10, %v515_v9  ;;  %v5261_v56 = vpack.c.bf16 %v490_v46, %v489_v44  ;;  %v5265_v9 = vpack.c.bf16 %v492_v59, %v491_v58  ;;  %v545_v44 = vld [vmem:[%s9223_s1 + $0x1010] sm:$0xff]  ;;  %v546_v46 = vld [vmem:[%s9223_s1 + $0x1018] sm:$0xff]  ;;  %v595_v55 = vld [vmem:[%s9223_s1 + $0x11a0] sm:$0xff] }
  0xe8   :  { %5276 = vmatprep.subr.bf16.mxu1 %v5275_v60  ;;  %v523_v60 = vld [vmem:[%s9223_s1 + $0xf60] sm:$0xff]  ;;  %v5341_v58 = vpack.c.bf16 %v578_v49, %v577_v47  ;;  %v5311_v59 = vpack.c.bf16 %v564_v53, %v563_v50  ;;  %v566_v0 = vld [vmem:[%s9223_s1 + $0x10b8] sm:$0xff]  ;;  %v597_v1 = vld [vmem:[%s9223_s1 + $0x11b0] sm:$0xff] }
  0xe9   :  { %5246 = vmatpush3.bf16.msra.mxu0 %v5245_v4  ;;  %v5297_v12 = vpack.c.bf16 %v524_v63, %v523_v60  ;;  %v548_v60 = vld [vmem:[%s9223_s1 + $0x1028] sm:$0xff]  ;;  %v565_v63 = vld [vmem:[%s9223_s1 + $0x10b0] sm:$0xff] }
  0xea   :  { %5248 = vmatprep.subr.bf16.mxu0 %v5247_v6  ;;  %v542_v6 = vld [vmem:[%s9223_s1 + $0xff8] sm:$0xff] }
  0xeb   :  { %5278 = vmatpush3.bf16.msra.mxu1 %v5277_v5  ;;  %v541_v5 = vld [vmem:[%s9223_s1 + $0xff0] sm:$0xff] }
  0xec   :  { %5280 = vmatprep.subr.bf16.mxu1 %v5279_v11  ;;  %v23_v11 = vld [vmem:[%s9222_s0 + $0x40] sm:$0xff] }
  0xed   :  { %5250 = vmatpush3.bf16.msra.mxu0 %v5249_v17  ;;  %v525_v17 = vld [vmem:[%s9223_s1 + $0xf70] sm:$0xff]  ;;  %v1214_v25 = vcombine.high %v23_v11, %v23_v11  ;;  %v7564_v52 = vrot.slane %v23_v11, %v6029_v13  ;;  %v582_v11 = vld [vmem:[%s9223_s1 + $0x1138] sm:$0xff] }
  0xee   :  { %5252 = vmatprep.subr.bf16.mxu0 %v5251_v19  ;;  %v5299_v19 = vpack.c.bf16 %v542_v6, %v541_v5  ;;  %v5301_v28 = vpack.c.bf16 %v526_v20, %v525_v17  ;;  %v5315_v5 = vpack.c.bf16 %v566_v0, %v565_v63  ;;  %v549_v6 = vld [vmem:[%s9223_s1 + $0x1030] sm:$0xff]  ;;  %v552_v20 = vld [vmem:[%s9223_s1 + $0x1048] sm:$0xff] }
  0xef   :  { %5282 = vmatpush3.bf16.msra.mxu1 %v5281_v18  ;;  %v7573_v39 = vrot.slane %v1214_v25, %v6029_v13  ;;  %v1229_v54 = vcombine.high %v7564_v52, %v7564_v52  ;;  %v570_v25 = vld [vmem:[%s9223_s1 + $0x10d8] sm:$0xff] }
  0xf0   :  { %5284 = vmatprep.subr.bf16.mxu1 %v5283_v23  ;;  %v591_v23 = vld [vmem:[%s9223_s1 + $0x1180] sm:$0xff] }
  0xf1   :  { %5254 = vmatpush3.bf16.msra.mxu0 %v5253_v29  ;;  %v5303_v29 = vpack.c.bf16 %v560_v22, %v559_v21  ;;  %v5335_v42 = vpack.c.bf16 %v592_v24, %v591_v23  ;;  %v583_v21 = vld [vmem:[%s9223_s1 + $0x1140] sm:$0xff]  ;;  %v584_v23 = vld [vmem:[%s9223_s1 + $0x1148] sm:$0xff]  ;;  %v569_v24 = vld [vmem:[%s9223_s1 + $0x10d0] sm:$0xff] }
  0xf2   :  { %5256 = vmatprep.subr.bf16.mxu0 %v5255_v30  ;;  %v544_v30 = vld [vmem:[%s9223_s1 + $0x1008] sm:$0xff] }
  0xf3   :  { %5286 = vmatpush3.bf16.msra.mxu1 %v5285_v31  ;;  %v543_v31 = vld [vmem:[%s9223_s1 + $0x1000] sm:$0xff] }
  0xf4   :  { %5288 = vmatprep.subr.bf16.mxu1 %v5287_v35  ;;  %v561_v35 = vld [vmem:[%s9223_s1 + $0x1090] sm:$0xff] }
  0xf5   :  { %5258 = vmatpush3.bf16.msra.mxu0 %v5257_v40  ;;  %v5305_v40 = vpack.c.bf16 %v544_v30, %v543_v31 }
  0xf6   :  { %5260 = vmatprep.subr.bf16.mxu0 %v5259_v43  ;;  %v5307_v43 = vpack.c.bf16 %v562_v36, %v561_v35 }
  0xf7   :  { %5290 = vmatpush3.bf16.msra.mxu1 %v5289_v41  ;;  %v3703_v61 = vpop.f32.mrb[0].mxu0  ;;  %v5337_v41 = vpack.c.bf16 %v576_v34, %v575_v32 }
  0xf8   :  { %5292 = vmatprep.subr.bf16.mxu1 %v5291_v48  ;;  %v3704_v3 = vpop.f32.mrb[1].mxu0  ;;  %v5339_v48 = vpack.c.bf16 %v594_v38, %v593_v37 }
  0xf9   :  { %v3738_v4 = vpop.f32.mrb[0].mxu1  ;;  %v3705_v8 = vadd.f32 %v3704_v3, %v3703_v61  ;;  %5262 = vmatpush3.bf16.msra.mxu0 %v5261_v56  ;;  %v596_v56 = vld [vmem:[%s9223_s1 + $0x11a8] sm:$0xff]  ;;  %v579_v61 = vld [vmem:[%s9223_s1 + $0x1120] sm:$0xff] }
  0xfa   :  { %v3739_v7 = vpop.f32.mrb[1].mxu1  ;;  %5264 = vmatprep.subr.bf16.mxu0 %v5263_v45  ;;  %v5309_v45 = vpack.c.bf16 %v546_v46, %v545_v44 }
  0xfb   :  { %v3740_v10 = vadd.f32 %v3739_v7, %v3738_v4  ;;  %5294 = vmatpush3.bf16.msra.mxu1 %v5293_v57  ;;  %v1481_v18 = vadd.f32 %v3705_v8, %v3670_v2  ;;  %v1230_v57 = vcombine.high %v7573_v39, %v7573_v39  ;;  %v598_v2 = vld [vmem:[%s9223_s1 + $0x11b8] sm:$0xff]  ;;  %v581_v7 = vld [vmem:[%s9223_s1 + $0x1130] sm:$0xff] }
  0xfc   :  { %5296 = vmatprep.subr.bf16.mxu1 %v5295_v62  ;;  %v5343_v62 = vpack.c.bf16 %v596_v56, %v595_v55  ;;  %v550_v8 = vld [vmem:[%s9223_s1 + $0x1038] sm:$0xff]  ;;  %v5349_v17 = vpack.c.bf16 %v582_v11, %v581_v7 }
  0xfd   :  { %v7543_v26 = vadd.f32 %v3740_v10, %v1481_v18  ;;  %5266 = vmatpush3.bf16.msra.mxu0 %v5265_v9  ;;  %v5347_v9 = vpack.c.bf16 %v598_v2, %v597_v1  ;;  %v567_v10 = vld [vmem:[%s9223_s1 + $0x10c0] sm:$0xff]  ;;  %v5317_v16 = vpack.c.bf16 %v550_v8, %v549_v6 }
  0xfe   :  { %5268 = vmatprep.subr.bf16.mxu0 %v5267_v14  ;;  %v599_v14 = vld [vmem:[%s9223_s1 + $0x11c0] sm:$0xff] }
  0xff   :  { %5298 = vmatpush3.bf16.msra.mxu1 %v5297_v12  ;;  %v568_v12 = vld [vmem:[%s9223_s1 + $0x10c8] sm:$0xff]  ;;  %v5351_v22 = vpack.c.bf16 %v600_v15, %v599_v14 }
 0x100   :  { %5300 = vmatprep.subr.bf16.mxu1 %v5299_v19  ;;  %v5319_v18 = vpack.c.bf16 %v568_v12, %v567_v10  ;;  %v551_v19 = vld [vmem:[%s9223_s1 + $0x1040] sm:$0xff] }
 0x101   :  { %5270 = vmatpush3.bf16.msra.mxu0 %v5269_v27  ;;  %v601_v27 = vld [vmem:[%s9223_s1 + $0x11d0] sm:$0xff] }
 0x102   :  { %5304 = vmatprep.subr.bf16.mxu0 %v5303_v29 }
 0x103   :  { %5302 = vmatpush3.bf16.msra.mxu1 %v5301_v28  ;;  %v602_v28 = vld [vmem:[%s9223_s1 + $0x11d8] sm:$0xff] }
 0x104   :  { %5336 = vmatprep.subr.bf16.mxu1 %v5335_v42  ;;  %2459 = vmatmul.mubr.f32.vlgmr.msra.gmra.mrb[14].mxu0 %v7352_v51  ;;  %v547_v51 = vld [vmem:[%s9223_s1 + $0x1020] sm:$0xff] }
 0x105   :  { %5306 = vmatpush3.bf16.msra.mxu0 %v5305_v40  ;;  %2598 = vmatprep.mubr.f32.mxu0 %v1229_v54  ;;  %v5313_v3 = vpack.c.bf16 %v548_v60, %v547_v51 }
 0x106   :  { %2529 = vmatmul.mubr.f32.vlgmr.msra.gmra.mrb[14].mxu1 %v7361_v33  ;;  %5308 = vmatprep.subr.bf16.mxu0 %v5307_v43  ;;  %v580_v33 = vld [vmem:[%s9223_s1 + $0x1128] sm:$0xff] }
 0x107   :  { %5338 = vmatpush3.bf16.msra.mxu1 %v5337_v41  ;;  %2668 = vmatprep.mubr.f32.mxu1 %v1230_v57  ;;  %v5345_v4 = vpack.c.bf16 %v580_v33, %v579_v61 }
 0x108   :  { %5340 = vmatprep.subr.bf16.mxu1 %v5339_v48 }
 0x109   :  { %5310 = vmatpush3.bf16.msra.mxu0 %v5309_v45 }
 0x10a   :  { %5312 = vmatprep.subr.bf16.mxu0 %v5311_v59 }
 0x10b   :  { %5342 = vmatpush3.bf16.msra.mxu1 %v5341_v58 }
 0x10c   :  { %5344 = vmatprep.subr.bf16.mxu1 %v5343_v62 }
 0x10d   :  { %5314 = vmatpush3.bf16.msra.mxu0 %v5313_v3 }
 0x10e   :  { %5316 = vmatprep.subr.bf16.mxu0 %v5315_v5 }
 0x10f   :  { %5346 = vmatpush3.bf16.msra.mxu1 %v5345_v4 }
 0x110   :  { %5348 = vmatprep.subr.bf16.mxu1 %v5347_v9 }
 0x111   :  { %8 = vsyncpa [#allocation3], 0  ;;  %5318 = vmatpush3.bf16.msra.mxu0 %v5317_v16  ;;  %v5321_v29 = vpack.c.bf16 %v552_v20, %v551_v19  ;;  %v5353_v31 = vpack.c.bf16 %v584_v23, %v583_v21  ;;  %v5323_v30 = vpack.c.bf16 %v570_v25, %v569_v24  ;;  %v553_v32 = vld [vmem:[%s9223_s1 + $0x1050] sm:$0xff]  ;;  %v554_v42 = vld [vmem:[%s9223_s1 + $0x1058] sm:$0xff]  ;;  %v5355_v35 = vpack.c.bf16 %v602_v28, %v601_v27 }
 0x112   :  { %5320 = vmatprep.subr.bf16.mxu0 %v5319_v18  ;;  %v585_v34 = vld [vmem:[%s9223_s1 + $0x1150] sm:$0xff]  ;;  %v586_v36 = vld [vmem:[%s9223_s1 + $0x1158] sm:$0xff]  ;;  %v571_v37 = vld [vmem:[%s9223_s1 + $0x10e0] sm:$0xff]  ;;  %v5325_v43 = vpack.c.bf16 %v554_v42, %v553_v32  ;;  %vm3654_vm0 = vcmask 517120  }
 0x113   :  { %5350 = vmatpush3.bf16.msra.mxu1 %v5349_v17  ;;  %v572_v38 = vld [vmem:[%s9223_s1 + $0x10e8] sm:$0xff]  ;;  %v603_v40 = vld [vmem:[%s9223_s1 + $0x11e0] sm:$0xff]  ;;  %v5357_v44 = vpack.c.bf16 %v586_v36, %v585_v34  ;;  %v573_v55 = vld [vmem:[%s9223_s1 + $0x10f0] sm:$0xff] }
 0x114   :  { %5352 = vmatprep.subr.bf16.mxu1 %v5351_v22  ;;  %v604_v41 = vld [vmem:[%s9223_s1 + $0x11e8] sm:$0xff]  ;;  %v5327_v46 = vpack.c.bf16 %v572_v38, %v571_v37  ;;  %v555_v47 = vld [vmem:[%s9223_s1 + $0x1060] sm:$0xff]  ;;  %v574_v56 = vld [vmem:[%s9223_s1 + $0x10f8] sm:$0xff] }
 0x115   :  { %5322 = vmatpush3.bf16.msra.mxu0 %v5321_v29  ;;  %v556_v48 = vld [vmem:[%s9223_s1 + $0x1068] sm:$0xff]  ;;  %v587_v49 = vld [vmem:[%s9223_s1 + $0x1160] sm:$0xff]  ;;  %v5359_v53 = vpack.c.bf16 %v604_v41, %v603_v40  ;;  %v605_v58 = vld [vmem:[%s9223_s1 + $0x11f0] sm:$0xff]  ;;  %v5331_v0 = vpack.c.bf16 %v574_v56, %v573_v55 }
 0x116   :  { %5324 = vmatprep.subr.bf16.mxu0 %v5323_v30  ;;  %v588_v54 = vld [vmem:[%s9223_s1 + $0x1168] sm:$0xff]  ;;  %v606_v59 = vld [vmem:[%s9223_s1 + $0x11f8] sm:$0xff]  ;;  %v5329_v61 = vpack.c.bf16 %v556_v48, %v555_v47  ;;  %v557_v1 = vld [vmem:[%s9223_s1 + $0x1070] sm:$0xff] }
 0x117   :  { %5354 = vmatpush3.bf16.msra.mxu1 %v5353_v31  ;;  %v3773_v50 = vpop.f32.mrb[2].mxu0  ;;  %v24_v62 = vld [vmem:[%s9222_s0 + $0x48] sm:$0xff]  ;;  %v5361_v63 = vpack.c.bf16 %v588_v54, %v587_v49  ;;  %v558_v2 = vld [vmem:[%s9223_s1 + $0x1078] sm:$0xff]  ;;  %v589_v3 = vld [vmem:[%s9223_s1 + $0x1170] sm:$0xff]  ;;  %v5363_v5 = vpack.c.bf16 %v606_v59, %v605_v58 }
 0x118   :  { %5356 = vmatprep.subr.bf16.mxu1 %v5355_v35  ;;  %v3774_v57 = vpop.f32.mrb[3].mxu0  ;;  %v590_v6 = vld [vmem:[%s9223_s1 + $0x1178] sm:$0xff]  ;;  %v623_v8 = vld [vmem:[%s9223_s1 + $0x1280] sm:$0xff]  ;;  %v624_v7 = vld [vmem:[%s9223_s1 + $0x1288] sm:$0xff]  ;;  %v1231_v11 = vcombine.high %v24_v62, %v24_v62  ;;  %v5333_v12 = vpack.c.bf16 %v558_v2, %v557_v1  ;;  %v7774_v23 = vrot.slane %v24_v62, %v6029_v13 }
 0x119   :  { %v3808_v45 = vpop.f32.mrb[2].mxu1  ;;  %v3775_v51 = vadd.f32 %v3774_v57, %v3773_v50  ;;  %5326 = vmatpush3.bf16.msra.mxu0 %v5325_v43  ;;  %v655_v9 = vld [vmem:[%s9223_s1 + $0x1380] sm:$0xff]  ;;  %v5365_v14 = vpack.c.bf16 %v590_v6, %v589_v3  ;;  %v5367_v15 = vpack.c.bf16 %v624_v7, %v623_v8  ;;  %v608_v17 = vld [vmem:[%s9223_s1 + $0x1208] sm:$0xff]  ;;  %v625_v21 = vld [vmem:[%s9223_s1 + $0x1290] sm:$0xff] }
 0x11a   :  { %v3809_v60 = vpop.f32.mrb[3].mxu1  ;;  %5328 = vmatprep.subr.bf16.mxu0 %v5327_v46  ;;  %v607_v16 = vld [vmem:[%s9223_s1 + $0x1200] sm:$0xff]  ;;  %v640_v20 = vld [vmem:[%s9223_s1 + $0x1308] sm:$0xff]  ;;  %v626_v22 = vld [vmem:[%s9223_s1 + $0x1298] sm:$0xff]  ;;  %v7783_v27 = vrot.slane %v1231_v11, %v6029_v13  ;;  %v1246_v38 = vcombine.high %v7774_v23, %v7774_v23 }
 0x11b   :  { %v3810_v33 = vadd.f32 %v3809_v60, %v3808_v45  ;;  %5358 = vmatpush3.bf16.msra.mxu1 %v5357_v44  ;;  %v1621_v4 = vadd.f32 %v3775_v51, %v7543_v26  ;;  %v656_v26 = vld [vmem:[%s9223_s1 + $0x1388] sm:$0xff]  ;;  %v639_v18 = vld [vmem:[%s9223_s1 + $0x1300] sm:$0xff]  ;;  %v657_v24 = vld [vmem:[%s9223_s1 + $0x1390] sm:$0xff]  ;;  %v5369_v28 = vpack.c.bf16 %v608_v17, %v607_v16  ;;  %v5371_v31 = vpack.c.bf16 %v626_v22, %v625_v21 }
 0x11c   :  { %5360 = vmatprep.subr.bf16.mxu1 %v5359_v53  ;;  %v5399_v19 = vpack.c.bf16 %v656_v26, %v655_v9  ;;  %v658_v25 = vld [vmem:[%s9223_s1 + $0x1398] sm:$0xff]  ;;  %v5401_v29 = vpack.c.bf16 %v640_v20, %v639_v18  ;;  %v609_v30 = vld [vmem:[%s9223_s1 + $0x1210] sm:$0xff]  ;;  %v627_v36 = vld [vmem:[%s9223_s1 + $0x12a0] sm:$0xff]  ;;  %v1247_v43 = vcombine.high %v7783_v27, %v7783_v27 }
 0x11d   :  { %v7753_v10 = vadd.f32 %v3810_v33, %v1621_v4  ;;  %5330 = vmatpush3.bf16.msra.mxu0 %v5329_v61  ;;  %v610_v32 = vld [vmem:[%s9223_s1 + $0x1218] sm:$0xff]  ;;  %v641_v42 = vld [vmem:[%s9223_s1 + $0x1310] sm:$0xff]  ;;  %v5403_v34 = vpack.c.bf16 %v658_v25, %v657_v24  ;;  %v628_v37 = vld [vmem:[%s9223_s1 + $0x12a8] sm:$0xff] }
 0x11e   :  { %5332 = vmatprep.subr.bf16.mxu0 %v5331_v0  ;;  %v642_v35 = vld [vmem:[%s9223_s1 + $0x1318] sm:$0xff]  ;;  %v659_v40 = vld [vmem:[%s9223_s1 + $0x13a0] sm:$0xff]  ;;  %v660_v41 = vld [vmem:[%s9223_s1 + $0x13a8] sm:$0xff]  ;;  %v5373_v44 = vpack.c.bf16 %v610_v32, %v609_v30  ;;  %v5375_v47 = vpack.c.bf16 %v628_v37, %v627_v36 }
 0x11f   :  { %5362 = vmatpush3.bf16.msra.mxu1 %v5361_v63  ;;  %v5405_v46 = vpack.c.bf16 %v642_v35, %v641_v42  ;;  %v612_v48 = vld [vmem:[%s9223_s1 + $0x1228] sm:$0xff]  ;;  %v643_v49 = vld [vmem:[%s9223_s1 + $0x1320] sm:$0xff]  ;;  %v5407_v50 = vpack.c.bf16 %v660_v41, %v659_v40  ;;  %v629_v53 = vld [vmem:[%s9223_s1 + $0x12b0] sm:$0xff] }
 0x120   :  { %5364 = vmatprep.subr.bf16.mxu1 %v5363_v5  ;;  %v630_v54 = vld [vmem:[%s9223_s1 + $0x12b8] sm:$0xff]  ;;  %v661_v55 = vld [vmem:[%s9223_s1 + $0x13b0] sm:$0xff]  ;;  %v631_v33 = vld [vmem:[%s9223_s1 + $0x12c0] sm:$0xff] }
 0x121   :  { %5334 = vmatpush3.bf16.msra.mxu0 %v5333_v12  ;;  %v662_v56 = vld [vmem:[%s9223_s1 + $0x13b8] sm:$0xff]  ;;  %v5379_v58 = vpack.c.bf16 %v630_v54, %v629_v53  ;;  %v613_v59 = vld [vmem:[%s9223_s1 + $0x1230] sm:$0xff]  ;;  %v632_v63 = vld [vmem:[%s9223_s1 + $0x12c8] sm:$0xff] }
 0x122   :  { %5368 = vmatprep.subr.bf16.mxu0 %v5367_v15  ;;  %v614_v51 = vld [vmem:[%s9223_s1 + $0x1238] sm:$0xff]  ;;  %v645_v60 = vld [vmem:[%s9223_s1 + $0x1330] sm:$0xff]  ;;  %v5411_v61 = vpack.c.bf16 %v662_v56, %v661_v55  ;;  %v663_v0 = vld [vmem:[%s9223_s1 + $0x13c0] sm:$0xff]  ;;  %v5383_v4 = vpack.c.bf16 %v632_v63, %v631_v33 }
 0x123   :  { %5366 = vmatpush3.bf16.msra.mxu1 %v5365_v14  ;;  %v646_v62 = vld [vmem:[%s9223_s1 + $0x1338] sm:$0xff]  ;;  %v664_v1 = vld [vmem:[%s9223_s1 + $0x13c8] sm:$0xff]  ;;  %v5381_v2 = vpack.c.bf16 %v614_v51, %v613_v59  ;;  %v615_v5 = vld [vmem:[%s9223_s1 + $0x1240] sm:$0xff] }
 0x124   :  { %5400 = vmatprep.subr.bf16.mxu1 %v5399_v19  ;;  %2599 = vmatmul.mubr.f32.vlgmr.msra.gmra.mrb[16].mxu0 %v7564_v52  ;;  %v611_v52 = vld [vmem:[%s9223_s1 + $0x1220] sm:$0xff]  ;;  %v5413_v3 = vpack.c.bf16 %v646_v62, %v645_v60  ;;  %v616_v6 = vld [vmem:[%s9223_s1 + $0x1248] sm:$0xff]  ;;  %v5415_v7 = vpack.c.bf16 %v664_v1, %v663_v0  ;;  %v633_v26 = vld [vmem:[%s9223_s1 + $0x12d0] sm:$0xff] }
 0x125   :  { %5370 = vmatpush3.bf16.msra.mxu0 %v5369_v28  ;;  %2738 = vmatprep.mubr.f32.mxu0 %v1246_v38  ;;  %v5377_v57 = vpack.c.bf16 %v612_v48, %v611_v52  ;;  %v647_v8 = vld [vmem:[%s9223_s1 + $0x1340] sm:$0xff]  ;;  %v648_v9 = vld [vmem:[%s9223_s1 + $0x1348] sm:$0xff]  ;;  %v634_v11 = vld [vmem:[%s9223_s1 + $0x12d8] sm:$0xff]  ;;  %v5385_v15 = vpack.c.bf16 %v616_v6, %v615_v5 }
 0x126   :  { %2669 = vmatmul.mubr.f32.vlgmr.msra.gmra.mrb[16].mxu1 %v7573_v39  ;;  %5372 = vmatprep.subr.bf16.mxu0 %v5371_v31  ;;  %v644_v39 = vld [vmem:[%s9223_s1 + $0x1328] sm:$0xff]  ;;  %v665_v12 = vld [vmem:[%s9223_s1 + $0x13d0] sm:$0xff]  ;;  %v666_v14 = vld [vmem:[%s9223_s1 + $0x13d8] sm:$0xff]  ;;  %v5417_v16 = vpack.c.bf16 %v648_v9, %v647_v8  ;;  %v5387_v17 = vpack.c.bf16 %v634_v11, %v633_v26 }
 0x127   :  { %5402 = vmatpush3.bf16.msra.mxu1 %v5401_v29  ;;  %2808 = vmatprep.mubr.f32.mxu1 %v1247_v43  ;;  %v5409_v45 = vpack.c.bf16 %v644_v39, %v643_v49  ;;  %v617_v18 = vld [vmem:[%s9223_s1 + $0x1250] sm:$0xff]  ;;  %v618_v19 = vld [vmem:[%s9223_s1 + $0x1258] sm:$0xff]  ;;  %v5419_v21 = vpack.c.bf16 %v666_v14, %v665_v12  ;;  %v635_v24 = vld [vmem:[%s9223_s1 + $0x12e0] sm:$0xff] }
 0x128   :  { %5404 = vmatprep.subr.bf16.mxu1 %v5403_v34  ;;  %v649_v20 = vld [vmem:[%s9223_s1 + $0x1350] sm:$0xff]  ;;  %v650_v22 = vld [vmem:[%s9223_s1 + $0x1358] sm:$0xff]  ;;  %v636_v25 = vld [vmem:[%s9223_s1 + $0x12e8] sm:$0xff]  ;;  %v5389_v31 = vpack.c.bf16 %v618_v19, %v617_v18 }
 0x129   :  { %5374 = vmatpush3.bf16.msra.mxu0 %v5373_v44  ;;  %v667_v28 = vld [vmem:[%s9223_s1 + $0x13e0] sm:$0xff]  ;;  %v668_v29 = vld [vmem:[%s9223_s1 + $0x13e8] sm:$0xff]  ;;  %v5421_v30 = vpack.c.bf16 %v650_v22, %v649_v20  ;;  %v5391_v32 = vpack.c.bf16 %v636_v25, %v635_v24  ;;  %v637_v40 = vld [vmem:[%s9223_s1 + $0x12f0] sm:$0xff] }
 0x12a   :  { %5376 = vmatprep.subr.bf16.mxu0 %v5375_v47  ;;  %v619_v42 = vld [vmem:[%s9223_s1 + $0x1260] sm:$0xff]  ;;  %v620_v34 = vld [vmem:[%s9223_s1 + $0x1268] sm:$0xff]  ;;  %v5423_v37 = vpack.c.bf16 %v668_v29, %v667_v28  ;;  %v638_v41 = vld [vmem:[%s9223_s1 + $0x12f8] sm:$0xff] }
 0x12b   :  { %5406 = vmatpush3.bf16.msra.mxu1 %v5405_v46  ;;  %v651_v35 = vld [vmem:[%s9223_s1 + $0x1360] sm:$0xff]  ;;  %v652_v38 = vld [vmem:[%s9223_s1 + $0x1368] sm:$0xff]  ;;  %v669_v46 = vld [vmem:[%s9223_s1 + $0x13f0] sm:$0xff]  ;;  %v5393_v49 = vpack.c.bf16 %v620_v34, %v619_v42  ;;  %v5395_v54 = vpack.c.bf16 %v638_v41, %v637_v40 }
 0x12c   :  { %5408 = vmatprep.subr.bf16.mxu1 %v5407_v50  ;;  %v670_v47 = vld [vmem:[%s9223_s1 + $0x13f8] sm:$0xff]  ;;  %v25_v50 = vld [vmem:[%s9222_s0 + $0x50] sm:$0xff]  ;;  %v5425_v53 = vpack.c.bf16 %v652_v38, %v651_v35  ;;  %v687_v51 = vld [vmem:[%s9223_s1 + $0x1480] sm:$0xff] }
 0x12d   :  { %5378 = vmatpush3.bf16.msra.mxu0 %v5377_v57  ;;  %v621_v55 = vld [vmem:[%s9223_s1 + $0x1270] sm:$0xff]  ;;  %v622_v56 = vld [vmem:[%s9223_s1 + $0x1278] sm:$0xff]  ;;  %v688_v60 = vld [vmem:[%s9223_s1 + $0x1488] sm:$0xff]  ;;  %v1248_v62 = vcombine.high %v25_v50, %v25_v50  ;;  %v7984_v9 = vrot.slane %v25_v50, %v6029_v13 }
 0x12e   :  { %5380 = vmatprep.subr.bf16.mxu0 %v5379_v58  ;;  %v653_v57 = vld [vmem:[%s9223_s1 + $0x1370] sm:$0xff]  ;;  %v5427_v58 = vpack.c.bf16 %v670_v47, %v669_v46  ;;  %v654_v59 = vld [vmem:[%s9223_s1 + $0x1378] sm:$0xff]  ;;  %v5397_v63 = vpack.c.bf16 %v622_v56, %v621_v55  ;;  %v5431_v1 = vpack.c.bf16 %v688_v60, %v687_v51  ;;  %v704_v6 = vld [vmem:[%s9223_s1 + $0x1508] sm:$0xff] }
 0x12f   :  { %5410 = vmatpush3.bf16.msra.mxu1 %v5409_v45  ;;  %v5429_v0 = vpack.c.bf16 %v654_v59, %v653_v57  ;;  %v689_v8 = vld [vmem:[%s9223_s1 + $0x1490] sm:$0xff]  ;;  %v722_v11 = vld [vmem:[%s9223_s1 + $0x1598] sm:$0xff]  ;;  %v7993_v12 = vrot.slane %v1248_v62, %v6029_v13  ;;  %v691_v22 = vld [vmem:[%s9223_s1 + $0x14a0] sm:$0xff]  ;;  %v1263_v25 = vcombine.high %v7984_v9, %v7984_v9 }
 0x130   :  { %5412 = vmatprep.subr.bf16.mxu1 %v5411_v61  ;;  %v719_v61 = vld [vmem:[%s9223_s1 + $0x1580] sm:$0xff]  ;;  %v721_v26 = vld [vmem:[%s9223_s1 + $0x1590] sm:$0xff]  ;;  %v674_v18 = vld [vmem:[%s9223_s1 + $0x1418] sm:$0xff] }
 0x131   :  { %5382 = vmatpush3.bf16.msra.mxu0 %v5381_v2  ;;  %v671_v2 = vld [vmem:[%s9223_s1 + $0x1400] sm:$0xff]  ;;  %v705_v19 = vld [vmem:[%s9223_s1 + $0x1510] sm:$0xff]  ;;  %v5467_v20 = vpack.c.bf16 %v722_v11, %v721_v26  ;;  %v692_v24 = vld [vmem:[%s9223_s1 + $0x14a8] sm:$0xff] }
 0x132   :  { %5384 = vmatprep.subr.bf16.mxu0 %v5383_v4  ;;  %v703_v4 = vld [vmem:[%s9223_s1 + $0x1500] sm:$0xff]  ;;  %v724_v29 = vld [vmem:[%s9223_s1 + $0x15a8] sm:$0xff]  ;;  %v5439_v42 = vpack.c.bf16 %v692_v24, %v691_v22  ;;  %v694_v38 = vld [vmem:[%s9223_s1 + $0x14b8] sm:$0xff] }
 0x133   :  { %5414 = vmatpush3.bf16.msra.mxu1 %v5413_v3  ;;  %v672_v3 = vld [vmem:[%s9223_s1 + $0x1408] sm:$0xff]  ;;  %v723_v28 = vld [vmem:[%s9223_s1 + $0x15a0] sm:$0xff]  ;;  %v725_v40 = vld [vmem:[%s9223_s1 + $0x15b0] sm:$0xff] }
 0x134   :  { %5416 = vmatprep.subr.bf16.mxu1 %v5415_v7  ;;  %v690_v7 = vld [vmem:[%s9223_s1 + $0x1498] sm:$0xff]  ;;  %v5433_v14 = vpack.c.bf16 %v672_v3, %v671_v2  ;;  %v676_v34 = vld [vmem:[%s9223_s1 + $0x1428] sm:$0xff]  ;;  %v707_v35 = vld [vmem:[%s9223_s1 + $0x1520] sm:$0xff] }
 0x135   :  { %5386 = vmatpush3.bf16.msra.mxu0 %v5385_v15  ;;  %v5465_v15 = vpack.c.bf16 %v704_v6, %v703_v4  ;;  %v726_v41 = vld [vmem:[%s9223_s1 + $0x15b8] sm:$0xff]  ;;  %v677_v47 = vld [vmem:[%s9223_s1 + $0x1430] sm:$0xff]  ;;  %v728_v55 = vld [vmem:[%s9223_s1 + $0x15c8] sm:$0xff] }
 0x136   :  { %5388 = vmatprep.subr.bf16.mxu0 %v5387_v17  ;;  %v673_v17 = vld [vmem:[%s9223_s1 + $0x1410] sm:$0xff]  ;;  %v710_v50 = vld [vmem:[%s9223_s1 + $0x1538] sm:$0xff]  ;;  %v680_v59 = vld [vmem:[%s9223_s1 + $0x1448] sm:$0xff] }
 0x137   :  { %5418 = vmatpush3.bf16.msra.mxu1 %v5417_v16  ;;  %v3843_v36 = vpop.f32.mrb[4].mxu0  ;;  %v5435_v16 = vpack.c.bf16 %v690_v7, %v689_v8  ;;  %v711_v51 = vld [vmem:[%s9223_s1 + $0x1540] sm:$0xff]  ;;  %v698_v62 = vld [vmem:[%s9223_s1 + $0x14d8] sm:$0xff]  ;;  %v681_v4 = vld [vmem:[%s9223_s1 + $0x1450] sm:$0xff] }
 0x138   :  { %5420 = vmatprep.subr.bf16.mxu1 %v5419_v21  ;;  %v3844_v43 = vpop.f32.mrb[5].mxu0  ;;  %v706_v21 = vld [vmem:[%s9223_s1 + $0x1518] sm:$0xff]  ;;  %v713_v6 = vld [vmem:[%s9223_s1 + $0x1550] sm:$0xff]  ;;  %v699_v26 = vld [vmem:[%s9223_s1 + $0x14e0] sm:$0xff] }
 0x139   :  { %v3878_v44 = vpop.f32.mrb[4].mxu1  ;;  %v3845_v52 = vadd.f32 %v3844_v43, %v3843_v36  ;;  %5390 = vmatpush3.bf16.msra.mxu0 %v5389_v31  ;;  %v1264_v31 = vcombine.high %v7993_v12, %v7993_v12  ;;  %v5471_v36 = vpack.c.bf16 %v724_v29, %v723_v28  ;;  %v714_v7 = vld [vmem:[%s9223_s1 + $0x1558] sm:$0xff]  ;;  %v700_v11 = vld [vmem:[%s9223_s1 + $0x14e8] sm:$0xff]  ;;  %v701_v28 = vld [vmem:[%s9223_s1 + $0x14f0] sm:$0xff] }
 0x13a   :  { %v3879_v48 = vpop.f32.mrb[5].mxu1  ;;  %5392 = vmatprep.subr.bf16.mxu0 %v5391_v32  ;;  %v5469_v32 = vpack.c.bf16 %v706_v21, %v705_v19  ;;  %v683_v19 = vld [vmem:[%s9223_s1 + $0x1460] sm:$0xff]  ;;  %v702_v29 = vld [vmem:[%s9223_s1 + $0x14f8] sm:$0xff] }
 0x13b   :  { %v3880_v39 = vadd.f32 %v3879_v48, %v3878_v44  ;;  %5422 = vmatpush3.bf16.msra.mxu1 %v5421_v30  ;;  %v1761_v45 = vadd.f32 %v3845_v52, %v7753_v10  ;;  %v720_v10 = vld [vmem:[%s9223_s1 + $0x1588] sm:$0xff]  ;;  %v5437_v30 = vpack.c.bf16 %v674_v18, %v673_v17  ;;  %v678_v52 = vld [vmem:[%s9223_s1 + $0x1438] sm:$0xff]  ;;  %v709_v48 = vld [vmem:[%s9223_s1 + $0x1530] sm:$0xff]  ;;  %v5485_v17 = vpack.c.bf16 %v714_v7, %v713_v6 }
 0x13c   :  { %5424 = vmatprep.subr.bf16.mxu1 %v5423_v37  ;;  %v5463_v5 = vpack.c.bf16 %v720_v10, %v719_v61  ;;  %v693_v37 = vld [vmem:[%s9223_s1 + $0x14b0] sm:$0xff]  ;;  %v5445_v56 = vpack.c.bf16 %v678_v52, %v677_v47  ;;  %v5477_v57 = vpack.c.bf16 %v710_v50, %v709_v48  ;;  %v712_v61 = vld [vmem:[%s9223_s1 + $0x1548] sm:$0xff]  ;;  %v5455_v18 = vpack.c.bf16 %v700_v11, %v699_v26  ;;  %v715_v21 = vld [vmem:[%s9223_s1 + $0x1560] sm:$0xff] }
 0x13d   :  { %v7963_v33 = vadd.f32 %v3880_v39, %v1761_v45  ;;  %5394 = vmatpush3.bf16.msra.mxu0 %v5393_v49  ;;  %v5443_v46 = vpack.c.bf16 %v694_v38, %v693_v37  ;;  %v5475_v49 = vpack.c.bf16 %v726_v41, %v725_v40  ;;  %v695_v39 = vld [vmem:[%s9223_s1 + $0x14c0] sm:$0xff]  ;;  %v697_v10 = vld [vmem:[%s9223_s1 + $0x14d0] sm:$0xff]  ;;  %v5481_v2 = vpack.c.bf16 %v712_v61, %v711_v51  ;;  %v686_v41 = vld [vmem:[%s9223_s1 + $0x1478] sm:$0xff] }
 0x13e   :  { %5396 = vmatprep.subr.bf16.mxu0 %v5395_v54  ;;  %v727_v54 = vld [vmem:[%s9223_s1 + $0x15c0] sm:$0xff]  ;;  %v5451_v3 = vpack.c.bf16 %v698_v62, %v697_v10  ;;  %v5459_v38 = vpack.c.bf16 %v702_v29, %v701_v28  ;;  %v685_v40 = vld [vmem:[%s9223_s1 + $0x1470] sm:$0xff]  ;;  %v718_v47 = vld [vmem:[%s9223_s1 + $0x1578] sm:$0xff] }
 0x13f   :  { %5426 = vmatpush3.bf16.msra.mxu1 %v5425_v53  ;;  %v696_v53 = vld [vmem:[%s9223_s1 + $0x14c8] sm:$0xff]  ;;  %v5479_v60 = vpack.c.bf16 %v728_v55, %v727_v54  ;;  %v751_v52 = vld [vmem:[%s9223_s1 + $0x1680] sm:$0xff]  ;;  %v753_v51 = vld [vmem:[%s9223_s1 + $0x1690] sm:$0xff] }
 0x140   :  { %5428 = vmatprep.subr.bf16.mxu1 %v5427_v58  ;;  %v5447_v45 = vpack.c.bf16 %v696_v53, %v695_v39  ;;  %v679_v58 = vld [vmem:[%s9223_s1 + $0x1440] sm:$0xff]  ;;  %v752_v48 = vld [vmem:[%s9223_s1 + $0x1688] sm:$0xff]  ;;  %v5461_v53 = vpack.c.bf16 %v686_v41, %v685_v40  ;;  %v785_v10 = vld [vmem:[%s9223_s1 + $0x1790] sm:$0xff] }
 0x141   :  { %5398 = vmatpush3.bf16.msra.mxu0 %v5397_v63  ;;  %v729_v63 = vld [vmem:[%s9223_s1 + $0x15d0] sm:$0xff]  ;;  %v5495_v55 = vpack.c.bf16 %v752_v48, %v751_v52  ;;  %v786_v62 = vld [vmem:[%s9223_s1 + $0x1798] sm:$0xff]  ;;  %v755_v7 = vld [vmem:[%s9223_s1 + $0x16a0] sm:$0xff] }
 0x142   :  { %5432 = vmatprep.subr.bf16.mxu0 %v5431_v1  ;;  %v5449_v1 = vpack.c.bf16 %v680_v59, %v679_v58  ;;  %v768_v59 = vld [vmem:[%s9223_s1 + $0x1708] sm:$0xff]  ;;  %v5531_v6 = vpack.c.bf16 %v786_v62, %v785_v10  ;;  %v789_v28 = vld [vmem:[%s9223_s1 + $0x17b0] sm:$0xff]  ;;  %v790_v29 = vld [vmem:[%s9223_s1 + $0x17b8] sm:$0xff] }
 0x143   :  { %5430 = vmatpush3.bf16.msra.mxu1 %v5429_v0  ;;  %v730_v0 = vld [vmem:[%s9223_s1 + $0x15d8] sm:$0xff]  ;;  %v756_v26 = vld [vmem:[%s9223_s1 + $0x16a8] sm:$0xff]  ;;  %v775_v52 = vld [vmem:[%s9223_s1 + $0x1740] sm:$0xff] }
 0x144   :  { %5464 = vmatprep.subr.bf16.mxu1 %v5463_v5  ;;  %2739 = vmatmul.mubr.f32.vlgmr.msra.gmra.mrb[18].mxu0 %v7774_v23  ;;  %v675_v23 = vld [vmem:[%s9223_s1 + $0x1420] sm:$0xff]  ;;  %v682_v5 = vld [vmem:[%s9223_s1 + $0x1458] sm:$0xff]  ;;  %v5483_v8 = vpack.c.bf16 %v730_v0, %v729_v63  ;;  %v792_v40 = vld [vmem:[%s9223_s1 + $0x17c8] sm:$0xff] }
 0x145   :  { %5434 = vmatpush3.bf16.msra.mxu0 %v5433_v14  ;;  %2878 = vmatprep.mubr.f32.mxu0 %v1263_v25  ;;  %v5441_v43 = vpack.c.bf16 %v676_v34, %v675_v23  ;;  %v731_v14 = vld [vmem:[%s9223_s1 + $0x15e0] sm:$0xff]  ;;  %v716_v25 = vld [vmem:[%s9223_s1 + $0x1568] sm:$0xff] }
 0x146   :  { %2809 = vmatmul.mubr.f32.vlgmr.msra.gmra.mrb[18].mxu1 %v7783_v27  ;;  %5436 = vmatprep.subr.bf16.mxu0 %v5435_v16  ;;  %v708_v27 = vld [vmem:[%s9223_s1 + $0x1528] sm:$0xff]  ;;  %v5453_v16 = vpack.c.bf16 %v682_v5, %v681_v4  ;;  %v5489_v37 = vpack.c.bf16 %v716_v25, %v715_v21  ;;  %v738_v4 = vld [vmem:[%s9223_s1 + $0x1618] sm:$0xff]  ;;  %v769_v5 = vld [vmem:[%s9223_s1 + $0x1710] sm:$0xff] }
 0x147   :  { %5466 = vmatpush3.bf16.msra.mxu1 %v5465_v15  ;;  %2948 = vmatprep.mubr.f32.mxu1 %v1264_v31  ;;  %v5473_v44 = vpack.c.bf16 %v708_v27, %v707_v35  ;;  %v732_v15 = vld [vmem:[%s9223_s1 + $0x15e8] sm:$0xff]  ;;  %v771_v21 = vld [vmem:[%s9223_s1 + $0x1720] sm:$0xff]  ;;  %v758_v25 = vld [vmem:[%s9223_s1 + $0x16b8] sm:$0xff] }
 0x148   :  { %5468 = vmatprep.subr.bf16.mxu1 %v5467_v20  ;;  %v684_v20 = vld [vmem:[%s9223_s1 + $0x1468] sm:$0xff]  ;;  %v5487_v24 = vpack.c.bf16 %v732_v15, %v731_v14  ;;  %v787_v14 = vld [vmem:[%s9223_s1 + $0x17a0] sm:$0xff] }
 0x149   :  { %5438 = vmatpush3.bf16.msra.mxu0 %v5437_v30  ;;  %v5457_v35 = vpack.c.bf16 %v684_v20, %v683_v19  ;;  %v788_v15 = vld [vmem:[%s9223_s1 + $0x17a8] sm:$0xff]  ;;  %v5503_v19 = vpack.c.bf16 %v756_v26, %v755_v7  ;;  %v763_v10 = vld [vmem:[%s9223_s1 + $0x16e0] sm:$0xff] }
 0x14a   :  { %5440 = vmatprep.subr.bf16.mxu0 %v5439_v42  ;;  %v734_v42 = vld [vmem:[%s9223_s1 + $0x15f8] sm:$0xff]  ;;  %v740_v20 = vld [vmem:[%s9223_s1 + $0x1628] sm:$0xff] }
 0x14b   :  { %5470 = vmatpush3.bf16.msra.mxu1 %v5469_v32  ;;  %v733_v32 = vld [vmem:[%s9223_s1 + $0x15f0] sm:$0xff]  ;;  %v764_v62 = vld [vmem:[%s9223_s1 + $0x16e8] sm:$0xff] }
 0x14c   :  { %5472 = vmatprep.subr.bf16.mxu1 %v5471_v36  ;;  %v26_v36 = vld [vmem:[%s9222_s0 + $0x58] sm:$0xff] }
 0x14d   :  { %5442 = vmatpush3.bf16.msra.mxu0 %v5441_v43  ;;  %v717_v43 = vld [vmem:[%s9223_s1 + $0x1570] sm:$0xff]  ;;  %v1265_v50 = vcombine.high %v26_v36, %v26_v36  ;;  %v8194_v61 = vrot.slane %v26_v36, %v6029_v13  ;;  %v774_v36 = vld [vmem:[%s9223_s1 + $0x1738] sm:$0xff] }
 0x14e   :  { %5444 = vmatprep.subr.bf16.mxu0 %v5443_v46  ;;  %v5491_v46 = vpack.c.bf16 %v734_v42, %v733_v32  ;;  %v5493_v54 = vpack.c.bf16 %v718_v47, %v717_v43  ;;  %v741_v42 = vld [vmem:[%s9223_s1 + $0x1630] sm:$0xff]  ;;  %v744_v47 = vld [vmem:[%s9223_s1 + $0x1648] sm:$0xff] }
 0x14f   :  { %5474 = vmatpush3.bf16.msra.mxu1 %v5473_v44  ;;  %v8203_v63 = vrot.slane %v1265_v50, %v6029_v13  ;;  %v1280_v11 = vcombine.high %v8194_v61, %v8194_v61  ;;  %v762_v50 = vld [vmem:[%s9223_s1 + $0x16d8] sm:$0xff] }
 0x150   :  { %5476 = vmatprep.subr.bf16.mxu1 %v5475_v49  ;;  %v783_v49 = vld [vmem:[%s9223_s1 + $0x1780] sm:$0xff] }
 0x151   :  { %5446 = vmatpush3.bf16.msra.mxu0 %v5445_v56  ;;  %v735_v56 = vld [vmem:[%s9223_s1 + $0x1600] sm:$0xff] }
 0x152   :  { %5448 = vmatprep.subr.bf16.mxu0 %v5447_v45  ;;  %v767_v45 = vld [vmem:[%s9223_s1 + $0x1700] sm:$0xff] }
 0x153   :  { %5478 = vmatpush3.bf16.msra.mxu1 %v5477_v57  ;;  %v736_v57 = vld [vmem:[%s9223_s1 + $0x1608] sm:$0xff] }
 0x154   :  { %5480 = vmatprep.subr.bf16.mxu1 %v5479_v60  ;;  %v754_v60 = vld [vmem:[%s9223_s1 + $0x1698] sm:$0xff]  ;;  %v5497_v0 = vpack.c.bf16 %v736_v57, %v735_v56 }
 0x155   :  { %5450 = vmatpush3.bf16.msra.mxu0 %v5449_v1  ;;  %v5529_v1 = vpack.c.bf16 %v768_v59, %v767_v45  ;;  %v745_v45 = vld [vmem:[%s9223_s1 + $0x1650] sm:$0xff] }
 0x156   :  { %5452 = vmatprep.subr.bf16.mxu0 %v5451_v3  ;;  %v737_v3 = vld [vmem:[%s9223_s1 + $0x1610] sm:$0xff] }
 0x157   :  { %5482 = vmatpush3.bf16.msra.mxu1 %v5481_v2  ;;  %v3913_v22 = vpop.f32.mrb[6].mxu0  ;;  %v5499_v2 = vpack.c.bf16 %v754_v60, %v753_v51  ;;  %v777_v59 = vld [vmem:[%s9223_s1 + $0x1750] sm:$0xff]  ;;  %v778_v60 = vld [vmem:[%s9223_s1 + $0x1758] sm:$0xff] }
 0x158   :  { %5484 = vmatprep.subr.bf16.mxu1 %v5483_v8  ;;  %v3914_v31 = vpop.f32.mrb[7].mxu0  ;;  %v770_v8 = vld [vmem:[%s9223_s1 + $0x1718] sm:$0xff] }
 0x159   :  { %v3948_v30 = vpop.f32.mrb[6].mxu1  ;;  %v3915_v23 = vadd.f32 %v3914_v31, %v3913_v22  ;;  %5454 = vmatpush3.bf16.msra.mxu0 %v5453_v16  ;;  %v1281_v16 = vcombine.high %v8203_v63, %v8203_v63  ;;  %v5535_v22 = vpack.c.bf16 %v788_v15, %v787_v14  ;;  %v765_v14 = vld [vmem:[%s9223_s1 + $0x16f0] sm:$0xff]  ;;  %v766_v15 = vld [vmem:[%s9223_s1 + $0x16f8] sm:$0xff] }
 0x15a   :  { %v3949_v34 = vpop.f32.mrb[7].mxu1  ;;  %5456 = vmatprep.subr.bf16.mxu0 %v5455_v18  ;;  %v5533_v18 = vpack.c.bf16 %v770_v8, %v769_v5  ;;  %v747_v5 = vld [vmem:[%s9223_s1 + $0x1660] sm:$0xff] }
 0x15b   :  { %v3950_v27 = vadd.f32 %v3949_v34, %v3948_v30  ;;  %5486 = vmatpush3.bf16.msra.mxu1 %v5485_v17  ;;  %v1901_v44 = vadd.f32 %v3915_v23, %v7963_v33  ;;  %v784_v33 = vld [vmem:[%s9223_s1 + $0x1788] sm:$0xff]  ;;  %v5501_v17 = vpack.c.bf16 %v738_v4, %v737_v3  ;;  %v742_v23 = vld [vmem:[%s9223_s1 + $0x1638] sm:$0xff]  ;;  %v773_v34 = vld [vmem:[%s9223_s1 + $0x1730] sm:$0xff]  ;;  %v5549_v3 = vpack.c.bf16 %v778_v60, %v777_v59 }
 0x15c   :  { %5488 = vmatprep.subr.bf16.mxu1 %v5487_v24  ;;  %v5527_v58 = vpack.c.bf16 %v784_v33, %v783_v49  ;;  %v757_v24 = vld [vmem:[%s9223_s1 + $0x16b0] sm:$0xff]  ;;  %v5509_v41 = vpack.c.bf16 %v742_v23, %v741_v42  ;;  %v5541_v43 = vpack.c.bf16 %v774_v36, %v773_v34  ;;  %v776_v49 = vld [vmem:[%s9223_s1 + $0x1748] sm:$0xff]  ;;  %v5519_v4 = vpack.c.bf16 %v764_v62, %v763_v10  ;;  %v779_v8 = vld [vmem:[%s9223_s1 + $0x1760] sm:$0xff] }
 0x15d   :  { %v8173_v39 = vadd.f32 %v3950_v27, %v1901_v44  ;;  %5458 = vmatpush3.bf16.msra.mxu0 %v5457_v35  ;;  %v5507_v32 = vpack.c.bf16 %v758_v25, %v757_v24  ;;  %v5539_v35 = vpack.c.bf16 %v790_v29, %v789_v28  ;;  %v759_v27 = vld [vmem:[%s9223_s1 + $0x16c0] sm:$0xff]  ;;  %v761_v33 = vld [vmem:[%s9223_s1 + $0x16d0] sm:$0xff]  ;;  %v5545_v56 = vpack.c.bf16 %v776_v49, %v775_v52  ;;  %v750_v29 = vld [vmem:[%s9223_s1 + $0x1678] sm:$0xff] }
 0x15e   :  { %5460 = vmatprep.subr.bf16.mxu0 %v5459_v38  ;;  %v791_v38 = vld [vmem:[%s9223_s1 + $0x17c0] sm:$0xff]  ;;  %v5515_v57 = vpack.c.bf16 %v762_v50, %v761_v33  ;;  %v5523_v25 = vpack.c.bf16 %v766_v15, %v765_v14  ;;  %v749_v28 = vld [vmem:[%s9223_s1 + $0x1670] sm:$0xff]  ;;  %v782_v42 = vld [vmem:[%s9223_s1 + $0x1778] sm:$0xff] }
 0x15f   :  { %5490 = vmatpush3.bf16.msra.mxu1 %v5489_v37  ;;  %v760_v37 = vld [vmem:[%s9223_s1 + $0x16c8] sm:$0xff]  ;;  %v5543_v48 = vpack.c.bf16 %v792_v40, %v791_v38  ;;  %v815_v23 = vld [vmem:[%s9223_s1 + $0x1880] sm:$0xff]  ;;  %v817_v52 = vld [vmem:[%s9223_s1 + $0x1890] sm:$0xff] }
 0x160   :  { %5492 = vmatprep.subr.bf16.mxu1 %v5491_v46  ;;  %v5511_v44 = vpack.c.bf16 %v760_v37, %v759_v27  ;;  %v743_v46 = vld [vmem:[%s9223_s1 + $0x1640] sm:$0xff]  ;;  %v816_v34 = vld [vmem:[%s9223_s1 + $0x1888] sm:$0xff]  ;;  %v5525_v37 = vpack.c.bf16 %v750_v29, %v749_v28  ;;  %v849_v33 = vld [vmem:[%s9223_s1 + $0x1990] sm:$0xff] }
 0x161   :  { %5462 = vmatpush3.bf16.msra.mxu0 %v5461_v53  ;;  %v793_v53 = vld [vmem:[%s9223_s1 + $0x17d0] sm:$0xff]  ;;  %v5559_v40 = vpack.c.bf16 %v816_v34, %v815_v23  ;;  %v850_v50 = vld [vmem:[%s9223_s1 + $0x1998] sm:$0xff]  ;;  %v819_v60 = vld [vmem:[%s9223_s1 + $0x18a0] sm:$0xff] }
 0x162   :  { %5496 = vmatprep.subr.bf16.mxu0 %v5495_v55  ;;  %v5513_v55 = vpack.c.bf16 %v744_v47, %v743_v46  ;;  %v832_v47 = vld [vmem:[%s9223_s1 + $0x1908] sm:$0xff]  ;;  %v5595_v59 = vpack.c.bf16 %v850_v50, %v849_v33  ;;  %v853_v14 = vld [vmem:[%s9223_s1 + $0x19b0] sm:$0xff]  ;;  %v854_v15 = vld [vmem:[%s9223_s1 + $0x19b8] sm:$0xff] }
 0x163   :  { %5494 = vmatpush3.bf16.msra.mxu1 %v5493_v54  ;;  %v794_v54 = vld [vmem:[%s9223_s1 + $0x17d8] sm:$0xff]  ;;  %v820_v10 = vld [vmem:[%s9223_s1 + $0x18a8] sm:$0xff]  ;;  %v839_v23 = vld [vmem:[%s9223_s1 + $0x1940] sm:$0xff] }
 0x164   :  { %5528 = vmatprep.subr.bf16.mxu1 %v5527_v58  ;;  %2879 = vmatmul.mubr.f32.vlgmr.msra.gmra.mrb[20].mxu0 %v7984_v9  ;;  %v739_v9 = vld [vmem:[%s9223_s1 + $0x1620] sm:$0xff]  ;;  %v746_v58 = vld [vmem:[%s9223_s1 + $0x1658] sm:$0xff]  ;;  %v5547_v51 = vpack.c.bf16 %v794_v54, %v793_v53  ;;  %v856_v28 = vld [vmem:[%s9223_s1 + $0x19c8] sm:$0xff] }
 0x165   :  { %5498 = vmatpush3.bf16.msra.mxu0 %v5497_v0  ;;  %3018 = vmatprep.mubr.f32.mxu0 %v1280_v11  ;;  %v5505_v31 = vpack.c.bf16 %v740_v20, %v739_v9  ;;  %v795_v0 = vld [vmem:[%s9223_s1 + $0x17e0] sm:$0xff]  ;;  %v780_v11 = vld [vmem:[%s9223_s1 + $0x1768] sm:$0xff] }
 0x166   :  { %2949 = vmatmul.mubr.f32.vlgmr.msra.gmra.mrb[20].mxu1 %v7993_v12  ;;  %5500 = vmatprep.subr.bf16.mxu0 %v5499_v2  ;;  %v772_v12 = vld [vmem:[%s9223_s1 + $0x1728] sm:$0xff]  ;;  %v5517_v2 = vpack.c.bf16 %v746_v58, %v745_v45  ;;  %v5553_v24 = vpack.c.bf16 %v780_v11, %v779_v8  ;;  %v802_v45 = vld [vmem:[%s9223_s1 + $0x1818] sm:$0xff]  ;;  %v833_v58 = vld [vmem:[%s9223_s1 + $0x1910] sm:$0xff] }
 0x167   :  { %5530 = vmatpush3.bf16.msra.mxu1 %v5529_v1  ;;  %3088 = vmatprep.mubr.f32.mxu1 %v1281_v16  ;;  %v5537_v30 = vpack.c.bf16 %v772_v12, %v771_v21  ;;  %v796_v1 = vld [vmem:[%s9223_s1 + $0x17e8] sm:$0xff]  ;;  %v835_v8 = vld [vmem:[%s9223_s1 + $0x1920] sm:$0xff]  ;;  %v822_v11 = vld [vmem:[%s9223_s1 + $0x18b8] sm:$0xff] }
 0x168   :  { %5532 = vmatprep.subr.bf16.mxu1 %v5531_v6  ;;  %v748_v6 = vld [vmem:[%s9223_s1 + $0x1668] sm:$0xff]  ;;  %v5551_v26 = vpack.c.bf16 %v796_v1, %v795_v0  ;;  %v851_v0 = vld [vmem:[%s9223_s1 + $0x19a0] sm:$0xff] }
 0x169   :  { %5502 = vmatpush3.bf16.msra.mxu0 %v5501_v17  ;;  %v5521_v21 = vpack.c.bf16 %v748_v6, %v747_v5  ;;  %v852_v1 = vld [vmem:[%s9223_s1 + $0x19a8] sm:$0xff]  ;;  %v5567_v5 = vpack.c.bf16 %v820_v10, %v819_v60  ;;  %v827_v33 = vld [vmem:[%s9223_s1 + $0x18e0] sm:$0xff] }
 0x16a   :  { %5504 = vmatprep.subr.bf16.mxu0 %v5503_v19  ;;  %v798_v19 = vld [vmem:[%s9223_s1 + $0x17f8] sm:$0xff]  ;;  %v804_v6 = vld [vmem:[%s9223_s1 + $0x1828] sm:$0xff] }
 0x16b   :  { %5534 = vmatpush3.bf16.msra.mxu1 %v5533_v18  ;;  %v797_v18 = vld [vmem:[%s9223_s1 + $0x17f0] sm:$0xff]  ;;  %v828_v50 = vld [vmem:[%s9223_s1 + $0x18e8] sm:$0xff] }
 0x16c   :  { %5536 = vmatprep.subr.bf16.mxu1 %v5535_v22  ;;  %v27_v22 = vld [vmem:[%s9222_s0 + $0x60] sm:$0xff] }
 0x16d   :  { %5506 = vmatpush3.bf16.msra.mxu0 %v5505_v31  ;;  %v781_v31 = vld [vmem:[%s9223_s1 + $0x1770] sm:$0xff]  ;;  %v1282_v36 = vcombine.high %v27_v22, %v27_v22  ;;  %v8404_v49 = vrot.slane %v27_v22, %v6029_v13  ;;  %v838_v22 = vld [vmem:[%s9223_s1 + $0x1938] sm:$0xff] }
 0x16e   :  { %5508 = vmatprep.subr.bf16.mxu0 %v5507_v32  ;;  %v5555_v32 = vpack.c.bf16 %v798_v19, %v797_v18  ;;  %v5557_v38 = vpack.c.bf16 %v782_v42, %v781_v31  ;;  %v805_v19 = vld [vmem:[%s9223_s1 + $0x1830] sm:$0xff]  ;;  %v808_v42 = vld [vmem:[%s9223_s1 + $0x1848] sm:$0xff] }
 0x16f   :  { %5538 = vmatpush3.bf16.msra.mxu1 %v5537_v30  ;;  %v8413_v53 = vrot.slane %v1282_v36, %v6029_v13  ;;  %v1297_v62 = vcombine.high %v8404_v49, %v8404_v49  ;;  %v826_v36 = vld [vmem:[%s9223_s1 + $0x18d8] sm:$0xff] }
 0x170   :  { %5540 = vmatprep.subr.bf16.mxu1 %v5539_v35  ;;  %v847_v35 = vld [vmem:[%s9223_s1 + $0x1980] sm:$0xff] }
 0x171   :  { %5510 = vmatpush3.bf16.msra.mxu0 %v5509_v41  ;;  %v799_v41 = vld [vmem:[%s9223_s1 + $0x1800] sm:$0xff] }
 0x172   :  { %5512 = vmatprep.subr.bf16.mxu0 %v5511_v44  ;;  %v831_v44 = vld [vmem:[%s9223_s1 + $0x1900] sm:$0xff] }
 0x173   :  { %5542 = vmatpush3.bf16.msra.mxu1 %v5541_v43  ;;  %v800_v43 = vld [vmem:[%s9223_s1 + $0x1808] sm:$0xff] }
 0x174   :  { %5544 = vmatprep.subr.bf16.mxu1 %v5543_v48  ;;  %v818_v48 = vld [vmem:[%s9223_s1 + $0x1898] sm:$0xff]  ;;  %v5561_v54 = vpack.c.bf16 %v800_v43, %v799_v41 }
 0x175   :  { %5514 = vmatpush3.bf16.msra.mxu0 %v5513_v55  ;;  %v5593_v55 = vpack.c.bf16 %v832_v47, %v831_v44  ;;  %v809_v44 = vld [vmem:[%s9223_s1 + $0x1850] sm:$0xff] }
 0x176   :  { %5516 = vmatprep.subr.bf16.mxu0 %v5515_v57  ;;  %v801_v57 = vld [vmem:[%s9223_s1 + $0x1810] sm:$0xff] }
 0x177   :  { %5546 = vmatpush3.bf16.msra.mxu1 %v5545_v56  ;;  %v3983_v7 = vpop.f32.mrb[8].mxu0  ;;  %v5563_v56 = vpack.c.bf16 %v818_v48, %v817_v52  ;;  %v841_v47 = vld [vmem:[%s9223_s1 + $0x1950] sm:$0xff]  ;;  %v842_v48 = vld [vmem:[%s9223_s1 + $0x1958] sm:$0xff] }
 0x178   :  { %5548 = vmatprep.subr.bf16.mxu1 %v5547_v51  ;;  %v3984_v16 = vpop.f32.mrb[9].mxu0  ;;  %v834_v51 = vld [vmem:[%s9223_s1 + $0x1918] sm:$0xff] }
 0x179   :  { %v4018_v17 = vpop.f32.mrb[8].mxu1  ;;  %v3985_v9 = vadd.f32 %v3984_v16, %v3983_v7  ;;  %5518 = vmatpush3.bf16.msra.mxu0 %v5517_v2  ;;  %v1298_v2 = vcombine.high %v8413_v53, %v8413_v53  ;;  %v5599_v7 = vpack.c.bf16 %v852_v1, %v851_v0  ;;  %v829_v0 = vld [vmem:[%s9223_s1 + $0x18f0] sm:$0xff]  ;;  %v830_v1 = vld [vmem:[%s9223_s1 + $0x18f8] sm:$0xff] }
 0x17a   :  { %v4019_v20 = vpop.f32.mrb[9].mxu1  ;;  %5520 = vmatprep.subr.bf16.mxu0 %v5519_v4  ;;  %v5597_v4 = vpack.c.bf16 %v834_v51, %v833_v58  ;;  %v811_v58 = vld [vmem:[%s9223_s1 + $0x1860] sm:$0xff] }
 0x17b   :  { %v4020_v12 = vadd.f32 %v4019_v20, %v4018_v17  ;;  %5550 = vmatpush3.bf16.msra.mxu1 %v5549_v3  ;;  %v2041_v30 = vadd.f32 %v3985_v9, %v8173_v39  ;;  %v848_v39 = vld [vmem:[%s9223_s1 + $0x1988] sm:$0xff]  ;;  %v5565_v3 = vpack.c.bf16 %v802_v45, %v801_v57  ;;  %v806_v9 = vld [vmem:[%s9223_s1 + $0x1838] sm:$0xff]  ;;  %v837_v20 = vld [vmem:[%s9223_s1 + $0x1930] sm:$0xff]  ;;  %v5613_v57 = vpack.c.bf16 %v842_v48, %v841_v47 }
 0x17c   :  { %5552 = vmatprep.subr.bf16.mxu1 %v5551_v26  ;;  %v5591_v46 = vpack.c.bf16 %v848_v39, %v847_v35  ;;  %v821_v26 = vld [vmem:[%s9223_s1 + $0x18b0] sm:$0xff]  ;;  %v5573_v29 = vpack.c.bf16 %v806_v9, %v805_v19  ;;  %v5605_v31 = vpack.c.bf16 %v838_v22, %v837_v20  ;;  %v840_v35 = vld [vmem:[%s9223_s1 + $0x1948] sm:$0xff]  ;;  %v5583_v45 = vpack.c.bf16 %v828_v50, %v827_v33  ;;  %v843_v51 = vld [vmem:[%s9223_s1 + $0x1960] sm:$0xff] }
 0x17d   :  { %v8383_v27 = vadd.f32 %v4020_v12, %v2041_v30  ;;  %5522 = vmatpush3.bf16.msra.mxu0 %v5521_v21  ;;  %v5571_v18 = vpack.c.bf16 %v822_v11, %v821_v26  ;;  %v5603_v21 = vpack.c.bf16 %v854_v15, %v853_v14  ;;  %v823_v12 = vld [vmem:[%s9223_s1 + $0x18c0] sm:$0xff]  ;;  %v825_v39 = vld [vmem:[%s9223_s1 + $0x18d0] sm:$0xff]  ;;  %v5609_v41 = vpack.c.bf16 %v840_v35, %v839_v23  ;;  %v814_v15 = vld [vmem:[%s9223_s1 + $0x1878] sm:$0xff] }
 0x17e   :  { %5524 = vmatprep.subr.bf16.mxu0 %v5523_v25  ;;  %v855_v25 = vld [vmem:[%s9223_s1 + $0x19c0] sm:$0xff]  ;;  %v5579_v43 = vpack.c.bf16 %v826_v36, %v825_v39  ;;  %v5587_v11 = vpack.c.bf16 %v830_v1, %v829_v0  ;;  %v813_v14 = vld [vmem:[%s9223_s1 + $0x1870] sm:$0xff]  ;;  %v846_v19 = vld [vmem:[%s9223_s1 + $0x1978] sm:$0xff] }
 0x17f   :  { %5554 = vmatpush3.bf16.msra.mxu1 %v5553_v24  ;;  %v824_v24 = vld [vmem:[%s9223_s1 + $0x18c8] sm:$0xff]  ;;  %v5607_v34 = vpack.c.bf16 %v856_v28, %v855_v25  ;;  %v879_v9 = vld [vmem:[%s9223_s1 + $0x1a80] sm:$0xff]  ;;  %v881_v23 = vld [vmem:[%s9223_s1 + $0x1a90] sm:$0xff] }
 0x180   :  { %5556 = vmatprep.subr.bf16.mxu1 %v5555_v32  ;;  %v5575_v30 = vpack.c.bf16 %v824_v24, %v823_v12  ;;  %v807_v32 = vld [vmem:[%s9223_s1 + $0x1840] sm:$0xff]  ;;  %v880_v20 = vld [vmem:[%s9223_s1 + $0x1a88] sm:$0xff]  ;;  %v5589_v24 = vpack.c.bf16 %v814_v15, %v813_v14  ;;  %v913_v39 = vld [vmem:[%s9223_s1 + $0x1b90] sm:$0xff] }
 0x181   :  { %5526 = vmatpush3.bf16.msra.mxu0 %v5525_v37  ;;  %v857_v37 = vld [vmem:[%s9223_s1 + $0x19d0] sm:$0xff]  ;;  %v5623_v28 = vpack.c.bf16 %v880_v20, %v879_v9  ;;  %v914_v36 = vld [vmem:[%s9223_s1 + $0x1b98] sm:$0xff]  ;;  %v883_v48 = vld [vmem:[%s9223_s1 + $0x1aa0] sm:$0xff] }
 0x182   :  { %5560 = vmatprep.subr.bf16.mxu0 %v5559_v40  ;;  %v5577_v40 = vpack.c.bf16 %v808_v42, %v807_v32  ;;  %v896_v42 = vld [vmem:[%s9223_s1 + $0x1b08] sm:$0xff]  ;;  %v5659_v47 = vpack.c.bf16 %v914_v36, %v913_v39  ;;  %v917_v0 = vld [vmem:[%s9223_s1 + $0x1bb0] sm:$0xff]  ;;  %v918_v1 = vld [vmem:[%s9223_s1 + $0x1bb8] sm:$0xff] }
 0x183   :  { %5558 = vmatpush3.bf16.msra.mxu1 %v5557_v38  ;;  %v858_v38 = vld [vmem:[%s9223_s1 + $0x19d8] sm:$0xff]  ;;  %v884_v33 = vld [vmem:[%s9223_s1 + $0x1aa8] sm:$0xff]  ;;  %v903_v9 = vld [vmem:[%s9223_s1 + $0x1b40] sm:$0xff] }
 0x184   :  { %5592 = vmatprep.subr.bf16.mxu1 %v5591_v46  ;;  %3019 = vmatmul.mubr.f32.vlgmr.msra.gmra.mrb[22].mxu0 %v8194_v61  ;;  %v803_v61 = vld [vmem:[%s9223_s1 + $0x1820] sm:$0xff]  ;;  %v810_v46 = vld [vmem:[%s9223_s1 + $0x1858] sm:$0xff]  ;;  %v5611_v52 = vpack.c.bf16 %v858_v38, %v857_v37  ;;  %v920_v14 = vld [vmem:[%s9223_s1 + $0x1bc8] sm:$0xff] }
 0x185   :  { %5562 = vmatpush3.bf16.msra.mxu0 %v5561_v54  ;;  %3158 = vmatprep.mubr.f32.mxu0 %v1297_v62  ;;  %v5569_v16 = vpack.c.bf16 %v804_v6, %v803_v61  ;;  %v859_v54 = vld [vmem:[%s9223_s1 + $0x19e0] sm:$0xff]  ;;  %v844_v62 = vld [vmem:[%s9223_s1 + $0x1968] sm:$0xff] }
 0x186   :  { %3089 = vmatmul.mubr.f32.vlgmr.msra.gmra.mrb[22].mxu1 %v8203_v63  ;;  %5564 = vmatprep.subr.bf16.mxu0 %v5563_v56  ;;  %v836_v63 = vld [vmem:[%s9223_s1 + $0x1928] sm:$0xff]  ;;  %v5581_v56 = vpack.c.bf16 %v810_v46, %v809_v44  ;;  %v5617_v26 = vpack.c.bf16 %v844_v62, %v843_v51  ;;  %v866_v44 = vld [vmem:[%s9223_s1 + $0x1a18] sm:$0xff]  ;;  %v897_v46 = vld [vmem:[%s9223_s1 + $0x1b10] sm:$0xff] }
 0x187   :  { %5594 = vmatpush3.bf16.msra.mxu1 %v5593_v55  ;;  %3228 = vmatprep.mubr.f32.mxu1 %v1298_v2  ;;  %v5601_v17 = vpack.c.bf16 %v836_v63, %v835_v8  ;;  %v860_v55 = vld [vmem:[%s9223_s1 + $0x19e8] sm:$0xff]  ;;  %v899_v51 = vld [vmem:[%s9223_s1 + $0x1b20] sm:$0xff]  ;;  %v886_v62 = vld [vmem:[%s9223_s1 + $0x1ab8] sm:$0xff] }
 0x188   :  { %5596 = vmatprep.subr.bf16.mxu1 %v5595_v59  ;;  %v812_v59 = vld [vmem:[%s9223_s1 + $0x1868] sm:$0xff]  ;;  %v5615_v10 = vpack.c.bf16 %v860_v55, %v859_v54  ;;  %v915_v54 = vld [vmem:[%s9223_s1 + $0x1ba0] sm:$0xff] }
 0x189   :  { %5566 = vmatpush3.bf16.msra.mxu0 %v5565_v3  ;;  %v5585_v8 = vpack.c.bf16 %v812_v59, %v811_v58  ;;  %v916_v55 = vld [vmem:[%s9223_s1 + $0x1ba8] sm:$0xff]  ;;  %v5631_v58 = vpack.c.bf16 %v884_v33, %v883_v48  ;;  %v891_v39 = vld [vmem:[%s9223_s1 + $0x1ae0] sm:$0xff] }
 0x18a   :  { %5568 = vmatprep.subr.bf16.mxu0 %v5567_v5  ;;  %v862_v5 = vld [vmem:[%s9223_s1 + $0x19f8] sm:$0xff]  ;;  %v868_v59 = vld [vmem:[%s9223_s1 + $0x1a28] sm:$0xff] }
 0x18b   :  { %5598 = vmatpush3.bf16.msra.mxu1 %v5597_v4  ;;  %v861_v4 = vld [vmem:[%s9223_s1 + $0x19f0] sm:$0xff]  ;;  %v892_v36 = vld [vmem:[%s9223_s1 + $0x1ae8] sm:$0xff] }
 0x18c   :  { %5600 = vmatprep.subr.bf16.mxu1 %v5599_v7  ;;  %v28_v7 = vld [vmem:[%s9222_s0 + $0x68] sm:$0xff] }
 0x18d   :  { %5570 = vmatpush3.bf16.msra.mxu0 %v5569_v16  ;;  %v845_v16 = vld [vmem:[%s9223_s1 + $0x1970] sm:$0xff]  ;;  %v1299_v22 = vcombine.high %v28_v7, %v28_v7  ;;  %v8614_v35 = vrot.slane %v28_v7, %v6029_v13  ;;  %v902_v7 = vld [vmem:[%s9223_s1 + $0x1b38] sm:$0xff] }
 0x18e   :  { %5572 = vmatprep.subr.bf16.mxu0 %v5571_v18  ;;  %v5619_v18 = vpack.c.bf16 %v862_v5, %v861_v4  ;;  %v5621_v25 = vpack.c.bf16 %v846_v19, %v845_v16  ;;  %v869_v5 = vld [vmem:[%s9223_s1 + $0x1a30] sm:$0xff]  ;;  %v872_v19 = vld [vmem:[%s9223_s1 + $0x1a48] sm:$0xff] }
 0x18f   :  { %5602 = vmatpush3.bf16.msra.mxu1 %v5601_v17  ;;  %v8623_v37 = vrot.slane %v1299_v22, %v6029_v13  ;;  %v1314_v50 = vcombine.high %v8614_v35, %v8614_v35  ;;  %v890_v22 = vld [vmem:[%s9223_s1 + $0x1ad8] sm:$0xff] }
 0x190   :  { %5604 = vmatprep.subr.bf16.mxu1 %v5603_v21  ;;  %v911_v21 = vld [vmem:[%s9223_s1 + $0x1b80] sm:$0xff] }
 0x191   :  { %5574 = vmatpush3.bf16.msra.mxu0 %v5573_v29  ;;  %v863_v29 = vld [vmem:[%s9223_s1 + $0x1a00] sm:$0xff] }
 0x192   :  { %5576 = vmatprep.subr.bf16.mxu0 %v5575_v30  ;;  %v895_v30 = vld [vmem:[%s9223_s1 + $0x1b00] sm:$0xff] }
 0x193   :  { %5606 = vmatpush3.bf16.msra.mxu1 %v5605_v31  ;;  %v864_v31 = vld [vmem:[%s9223_s1 + $0x1a08] sm:$0xff] }
 0x194   :  { %5608 = vmatprep.subr.bf16.mxu1 %v5607_v34  ;;  %v882_v34 = vld [vmem:[%s9223_s1 + $0x1a98] sm:$0xff]  ;;  %v5625_v38 = vpack.c.bf16 %v864_v31, %v863_v29 }
 0x195   :  { %5578 = vmatpush3.bf16.msra.mxu0 %v5577_v40  ;;  %v5657_v40 = vpack.c.bf16 %v896_v42, %v895_v30  ;;  %v873_v30 = vld [vmem:[%s9223_s1 + $0x1a50] sm:$0xff] }
 0x196   :  { %5580 = vmatprep.subr.bf16.mxu0 %v5579_v43  ;;  %v865_v43 = vld [vmem:[%s9223_s1 + $0x1a10] sm:$0xff] }
 0x197   :  { %5610 = vmatpush3.bf16.msra.mxu1 %v5609_v41  ;;  %v4053_v60 = vpop.f32.mrb[10].mxu0  ;;  %v5627_v41 = vpack.c.bf16 %v882_v34, %v881_v23  ;;  %v905_v42 = vld [vmem:[%s9223_s1 + $0x1b50] sm:$0xff]  ;;  %v906_v34 = vld [vmem:[%s9223_s1 + $0x1b58] sm:$0xff] }
 0x198   :  { %5612 = vmatprep.subr.bf16.mxu1 %v5611_v52  ;;  %v4054_v2 = vpop.f32.mrb[11].mxu0  ;;  %v898_v52 = vld [vmem:[%s9223_s1 + $0x1b18] sm:$0xff] }
 0x199   :  { %v4088_v3 = vpop.f32.mrb[10].mxu1  ;;  %v4055_v61 = vadd.f32 %v4054_v2, %v4053_v60  ;;  %5582 = vmatpush3.bf16.msra.mxu0 %v5581_v56  ;;  %v1315_v56 = vcombine.high %v8623_v37, %v8623_v37  ;;  %v5663_v60 = vpack.c.bf16 %v916_v55, %v915_v54  ;;  %v893_v54 = vld [vmem:[%s9223_s1 + $0x1af0] sm:$0xff]  ;;  %v894_v55 = vld [vmem:[%s9223_s1 + $0x1af8] sm:$0xff] }
 0x19a   :  { %v4089_v6 = vpop.f32.mrb[11].mxu1  ;;  %5584 = vmatprep.subr.bf16.mxu0 %v5583_v45  ;;  %v5661_v45 = vpack.c.bf16 %v898_v52, %v897_v46  ;;  %v875_v46 = vld [vmem:[%s9223_s1 + $0x1a60] sm:$0xff] }
 0x19b   :  { %v4090_v63 = vadd.f32 %v4089_v6, %v4088_v3  ;;  %5614 = vmatpush3.bf16.msra.mxu1 %v5613_v57  ;;  %v2181_v17 = vadd.f32 %v4055_v61, %v8383_v27  ;;  %v912_v27 = vld [vmem:[%s9223_s1 + $0x1b88] sm:$0xff]  ;;  %v5629_v57 = vpack.c.bf16 %v866_v44, %v865_v43  ;;  %v870_v61 = vld [vmem:[%s9223_s1 + $0x1a38] sm:$0xff]  ;;  %v901_v6 = vld [vmem:[%s9223_s1 + $0x1b30] sm:$0xff]  ;;  %v5677_v43 = vpack.c.bf16 %v906_v34, %v905_v42 }
 0x19c   :  { %5616 = vmatprep.subr.bf16.mxu1 %v5615_v10  ;;  %v5655_v32 = vpack.c.bf16 %v912_v27, %v911_v21  ;;  %v885_v10 = vld [vmem:[%s9223_s1 + $0x1ab0] sm:$0xff]  ;;  %v5637_v15 = vpack.c.bf16 %v870_v61, %v869_v5  ;;  %v5669_v16 = vpack.c.bf16 %v902_v7, %v901_v6  ;;  %v904_v21 = vld [vmem:[%s9223_s1 + $0x1b48] sm:$0xff]  ;;  %v5647_v44 = vpack.c.bf16 %v892_v36, %v891_v39  ;;  %v907_v52 = vld [vmem:[%s9223_s1 + $0x1b60] sm:$0xff] }
 0x19d   :  { %v8593_v12 = vadd.f32 %v4090_v63, %v2181_v17  ;;  %5586 = vmatpush3.bf16.msra.mxu0 %v5585_v8  ;;  %v5635_v4 = vpack.c.bf16 %v886_v62, %v885_v10  ;;  %v5667_v8 = vpack.c.bf16 %v918_v1, %v917_v0  ;;  %v887_v63 = vld [vmem:[%s9223_s1 + $0x1ac0] sm:$0xff]  ;;  %v889_v27 = vld [vmem:[%s9223_s1 + $0x1ad0] sm:$0xff]  ;;  %v5673_v29 = vpack.c.bf16 %v904_v21, %v903_v9  ;;  %v878_v1 = vld [vmem:[%s9223_s1 + $0x1a78] sm:$0xff] }
 0x19e   :  { %5588 = vmatprep.subr.bf16.mxu0 %v5587_v11  ;;  %v919_v11 = vld [vmem:[%s9223_s1 + $0x1bc0] sm:$0xff]  ;;  %v5643_v31 = vpack.c.bf16 %v890_v22, %v889_v27  ;;  %v5651_v62 = vpack.c.bf16 %v894_v55, %v893_v54  ;;  %v877_v0 = vld [vmem:[%s9223_s1 + $0x1a70] sm:$0xff]  ;;  %v910_v5 = vld [vmem:[%s9223_s1 + $0x1b78] sm:$0xff] }
 0x19f   :  { %5618 = vmatpush3.bf16.msra.mxu1 %v5617_v26  ;;  %v888_v26 = vld [vmem:[%s9223_s1 + $0x1ac8] sm:$0xff]  ;;  %v5671_v20 = vpack.c.bf16 %v920_v14, %v919_v11  ;;  %v943_v61 = vld [vmem:[%s9223_s1 + $0x1c80] sm:$0xff]  ;;  %v945_v9 = vld [vmem:[%s9223_s1 + $0x1c90] sm:$0xff] }
 0x1a0   :  { %5620 = vmatprep.subr.bf16.mxu1 %v5619_v18  ;;  %v5639_v17 = vpack.c.bf16 %v888_v26, %v887_v63  ;;  %v871_v18 = vld [vmem:[%s9223_s1 + $0x1a40] sm:$0xff]  ;;  %v944_v6 = vld [vmem:[%s9223_s1 + $0x1c88] sm:$0xff]  ;;  %v5653_v26 = vpack.c.bf16 %v878_v1, %v877_v0  ;;  %v977_v27 = vld [vmem:[%s9223_s1 + $0x1d90] sm:$0xff] }
 0x1a1   :  { %5590 = vmatpush3.bf16.msra.mxu0 %v5589_v24  ;;  %v921_v24 = vld [vmem:[%s9223_s1 + $0x1bd0] sm:$0xff]  ;;  %v5687_v14 = vpack.c.bf16 %v944_v6, %v943_v61  ;;  %v978_v22 = vld [vmem:[%s9223_s1 + $0x1d98] sm:$0xff]  ;;  %v947_v34 = vld [vmem:[%s9223_s1 + $0x1ca0] sm:$0xff] }
 0x1a2   :  { %5624 = vmatprep.subr.bf16.mxu0 %v5623_v28  ;;  %v5641_v28 = vpack.c.bf16 %v872_v19, %v871_v18  ;;  %v960_v19 = vld [vmem:[%s9223_s1 + $0x1d08] sm:$0xff]  ;;  %v5723_v42 = vpack.c.bf16 %v978_v22, %v977_v27  ;;  %v981_v54 = vld [vmem:[%s9223_s1 + $0x1db0] sm:$0xff]  ;;  %v982_v55 = vld [vmem:[%s9223_s1 + $0x1db8] sm:$0xff] }
 0x1a3   :  { %5622 = vmatpush3.bf16.msra.mxu1 %v5621_v25  ;;  %v922_v25 = vld [vmem:[%s9223_s1 + $0x1bd8] sm:$0xff]  ;;  %v948_v39 = vld [vmem:[%s9223_s1 + $0x1ca8] sm:$0xff]  ;;  %v967_v61 = vld [vmem:[%s9223_s1 + $0x1d40] sm:$0xff] }
 0x1a4   :  { %5656 = vmatprep.subr.bf16.mxu1 %v5655_v32  ;;  %3159 = vmatmul.mubr.f32.vlgmr.msra.gmra.mrb[24].mxu0 %v8404_v49  ;;  %v867_v49 = vld [vmem:[%s9223_s1 + $0x1a20] sm:$0xff]  ;;  %v874_v32 = vld [vmem:[%s9223_s1 + $0x1a58] sm:$0xff]  ;;  %v5675_v23 = vpack.c.bf16 %v922_v25, %v921_v24  ;;  %v984_v0 = vld [vmem:[%s9223_s1 + $0x1dc8] sm:$0xff] }
 0x1a5   :  { %5626 = vmatpush3.bf16.msra.mxu0 %v5625_v38  ;;  %3298 = vmatprep.mubr.f32.mxu0 %v1314_v50  ;;  %v5633_v2 = vpack.c.bf16 %v868_v59, %v867_v49  ;;  %v923_v38 = vld [vmem:[%s9223_s1 + $0x1be0] sm:$0xff]  ;;  %v908_v50 = vld [vmem:[%s9223_s1 + $0x1b68] sm:$0xff] }
 0x1a6   :  { %3229 = vmatmul.mubr.f32.vlgmr.msra.gmra.mrb[24].mxu1 %v8413_v53  ;;  %5628 = vmatprep.subr.bf16.mxu0 %v5627_v41  ;;  %v900_v53 = vld [vmem:[%s9223_s1 + $0x1b28] sm:$0xff]  ;;  %v5645_v41 = vpack.c.bf16 %v874_v32, %v873_v30  ;;  %v5681_v10 = vpack.c.bf16 %v908_v50, %v907_v52  ;;  %v930_v30 = vld [vmem:[%s9223_s1 + $0x1c18] sm:$0xff]  ;;  %v961_v32 = vld [vmem:[%s9223_s1 + $0x1d10] sm:$0xff] }
 0x1a7   :  { %5658 = vmatpush3.bf16.msra.mxu1 %v5657_v40  ;;  %3368 = vmatprep.mubr.f32.mxu1 %v1315_v56  ;;  %v5665_v3 = vpack.c.bf16 %v900_v53, %v899_v51  ;;  %v924_v40 = vld [vmem:[%s9223_s1 + $0x1be8] sm:$0xff]  ;;  %v963_v52 = vld [vmem:[%s9223_s1 + $0x1d20] sm:$0xff]  ;;  %v950_v50 = vld [vmem:[%s9223_s1 + $0x1cb8] sm:$0xff] }
 0x1a8   :  { %5660 = vmatprep.subr.bf16.mxu1 %v5659_v47  ;;  %v876_v47 = vld [vmem:[%s9223_s1 + $0x1a68] sm:$0xff]  ;;  %v5679_v33 = vpack.c.bf16 %v924_v40, %v923_v38  ;;  %v979_v38 = vld [vmem:[%s9223_s1 + $0x1da0] sm:$0xff] }
 0x1a9   :  { %5630 = vmatpush3.bf16.msra.mxu0 %v5629_v57  ;;  %v5649_v51 = vpack.c.bf16 %v876_v47, %v875_v46  ;;  %v980_v40 = vld [vmem:[%s9223_s1 + $0x1da8] sm:$0xff]  ;;  %v5695_v46 = vpack.c.bf16 %v948_v39, %v947_v34  ;;  %v955_v27 = vld [vmem:[%s9223_s1 + $0x1ce0] sm:$0xff] }
 0x1aa   :  { %5632 = vmatprep.subr.bf16.mxu0 %v5631_v58  ;;  %v926_v58 = vld [vmem:[%s9223_s1 + $0x1bf8] sm:$0xff]  ;;  %v932_v47 = vld [vmem:[%s9223_s1 + $0x1c28] sm:$0xff] }
 0x1ab   :  { %5662 = vmatpush3.bf16.msra.mxu1 %v5661_v45  ;;  %v925_v45 = vld [vmem:[%s9223_s1 + $0x1bf0] sm:$0xff]  ;;  %v956_v22 = vld [vmem:[%s9223_s1 + $0x1ce8] sm:$0xff] }
 0x1ac   :  { %5664 = vmatprep.subr.bf16.mxu1 %v5663_v60  ;;  %v29_v60 = vld [vmem:[%s9222_s0 + $0x70] sm:$0xff] }
 0x1ad   :  { %5634 = vmatpush3.bf16.msra.mxu0 %v5633_v2  ;;  %v909_v2 = vld [vmem:[%s9223_s1 + $0x1b70] sm:$0xff]  ;;  %v1316_v7 = vcombine.high %v29_v60, %v29_v60  ;;  %v8824_v21 = vrot.slane %v29_v60, %v6029_v13  ;;  %v966_v60 = vld [vmem:[%s9223_s1 + $0x1d38] sm:$0xff] }
 0x1ae   :  { %5636 = vmatprep.subr.bf16.mxu0 %v5635_v4  ;;  %v5683_v4 = vpack.c.bf16 %v926_v58, %v925_v45  ;;  %v5685_v11 = vpack.c.bf16 %v910_v5, %v909_v2  ;;  %v933_v58 = vld [vmem:[%s9223_s1 + $0x1c30] sm:$0xff]  ;;  %v936_v5 = vld [vmem:[%s9223_s1 + $0x1c48] sm:$0xff] }
 0x1af   :  { %5666 = vmatpush3.bf16.msra.mxu1 %v5665_v3  ;;  %v8833_v24 = vrot.slane %v1316_v7, %v6029_v13  ;;  %v1331_v36 = vcombine.high %v8824_v21, %v8824_v21  ;;  %v954_v7 = vld [vmem:[%s9223_s1 + $0x1cd8] sm:$0xff] }
 0x1b0   :  { %5668 = vmatprep.subr.bf16.mxu1 %v5667_v8  ;;  %v975_v8 = vld [vmem:[%s9223_s1 + $0x1d80] sm:$0xff] }
 0x1b1   :  { %5638 = vmatpush3.bf16.msra.mxu0 %v5637_v15  ;;  %v927_v15 = vld [vmem:[%s9223_s1 + $0x1c00] sm:$0xff] }
 0x1b2   :  { %5640 = vmatprep.subr.bf16.mxu0 %v5639_v17  ;;  %v959_v17 = vld [vmem:[%s9223_s1 + $0x1d00] sm:$0xff] }
 0x1b3   :  { %5670 = vmatpush3.bf16.msra.mxu1 %v5669_v16  ;;  %v928_v16 = vld [vmem:[%s9223_s1 + $0x1c08] sm:$0xff] }
 0x1b4   :  { %5672 = vmatprep.subr.bf16.mxu1 %v5671_v20  ;;  %v946_v20 = vld [vmem:[%s9223_s1 + $0x1c98] sm:$0xff]  ;;  %v5689_v25 = vpack.c.bf16 %v928_v16, %v927_v15 }
 0x1b5   :  { %5642 = vmatpush3.bf16.msra.mxu0 %v5641_v28  ;;  %v5721_v28 = vpack.c.bf16 %v960_v19, %v959_v17  ;;  %v937_v17 = vld [vmem:[%s9223_s1 + $0x1c50] sm:$0xff] }
 0x1b6   :  { %5644 = vmatprep.subr.bf16.mxu0 %v5643_v31  ;;  %v929_v31 = vld [vmem:[%s9223_s1 + $0x1c10] sm:$0xff] }
 0x1b7   :  { %5674 = vmatpush3.bf16.msra.mxu1 %v5673_v29  ;;  %v4123_v48 = vpop.f32.mrb[12].mxu0  ;;  %v5691_v29 = vpack.c.bf16 %v946_v20, %v945_v9  ;;  %v969_v19 = vld [vmem:[%s9223_s1 + $0x1d50] sm:$0xff]  ;;  %v970_v20 = vld [vmem:[%s9223_s1 + $0x1d58] sm:$0xff] }
 0x1b8   :  { %5676 = vmatprep.subr.bf16.mxu1 %v5675_v23  ;;  %v4124_v56 = vpop.f32.mrb[13].mxu0  ;;  %v962_v23 = vld [vmem:[%s9223_s1 + $0x1d18] sm:$0xff] }
 0x1b9   :  { %v4158_v57 = vpop.f32.mrb[12].mxu1  ;;  %v4125_v49 = vadd.f32 %v4124_v56, %v4123_v48  ;;  %5646 = vmatpush3.bf16.msra.mxu0 %v5645_v41  ;;  %v1332_v41 = vcombine.high %v8833_v24, %v8833_v24  ;;  %v5727_v48 = vpack.c.bf16 %v980_v40, %v979_v38  ;;  %v957_v38 = vld [vmem:[%s9223_s1 + $0x1cf0] sm:$0xff]  ;;  %v958_v40 = vld [vmem:[%s9223_s1 + $0x1cf8] sm:$0xff] }
 0x1ba   :  { %v4159_v59 = vpop.f32.mrb[13].mxu1  ;;  %5648 = vmatprep.subr.bf16.mxu0 %v5647_v44  ;;  %v5725_v44 = vpack.c.bf16 %v962_v23, %v961_v32  ;;  %v939_v32 = vld [vmem:[%s9223_s1 + $0x1c60] sm:$0xff] }
 0x1bb   :  { %v4160_v53 = vadd.f32 %v4159_v59, %v4158_v57  ;;  %5678 = vmatpush3.bf16.msra.mxu1 %v5677_v43  ;;  %v2321_v3 = vadd.f32 %v4125_v49, %v8593_v12  ;;  %v976_v12 = vld [vmem:[%s9223_s1 + $0x1d88] sm:$0xff]  ;;  %v5693_v43 = vpack.c.bf16 %v930_v30, %v929_v31  ;;  %v934_v49 = vld [vmem:[%s9223_s1 + $0x1c38] sm:$0xff]  ;;  %v965_v59 = vld [vmem:[%s9223_s1 + $0x1d30] sm:$0xff]  ;;  %v5741_v31 = vpack.c.bf16 %v970_v20, %v969_v19 }
 0x1bc   :  { %5680 = vmatprep.subr.bf16.mxu1 %v5679_v33  ;;  %v5719_v18 = vpack.c.bf16 %v976_v12, %v975_v8  ;;  %v949_v33 = vld [vmem:[%s9223_s1 + $0x1cb0] sm:$0xff]  ;;  %v5701_v1 = vpack.c.bf16 %v934_v49, %v933_v58  ;;  %v5733_v2 = vpack.c.bf16 %v966_v60, %v965_v59  ;;  %v968_v8 = vld [vmem:[%s9223_s1 + $0x1d48] sm:$0xff]  ;;  %v5711_v30 = vpack.c.bf16 %v956_v22, %v955_v27  ;;  %v971_v23 = vld [vmem:[%s9223_s1 + $0x1d60] sm:$0xff] }
 0x1bd   :  { %v8803_v63 = vadd.f32 %v4160_v53, %v2321_v3  ;;  %5650 = vmatpush3.bf16.msra.mxu0 %v5649_v51  ;;  %v5699_v45 = vpack.c.bf16 %v950_v50, %v949_v33  ;;  %v5731_v51 = vpack.c.bf16 %v982_v55, %v981_v54  ;;  %v951_v53 = vld [vmem:[%s9223_s1 + $0x1cc0] sm:$0xff]  ;;  %v953_v12 = vld [vmem:[%s9223_s1 + $0x1cd0] sm:$0xff]  ;;  %v5737_v15 = vpack.c.bf16 %v968_v8, %v967_v61  ;;  %v942_v55 = vld [vmem:[%s9223_s1 + $0x1c78] sm:$0xff] }
 0x1be   :  { %5652 = vmatprep.subr.bf16.mxu0 %v5651_v62  ;;  %v983_v62 = vld [vmem:[%s9223_s1 + $0x1dc0] sm:$0xff]  ;;  %v5707_v16 = vpack.c.bf16 %v954_v7, %v953_v12  ;;  %v5715_v50 = vpack.c.bf16 %v958_v40, %v957_v38  ;;  %v941_v54 = vld [vmem:[%s9223_s1 + $0x1c70] sm:$0xff]  ;;  %v974_v58 = vld [vmem:[%s9223_s1 + $0x1d78] sm:$0xff] }
 0x1bf   :  { %5682 = vmatpush3.bf16.msra.mxu1 %v5681_v10  ;;  %v952_v10 = vld [vmem:[%s9223_s1 + $0x1cc8] sm:$0xff]  ;;  %v5735_v6 = vpack.c.bf16 %v984_v0, %v983_v62  ;;  %v1007_v49 = vld [vmem:[%s9223_s1 + $0x1e80] sm:$0xff]  ;;  %v1009_v61 = vld [vmem:[%s9223_s1 + $0x1e90] sm:$0xff] }
 0x1c0   :  { %5684 = vmatprep.subr.bf16.mxu1 %v5683_v4  ;;  %v5703_v3 = vpack.c.bf16 %v952_v10, %v951_v53  ;;  %v935_v4 = vld [vmem:[%s9223_s1 + $0x1c40] sm:$0xff]  ;;  %v1008_v59 = vld [vmem:[%s9223_s1 + $0x1e88] sm:$0xff]  ;;  %v5717_v10 = vpack.c.bf16 %v942_v55, %v941_v54  ;;  %v1041_v12 = vld [vmem:[%s9223_s1 + $0x1f90] sm:$0xff] }
 0x1c1   :  { %5654 = vmatpush3.bf16.msra.mxu0 %v5653_v26  ;;  %v985_v26 = vld [vmem:[%s9223_s1 + $0x1dd0] sm:$0xff]  ;;  %v5751_v0 = vpack.c.bf16 %v1008_v59, %v1007_v49  ;;  %v1042_v7 = vld [vmem:[%s9223_s1 + $0x1f98] sm:$0xff]  ;;  %v1012_v20 = vld [vmem:[%s9223_s1 + $0x1ea8] sm:$0xff] }
 0x1c2   :  { %5688 = vmatprep.subr.bf16.mxu0 %v5687_v14  ;;  %v5705_v14 = vpack.c.bf16 %v936_v5, %v935_v4  ;;  %v1024_v5 = vld [vmem:[%s9223_s1 + $0x1f08] sm:$0xff]  ;;  %v1026_v19 = vld [vmem:[%s9223_s1 + $0x1f18] sm:$0xff]  ;;  %v1043_v22 = vld [vmem:[%s9223_s1 + $0x1fa0] sm:$0xff] }
 0x1c3   :  { %5686 = vmatpush3.bf16.msra.mxu1 %v5685_v11  ;;  %v986_v11 = vld [vmem:[%s9223_s1 + $0x1dd8] sm:$0xff]  ;;  %v1032_v59 = vld [vmem:[%s9223_s1 + $0x1f48] sm:$0xff] }
 0x1c4   :  { %5720 = vmatprep.subr.bf16.mxu1 %v5719_v18  ;;  %3299 = vmatmul.mubr.f32.vlgmr.msra.gmra.mrb[26].mxu0 %v8614_v35  ;;  %v931_v35 = vld [vmem:[%s9223_s1 + $0x1c20] sm:$0xff]  ;;  %v938_v18 = vld [vmem:[%s9223_s1 + $0x1c58] sm:$0xff]  ;;  %v5739_v9 = vpack.c.bf16 %v986_v11, %v985_v26 }
 0x1c5   :  { %5690 = vmatpush3.bf16.msra.mxu0 %v5689_v25  ;;  %3438 = vmatprep.mubr.f32.mxu0 %v1331_v36  ;;  %v5697_v56 = vpack.c.bf16 %v932_v47, %v931_v35  ;;  %v987_v25 = vld [vmem:[%s9223_s1 + $0x1de0] sm:$0xff]  ;;  %v972_v36 = vld [vmem:[%s9223_s1 + $0x1d68] sm:$0xff]  ;;  %v1046_v38 = vld [vmem:[%s9223_s1 + $0x1fb8] sm:$0xff] }
 0x1c6   :  { %3369 = vmatmul.mubr.f32.vlgmr.msra.gmra.mrb[26].mxu1 %v8623_v37  ;;  %5692 = vmatprep.subr.bf16.mxu0 %v5691_v29  ;;  %v964_v37 = vld [vmem:[%s9223_s1 + $0x1d28] sm:$0xff]  ;;  %v5709_v29 = vpack.c.bf16 %v938_v18, %v937_v17  ;;  %v5745_v33 = vpack.c.bf16 %v972_v36, %v971_v23  ;;  %v994_v17 = vld [vmem:[%s9223_s1 + $0x1e18] sm:$0xff]  ;;  %v1025_v18 = vld [vmem:[%s9223_s1 + $0x1f10] sm:$0xff] }
 0x1c7   :  { %5722 = vmatpush3.bf16.msra.mxu1 %v5721_v28  ;;  %3508 = vmatprep.mubr.f32.mxu1 %v1332_v41  ;;  %v5729_v57 = vpack.c.bf16 %v964_v37, %v963_v52  ;;  %v988_v28 = vld [vmem:[%s9223_s1 + $0x1de8] sm:$0xff]  ;;  %v1045_v36 = vld [vmem:[%s9223_s1 + $0x1fb0] sm:$0xff] }
 0x1c8   :  { %5724 = vmatprep.subr.bf16.mxu1 %v5723_v42  ;;  %v940_v42 = vld [vmem:[%s9223_s1 + $0x1c68] sm:$0xff]  ;;  %v5743_v39 = vpack.c.bf16 %v988_v28, %v987_v25 }
 0x1c9   :  { %5694 = vmatpush3.bf16.msra.mxu0 %v5693_v43  ;;  %v5713_v52 = vpack.c.bf16 %v940_v42, %v939_v32  ;;  %v1044_v25 = vld [vmem:[%s9223_s1 + $0x1fa8] sm:$0xff]  ;;  %v1027_v42 = vld [vmem:[%s9223_s1 + $0x1f20] sm:$0xff] }
 0x1ca   :  { %5696 = vmatprep.subr.bf16.mxu0 %v5695_v46  ;;  %v990_v46 = vld [vmem:[%s9223_s1 + $0x1df8] sm:$0xff]  ;;  %v996_v32 = vld [vmem:[%s9223_s1 + $0x1e28] sm:$0xff]  ;;  %v5791_v23 = vpack.c.bf16 %v1044_v25, %v1043_v22 }
 0x1cb   :  { %5726 = vmatpush3.bf16.msra.mxu1 %v5725_v44  ;;  %v989_v44 = vld [vmem:[%s9223_s1 + $0x1df0] sm:$0xff]  ;;  %v1022_v22 = vld [vmem:[%s9223_s1 + $0x1ef8] sm:$0xff] }
 0x1cc   :  { %5728 = vmatprep.subr.bf16.mxu1 %v5727_v48  ;;  %v30_v48 = vld [vmem:[%s9222_s0 + $0x78] sm:$0xff] }
 0x1cd   :  { %5698 = vmatpush3.bf16.msra.mxu0 %v5697_v56  ;;  %v973_v56 = vld [vmem:[%s9223_s1 + $0x1d70] sm:$0xff]  ;;  %v1333_v60 = vcombine.high %v30_v48, %v30_v48  ;;  %v9034_v8 = vrot.slane %v30_v48, %v6029_v13  ;;  %v1015_v48 = vld [vmem:[%s9223_s1 + $0x1ec0] sm:$0xff] }
 0x1ce   :  { %5700 = vmatprep.subr.bf16.mxu0 %v5699_v45  ;;  %v5747_v45 = vpack.c.bf16 %v990_v46, %v989_v44  ;;  %v5749_v62 = vpack.c.bf16 %v974_v58, %v973_v56  ;;  %v997_v44 = vld [vmem:[%s9223_s1 + $0x1e30] sm:$0xff]  ;;  %v998_v46 = vld [vmem:[%s9223_s1 + $0x1e38] sm:$0xff]  ;;  %v1031_v58 = vld [vmem:[%s9223_s1 + $0x1f40] sm:$0xff] }
 0x1cf   :  { %5730 = vmatpush3.bf16.msra.mxu1 %v5729_v57  ;;  %v9043_v26 = vrot.slane %v1333_v60, %v6029_v13  ;;  %v5787_v13 = vpack.c.bf16 %v1042_v7, %v1041_v12  ;;  %v1348_v27 = vcombine.high %v9034_v8, %v9034_v8  ;;  %v5765_v54 = vpack.c.bf16 %v998_v46, %v997_v44  ;;  %v1049_v60 = vld [vmem:[%s9223_s1 + $0x1fd0] sm:$0xff]  ;;  %v1020_v12 = vld [vmem:[%s9223_s1 + $0x1ee8] sm:$0xff]  ;;  %v1051_v7 = vld [vmem:[%s9223_s1 + $0x1fe0] sm:$0xff] }
 0x1d0   :  { %5732 = vmatprep.subr.bf16.mxu1 %v5731_v51  ;;  %v1039_v51 = vld [vmem:[%s9223_s1 + $0x1f80] sm:$0xff] }
 0x1d1   :  { %5702 = vmatpush3.bf16.msra.mxu0 %v5701_v1  ;;  %v991_v1 = vld [vmem:[%s9223_s1 + $0x1e00] sm:$0xff]  ;;  %v1349_v28 = vcombine.high %v9043_v26, %v9043_v26 }
 0x1d2   :  { %5704 = vmatprep.subr.bf16.mxu0 %v5703_v3  ;;  %v1023_v3 = vld [vmem:[%s9223_s1 + $0x1f00] sm:$0xff] }
 0x1d3   :  { %5734 = vmatpush3.bf16.msra.mxu1 %v5733_v2  ;;  %v992_v2 = vld [vmem:[%s9223_s1 + $0x1e08] sm:$0xff] }
 0x1d4   :  { %5736 = vmatprep.subr.bf16.mxu1 %v5735_v6  ;;  %v1010_v6 = vld [vmem:[%s9223_s1 + $0x1e98] sm:$0xff]  ;;  %v5753_v11 = vpack.c.bf16 %v992_v2, %v991_v1  ;;  %v1001_v2 = vld [vmem:[%s9223_s1 + $0x1e50] sm:$0xff] }
 0x1d5   :  { %5706 = vmatpush3.bf16.msra.mxu0 %v5705_v14  ;;  %v5785_v14 = vpack.c.bf16 %v1024_v5, %v1023_v3  ;;  %v1002_v3 = vld [vmem:[%s9223_s1 + $0x1e58] sm:$0xff] }
 0x1d6   :  { %5708 = vmatprep.subr.bf16.mxu0 %v5707_v16  ;;  %v993_v16 = vld [vmem:[%s9223_s1 + $0x1e10] sm:$0xff] }
 0x1d7   :  { %5738 = vmatpush3.bf16.msra.mxu1 %v5737_v15  ;;  %v4193_v34 = vpop.f32.mrb[14].mxu0  ;;  %v5755_v15 = vpack.c.bf16 %v1010_v6, %v1009_v61  ;;  %v1034_v61 = vld [vmem:[%s9223_s1 + $0x1f58] sm:$0xff]  ;;  %v1019_v6 = vld [vmem:[%s9223_s1 + $0x1ee0] sm:$0xff] }
 0x1d8   :  { %5740 = vmatprep.subr.bf16.mxu1 %v5739_v9  ;;  %v4194_v41 = vpop.f32.mrb[15].mxu0  ;;  %v1011_v9 = vld [vmem:[%s9223_s1 + $0x1ea0] sm:$0xff] }
 0x1d9   :  { %v4228_v43 = vpop.f32.mrb[14].mxu1  ;;  %v4195_v35 = vadd.f32 %v4194_v41, %v4193_v34  ;;  %5710 = vmatpush3.bf16.msra.mxu0 %v5709_v29  ;;  %v5757_v29 = vpack.c.bf16 %v994_v17, %v993_v16  ;;  %v1013_v34 = vld [vmem:[%s9223_s1 + $0x1eb0] sm:$0xff]  ;;  %v5775_v16 = vpack.c.bf16 %v1020_v12, %v1019_v6  ;;  %v1003_v17 = vld [vmem:[%s9223_s1 + $0x1e60] sm:$0xff] }
 0x1da   :  { %v4229_v47 = vpop.f32.mrb[15].mxu1  ;;  %5712 = vmatprep.subr.bf16.mxu0 %v5711_v30  ;;  %v5759_v30 = vpack.c.bf16 %v1012_v20, %v1011_v9  ;;  %v1036_v20 = vld [vmem:[%s9223_s1 + $0x1f68] sm:$0xff] }
 0x1db   :  { %v4230_v37 = vadd.f32 %v4229_v47, %v4228_v43  ;;  %5742 = vmatpush3.bf16.msra.mxu1 %v5741_v31  ;;  %v2461_v57 = vadd.f32 %v4195_v35, %v8803_v63  ;;  %v1040_v63 = vld [vmem:[%s9223_s1 + $0x1f88] sm:$0xff]  ;;  %v5789_v31 = vpack.c.bf16 %v1026_v19, %v1025_v18  ;;  %v1029_v35 = vld [vmem:[%s9223_s1 + $0x1f30] sm:$0xff]  ;;  %v5795_v47 = vpack.c.bf16 %v1046_v38, %v1045_v36 }
 0x1dc   :  { %5744 = vmatprep.subr.bf16.mxu1 %v5743_v39  ;;  %v5783_v4 = vpack.c.bf16 %v1040_v63, %v1039_v51  ;;  %v1014_v39 = vld [vmem:[%s9223_s1 + $0x1eb8] sm:$0xff]  ;;  %v1017_v51 = vld [vmem:[%s9223_s1 + $0x1ed0] sm:$0xff]  ;;  %v1004_v18 = vld [vmem:[%s9223_s1 + $0x1e68] sm:$0xff] }
 0x1dd   :  { %v9013_v53 = vadd.f32 %v4230_v37, %v2461_v57  ;;  %5714 = vmatpush3.bf16.msra.mxu0 %v5713_v52  ;;  %v5763_v43 = vpack.c.bf16 %v1014_v39, %v1013_v34  ;;  %v1030_v52 = vld [vmem:[%s9223_s1 + $0x1f38] sm:$0xff]  ;;  %v1016_v37 = vld [vmem:[%s9223_s1 + $0x1ec8] sm:$0xff]  ;;  %v999_v57 = vld [vmem:[%s9223_s1 + $0x1e40] sm:$0xff] }
 0x1de   :  { %5716 = vmatprep.subr.bf16.mxu0 %v5715_v50  ;;  %v1048_v50 = vld [vmem:[%s9223_s1 + $0x1fc8] sm:$0xff]  ;;  %v5797_v55 = vpack.c.bf16 %v1030_v52, %v1029_v35  ;;  %v5767_v56 = vpack.c.bf16 %v1016_v37, %v1015_v48  ;;  %v1018_v63 = vld [vmem:[%s9223_s1 + $0x1ed8] sm:$0xff]  ;;  %v1005_v34 = vld [vmem:[%s9223_s1 + $0x1e70] sm:$0xff] }
 0x1df   :  { %5746 = vmatpush3.bf16.msra.mxu1 %v5745_v33  ;;  %v1047_v33 = vld [vmem:[%s9223_s1 + $0x1fc0] sm:$0xff]  ;;  %v5771_v1 = vpack.c.bf16 %v1018_v63, %v1017_v51  ;;  %v1006_v39 = vld [vmem:[%s9223_s1 + $0x1e78] sm:$0xff] }
 0x1e0   :  { %5748 = vmatprep.subr.bf16.mxu1 %v5747_v45  ;;  %v1000_v45 = vld [vmem:[%s9223_s1 + $0x1e48] sm:$0xff]  ;;  %v5799_v49 = vpack.c.bf16 %v1048_v50, %v1047_v33  ;;  %v5781_v44 = vpack.c.bf16 %v1006_v39, %v1005_v34 }
 0x1e1   :  { %5718 = vmatpush3.bf16.msra.mxu0 %v5717_v10  ;;  %v1050_v10 = vld [vmem:[%s9223_s1 + $0x1fd8] sm:$0xff] }
 0x1e2   :  { %5752 = vmatprep.subr.bf16.mxu0 %v5751_v0  ;;  %v5801_v0 = vpack.c.bf16 %v1032_v59, %v1031_v58  ;;  %v5803_v5 = vpack.c.bf16 %v1050_v10, %v1049_v60 }
 0x1e3   :  { %5750 = vmatpush3.bf16.msra.mxu1 %v5749_v62  ;;  %v5769_v62 = vpack.c.bf16 %v1000_v45, %v999_v57 }
 0x1e4   :  { %5784 = vmatprep.subr.bf16.mxu1 %v5783_v4  ;;  %3439 = vmatmul.mubr.f32.vlgmr.msra.gmra.mrb[28].mxu0 %v8824_v21  ;;  %v995_v21 = vld [vmem:[%s9223_s1 + $0x1e20] sm:$0xff]  ;;  %v1033_v4 = vld [vmem:[%s9223_s1 + $0x1f50] sm:$0xff] }
 0x1e5   :  { %5754 = vmatpush3.bf16.msra.mxu0 %v5753_v11  ;;  %3578 = vmatprep.mubr.f32.mxu0 %v1348_v27  ;;  %v5761_v40 = vpack.c.bf16 %v996_v32, %v995_v21  ;;  %v1052_v11 = vld [vmem:[%s9223_s1 + $0x1fe8] sm:$0xff]  ;;  %v1021_v27 = vld [vmem:[%s9223_s1 + $0x1ef0] sm:$0xff]  ;;  %v5777_v32 = vpack.c.bf16 %v1004_v18, %v1003_v17 }
 0x1e6   :  { %3509 = vmatmul.mubr.f32.vlgmr.msra.gmra.mrb[28].mxu1 %v8833_v24  ;;  %5756 = vmatprep.subr.bf16.mxu0 %v5755_v15  ;;  %v1028_v24 = vld [vmem:[%s9223_s1 + $0x1f28] sm:$0xff]  ;;  %v5805_v15 = vpack.c.bf16 %v1034_v61, %v1033_v4  ;;  %v5807_v9 = vpack.c.bf16 %v1052_v11, %v1051_v7 }
 0x1e7   :  { %5786 = vmatpush3.bf16.msra.mxu1 %v5785_v14  ;;  %3648 = vmatprep.mubr.f32.mxu1 %v1349_v28  ;;  %v5793_v41 = vpack.c.bf16 %v1028_v24, %v1027_v42  ;;  %v5773_v14 = vpack.c.bf16 %v1002_v3, %v1001_v2  ;;  %v5779_v24 = vpack.c.bf16 %v1022_v22, %v1021_v27 }
 0x1e8   :  { %5788 = vmatprep.subr.bf16.mxu1 %v5787_v13  ;;  %v1035_v13 = vld [vmem:[%s9223_s1 + $0x1f60] sm:$0xff] }
 0x1e9   :  { %5758 = vmatpush3.bf16.msra.mxu0 %v5757_v29  ;;  %v1053_v29 = vld [vmem:[%s9223_s1 + $0x1ff0] sm:$0xff] }
 0x1ea   :  { %5760 = vmatprep.subr.bf16.mxu0 %v5759_v30 }
 0x1eb   :  { %5790 = vmatpush3.bf16.msra.mxu1 %v5789_v31  ;;  %v1054_v31 = vld [vmem:[%s9223_s1 + $0x1ff8] sm:$0xff] }
 0x1ec   :  { %5792 = vmatprep.subr.bf16.mxu1 %v5791_v23  ;;  %v5809_v23 = vpack.c.bf16 %v1036_v20, %v1035_v13  ;;  %v5811_v38 = vpack.c.bf16 %v1054_v31, %v1053_v29 }
 0x1ed   :  { %5762 = vmatpush3.bf16.msra.mxu0 %v5761_v40  ;;  %v1037_v40 = vld [vmem:[%s9223_s1 + $0x1f70] sm:$0xff] }
 0x1ee   :  { %5764 = vmatprep.subr.bf16.mxu0 %v5763_v43 }
 0x1ef   :  { %5794 = vmatpush3.bf16.msra.mxu1 %v5793_v41  ;;  %v1038_v41 = vld [vmem:[%s9223_s1 + $0x1f78] sm:$0xff]  ;;  %s5858_s1 = smov [#allocation2]  }
 0x1f0   :  { %5796 = vmatprep.subr.bf16.mxu1 %v5795_v47  ;;  %v5813_v46 = vpack.c.bf16 %v1038_v41, %v1037_v40  ;;  %s3662_s26 = sshll.u32 %s5858_s1, 4  ;;  %s3663_s26 = int_to_ptr.vmem [resolvable:$true] %s3662_s26 }
 0x1f1   :  { %5766 = vmatpush3.bf16.msra.mxu0 %v5765_v54  ;;  %s5833_s27 = scalar_lea.vmem %s3663_s26, 32  ;;  %p5838_p1 = scmp.lt.s32.totalorder %s3663_s26, %s3663_s26 }
 0x1f2   :  { %5768 = vmatprep.subr.bf16.mxu0 %v5767_v56  ;;  %p5834_p0 = scmp.ne.s32.totalorder %s3663_s26, %s5833_s27  ;;  %p5839_p2 = scmp.lt.s32.totalorder %s5833_s27, %s5833_s27 }
 0x1f3   :  { %5798 = vmatpush3.bf16.msra.mxu1 %v5797_v55 }
 0x1f4   :  { %5800 = vmatprep.subr.bf16.mxu1 %v5799_v49  ;;  %p5840_p3 = por %p5839_p2, %p5838_p1 }
 0x1f5   :  { %5770 = vmatpush3.bf16.msra.mxu0 %v5769_v62 }
 0x1f6   :  { %5772 = vmatprep.subr.bf16.mxu0 %v5771_v1  ;;  %p5841_p4 = pnand %p5840_p3, %p5834_p0 }
 0x1f7   :  { %5802 = vmatpush3.bf16.msra.mxu1 %v5801_v0  ;;  %v4263_v19 = vpop.f32.mrb[16].mxu0 }
 0x1f8   :  { %5804 = vmatprep.subr.bf16.mxu1 %v5803_v5  ;;  %v4264_v25 = vpop.f32.mrb[17].mxu0 }
 0x1f9   :  { %v4298_v28 = vpop.f32.mrb[16].mxu1  ;;  %v4265_v30 = vadd.f32 %v4264_v25, %v4263_v19  ;;  %5774 = vmatpush3.bf16.msra.mxu0 %v5773_v14 }
 0x1fa   :  { %v4299_v21 = vpop.f32.mrb[17].mxu1  ;;  %5776 = vmatprep.subr.bf16.mxu0 %v5775_v16 }
 0x1fb   :  { %v4300_v42 = vadd.f32 %v4299_v21, %v4298_v28  ;;  %5806 = vmatpush3.bf16.msra.mxu1 %v5805_v15  ;;  %v2601_v36 = vadd.f32 %v4265_v30, %v9013_v53 }
 0x1fc   :  { %5808 = vmatprep.subr.bf16.mxu1 %v5807_v9 }
 0x1fd   :  { %v2671_v43 = vadd.f32 %v4300_v42, %v2601_v36  ;;  %5778 = vmatpush3.bf16.msra.mxu0 %v5777_v32 }
 0x1fe   :  { %5780 = vmatprep.subr.bf16.mxu0 %v5779_v24 }
 0x1ff   :  { %5810 = vmatpush3.bf16.msra.mxu1 %v5809_v23 }
 0x200   :  { %5812 = vmatprep.subr.bf16.mxu1 %v5811_v38 }
 0x201   :  { %5782 = vmatpush3.bf16.msra.mxu0 %v5781_v44 }
 0x203   :  { %5814 = vmatpush3.bf16.msra.mxu1 %v5813_v46 }
 0x204   :  { %3579 = vmatmul.mubr.f32.vlgmr.msra.gmra.mrb[30].mxu0 %v9034_v8 }
 0x206   :  { %3649 = vmatmul.mubr.f32.vlgmr.msra.gmra.mrb[30].mxu1 %v9043_v26 }
 0x217   :  { %v4333_v53 = vpop.f32.mrb[18].mxu0 }
 0x218   :  { %v4334_v35 = vpop.f32.mrb[19].mxu0 }
 0x219   :  { %v4368_v47 = vpop.f32.mrb[18].mxu1  ;;  %v4335_v52 = vadd.f32 %v4334_v35, %v4333_v53 }
 0x21a   :  { %v4369_v48 = vpop.f32.mrb[19].mxu1 }
 0x21b   :  { %v4370_v37 = vadd.f32 %v4369_v48, %v4368_v47  ;;  %v2741_v33 = vadd.f32 %v4335_v52, %v2671_v43 }
 0x21d   :  { %v2811_v50 = vadd.f32 %v4370_v37, %v2741_v33 }
 0x237   :  { %v4403_v54 = vpop.f32.mrb[20].mxu0 }
 0x238   :  { %v4404_v55 = vpop.f32.mrb[21].mxu0 }
 0x239   :  { %v4438_v56 = vpop.f32.mrb[20].mxu1  ;;  %v4405_v57 = vadd.f32 %v4404_v55, %v4403_v54 }
 0x23a   :  { %v4439_v45 = vpop.f32.mrb[21].mxu1 }
 0x23b   :  { %v4440_v58 = vadd.f32 %v4439_v45, %v4438_v56  ;;  %v2881_v49 = vadd.f32 %v4405_v57, %v2811_v50 }
 0x23d   :  { %v2951_v59 = vadd.f32 %v4440_v58, %v2881_v49 }
 0x257   :  { %v4473_v51 = vpop.f32.mrb[22].mxu0 }
 0x258   :  { %v4474_v8 = vpop.f32.mrb[23].mxu0 }
 0x259   :  { %v4508_v63 = vpop.f32.mrb[22].mxu1  ;;  %v4475_v26 = vadd.f32 %v4474_v8, %v4473_v51 }
 0x25a   :  { %v4509_v60 = vpop.f32.mrb[23].mxu1 }
 0x25b   :  { %v4510_v10 = vadd.f32 %v4509_v60, %v4508_v63  ;;  %v3021_v62 = vadd.f32 %v4475_v26, %v2951_v59 }
 0x25d   :  { %v3091_v0 = vadd.f32 %v4510_v10, %v3021_v62 }
 0x277   :  { %v4543_v1 = vpop.f32.mrb[24].mxu0 }
 0x278   :  { %v4544_v2 = vpop.f32.mrb[25].mxu0 }
 0x279   :  { %v4578_v3 = vpop.f32.mrb[24].mxu1  ;;  %v4545_v4 = vadd.f32 %v4544_v2, %v4543_v1 }
 0x27a   :  { %v4579_v5 = vpop.f32.mrb[25].mxu1 }
 0x27b   :  { %v4580_v61 = vadd.f32 %v4579_v5, %v4578_v3  ;;  %v3161_v6 = vadd.f32 %v4545_v4, %v3091_v0 }
 0x27d   :  { %v3231_v12 = vadd.f32 %v4580_v61, %v3161_v6 }
 0x297   :  { %v4613_v7 = vpop.f32.mrb[26].mxu0 }
 0x298   :  { %v4614_v11 = vpop.f32.mrb[27].mxu0 }
 0x299   :  { %v4648_v14 = vpop.f32.mrb[26].mxu1  ;;  %v4615_v15 = vadd.f32 %v4614_v11, %v4613_v7 }
 0x29a   :  { %v4649_v16 = vpop.f32.mrb[27].mxu1 }
 0x29b   :  { %v4650_v17 = vadd.f32 %v4649_v16, %v4648_v14  ;;  %v3301_v18 = vadd.f32 %v4615_v15, %v3231_v12 }
 0x29d   :  { %v3371_v13 = vadd.f32 %v4650_v17, %v3301_v18 }
 0x2b7   :  { %v4683_v19 = vpop.f32.mrb[28].mxu0 }
 0x2b8   :  { %v4684_v9 = vpop.f32.mrb[29].mxu0 }
 0x2b9   :  { %v4718_v20 = vpop.f32.mrb[28].mxu1  ;;  %v4685_v27 = vadd.f32 %v4684_v9, %v4683_v19 }
 0x2ba   :  { %v4719_v22 = vpop.f32.mrb[29].mxu1 }
 0x2bb   :  { %v4720_v25 = vadd.f32 %v4719_v22, %v4718_v20  ;;  %v3441_v28 = vadd.f32 %v4685_v27, %v3371_v13 }
 0x2bd   :  { %v3511_v29 = vadd.f32 %v4720_v25, %v3441_v28 }
 0x2d7   :  { %v4753_v31 = vpop.f32.mrb[30].mxu0 }
 0x2d8   :  { %v4754_v30 = vpop.f32.mrb[31].mxu0 }
 0x2d9   :  { %v4788_v21 = vpop.f32.mrb[30].mxu1  ;;  %v4755_v32 = vadd.f32 %v4754_v30, %v4753_v31 }
 0x2da   :  { %v4789_v42 = vpop.f32.mrb[31].mxu1 }
 0x2db   :  { %v4790_v23 = vadd.f32 %v4789_v42, %v4788_v21  ;;  %v3581_v24 = vadd.f32 %v4755_v32, %v3511_v29 }
 0x2dd   :  { %v3651_v34 = vadd.f32 %v4790_v23, %v3581_v24 }
 0x2df   :  { %3655 = vst.msk [vmem:[#allocation2] sm:$0x3] %vm3654_vm0, %v3651_v34 }
 0x2e0   :  { %5844 = shalt.err (!%p5841_p4)
}
 0x2e1   :  { %s5845_s30 = scalar_lea.hbm %s9225_s3, 32 }
 0x2e2   :  { %p5846_p5 = scmp.ne.s32.totalorder %s9225_s3, %s5845_s30  ;;  %p5849_p6 = scmp.lt.u32.totalorder %s5845_s30, %s9225_s3 }
 0x2e4   :  { %p5851_p7 = pnand %p5849_p6, %p5846_p5 }
 0x2e6   :  { %5854 = shalt.err (!%p5851_p7)
}
 0x2e7   :  { %3665 = dma.vmem_to_hbm [thread:$0]  %s3663_s26, 32, %s9225_s3, [#allocation3]  }
 0x2e8   :  { %5855 = dma.done.wait [#allocation3], 32  }
 0x2e9   :  { %5856 = vsyncadd [#allocation3], 4294967264 }
 0x2ea   :  { %3669 = vsyncpa [#allocation3], 1 }

// kernel: simple_embedding_forward.2
= control target key start
LH: loop header
LB: loop body
LE: loop exit
PB: predicated region body
PF: predicated region fallthrough
CT: control target
= control target key end

     0   :  { %10 = vsyncpa [#allocation5], 0  ;;  %s7875_s0 = inlined_call_operand.vmem [shape: f32[2,16,16,4], index: 0, kind: input, shape index: {}]   ;;  %s7876_s1 = inlined_call_operand.vmem [shape: f32[36,32], index: 1, kind: input, shape index: {}]   ;;  %s7877_s2 = inlined_call_operand.hbm [shape: f32[1,32], index: 2, kind: input, shape index: {}]   ;;  %s7878_s3 = inlined_call_operand.vmem [shape: f32[288,32], index: 3, kind: input, shape index: {}]   ;;  %s7879_s4 = inlined_call_operand.hbm [shape: f32[1,32], index: 4, kind: input, shape index: {}]   ;;  %s7880_s5 = inlined_call_operand.vmem [shape: f32[2,256,32], index: 5, kind: output, shape index: {}]  }
   0x1   :  { %11 = vsyncpa [#allocation7], 0  ;;  %s5412_s18 = smov 0  }
   0x2 LB: > { %s5418_s19 = sadd.s32 4294967295, %s5366_s18   ;;  %p4389_p0 = scmp.ge.s32.totalorder %s5366_s18, 1  ;;  %s5366_s18 = sphi %s5412_s18, %s17_s18  }
   0x3   : > { %p158_p1 = scmp.lt.s32.totalorder %s5366_s18, 3  ;;  %p7881_p2 = scmp.eq.s32.totalorder %s5418_s19, 0 }
   0x4   : > { %s5368_s21 = smov [#allocation4]   ;;  %s5369_s23 = smov [#allocation6]  }
   0x5   : > { %p5423_p3 = pnand %p4389_p0, %p158_p1  ;;  %s174_s22 = sshll.u32 %s5368_s21, 4  ;;  %s175_s22 = int_to_ptr.vmem [resolvable:$true] %s174_s22 }
   0x6   : > { %s188_s24 = sshll.u32 %s5369_s23, 4  ;;  %s5296_s28 = scalar_lea.hbm %s7877_s2, 16  ;;  %s5435_s24 = int_to_ptr.vmem [resolvable:$true] %s188_s24 }
   0x7   : > { %s7886_s20 = scalar_select %p5423_p3, 1, 0 }
   0x8   : > { %p4762_p4 = pneg %p5423_p3  ;;  %p5297_p6 = scmp.ne.s32.totalorder %s7877_s2, %s5296_s28 }
   0x9   : > { %p5303_p10 = scmp.lt.u32.totalorder %s5296_s28, %s7877_s2 }
   0xa   : > { %p5431_p5 = pnand %p7881_p2, %p4762_p4 }
   0xc   : > { %p5298_p7 = pneg %p5431_p5 }
   0xe   : > { %p5299_p8 = pnand %p5298_p7, %p5297_p6 }
  0x10   : > { %p5300_p9 = pneg %p5299_p8 }
  0x12   : > { %p5305_p11 = pnand %p5303_p10, %p5300_p9 }
  0x14   : > { %5308 = shalt.err (!%p5305_p11)
}
  0x15   : > { %s5309_s8 = scalar_lea.vmem %s175_s22, 16  ;;  %s5316_s9 = scalar_lea.vmem %s175_s22, 32 }
  0x16   : > { %p5310_p12 = scmp.ne.s32.totalorder %s175_s22, %s5309_s8  ;;  %p5317_p1 = scmp.lt.s32.totalorder %s175_s22, %s175_s22 }
  0x17   : > { %p5318_p4 = scmp.lt.s32.totalorder %s5316_s9, %s5309_s8 }
  0x18   : > { %p5312_p13 = pnand %p5310_p12, %p5298_p7 }
  0x19   : > { %p5319_p2 = por %p5318_p4, %p5317_p1 }
  0x1a   : > { %p5313_p0 = pneg %p5312_p13 }
  0x1c   : > { %p5320_p3 = pnand %p5319_p2, %p5313_p0 }
  0x1e   : > { %5323 = shalt.err (!%p5320_p3)
}
  0x1f   : > { %4765 = dma.hbm_to_vmem [thread:$0]  (!%p5431_p5), %s7877_s2, 16, %s175_s22, [#allocation5]  }
  0x20   : > { %s5324_s14 = scalar_lea.hbm %s7879_s4, 16 }
  0x21   : > { %p5325_p6 = scmp.ne.s32.totalorder %s7879_s4, %s5324_s14  ;;  %p5331_p3 = scmp.lt.u32.totalorder %s5324_s14, %s7879_s4 }
  0x23   : > { %p5327_p8 = pnand %p5325_p6, %p5298_p7 }
  0x25   : > { %p5328_p2 = pneg %p5327_p8 }
  0x27   : > { %p5333_p9 = pnand %p5331_p3, %p5328_p2 }
  0x29   : > { %5336 = shalt.err (!%p5333_p9)
}
  0x2a   : > { %s5337_s22 = scalar_lea.vmem %s5435_s24, 16  ;;  %s5344_s23 = scalar_lea.vmem %s5435_s24, 32 }
  0x2b   : > { %p5338_p10 = scmp.ne.s32.totalorder %s5435_s24, %s5337_s22  ;;  %p5345_p13 = scmp.lt.s32.totalorder %s5435_s24, %s5435_s24 }
  0x2c   : > { %p5346_p0 = scmp.lt.s32.totalorder %s5344_s23, %s5337_s22 }
  0x2d   : > { %p5340_p11 = pnand %p5338_p10, %p5298_p7 }
  0x2e   : > { %p5347_p1 = por %p5346_p0, %p5345_p13 }
  0x2f   : > { %p5341_p12 = pneg %p5340_p11 }
  0x31   : > { %p5348_p4 = pnand %p5347_p1, %p5341_p12 }
  0x33   : > { %5351 = shalt.err (!%p5348_p4)
}
  0x34   : > { %4768 = dma.hbm_to_vmem [thread:$0]  (!%p5431_p5), %s7879_s4, 16, %s5435_s24, [#allocation7]  }
  0x35   : > { %p7888_p6 = scmp.ne.s32.totalorder %s7886_s20, 0 }
  0x37   : > { %209 = sbr.rel (%p7888_p6) target bundleno = 1312 (0x520), region = 40 }
  0x3e   : > { %p7889_p7 = scmp.eq.s32.totalorder %s5418_s19, 0 }
  0x40   : > { %5357 = dma.done.wait (%p7889_p7), [#allocation5], 16   ;;  %p7890_p8 = pmov %p7889_p7 }
  0x41   : > { %p7891_p2 = pmov %p7889_p7 }
  0x42   : > { %5359 = vsyncadd (%p7890_p8), [#allocation5], 4294967280 }
  0x43   : > { %5361 = dma.done.wait (%p7891_p2), [#allocation7], 16   ;;  %p7892_p3 = pmov %p7891_p2 }
  0x44   : > { %vm283_vm0 = vcmask 31744   ;;  %vm286_vm1 = vcmask 25600   ;;  %v7883_v0 = vmov 0.0   ;;  %p241_p5 = scmp.lt.s32.totalorder %s5418_s19, 1  ;;  %s5371_s29 = smov 4   ;;  %vm1915_vm2 = vcmask 261120  }
  0x45   : > { %5363 = vsyncadd (%p7892_p3), [#allocation7], 4294967280  ;;  %284 = vst.msk [vmem:[#allocation2] sm:$0xff] %vm283_vm0, %v7883_v0  ;;  %s5372_s30 = smov 8   ;;  %s5373_s6 = smov 12   ;;  %vm2057_vm3 = vcmask 1043456  }
  0x46   : > { %285 = vst.msk [vmem:[#allocation2 + $0x8] sm:$0xff] %vm283_vm0, %v7883_v0  ;;  %288 = vst.msk [vmem:[#allocation2 + $0x18] sm:$0xff] %vm283_vm0, %v7883_v0  ;;  %s8040_s19 = smov (!%p241_p5, %s5418_s19), 1  ;;  %s5374_s7 = smov 16   ;;  %vm1717_vm4 = vcmask 64512   ;;  %vm1750_vm5 = vcmask 97280  }
  0x47   : > { %289 = vst.msk [vmem:[#allocation2 + $0x20] sm:$0xff] %vm283_vm0, %v7883_v0  ;;  %291 = vst.msk [vmem:[#allocation2 + $0x30] sm:$0xff] %vm283_vm0, %v7883_v0  ;;  %s4469_s20 = sshll.u32 %s8040_s19, 8  ;;  %s5375_s16 = smov 20   ;;  %vm1783_vm6 = vcmask 130048   ;;  %vm1816_vm7 = vcmask 162816  }
  0x48   : > { %292 = vst.msk [vmem:[#allocation2 + $0x38] sm:$0xff] %vm283_vm0, %v7883_v0  ;;  %294 = vst.msk [vmem:[#allocation2 + $0x48] sm:$0xff] %vm283_vm0, %v7883_v0  ;;  %s5613_s28 = scalar_lea.vmem %s7875_s0, %s4469_s20  ;;  %s5376_s17 = smov 24   ;;  %vm1849_vm8 = vcmask 195584   ;;  %vm1882_vm9 = vcmask 228352   ;;  %vm1960_vm10 = vcmask 293888  }
  0x49   : > { %295 = vst.msk [vmem:[#allocation2 + $0x50] sm:$0xff] %vm283_vm0, %v7883_v0  ;;  %297 = vst.msk [vmem:[#allocation2 + $0x60] sm:$0xff] %vm283_vm0, %v7883_v0  ;;  %v251_v1 = vld [vmem:[%s5613_s28] sm:$0xff]  ;;  %v253_v2 = vld [vmem:[%s5613_s28 + $0x10] sm:$0xff]  ;;  %s5377_s23 = smov 28   ;;  %s5378_s26 = smov 32  }
  0x4a   : > { %298 = vst.msk [vmem:[#allocation2 + $0x68] sm:$0xff] %vm283_vm0, %v7883_v0  ;;  %300 = vst.msk [vmem:[#allocation2 + $0x78] sm:$0xff] %vm283_vm0, %v7883_v0  ;;  %v252_v3 = vld [vmem:[%s5613_s28 + $0x8] sm:$0xff]  ;;  %v255_v6 = vld [vmem:[%s5613_s28 + $0x20] sm:$0xff]  ;;  %vm2320_vm11 = vcmask 254976   ;;  %s5380_s24 = smov 64   ;;  %s7763_s12 = scalar_lea.vmem %s7880_s5, %s4469_s20 }
  0x4b   : > { %301 = vst.msk [vmem:[#allocation2 + $0x80] sm:$0xff] %vm283_vm0, %v7883_v0  ;;  %303 = vst.msk [vmem:[#allocation2 + $0x90] sm:$0xff] %vm283_vm0, %v7883_v0  ;;  %v254_v7 = vld [vmem:[%s5613_s28 + $0x18] sm:$0xff]  ;;  %v257_v8 = vld [vmem:[%s5613_s28 + $0x30] sm:$0xff]  ;;  %s5381_s25 = smov 96   ;;  %vm3495_vm12 = vcmask 523264  }
  0x4c   : > { %304 = vst.msk [vmem:[#allocation2 + $0x98] sm:$0xff] %vm283_vm0, %v7883_v0  ;;  %306 = vst.msk [vmem:[#allocation2 + $0xa8] sm:$0xff] %vm283_vm0, %v7883_v0  ;;  %v256_v9 = vld [vmem:[%s5613_s28 + $0x28] sm:$0xff]  ;;  %v259_v10 = vld [vmem:[%s5613_s28 + $0x40] sm:$0xff]  ;;  %vm3528_vm13 = vcmask 785408  }
  0x4d   : > { %307 = vst.msk [vmem:[#allocation2 + $0xb0] sm:$0xff] %vm283_vm0, %v7883_v0  ;;  %309 = vst.msk [vmem:[#allocation2 + $0xc0] sm:$0xff] %vm283_vm0, %v7883_v0  ;;  %v404_v4 = vld [vmem:[#allocation2 + $0x1] sm:$0xff]  ;;  %v258_v11 = vld [vmem:[%s5613_s28 + $0x38] sm:$0xff] }
  0x4e   : > { %310 = vst.msk [vmem:[#allocation2 + $0xc8] sm:$0xff] %vm283_vm0, %v7883_v0  ;;  %312 = vst.msk [vmem:[#allocation2 + $0xd8] sm:$0xff] %vm283_vm0, %v7883_v0  ;;  %693 = vrot.lane.b32.xlu0 %v404_v4, %s5371_s29  ;;  %v261_v12 = vld [vmem:[%s5613_s28 + $0x50] sm:$0xff]  ;;  %v260_v13 = vld [vmem:[%s5613_s28 + $0x48] sm:$0xff] }
  0x4f   : > { %313 = vst.msk [vmem:[#allocation2 + $0xe0] sm:$0xff] %vm283_vm0, %v7883_v0  ;;  %315 = vst.msk [vmem:[#allocation2 + $0xf0] sm:$0xff] %vm283_vm0, %v7883_v0  ;;  %v263_v14 = vld [vmem:[%s5613_s28 + $0x60] sm:$0xff]  ;;  %v262_v15 = vld [vmem:[%s5613_s28 + $0x58] sm:$0xff] }
  0x50   : > { %316 = vst.msk [vmem:[#allocation2 + $0xf8] sm:$0xff] %vm283_vm0, %v7883_v0  ;;  %318 = vst.msk [vmem:[#allocation2 + $0x108] sm:$0xff] %vm283_vm0, %v7883_v0  ;;  %v265_v16 = vld [vmem:[%s5613_s28 + $0x70] sm:$0xff]  ;;  %v264_v17 = vld [vmem:[%s5613_s28 + $0x68] sm:$0xff] }
  0x51   : > { %319 = vst.msk [vmem:[#allocation2 + $0x110] sm:$0xff] %vm283_vm0, %v7883_v0  ;;  %321 = vst.msk [vmem:[#allocation2 + $0x120] sm:$0xff] %vm283_vm0, %v7883_v0  ;;  %v267_v18 = vld [vmem:[%s5613_s28 + $0x80] sm:$0xff]  ;;  %v266_v19 = vld [vmem:[%s5613_s28 + $0x78] sm:$0xff] }
  0x52   : > { %322 = vst.msk [vmem:[#allocation2 + $0x128] sm:$0xff] %vm283_vm0, %v7883_v0  ;;  %324 = vst.msk [vmem:[#allocation2 + $0x138] sm:$0xff] %vm283_vm0, %v7883_v0  ;;  %v269_v20 = vld [vmem:[%s5613_s28 + $0x90] sm:$0xff]  ;;  %v268_v21 = vld [vmem:[%s5613_s28 + $0x88] sm:$0xff] }
  0x53   : > { %325 = vst.msk [vmem:[#allocation2 + $0x140] sm:$0xff] %vm283_vm0, %v7883_v0  ;;  %327 = vst.msk [vmem:[#allocation2 + $0x150] sm:$0xff] %vm283_vm0, %v7883_v0  ;;  %v271_v22 = vld [vmem:[%s5613_s28 + $0xa0] sm:$0xff]  ;;  %v270_v23 = vld [vmem:[%s5613_s28 + $0x98] sm:$0xff] }
  0x54   : > { %328 = vst.msk [vmem:[#allocation2 + $0x158] sm:$0xff] %vm283_vm0, %v7883_v0  ;;  %330 = vst.msk [vmem:[#allocation2 + $0x168] sm:$0xff] %vm283_vm0, %v7883_v0  ;;  %v273_v24 = vld [vmem:[%s5613_s28 + $0xb0] sm:$0xff]  ;;  %v272_v27 = vld [vmem:[%s5613_s28 + $0xa8] sm:$0xff] }
  0x55   : > { %331 = vst.msk [vmem:[#allocation2 + $0x170] sm:$0xff] %vm283_vm0, %v7883_v0  ;;  %333 = vst.msk [vmem:[#allocation2 + $0x180] sm:$0xff] %vm283_vm0, %v7883_v0  ;;  %v275_v28 = vld [vmem:[%s5613_s28 + $0xc0] sm:$0xff]  ;;  %v274_v33 = vld [vmem:[%s5613_s28 + $0xb8] sm:$0xff] }
  0x56   : > { %334 = vst.msk [vmem:[#allocation2 + $0x188] sm:$0xff] %vm283_vm0, %v7883_v0  ;;  %336 = vst.msk [vmem:[#allocation2 + $0x198] sm:$0xff] %vm283_vm0, %v7883_v0  ;;  %v277_v34 = vld [vmem:[%s5613_s28 + $0xd0] sm:$0xff]  ;;  %v276_v35 = vld [vmem:[%s5613_s28 + $0xc8] sm:$0xff] }
  0x57   : > { %337 = vst.msk [vmem:[#allocation2 + $0x1a0] sm:$0xff] %vm283_vm0, %v7883_v0  ;;  %340 = vst.msk [vmem:[#allocation2 + $0x19] sm:$0xff] %vm283_vm0, %v251_v1  ;;  %v279_v36 = vld [vmem:[%s5613_s28 + $0xe0] sm:$0xff]  ;;  %v278_v38 = vld [vmem:[%s5613_s28 + $0xd8] sm:$0xff] }
  0x58   : > { %287 = vst.msk [vmem:[#allocation2 + $0x10] sm:$0x3] %vm286_vm1, %v7883_v0  ;;  %290 = vst.msk [vmem:[#allocation2 + $0x28] sm:$0x3] %vm286_vm1, %v7883_v0  ;;  %v280_v39 = vld [vmem:[%s5613_s28 + $0xe8] sm:$0xff]  ;;  %v281_v57 = vld [vmem:[%s5613_s28 + $0xf0] sm:$0xff] }
  0x59   : > { %293 = vst.msk [vmem:[#allocation2 + $0x40] sm:$0x3] %vm286_vm1, %v7883_v0  ;;  %296 = vst.msk [vmem:[#allocation2 + $0x58] sm:$0x3] %vm286_vm1, %v7883_v0  ;;  %v282_v62 = vld [vmem:[%s5613_s28 + $0xf8] sm:$0xff]  ;;  %v436_v1 = vld [vmem:[#allocation2 + $0x2] sm:$0xff] }
  0x5a   : > { %299 = vst.msk [vmem:[#allocation2 + $0x70] sm:$0x3] %vm286_vm1, %v7883_v0  ;;  %302 = vst.msk [vmem:[#allocation2 + $0x88] sm:$0x3] %vm286_vm1, %v7883_v0 }
  0x5b   : > { %305 = vst.msk [vmem:[#allocation2 + $0xa0] sm:$0x3] %vm286_vm1, %v7883_v0  ;;  %308 = vst.msk [vmem:[#allocation2 + $0xb8] sm:$0x3] %vm286_vm1, %v7883_v0 }
  0x5c   : > { %311 = vst.msk [vmem:[#allocation2 + $0xd0] sm:$0x3] %vm286_vm1, %v7883_v0  ;;  %314 = vst.msk [vmem:[#allocation2 + $0xe8] sm:$0x3] %vm286_vm1, %v7883_v0 }
  0x5d   : > { %317 = vst.msk [vmem:[#allocation2 + $0x100] sm:$0x3] %vm286_vm1, %v7883_v0  ;;  %320 = vst.msk [vmem:[#allocation2 + $0x118] sm:$0x3] %vm286_vm1, %v7883_v0 }
  0x5e   : > { %323 = vst.msk [vmem:[#allocation2 + $0x130] sm:$0x3] %vm286_vm1, %v7883_v0  ;;  %326 = vst.msk [vmem:[#allocation2 + $0x148] sm:$0x3] %vm286_vm1, %v7883_v0  ;;  %v5658_v25 = vld [vmem:[#allocation2 + $0x19] sm:$0xff] }
  0x5f   : > { %329 = vst.msk [vmem:[#allocation2 + $0x160] sm:$0x3] %vm286_vm1, %v7883_v0  ;;  %332 = vst.msk [vmem:[#allocation2 + $0x178] sm:$0x3] %vm286_vm1, %v7883_v0  ;;  %v405_v5 = vld [vmem:[#allocation2 + $0x9] sm:$0xff]  ;;  %697 = vrot.lane.b32.xlu1 %v5658_v25, %s5371_s29 }
  0x60   : > { %335 = vst.msk [vmem:[#allocation2 + $0x190] sm:$0x3] %vm286_vm1, %v7883_v0  ;;  %338 = vst.msk [vmem:[#allocation2 + $0x1a8] sm:$0x3] %vm286_vm1, %v7883_v0  ;;  %695 = vrot.lane.b32.xlu0 %v405_v5, %s5371_s29  ;;  %v437_v4 = vld [vmem:[#allocation2 + $0xa] sm:$0xff] }
  0x61   : > { %342 = vst.msk [vmem:[#allocation2 + $0x31] sm:$0xff] %vm283_vm0, %v253_v2  ;;  %341 = vst.msk [vmem:[#allocation2 + $0x21] sm:$0xff] %vm283_vm0, %v252_v3 }
  0x62   : > { %344 = vst.msk [vmem:[#allocation2 + $0x49] sm:$0xff] %vm283_vm0, %v255_v6  ;;  %343 = vst.msk [vmem:[#allocation2 + $0x39] sm:$0xff] %vm283_vm0, %v254_v7 }
  0x63   : > { %346 = vst.msk [vmem:[#allocation2 + $0x61] sm:$0xff] %vm283_vm0, %v257_v8  ;;  %345 = vst.msk [vmem:[#allocation2 + $0x51] sm:$0xff] %vm283_vm0, %v256_v9 }
  0x64   : > { %348 = vst.msk [vmem:[#allocation2 + $0x79] sm:$0xff] %vm283_vm0, %v259_v10  ;;  %347 = vst.msk [vmem:[#allocation2 + $0x69] sm:$0xff] %vm283_vm0, %v258_v11 }
  0x65   : > { %350 = vst.msk [vmem:[#allocation2 + $0x91] sm:$0xff] %vm283_vm0, %v261_v12  ;;  %349 = vst.msk [vmem:[#allocation2 + $0x81] sm:$0xff] %vm283_vm0, %v260_v13 }
  0x66   : > { %352 = vst.msk [vmem:[#allocation2 + $0xa9] sm:$0xff] %vm283_vm0, %v263_v14  ;;  %351 = vst.msk [vmem:[#allocation2 + $0x99] sm:$0xff] %vm283_vm0, %v262_v15 }
  0x67   : > { %354 = vst.msk [vmem:[#allocation2 + $0xc1] sm:$0xff] %vm283_vm0, %v265_v16  ;;  %353 = vst.msk [vmem:[#allocation2 + $0xb1] sm:$0xff] %vm283_vm0, %v264_v17 }
  0x68   : > { %356 = vst.msk [vmem:[#allocation2 + $0xd9] sm:$0xff] %vm283_vm0, %v267_v18  ;;  %355 = vst.msk [vmem:[#allocation2 + $0xc9] sm:$0xff] %vm283_vm0, %v266_v19  ;;  %v5660_v26 = vld [vmem:[#allocation2 + $0x31] sm:$0xff]  ;;  %v5671_v29 = vld [vmem:[#allocation2 + $0x21] sm:$0xff] }
  0x69   : > { %358 = vst.msk [vmem:[#allocation2 + $0xf1] sm:$0xff] %vm283_vm0, %v269_v20  ;;  %357 = vst.msk [vmem:[#allocation2 + $0xe1] sm:$0xff] %vm283_vm0, %v268_v21  ;;  %701 = vrot.lane.b32.xlu0 %v5660_v26, %s5371_s29  ;;  %v5675_v30 = vld [vmem:[#allocation2 + $0x49] sm:$0xff]  ;;  %699 = vrot.lane.b32.xlu1 %v5671_v29, %s5371_s29  ;;  %v5681_v31 = vld [vmem:[#allocation2 + $0x39] sm:$0xff] }
  0x6a   : > { %360 = vst.msk [vmem:[#allocation2 + $0x109] sm:$0xff] %vm283_vm0, %v271_v22  ;;  %359 = vst.msk [vmem:[#allocation2 + $0xf9] sm:$0xff] %vm283_vm0, %v270_v23  ;;  %v5683_v32 = vld [vmem:[#allocation2 + $0x61] sm:$0xff]  ;;  %v5696_v37 = vld [vmem:[#allocation2 + $0x51] sm:$0xff] }
  0x6b   : > { %362 = vst.msk [vmem:[#allocation2 + $0x121] sm:$0xff] %vm283_vm0, %v273_v24  ;;  %361 = vst.msk [vmem:[#allocation2 + $0x111] sm:$0xff] %vm283_vm0, %v272_v27  ;;  %v5701_v40 = vld [vmem:[#allocation2 + $0x79] sm:$0xff]  ;;  %v5709_v41 = vld [vmem:[#allocation2 + $0x69] sm:$0xff] }
  0x6c   : > { %364 = vst.msk [vmem:[#allocation2 + $0x139] sm:$0xff] %vm283_vm0, %v275_v28  ;;  %363 = vst.msk [vmem:[#allocation2 + $0x129] sm:$0xff] %vm283_vm0, %v274_v33  ;;  %v5711_v42 = vld [vmem:[#allocation2 + $0x91] sm:$0xff]  ;;  %v5717_v43 = vld [vmem:[#allocation2 + $0x81] sm:$0xff] }
  0x6d   : > { %705 = vrot.lane.b32.xlu0 %v5675_v30, %s5371_s29  ;;  %703 = vrot.lane.b32.xlu1 %v5681_v31, %s5371_s29  ;;  %366 = vst.msk [vmem:[#allocation2 + $0x151] sm:$0xff] %vm283_vm0, %v277_v34  ;;  %365 = vst.msk [vmem:[#allocation2 + $0x141] sm:$0xff] %vm283_vm0, %v276_v35  ;;  %v418_v44 = vld [vmem:[#allocation2 + $0xa9] sm:$0xff]  ;;  %v5722_v45 = vld [vmem:[#allocation2 + $0x99] sm:$0xff] }
  0x6e   : > { %368 = vst.msk [vmem:[#allocation2 + $0x169] sm:$0xff] %vm283_vm0, %v279_v36  ;;  %367 = vst.msk [vmem:[#allocation2 + $0x159] sm:$0xff] %vm283_vm0, %v278_v38  ;;  %v420_v46 = vld [vmem:[#allocation2 + $0xc1] sm:$0xff]  ;;  %v419_v47 = vld [vmem:[#allocation2 + $0xb1] sm:$0xff] }
  0x6f   : > { %369 = vst.msk [vmem:[#allocation2 + $0x171] sm:$0xff] %vm283_vm0, %v280_v39  ;;  %v422_v48 = vld [vmem:[#allocation2 + $0xd9] sm:$0xff]  ;;  %v421_v49 = vld [vmem:[#allocation2 + $0xc9] sm:$0xff]  ;;  %370 = vst.msk [vmem:[#allocation2 + $0x181] sm:$0xff] %vm283_vm0, %v281_v57 }
  0x70   : > { %v424_v50 = vld [vmem:[#allocation2 + $0xf1] sm:$0xff]  ;;  %v423_v51 = vld [vmem:[#allocation2 + $0xe1] sm:$0xff]  ;;  %371 = vst.msk [vmem:[#allocation2 + $0x189] sm:$0xff] %vm283_vm0, %v282_v62 }
  0x71   : > { %709 = vrot.lane.b32.xlu0 %v5683_v32, %s5371_s29  ;;  %707 = vrot.lane.b32.xlu1 %v5696_v37, %s5371_s29  ;;  %v426_v52 = vld [vmem:[#allocation2 + $0x109] sm:$0xff]  ;;  %v425_v53 = vld [vmem:[#allocation2 + $0xf9] sm:$0xff] }
  0x72   : > { %v428_v54 = vld [vmem:[#allocation2 + $0x121] sm:$0xff]  ;;  %v427_v55 = vld [vmem:[#allocation2 + $0x111] sm:$0xff] }
  0x73   : > { %v430_v56 = vld [vmem:[#allocation2 + $0x139] sm:$0xff]  ;;  %v429_v58 = vld [vmem:[#allocation2 + $0x129] sm:$0xff] }
  0x74   : > { %v432_v59 = vld [vmem:[#allocation2 + $0x151] sm:$0xff]  ;;  %v431_v60 = vld [vmem:[#allocation2 + $0x141] sm:$0xff] }
  0x75   : > { %713 = vrot.lane.b32.xlu0 %v5701_v40, %s5371_s29  ;;  %711 = vrot.lane.b32.xlu1 %v5709_v41, %s5371_s29  ;;  %v434_v61 = vld [vmem:[#allocation2 + $0x169] sm:$0xff]  ;;  %v433_v63 = vld [vmem:[#allocation2 + $0x159] sm:$0xff] }
  0x76   : > { %v435_v2 = vld [vmem:[#allocation2 + $0x171] sm:$0xff]  ;;  %v5747_v3 = vld [vmem:[#allocation2 + $0x1a] sm:$0xff]  ;;  %v5757_v6 = vld [vmem:[#allocation2 + $0x22] sm:$0xff] }
  0x77   : > { %v5752_v5 = vld [vmem:[#allocation2 + $0x32] sm:$0xff]  ;;  %v5759_v7 = vld [vmem:[#allocation2 + $0x4a] sm:$0xff]  ;;  %v5765_v8 = vld [vmem:[#allocation2 + $0x3a] sm:$0xff] }
  0x78   : > { %v5767_v9 = vld [vmem:[#allocation2 + $0x62] sm:$0xff]  ;;  %v5773_v10 = vld [vmem:[#allocation2 + $0x52] sm:$0xff]  ;;  %v5775_v11 = vld [vmem:[#allocation2 + $0x7a] sm:$0xff] }
  0x79   : > { %717 = vrot.lane.b32.xlu0 %v5711_v42, %s5371_s29  ;;  %715 = vrot.lane.b32.xlu1 %v5717_v43, %s5371_s29  ;;  %v5781_v12 = vld [vmem:[#allocation2 + $0x6a] sm:$0xff]  ;;  %v5783_v13 = vld [vmem:[#allocation2 + $0x92] sm:$0xff]  ;;  %v5789_v14 = vld [vmem:[#allocation2 + $0x82] sm:$0xff] }
  0x7a   : > { %v5791_v15 = vld [vmem:[#allocation2 + $0xaa] sm:$0xff]  ;;  %v5797_v16 = vld [vmem:[#allocation2 + $0x9a] sm:$0xff]  ;;  %v5799_v17 = vld [vmem:[#allocation2 + $0xc2] sm:$0xff] }
  0x7b   : > { %v5805_v18 = vld [vmem:[#allocation2 + $0xb2] sm:$0xff]  ;;  %v454_v19 = vld [vmem:[#allocation2 + $0xda] sm:$0xff]  ;;  %v5810_v20 = vld [vmem:[#allocation2 + $0xca] sm:$0xff] }
  0x7c   : > { %v456_v21 = vld [vmem:[#allocation2 + $0xf2] sm:$0xff]  ;;  %v455_v22 = vld [vmem:[#allocation2 + $0xe2] sm:$0xff]  ;;  %v458_v23 = vld [vmem:[#allocation2 + $0x10a] sm:$0xff] }
  0x7d   : > { %721 = vrot.lane.b32.xlu0 %v418_v44, %s5371_s29  ;;  %719 = vrot.lane.b32.xlu1 %v5722_v45, %s5371_s29  ;;  %v457_v24 = vld [vmem:[#allocation2 + $0xfa] sm:$0xff]  ;;  %v460_v27 = vld [vmem:[#allocation2 + $0x122] sm:$0xff]  ;;  %v459_v28 = vld [vmem:[#allocation2 + $0x112] sm:$0xff] }
  0x7e   : > { %v462_v33 = vld [vmem:[#allocation2 + $0x13a] sm:$0xff]  ;;  %v461_v35 = vld [vmem:[#allocation2 + $0x12a] sm:$0xff]  ;;  %v464_v36 = vld [vmem:[#allocation2 + $0x152] sm:$0xff] }
  0x7f   : > { %v463_v39 = vld [vmem:[#allocation2 + $0x142] sm:$0xff]  ;;  %v5925_v0 = vld [vmem:[#allocation2 + $0xb0] sm:$0xff] }
  0x80   : > { %v5853_v57 = vld [vmem:[#allocation2 + $0x20] sm:$0xff] }
  0x81   : > { %725 = vrot.lane.b32.xlu0 %v420_v46, %s5371_s29  ;;  %723 = vrot.lane.b32.xlu1 %v419_v47, %s5371_s29  ;;  %v466_v46 = vld [vmem:[#allocation2 + $0x16a] sm:$0xff] }
  0x85   : > { %729 = vrot.lane.b32.xlu0 %v422_v48, %s5371_s29  ;;  %727 = vrot.lane.b32.xlu1 %v421_v49, %s5371_s29  ;;  %v465_v48 = vld [vmem:[#allocation2 + $0x15a] sm:$0xff] }
  0x89   : > { %733 = vrot.lane.b32.xlu0 %v424_v50, %s5371_s29  ;;  %731 = vrot.lane.b32.xlu1 %v423_v51, %s5371_s29  ;;  %v5837_v51 = vld [vmem:[#allocation2 + $0x18] sm:$0xff] }
  0x8d   : > { %737 = vrot.lane.b32.xlu0 %v426_v52, %s5371_s29  ;;  %735 = vrot.lane.b32.xlu1 %v425_v53, %s5371_s29  ;;  %v467_v52 = vld [vmem:[#allocation2 + $0x172] sm:$0xff] }
  0x91   : > { %741 = vrot.lane.b32.xlu0 %v428_v54, %s5371_s29  ;;  %739 = vrot.lane.b32.xlu1 %v427_v55, %s5371_s29  ;;  %v5846_v55 = vld [vmem:[#allocation2 + $0x30] sm:$0xff] }
  0x95   : > { %745 = vrot.lane.b32.xlu0 %v430_v56, %s5371_s29  ;;  %743 = vrot.lane.b32.xlu1 %v429_v58, %s5371_s29 }
  0x99   : > { %749 = vrot.lane.b32.xlu0 %v432_v59, %s5371_s29  ;;  %747 = vrot.lane.b32.xlu1 %v431_v60, %s5371_s29  ;;  %v5857_v59 = vld [vmem:[#allocation2 + $0x48] sm:$0xff] }
  0x9d   : > { %753 = vrot.lane.b32.xlu0 %v434_v61, %s5371_s29  ;;  %751 = vrot.lane.b32.xlu1 %v433_v63, %s5371_s29  ;;  %v5865_v61 = vld [vmem:[#allocation2 + $0x38] sm:$0xff]  ;;  %v5869_v63 = vld [vmem:[#allocation2 + $0x60] sm:$0xff] }
  0xa1   : > { %821 = vrot.lane.b32.xlu0 %v436_v1, %s5372_s30  ;;  %755 = vrot.lane.b32.xlu1 %v435_v2, %s5371_s29  ;;  %v5877_v2 = vld [vmem:[#allocation2 + $0x50] sm:$0xff] }
  0xa5   : > { %825 = vrot.lane.b32.xlu0 %v5747_v3, %s5372_s30  ;;  %823 = vrot.lane.b32.xlu1 %v437_v4, %s5372_s30 }
  0xa9   : > { %829 = vrot.lane.b32.xlu0 %v5752_v5, %s5372_s30  ;;  %827 = vrot.lane.b32.xlu1 %v5757_v6, %s5372_s30 }
  0xad   : > { %833 = vrot.lane.b32.xlu0 %v5759_v7, %s5372_s30  ;;  %831 = vrot.lane.b32.xlu1 %v5765_v8, %s5372_s30 }
  0xb1   : > { %837 = vrot.lane.b32.xlu0 %v5767_v9, %s5372_s30  ;;  %835 = vrot.lane.b32.xlu1 %v5773_v10, %s5372_s30 }
  0xb5   : > { %841 = vrot.lane.b32.xlu0 %v5775_v11, %s5372_s30  ;;  %839 = vrot.lane.b32.xlu1 %v5781_v12, %s5372_s30 }
  0xb9   : > { %845 = vrot.lane.b32.xlu0 %v5783_v13, %s5372_s30  ;;  %843 = vrot.lane.b32.xlu1 %v5789_v14, %s5372_s30 }
  0xbd   : > { %849 = vrot.lane.b32.xlu0 %v5791_v15, %s5372_s30  ;;  %847 = vrot.lane.b32.xlu1 %v5797_v16, %s5372_s30 }
  0xc0   : > { %v5819_v34 = vpop.permute.xlu0 %693 }
  0xc1   : > { %853 = vrot.lane.b32.xlu0 %v5799_v17, %s5372_s30  ;;  %851 = vrot.lane.b32.xlu1 %v5805_v18, %s5372_s30 }
  0xc5   : > { %857 = vrot.lane.b32.xlu0 %v454_v19, %s5372_s30  ;;  %855 = vrot.lane.b32.xlu1 %v5810_v20, %s5372_s30  ;;  %v5881_v19 = vld [vmem:[#allocation2 + $0x78] sm:$0xff] }
  0xc9   : > { %861 = vrot.lane.b32.xlu0 %v456_v21, %s5372_s30  ;;  %859 = vrot.lane.b32.xlu1 %v455_v22, %s5372_s30  ;;  %v5889_v22 = vld [vmem:[#allocation2 + $0x68] sm:$0xff] }
  0xcd   : > { %865 = vrot.lane.b32.xlu0 %v458_v23, %s5372_s30  ;;  %863 = vrot.lane.b32.xlu1 %v457_v24, %s5372_s30  ;;  %v5893_v24 = vld [vmem:[#allocation2 + $0x90] sm:$0xff] }
  0xd1   : > { %869 = vrot.lane.b32.xlu0 %v460_v27, %s5372_s30  ;;  %867 = vrot.lane.b32.xlu1 %v459_v28, %s5372_s30  ;;  %v5827_v44 = vpop.permute.xlu1 %697  ;;  %v5901_v28 = vld [vmem:[#allocation2 + $0x80] sm:$0xff] }
  0xd2   : > { %v5823_v38 = vpop.permute.xlu0 %695 }
  0xd5   : > { %873 = vrot.lane.b32.xlu0 %v462_v33, %s5372_s30  ;;  %871 = vrot.lane.b32.xlu1 %v461_v35, %s5372_s30  ;;  %v5905_v35 = vld [vmem:[#allocation2 + $0xa8] sm:$0xff] }
  0xd9   : > { %877 = vrot.lane.b32.xlu0 %v464_v36, %s5372_s30  ;;  %875 = vrot.lane.b32.xlu1 %v463_v39, %s5372_s30  ;;  %v5913_v39 = vld [vmem:[#allocation2 + $0x98] sm:$0xff] }
  0xdb   : > { %v5829_v47 = vpop.permute.xlu0 %701  ;;  %v5833_v49 = vpop.permute.xlu1 %699 }
  0xdc   : > { %7893 = vst [vmem:[#allocation10_spill] sm:$0xff] %v5829_v47 }
  0xdd   : > { %881 = vrot.lane.b32.xlu0 %v466_v46, %s5372_s30  ;;  %879 = vrot.lane.b32.xlu1 %v465_v48, %s5372_s30  ;;  %v5917_v48 = vld [vmem:[#allocation2 + $0xc0] sm:$0xff] }
  0xdf   : > { %v5835_v50 = vpop.permute.xlu0 %705  ;;  %v5842_v53 = vpop.permute.xlu1 %703 }
  0xe0   : > { %7894 = vst [vmem:[#allocation11_spill] sm:$0xff] %v5835_v50  ;;  %7895 = vst [vmem:[#allocation12_spill] sm:$0xff] %v5842_v53 }
  0xe1   : > { %949 = vrot.lane.b32.xlu0 %v5837_v51, %s5373_s6  ;;  %883 = vrot.lane.b32.xlu1 %v467_v52, %s5372_s30 }
  0xe3   : > { %v5844_v54 = vpop.permute.xlu0 %709  ;;  %v5851_v56 = vpop.permute.xlu1 %707 }
  0xe4   : > { %7896 = vst [vmem:[#allocation13_spill] sm:$0xff] %v5844_v54  ;;  %7897 = vst [vmem:[#allocation14_spill] sm:$0xff] %v5851_v56  ;;  %v398_v54 = vld [vmem:[#allocation2 + $0x138] sm:$0xff]  ;;  %v400_v56 = vld [vmem:[#allocation2 + $0x150] sm:$0xff] }
  0xe5   : > { %953 = vrot.lane.b32.xlu0 %v5846_v55, %s5373_s6  ;;  %951 = vrot.lane.b32.xlu1 %v5853_v57, %s5373_s6 }
  0xe7   : > { %v5855_v58 = vpop.permute.xlu0 %713  ;;  %v5863_v60 = vpop.permute.xlu1 %711 }
  0xe8   : > { %7898 = vst [vmem:[#allocation15_spill] sm:$0xff] %v5855_v58  ;;  %7899 = vst [vmem:[#allocation16_spill] sm:$0xff] %v5863_v60  ;;  %v396_v58 = vld [vmem:[#allocation2 + $0x120] sm:$0xff] }
  0xe9   : > { %957 = vrot.lane.b32.xlu0 %v5857_v59, %s5373_s6  ;;  %955 = vrot.lane.b32.xlu1 %v5865_v61, %s5373_s6 }
  0xeb   : > { %v5867_v62 = vpop.permute.xlu0 %717  ;;  %v5875_v1 = vpop.permute.xlu1 %715 }
  0xec   : > { %7900 = vst [vmem:[#allocation17_spill] sm:$0xff] %v5867_v62  ;;  %7901 = vst [vmem:[#allocation18_spill] sm:$0xff] %v5875_v1  ;;  %v394_v62 = vld [vmem:[#allocation2 + $0x108] sm:$0xff] }
  0xed   : > { %961 = vrot.lane.b32.xlu0 %v5869_v63, %s5373_s6  ;;  %959 = vrot.lane.b32.xlu1 %v5877_v2, %s5373_s6 }
  0xef   : > { %v5879_v4 = vpop.permute.xlu0 %721  ;;  %v5887_v21 = vpop.permute.xlu1 %719 }
  0xf0   : > { %7902 = vst [vmem:[#allocation19_spill] sm:$0xff] %v5879_v4  ;;  %7903 = vst [vmem:[#allocation20_spill] sm:$0xff] %v5887_v21  ;;  %v5941_v4 = vld [vmem:[#allocation2 + $0xf0] sm:$0xff] }
  0xf1   : > { %965 = vrot.lane.b32.xlu0 %v5881_v19, %s5373_s6  ;;  %963 = vrot.lane.b32.xlu1 %v5889_v22, %s5373_s6 }
  0xf3   : > { %v5891_v23 = vpop.permute.xlu0 %725  ;;  %v5899_v27 = vpop.permute.xlu1 %723 }
  0xf4   : > { %7904 = vst [vmem:[#allocation21_spill] sm:$0xff] %v5891_v23  ;;  %7905 = vst [vmem:[#allocation22_spill] sm:$0xff] %v5899_v27  ;;  %v5929_v23 = vld [vmem:[#allocation2 + $0xd8] sm:$0xff] }
  0xf5   : > { %969 = vrot.lane.b32.xlu0 %v5893_v24, %s5373_s6  ;;  %967 = vrot.lane.b32.xlu1 %v5901_v28, %s5373_s6 }
  0xf7   : > { %v5903_v33 = vpop.permute.xlu0 %729  ;;  %v5911_v36 = vpop.permute.xlu1 %727 }
  0xf8   : > { %7906 = vst [vmem:[#allocation23_spill] sm:$0xff] %v5903_v33  ;;  %7907 = vst [vmem:[#allocation24_spill] sm:$0xff] %v5911_v36  ;;  %v5937_v36 = vld [vmem:[#allocation2 + $0xc8] sm:$0xff] }
  0xf9   : > { %973 = vrot.lane.b32.xlu0 %v5905_v35, %s5373_s6  ;;  %971 = vrot.lane.b32.xlu1 %v5913_v39, %s5373_s6 }
  0xfb   : > { %v5915_v46 = vpop.permute.xlu0 %733  ;;  %v5923_v52 = vpop.permute.xlu1 %731 }
  0xfc   : > { %7908 = vst [vmem:[#allocation25_spill] sm:$0xff] %v5915_v46  ;;  %7909 = vst [vmem:[#allocation26_spill] sm:$0xff] %v5923_v52  ;;  %v5949_v52 = vld [vmem:[#allocation2 + $0xe0] sm:$0xff] }
  0xfd   : > { %977 = vrot.lane.b32.xlu0 %v5917_v48, %s5373_s6  ;;  %975 = vrot.lane.b32.xlu1 %v5925_v0, %s5373_s6 }
  0xff   : > { %v5927_v33 = vpop.permute.xlu0 %737  ;;  %v5935_v46 = vpop.permute.xlu1 %735 }
 0x100   : > { %7910 = vst [vmem:[#allocation27_spill] sm:$0xff] %v5927_v33  ;;  %7911 = vst [vmem:[#allocation28_spill] sm:$0xff] %v5935_v46  ;;  %v5958_v46 = vld [vmem:[#allocation2 + $0xf8] sm:$0xff] }
 0x101   : > { %981 = vrot.lane.b32.xlu0 %v5929_v23, %s5373_s6  ;;  %979 = vrot.lane.b32.xlu1 %v5937_v36, %s5373_s6 }
 0x103   : > { %v5939_v27 = vpop.permute.xlu0 %741  ;;  %v5947_v33 = vpop.permute.xlu1 %739 }
 0x104   : > { %7912 = vst [vmem:[#allocation29_spill] sm:$0xff] %v5939_v27  ;;  %7913 = vst [vmem:[#allocation30_spill] sm:$0xff] %v5947_v33 }
 0x105   : > { %985 = vrot.lane.b32.xlu0 %v5941_v4, %s5373_s6  ;;  %983 = vrot.lane.b32.xlu1 %v5949_v52, %s5373_s6 }
 0x107   : > { %v5951_v21 = vpop.permute.xlu0 %745  ;;  %v5956_v27 = vpop.permute.xlu1 %743 }
 0x108   : > { %7914 = vst [vmem:[#allocation31_spill] sm:$0xff] %v5951_v21  ;;  %7915 = vst [vmem:[#allocation32_spill] sm:$0xff] %v5956_v27  ;;  %v395_v21 = vld [vmem:[#allocation2 + $0x110] sm:$0xff]  ;;  %v397_v27 = vld [vmem:[#allocation2 + $0x128] sm:$0xff] }
 0x109   : > { %989 = vrot.lane.b32.xlu0 %v394_v62, %s5373_s6  ;;  %987 = vrot.lane.b32.xlu1 %v5958_v46, %s5373_s6 }
 0x10b   : > { %v5960_v1 = vpop.permute.xlu0 %749  ;;  %v5965_v33 = vpop.permute.xlu1 %747 }
 0x10c   : > { %7916 = vst [vmem:[#allocation33_spill] sm:$0xff] %v5960_v1  ;;  %7917 = vst [vmem:[#allocation34_spill] sm:$0xff] %v5965_v33  ;;  %v399_v33 = vld [vmem:[#allocation2 + $0x140] sm:$0xff] }
 0x10d   : > { %993 = vrot.lane.b32.xlu0 %v396_v58, %s5373_s6  ;;  %991 = vrot.lane.b32.xlu1 %v395_v21, %s5373_s6  ;;  %v498_v21 = vld [vmem:[#allocation2 + $0x180] sm:$0xff] }
 0x10f   : > { %v5967_v60 = vpop.permute.xlu0 %753  ;;  %v5971_v62 = vpop.permute.xlu1 %751 }
 0x110   : > { %7918 = vst [vmem:[#allocation35_spill] sm:$0xff] %v5967_v60  ;;  %7919 = vst [vmem:[#allocation36_spill] sm:$0xff] %v5971_v62  ;;  %v402_v60 = vld [vmem:[#allocation2 + $0x168] sm:$0xff]  ;;  %v401_v62 = vld [vmem:[#allocation2 + $0x158] sm:$0xff] }
 0x111   : > { %997 = vrot.lane.b32.xlu0 %v398_v54, %s5373_s6  ;;  %995 = vrot.lane.b32.xlu1 %v397_v27, %s5373_s6  ;;  %v403_v27 = vld [vmem:[#allocation2 + $0x170] sm:$0xff] }
 0x113   : > { %v5973_v1 = vpop.permute.xlu0 %821  ;;  %v5977_v58 = vpop.permute.xlu1 %755 }
 0x114   : > { %7920 = vst [vmem:[#allocation37_spill] sm:$0xff] %v5977_v58 }
 0x115   : > { %1001 = vrot.lane.b32.xlu0 %v400_v56, %s5373_s6  ;;  %999 = vrot.lane.b32.xlu1 %v399_v33, %s5373_s6 }
 0x117   : > { %v5979_v50 = vpop.permute.xlu0 %825  ;;  %v5983_v54 = vpop.permute.xlu1 %823 }
 0x119   : > { %1005 = vrot.lane.b32.xlu0 %v402_v60, %s5373_s6  ;;  %1003 = vrot.lane.b32.xlu1 %v401_v62, %s5373_s6  ;;  %v499_v60 = vld [vmem:[#allocation2 + $0x188] sm:$0xff] }
 0x11b   : > { %v5985_v53 = vpop.permute.xlu0 %829  ;;  %v5989_v56 = vpop.permute.xlu1 %827 }
 0x11d   : > { %1009 = vrot.lane.b32.xlu0 %v498_v21, %s5373_s6  ;;  %1007 = vrot.lane.b32.xlu1 %v403_v27, %s5373_s6 }
 0x11f   : > { %v5991_v58 = vpop.permute.xlu0 %833  ;;  %v5996_v33 = vpop.permute.xlu1 %831 }
 0x121   : > { %1077 = vrot.lane.b32.xlu0 %v5658_v25, %s5374_s7  ;;  %1011 = vrot.lane.b32.xlu1 %v499_v60, %s5373_s6 }
 0x123   : > { %v5998_v47 = vpop.permute.xlu0 %837  ;;  %v6003_v62 = vpop.permute.xlu1 %835 }
 0x124   : > { %7921 = vst [vmem:[#allocation38_spill] sm:$0xff] %v5998_v47  ;;  %7922 = vst [vmem:[#allocation39_spill] sm:$0xff] %v6003_v62  ;;  %v1951_v62 = vld [vmem:[%s7876_s1 + $0x18] sm:$0xff] }
 0x125   : > { %1081 = vrot.lane.b32.xlu0 %v5660_v26, %s5374_s7  ;;  %1079 = vrot.lane.b32.xlu1 %v5671_v29, %s5374_s7 }
 0x127   : > { %v6005_v21 = vpop.permute.xlu0 %841  ;;  %v6011_v25 = vpop.permute.xlu1 %839 }
 0x128   : > { %7923 = vst [vmem:[#allocation40_spill] sm:$0xff] %v6005_v21  ;;  %7924 = vst [vmem:[#allocation41_spill] sm:$0xff] %v6011_v25 }
 0x129   : > { %1085 = vrot.lane.b32.xlu0 %v5675_v30, %s5374_s7  ;;  %1083 = vrot.lane.b32.xlu1 %v5681_v31, %s5374_s7 }
 0x12b   : > { %v6013_v27 = vpop.permute.xlu0 %845  ;;  %v6019_v60 = vpop.permute.xlu1 %843 }
 0x12c   : > { %7925 = vst [vmem:[#allocation42_spill] sm:$0xff] %v6013_v27  ;;  %7926 = vst [vmem:[#allocation43_spill] sm:$0xff] %v6019_v60  ;;  %v1948_v27 = vld [vmem:[%s7876_s1] sm:$0xff]  ;;  %v1949_v60 = vld [vmem:[%s7876_s1 + $0x8] sm:$0xff] }
 0x12d   : > { %1089 = vrot.lane.b32.xlu0 %v5683_v32, %s5374_s7  ;;  %1087 = vrot.lane.b32.xlu1 %v5696_v37, %s5374_s7 }
 0x12f   : > { %v6021_v47 = vpop.permute.xlu0 %849  ;;  %v6027_v29 = vpop.permute.xlu1 %847 }
 0x130   : > { %7927 = vst [vmem:[#allocation44_spill] sm:$0xff] %v6021_v47  ;;  %7928 = vst [vmem:[#allocation45_spill] sm:$0xff] %v6027_v29  ;;  %v4658_v47 = vpack.c.bf16 %v1949_v60, %v1948_v27  ;;  %v7934_v60 = vmov 0.0  }
 0x131   : > { %1093 = vrot.lane.b32.xlu0 %v5701_v40, %s5374_s7  ;;  %1091 = vrot.lane.b32.xlu1 %v5709_v41, %s5374_s7  ;;  %2318 = vst.msk [vmem:[#allocation3] sm:$0xff] %vm1915_vm2, %v7934_v60  ;;  %2319 = vst.msk [vmem:[#allocation3 + $0x8] sm:$0xff] %vm1915_vm2, %v7934_v60 }
 0x132   : > { %4659 = vmatprep.subr.bf16.mxu0 %v4658_v47  ;;  %2322 = vst.msk [vmem:[#allocation3 + $0x18] sm:$0xff] %vm1915_vm2, %v7934_v60  ;;  %2323 = vst.msk [vmem:[#allocation3 + $0x20] sm:$0xff] %vm1915_vm2, %v7934_v60 }
 0x133   : > { %v6029_v21 = vpop.permute.xlu0 %853  ;;  %v6041_v25 = vpop.permute.xlu1 %851  ;;  %4661 = vmatpush3.bf16.msra.mxu0 %v4658_v47  ;;  %2325 = vst.msk [vmem:[#allocation3 + $0x30] sm:$0xff] %vm1915_vm2, %v7934_v60  ;;  %2326 = vst.msk [vmem:[#allocation3 + $0x38] sm:$0xff] %vm1915_vm2, %v7934_v60 }
 0x134   : > { %7929 = vst [vmem:[#allocation46_spill] sm:$0xff] %v6029_v21  ;;  %7930 = vst [vmem:[#allocation47_spill] sm:$0xff] %v6041_v25  ;;  %v1950_v21 = vld [vmem:[%s7876_s1 + $0x10] sm:$0xff] }
 0x135   : > { %1097 = vrot.lane.b32.xlu0 %v5711_v42, %s5374_s7  ;;  %1095 = vrot.lane.b32.xlu1 %v5717_v43, %s5374_s7  ;;  %v4662_v27 = vpack.c.bf16 %v1951_v62, %v1950_v21  ;;  %2328 = vst.msk [vmem:[#allocation3 + $0x48] sm:$0xff] %vm1915_vm2, %v7934_v60  ;;  %2329 = vst.msk [vmem:[#allocation3 + $0x50] sm:$0xff] %vm1915_vm2, %v7934_v60 }
 0x136   : > { %2331 = vst.msk [vmem:[#allocation3 + $0x60] sm:$0xff] %vm1915_vm2, %v7934_v60  ;;  %2332 = vst.msk [vmem:[#allocation3 + $0x68] sm:$0xff] %vm1915_vm2, %v7934_v60 }
 0x137   : > { %v6043_v29 = vpop.permute.xlu0 %857  ;;  %v6055_v42 = vpop.permute.xlu1 %855  ;;  %4663 = vmatprep.subr.bf16.mxu0 %v4662_v27  ;;  %2334 = vst.msk [vmem:[#allocation3 + $0x78] sm:$0xff] %vm1915_vm2, %v7934_v60  ;;  %2335 = vst.msk [vmem:[#allocation3 + $0x80] sm:$0xff] %vm1915_vm2, %v7934_v60 }
 0x138   : > { %7931 = vst [vmem:[#allocation48_spill] sm:$0xff] %v6043_v29  ;;  %7932 = vst [vmem:[#allocation49_spill] sm:$0xff] %v6055_v42  ;;  %4665 = vmatpush3.bf16.msra.mxu0 %v4662_v27 }
 0x139   : > { %1207 = vrot.lane.b32.xlu0 %v5757_v6, %s5375_s16  ;;  %2337 = vst.msk [vmem:[#allocation3 + $0x90] sm:$0xff] %vm1915_vm2, %v7934_v60  ;;  %2338 = vst.msk [vmem:[#allocation3 + $0x98] sm:$0xff] %vm1915_vm2, %v7934_v60  ;;  %1205 = vrot.lane.b32.xlu1 %v5747_v3, %s5375_s16  ;;  %v1952_v6 = vld [vmem:[%s7876_s1 + $0x20] sm:$0xf] }
 0x13a   : > { %2340 = vst.msk [vmem:[#allocation3 + $0xa8] sm:$0xff] %vm1915_vm2, %v7934_v60  ;;  %2341 = vst.msk [vmem:[#allocation3 + $0xb0] sm:$0xff] %vm1915_vm2, %v7934_v60  ;;  %4552 = vmatprep.subr.msk.mxu0 %vm2057_vm3, %v1952_v6 }
 0x13b   : > { %v6057_v47 = vpop.permute.xlu0 %861  ;;  %2343 = vst.msk [vmem:[#allocation3 + $0xc0] sm:$0xff] %vm1915_vm2, %v7934_v60  ;;  %2344 = vst.msk [vmem:[#allocation3 + $0xc8] sm:$0xff] %vm1915_vm2, %v7934_v60  ;;  %v6138_v62 = vpop.permute.xlu1 %859 }
 0x13c   : > { %7933 = vst [vmem:[#allocation50_spill] sm:$0xff] %v6057_v47  ;;  %2346 = vst.msk [vmem:[#allocation3 + $0xd8] sm:$0xff] %vm1915_vm2, %v7934_v60  ;;  %4553 = vmatpush3.msk.msra.mxu0 %vm2057_vm3, %v1952_v6 }
 0x13d   : > { %2347 = vst.msk [vmem:[#allocation3 + $0xe0] sm:$0xff] %vm1915_vm2, %v7934_v60  ;;  %2349 = vst.msk [vmem:[#allocation3 + $0xf0] sm:$0xff] %vm1915_vm2, %v7934_v60  ;;  %1335 = vrot.lane.b32.xlu0 %v5865_v61, %s5376_s17  ;;  %1333 = vrot.lane.b32.xlu1 %v5846_v55, %s5376_s17 }
 0x13e   : > { %2350 = vst.msk [vmem:[#allocation3 + $0xf8] sm:$0xff] %vm1915_vm2, %v7934_v60  ;;  %2352 = vst.msk [vmem:[#allocation3 + $0x108] sm:$0xff] %vm1915_vm2, %v7934_v60 }
 0x13f   : > { %2353 = vst.msk [vmem:[#allocation3 + $0x110] sm:$0xff] %vm1915_vm2, %v7934_v60  ;;  %2355 = vst.msk [vmem:[#allocation3 + $0x120] sm:$0xff] %vm1915_vm2, %v7934_v60  ;;  %v6140_v21 = vpop.permute.xlu0 %865  ;;  %v6146_v3 = vpop.permute.xlu1 %863 }
 0x140   : > { %2356 = vst.msk [vmem:[#allocation3 + $0x128] sm:$0xff] %vm1915_vm2, %v7934_v60  ;;  %2358 = vst.msk [vmem:[#allocation3 + $0x138] sm:$0xff] %vm1915_vm2, %v7934_v60 }
 0x141   : > { %2359 = vst.msk [vmem:[#allocation3 + $0x140] sm:$0xff] %vm1915_vm2, %v7934_v60  ;;  %2361 = vst.msk [vmem:[#allocation3 + $0x150] sm:$0xff] %vm1915_vm2, %v7934_v60  ;;  %1463 = vrot.lane.b32.xlu0 %v5681_v31, %s5377_s23  ;;  %1461 = vrot.lane.b32.xlu1 %v5660_v26, %s5377_s23 }
 0x142   : > { %2362 = vst.msk [vmem:[#allocation3 + $0x158] sm:$0xff] %vm1915_vm2, %v7934_v60  ;;  %2364 = vst.msk [vmem:[#allocation3 + $0x168] sm:$0xff] %vm1915_vm2, %v7934_v60 }
 0x143   : > { %2365 = vst.msk [vmem:[#allocation3 + $0x170] sm:$0xff] %vm1915_vm2, %v7934_v60  ;;  %2367 = vst.msk [vmem:[#allocation3 + $0x180] sm:$0xff] %vm1915_vm2, %v7934_v60  ;;  %v6148_v27 = vpop.permute.xlu0 %869  ;;  %v6154_v47 = vpop.permute.xlu1 %867 }
 0x144   : > { %2368 = vst.msk [vmem:[#allocation3 + $0x188] sm:$0xff] %vm1915_vm2, %v7934_v60  ;;  %2370 = vst.msk [vmem:[#allocation3 + $0x198] sm:$0xff] %vm1915_vm2, %v7934_v60 }
 0x145   : > { %2371 = vst.msk [vmem:[#allocation3 + $0x1a0] sm:$0xff] %vm1915_vm2, %v7934_v60  ;;  %7935 = vst [vmem:[#allocation51_spill] sm:$0xff] %v6138_v62  ;;  %1209 = vrot.lane.b32.xlu0 %v5752_v5, %s5375_s16  ;;  %1589 = vrot.lane.b32.xlu1 %v5752_v5, %s5378_s26 }
 0x146   : > { %7936 = vst [vmem:[#allocation52_spill] sm:$0xff] %v6140_v21  ;;  %7937 = vst [vmem:[#allocation53_spill] sm:$0xff] %v6146_v3 }
 0x147   : > { %7938 = vst [vmem:[#allocation54_spill] sm:$0xff] %v6148_v27  ;;  %7939 = vst [vmem:[#allocation55_spill] sm:$0xff] %v6154_v47  ;;  %v6156_v6 = vpop.permute.xlu0 %873  ;;  %v6162_v31 = vpop.permute.xlu1 %871 }
 0x148   : > { %7940 = vst [vmem:[#allocation56_spill] sm:$0xff] %v6156_v6  ;;  %7941 = vst [vmem:[#allocation57_spill] sm:$0xff] %v6162_v31 }
 0x149   : > { %1211 = vrot.lane.b32.xlu0 %v5765_v8, %s5375_s16  ;;  %1591 = vrot.lane.b32.xlu1 %v5765_v8, %s5378_s26 }
 0x14b   : > { %v6164_v27 = vpop.permute.xlu0 %877  ;;  %v6170_v26 = vpop.permute.xlu1 %875 }
 0x14c   : > { %7942 = vst [vmem:[#allocation58_spill] sm:$0xff] %v6164_v27  ;;  %7943 = vst [vmem:[#allocation59_spill] sm:$0xff] %v6170_v26 }
 0x14d   : > { %1339 = vrot.lane.b32.xlu0 %v5877_v2, %s5376_s17  ;;  %1337 = vrot.lane.b32.xlu1 %v5857_v59, %s5376_s17 }
 0x14f   : > { %v6172_v6 = vpop.permute.xlu0 %881  ;;  %v6178_v5 = vpop.permute.xlu1 %879 }
 0x150   : > { %7944 = vst [vmem:[#allocation60_spill] sm:$0xff] %v6172_v6  ;;  %7945 = vst [vmem:[#allocation61_spill] sm:$0xff] %v6178_v5 }
 0x151   : > { %1467 = vrot.lane.b32.xlu0 %v5696_v37, %s5377_s23  ;;  %1465 = vrot.lane.b32.xlu1 %v5675_v30, %s5377_s23 }
 0x153   : > { %v6180_v31 = vpop.permute.xlu0 %949  ;;  %v6186_v8 = vpop.permute.xlu1 %883 }
 0x154   : > { %7946 = vst [vmem:[#allocation62_spill] sm:$0xff] %v6186_v8 }
 0x155   : > { %1213 = vrot.lane.b32.xlu0 %v5759_v7, %s5375_s16  ;;  %1593 = vrot.lane.b32.xlu1 %v5759_v7, %s5378_s26 }
 0x157   : > { %v6188_v27 = vpop.permute.xlu0 %953  ;;  %v6194_v37 = vpop.permute.xlu1 %951 }
 0x159   : > { %1215 = vrot.lane.b32.xlu0 %v5773_v10, %s5375_s16  ;;  %1595 = vrot.lane.b32.xlu1 %v5773_v10, %s5378_s26 }
 0x15b   : > { %v6196_v6 = vpop.permute.xlu0 %957  ;;  %v6202_v30 = vpop.permute.xlu1 %955 }
 0x15d   : > { %1343 = vrot.lane.b32.xlu0 %v5889_v22, %s5376_s17  ;;  %1341 = vrot.lane.b32.xlu1 %v5869_v63, %s5376_s17 }
 0x15f   : > { %v6204_v8 = vpop.permute.xlu0 %961  ;;  %v6210_v7 = vpop.permute.xlu1 %959 }
 0x161   : > { %1471 = vrot.lane.b32.xlu0 %v5709_v41, %s5377_s23  ;;  %1469 = vrot.lane.b32.xlu1 %v5683_v32, %s5377_s23 }
 0x163   : > { %v6212_v5 = vpop.permute.xlu0 %965  ;;  %v6218_v10 = vpop.permute.xlu1 %963 }
 0x165   : > { %1217 = vrot.lane.b32.xlu0 %v5767_v9, %s5375_s16  ;;  %1597 = vrot.lane.b32.xlu1 %v5767_v9, %s5378_s26 }
 0x167   : > { %v6220_v26 = vpop.permute.xlu0 %969  ;;  %v6226_v41 = vpop.permute.xlu1 %967 }
 0x169   : > { %1219 = vrot.lane.b32.xlu0 %v5781_v12, %s5375_s16  ;;  %1599 = vrot.lane.b32.xlu1 %v5781_v12, %s5378_s26 }
 0x16b   : > { %v6228_v47 = vpop.permute.xlu0 %973  ;;  %v6234_v32 = vpop.permute.xlu1 %971 }
 0x16d   : > { %1347 = vrot.lane.b32.xlu0 %v5901_v28, %s5376_s17  ;;  %1345 = vrot.lane.b32.xlu1 %v5881_v19, %s5376_s17 }
 0x16f   : > { %v6236_v21 = vpop.permute.xlu0 %977  ;;  %v6242_v9 = vpop.permute.xlu1 %975 }
 0x170   : > { %7947 = vst [vmem:[#allocation63_spill] sm:$0xff] %v6236_v21  ;;  %7948 = vst [vmem:[#allocation64_spill] sm:$0xff] %v6242_v9  ;;  %v611_v9 = vld [vmem:[#allocation2 + $0xd9] sm:$0xff] }
 0x171   : > { %1475 = vrot.lane.b32.xlu0 %v5717_v43, %s5377_s23  ;;  %1473 = vrot.lane.b32.xlu1 %v5701_v40, %s5377_s23 }
 0x173   : > { %v6244_v3 = vpop.permute.xlu0 %981  ;;  %v6250_v12 = vpop.permute.xlu1 %979 }
 0x174   : > { %7949 = vst [vmem:[#allocation65_spill] sm:$0xff] %v6244_v3  ;;  %7950 = vst [vmem:[#allocation66_spill] sm:$0xff] %v6250_v12 }
 0x175   : > { %1221 = vrot.lane.b32.xlu0 %v5775_v11, %s5375_s16  ;;  %1601 = vrot.lane.b32.xlu1 %v5775_v11, %s5378_s26  ;;  %v605_v11 = vld [vmem:[#allocation2 + $0x91] sm:$0xff] }
 0x177   : > { %v6252_v62 = vpop.permute.xlu0 %985  ;;  %v6258_v43 = vpop.permute.xlu1 %983 }
 0x178   : > { %7951 = vst [vmem:[#allocation67_spill] sm:$0xff] %v6252_v62  ;;  %7952 = vst [vmem:[#allocation68_spill] sm:$0xff] %v6258_v43  ;;  %v372_v43 = vld [vmem:[#allocation2] sm:$0xff] }
 0x179   : > { %1223 = vrot.lane.b32.xlu0 %v5789_v14, %s5375_s16  ;;  %1603 = vrot.lane.b32.xlu1 %v5789_v14, %s5378_s26  ;;  %v1685_v12 = vsel %vm283_vm0, %v372_v43, %v5819_v34 }
 0x17a   : > { %v1718_v25 = vsel %vm1717_vm4, %v1685_v12, %v5973_v1  ;;  %v643_v12 = vld [vmem:[#allocation2 + $0xda] sm:$0xff] }
 0x17b   : > { %v6260_v29 = vpop.permute.xlu0 %989  ;;  %v6266_v40 = vpop.permute.xlu1 %987 }
 0x17c   : > { %7953 = vst [vmem:[#allocation69_spill] sm:$0xff] %v6260_v29  ;;  %7954 = vst [vmem:[#allocation70_spill] sm:$0xff] %v6266_v40 }
 0x17d   : > { %1351 = vrot.lane.b32.xlu0 %v5913_v39, %s5376_s17  ;;  %1349 = vrot.lane.b32.xlu1 %v5893_v24, %s5376_s17 }
 0x17f   : > { %v6268_v42 = vpop.permute.xlu0 %993  ;;  %v6274_v62 = vpop.permute.xlu1 %991 }
 0x180   : > { %7955 = vst [vmem:[#allocation71_spill] sm:$0xff] %v6268_v42  ;;  %7956 = vst [vmem:[#allocation72_spill] sm:$0xff] %v6274_v62 }
 0x181   : > { %1479 = vrot.lane.b32.xlu0 %v5722_v45, %s5377_s23  ;;  %1477 = vrot.lane.b32.xlu1 %v605_v11, %s5377_s23  ;;  %v511_v45 = vld [vmem:[#allocation2 + $0x99] sm:$0xff] }
 0x183   : > { %v6276_v29 = vpop.permute.xlu0 %997  ;;  %v6281_v14 = vpop.permute.xlu1 %995 }
 0x184   : > { %7957 = vst [vmem:[#allocation73_spill] sm:$0xff] %v6276_v29  ;;  %7958 = vst [vmem:[#allocation74_spill] sm:$0xff] %v6281_v14  ;;  %v607_v29 = vld [vmem:[#allocation2 + $0xa9] sm:$0xff] }
 0x185   : > { %1607 = vrot.lane.b32.xlu0 %v5797_v16, %s5378_s26  ;;  %1605 = vrot.lane.b32.xlu1 %v5783_v13, %s5378_s26 }
 0x187   : > { %v6283_v39 = vpop.permute.xlu0 %1001  ;;  %v6289_v24 = vpop.permute.xlu1 %999 }
 0x188   : > { %7959 = vst [vmem:[#allocation75_spill] sm:$0xff] %v6283_v39  ;;  %7960 = vst [vmem:[#allocation76_spill] sm:$0xff] %v6289_v24 }
 0x189   : > { %1225 = vrot.lane.b32.xlu0 %v5783_v13, %s5375_s16  ;;  %1099 = vrot.lane.b32.xlu1 %v511_v45, %s5374_s7 }
 0x18b   : > { %v6291_v42 = vpop.permute.xlu0 %1005  ;;  %v6296_v11 = vpop.permute.xlu1 %1003 }
 0x18c   : > { %7961 = vst [vmem:[#allocation77_spill] sm:$0xff] %v6291_v42  ;;  %7962 = vst [vmem:[#allocation78_spill] sm:$0xff] %v6296_v11 }
 0x18d   : > { %1353 = vrot.lane.b32.xlu0 %v5905_v35, %s5376_s17  ;;  %1227 = vrot.lane.b32.xlu1 %v5797_v16, %s5375_s16  ;;  %v608_v35 = vld [vmem:[#allocation2 + $0xb1] sm:$0xff] }
 0x18f   : > { %v6298_v39 = vpop.permute.xlu0 %1009  ;;  %v6303_v13 = vpop.permute.xlu1 %1007 }
 0x190   : > { %7963 = vst [vmem:[#allocation79_spill] sm:$0xff] %v6298_v39  ;;  %7964 = vst [vmem:[#allocation80_spill] sm:$0xff] %v6303_v13 }
 0x191   : > { %1481 = vrot.lane.b32.xlu0 %v607_v29, %s5377_s23  ;;  %1355 = vrot.lane.b32.xlu1 %v5925_v0, %s5376_s17 }
 0x193   : > { %v1078_v24 = vpop.permute.xlu0 %1077  ;;  %v6309_v45 = vpop.permute.xlu1 %1011 }
 0x194   : > { %7965 = vst [vmem:[#allocation81_spill] sm:$0xff] %v6309_v45 }
 0x195   : > { %1609 = vrot.lane.b32.xlu0 %v5791_v15, %s5378_s26  ;;  %1483 = vrot.lane.b32.xlu1 %v608_v35, %s5377_s23 }
 0x197   : > { %v6311_v42 = vpop.permute.xlu0 %1081  ;;  %v1080_v16 = vpop.permute.xlu1 %1079 }
 0x199   : > { %1101 = vrot.lane.b32.xlu0 %v607_v29, %s5374_s7  ;;  %1611 = vrot.lane.b32.xlu1 %v5805_v18, %s5378_s26  ;;  %v609_v29 = vld [vmem:[#allocation2 + $0xc1] sm:$0xff] }
 0x19b   : > { %v6315_v39 = vpop.permute.xlu0 %1085  ;;  %v6321_v0 = vpop.permute.xlu1 %1083 }
 0x19d   : > { %1229 = vrot.lane.b32.xlu0 %v5791_v15, %s5375_s16  ;;  %1103 = vrot.lane.b32.xlu1 %v608_v35, %s5374_s7 }
 0x19f   : > { %v6323_v13 = vpop.permute.xlu0 %1089  ;;  %v6328_v45 = vpop.permute.xlu1 %1087 }
 0x1a1   : > { %1357 = vrot.lane.b32.xlu0 %v5917_v48, %s5376_s17  ;;  %1231 = vrot.lane.b32.xlu1 %v5805_v18, %s5375_s16  ;;  %v610_v48 = vld [vmem:[#allocation2 + $0xc9] sm:$0xff] }
 0x1a3   : > { %v6330_v11 = vpop.permute.xlu0 %1093  ;;  %v6335_v15 = vpop.permute.xlu1 %1091 }
 0x1a5   : > { %1485 = vrot.lane.b32.xlu0 %v609_v29, %s5377_s23  ;;  %1359 = vrot.lane.b32.xlu1 %v5937_v36, %s5376_s17 }
 0x1a7   : > { %v6337_v14 = vpop.permute.xlu0 %1097  ;;  %v6343_v35 = vpop.permute.xlu1 %1095 }
 0x1a9   : > { %1613 = vrot.lane.b32.xlu0 %v5799_v17, %s5378_s26  ;;  %1487 = vrot.lane.b32.xlu1 %v610_v48, %s5377_s23 }
 0x1ab   : > { %v1208_v62 = vpop.permute.xlu0 %1207  ;;  %v1206_v18 = vpop.permute.xlu1 %1205 }
 0x1ad   : > { %1105 = vrot.lane.b32.xlu0 %v609_v29, %s5374_s7  ;;  %1615 = vrot.lane.b32.xlu1 %v5810_v20, %s5378_s26  ;;  %v373_v29 = vld [vmem:[#allocation2 + $0x8] sm:$0xff] }
 0x1ae   : > { %v547_v20 = vld [vmem:[#allocation2 + $0xca] sm:$0xff]  ;;  %v1686_v43 = vsel %vm283_vm0, %v373_v29, %v5823_v38 }
 0x1af   : > { %v1336_v40 = vpop.permute.xlu0 %1335  ;;  %v1334_v36 = vpop.permute.xlu1 %1333  ;;  %v1719_v1 = vsel %vm1717_vm4, %v1686_v43, %v5983_v54 }
 0x1b1   : > { %1233 = vrot.lane.b32.xlu0 %v5799_v17, %s5375_s16  ;;  %1107 = vrot.lane.b32.xlu1 %v610_v48, %s5374_s7  ;;  %v1751_v17 = vsel %vm1750_vm5, %v1718_v25, %v6180_v31  ;;  %v1752_v25 = vsel %vm1750_vm5, %v1719_v1, %v6194_v37  ;;  %v612_v37 = vld [vmem:[#allocation2 + $0xe1] sm:$0xff] }
 0x1b2   : > { %v1784_v60 = vsel %vm1783_vm6, %v1751_v17, %v1078_v24 }
 0x1b3   : > { %v1464_v3 = vpop.permute.xlu0 %1463  ;;  %v1462_v21 = vpop.permute.xlu1 %1461  ;;  %v1817_v48 = vsel %vm1816_vm7, %v1784_v60, %v1206_v18  ;;  %v1785_v60 = vsel %vm1783_vm6, %v1752_v25, %v1080_v16 }
 0x1b4   : > { %v1818_v54 = vsel %vm1816_vm7, %v1785_v60, %v1208_v62 }
 0x1b5   : > { %1361 = vrot.lane.b32.xlu0 %v5929_v23, %s5376_s17  ;;  %1235 = vrot.lane.b32.xlu1 %v547_v20, %s5375_s16  ;;  %v1850_v23 = vsel %vm1849_vm8, %v1817_v48, %v1334_v36  ;;  %v1851_v36 = vsel %vm1849_vm8, %v1818_v54, %v1336_v40  ;;  %v1687_v40 = vsel %vm283_vm0, %v5837_v51, %v5827_v44 }
 0x1b6   : > { %v1883_v31 = vsel %vm1882_vm9, %v1850_v23, %v1462_v21  ;;  %v1884_v21 = vsel %vm1882_vm9, %v1851_v36, %v1464_v3  ;;  %v1720_v3 = vsel %vm1717_vm4, %v1687_v40, %v5979_v50  ;;  %v1688_v23 = vsel %vm283_vm0, %v5853_v57, %v5833_v49  ;;  %v7966_v36 = vld [vmem:[#allocation10_spill] sm:$0xff] }
 0x1b7   : > { %v1210_v34 = vpop.permute.xlu0 %1209  ;;  %v1590_v38 = vpop.permute.xlu1 %1589  ;;  %v1753_v43 = vsel %vm1750_vm5, %v1720_v3, %v6188_v27  ;;  %v1721_v50 = vsel %vm1717_vm4, %v1688_v23, %v5989_v56 }
 0x1b8   : > { %v1916_v18 = vsel %vm1915_vm2, %v1883_v31, %v1590_v38  ;;  %v613_v31 = vld [vmem:[#allocation2 + $0xf1] sm:$0xff] }
 0x1b9   : > { %1489 = vrot.lane.b32.xlu0 %v611_v9, %s5377_s23  ;;  %1363 = vrot.lane.b32.xlu1 %v5949_v52, %s5376_s17  ;;  %v644_v52 = vld [vmem:[#allocation2 + $0xe2] sm:$0xff] }
 0x1ba   : > { %4554 = vmatprep.mubr.msk.f32.mxu0 %vm1960_vm10, %v1916_v18 }
 0x1bb   : > { %v1212_v24 = vpop.permute.xlu0 %1211  ;;  %v1592_v29 = vpop.permute.xlu1 %1591 }
 0x1bc   : > { %v1917_v16 = vsel %vm1915_vm2, %v1884_v21, %v1592_v29  ;;  %v646_v29 = vld [vmem:[#allocation2 + $0xfa] sm:$0xff] }
 0x1bd   : > { %1617 = vrot.lane.b32.xlu0 %v643_v12, %s5378_s26  ;;  %1491 = vrot.lane.b32.xlu1 %v612_v37, %s5377_s23 }
 0x1be   : > { %4555 = vmatmul.mubr.msk.f32.vlgmr.msra.gmra.mrb[0].mxu0 %vm1960_vm10, %v1917_v16 }
 0x1bf   : > { %v1340_v20 = vpop.permute.xlu0 %1339  ;;  %v1338_v62 = vpop.permute.xlu1 %1337 }
 0x1c1   : > { %1109 = vrot.lane.b32.xlu0 %v611_v9, %s5374_s7  ;;  %1619 = vrot.lane.b32.xlu1 %v644_v52, %s5378_s26  ;;  %v1786_v9 = vsel %vm1783_vm6, %v1753_v43, %v6311_v42  ;;  %v1754_v42 = vsel %vm1750_vm5, %v1721_v50, %v6202_v30  ;;  %v583_v43 = vld [vmem:[#allocation2 + $0x108] sm:$0xff] }
 0x1c2   : > { %v1819_v44 = vsel %vm1816_vm7, %v1786_v9, %v1210_v34  ;;  %v1787_v49 = vsel %vm1783_vm6, %v1754_v42, %v6321_v0 }
 0x1c3   : > { %v1468_v17 = vpop.permute.xlu0 %1467  ;;  %v1466_v48 = vpop.permute.xlu1 %1465  ;;  %v1852_v51 = vsel %vm1849_vm8, %v1819_v44, %v1338_v62  ;;  %v1820_v56 = vsel %vm1816_vm7, %v1787_v49, %v1212_v24  ;;  %v614_v24 = vld [vmem:[#allocation2 + $0xf9] sm:$0xff]  ;;  %v615_v44 = vld [vmem:[#allocation2 + $0x109] sm:$0xff] }
 0x1c4   : > { %v1885_v27 = vsel %vm1882_vm9, %v1852_v51, %v1466_v48  ;;  %v7967_v62 = vld [vmem:[#allocation12_spill] sm:$0xff] }
 0x1c5   : > { %1237 = vrot.lane.b32.xlu0 %v643_v12, %s5375_s16  ;;  %1111 = vrot.lane.b32.xlu1 %v612_v37, %s5374_s7  ;;  %v645_v12 = vld [vmem:[#allocation2 + $0xf2] sm:$0xff]  ;;  %v1689_v37 = vsel %vm283_vm0, %v5846_v55, %v7966_v36  ;;  %v1690_v55 = vsel %vm283_vm0, %v5865_v61, %v7967_v62  ;;  %v617_v62 = vld [vmem:[#allocation2 + $0x121] sm:$0xff] }
 0x1c6   : > { %v1722_v21 = vsel %vm1717_vm4, %v1689_v37, %v5985_v53  ;;  %v1723_v53 = vsel %vm1717_vm4, %v1690_v55, %v5996_v33  ;;  %v584_v51 = vld [vmem:[#allocation2 + $0x110] sm:$0xff] }
 0x1c7   : > { %v1214_v1 = vpop.permute.xlu0 %1213  ;;  %v1594_v25 = vpop.permute.xlu1 %1593 }
 0x1c8   : > { %v1918_v57 = vsel %vm1915_vm2, %v1885_v27, %v1594_v25  ;;  %v647_v27 = vld [vmem:[#allocation2 + $0x10a] sm:$0xff] }
 0x1c9   : > { %1365 = vrot.lane.b32.xlu0 %v5941_v4, %s5376_s17  ;;  %1239 = vrot.lane.b32.xlu1 %v644_v52, %s5375_s16  ;;  %v1853_v4 = vsel %vm1849_vm8, %v1820_v56, %v1340_v20 }
 0x1ca   : > { %4557 = vmatprep.mubr.msk.f32.mxu0 %vm1960_vm10, %v1918_v57  ;;  %v1886_v30 = vsel %vm1882_vm9, %v1853_v4, %v1468_v17 }
 0x1cb   : > { %v1216_v34 = vpop.permute.xlu0 %1215  ;;  %v1596_v38 = vpop.permute.xlu1 %1595 }
 0x1cc   : > { %v1919_v60 = vsel %vm1915_vm2, %v1886_v30, %v1596_v38 }
 0x1cd   : > { %1493 = vrot.lane.b32.xlu0 %v613_v31, %s5377_s23  ;;  %1367 = vrot.lane.b32.xlu1 %v5958_v46, %s5376_s17  ;;  %v1755_v46 = vsel %vm1750_vm5, %v1722_v21, %v6196_v6  ;;  %v1756_v6 = vsel %vm1750_vm5, %v1723_v53, %v6210_v7 }
 0x1ce   : > { %4558 = vmatmul.mubr.msk.f32.gmra.mrb[2].mxu0 %vm1960_vm10, %v1919_v60  ;;  %v1788_v20 = vsel %vm1783_vm6, %v1755_v46, %v6315_v39  ;;  %v1789_v61 = vsel %vm1783_vm6, %v1756_v6, %v6328_v45 }
 0x1cf   : > { %v1344_v0 = vpop.permute.xlu0 %1343  ;;  %v1342_v18 = vpop.permute.xlu1 %1341  ;;  %v1821_v17 = vsel %vm1816_vm7, %v1788_v20, %v1214_v1  ;;  %v1822_v1 = vsel %vm1816_vm7, %v1789_v61, %v1216_v34  ;;  %v616_v34 = vld [vmem:[#allocation2 + $0x111] sm:$0xff]  ;;  %v7974_v61 = vld [vmem:[#allocation41_spill] sm:$0xff] }
 0x1d0   : > { %v1854_v40 = vsel %vm1849_vm8, %v1821_v17, %v1342_v18  ;;  %v1855_v33 = vsel %vm1849_vm8, %v1822_v1, %v1344_v0  ;;  %v7971_v17 = vld [vmem:[#allocation13_spill] sm:$0xff] }
 0x1d1   : > { %1621 = vrot.lane.b32.xlu0 %v645_v12, %s5378_s26  ;;  %1495 = vrot.lane.b32.xlu1 %v614_v24, %s5377_s23  ;;  %v1693_v53 = vsel %vm283_vm0, %v5869_v63, %v7971_v17  ;;  %v649_v63 = vld [vmem:[#allocation2 + $0x122] sm:$0xff] }
 0x1d2   : > { %v652_v17 = vld [vmem:[#allocation2 + $0x142] sm:$0xff] }
 0x1d3   : > { %v1472_v54 = vpop.permute.xlu0 %1471  ;;  %v1470_v16 = vpop.permute.xlu1 %1469 }
 0x1d4   : > { %v1887_v39 = vsel %vm1882_vm9, %v1854_v40, %v1470_v16  ;;  %v1888_v7 = vsel %vm1882_vm9, %v1855_v33, %v1472_v54  ;;  %v585_v16 = vld [vmem:[#allocation2 + $0x120] sm:$0xff]  ;;  %v7972_v40 = vld [vmem:[#allocation16_spill] sm:$0xff] }
 0x1d5   : > { %1113 = vrot.lane.b32.xlu0 %v613_v31, %s5374_s7  ;;  %1623 = vrot.lane.b32.xlu1 %v646_v29, %s5378_s26  ;;  %v7968_v31 = vld [vmem:[#allocation11_spill] sm:$0xff]  ;;  %v1694_v6 = vsel %vm283_vm0, %v5889_v22, %v7972_v40 }
 0x1d6   : > { %v1691_v49 = vsel %vm283_vm0, %v5857_v59, %v7968_v31  ;;  %v650_v31 = vld [vmem:[#allocation2 + $0x12a] sm:$0xff] }
 0x1d7   : > { %v1218_v52 = vpop.permute.xlu0 %1217  ;;  %v1598_v3 = vpop.permute.xlu1 %1597  ;;  %v1724_v57 = vsel %vm1717_vm4, %v1691_v49, %v5991_v58  ;;  %v7970_v58 = vld [vmem:[#allocation39_spill] sm:$0xff] }
 0x1d8   : > { %v1920_v48 = vsel %vm1915_vm2, %v1887_v39, %v1598_v3  ;;  %v1757_v56 = vsel %vm1750_vm5, %v1724_v57, %v6204_v8  ;;  %v648_v8 = vld [vmem:[#allocation2 + $0x112] sm:$0xff]  ;;  %v7973_v39 = vld [vmem:[#allocation38_spill] sm:$0xff] }
 0x1d9   : > { %1241 = vrot.lane.b32.xlu0 %v645_v12, %s5375_s16  ;;  %1115 = vrot.lane.b32.xlu1 %v614_v24, %s5374_s7  ;;  %v1790_v30 = vsel %vm1783_vm6, %v1757_v56, %v6323_v13  ;;  %v7969_v12 = vld [vmem:[#allocation14_spill] sm:$0xff]  ;;  %v1726_v3 = vsel %vm1717_vm4, %v1693_v53, %v7973_v39  ;;  %v7979_v39 = vld [vmem:[#allocation17_spill] sm:$0xff] }
 0x1da   : > { %4560 = vmatprep.mubr.msk.f32.mxu0 %vm1960_vm10, %v1920_v48  ;;  %v1692_v59 = vsel %vm283_vm0, %v5877_v2, %v7969_v12  ;;  %v1823_v60 = vsel %vm1816_vm7, %v1790_v30, %v1218_v52  ;;  %v1727_v48 = vsel %vm1717_vm4, %v1694_v6, %v7974_v61  ;;  %v587_v12 = vld [vmem:[#allocation2 + $0x138] sm:$0xff]  ;;  %v5275_v6 = vld [vmem:[#allocation2 + $0x90] sm:$0xff] }
 0x1db   : > { %v1220_v9 = vpop.permute.xlu0 %1219  ;;  %v1600_v23 = vpop.permute.xlu1 %1599  ;;  %v1725_v0 = vsel %vm1717_vm4, %v1692_v59, %v7970_v58  ;;  %v1760_v33 = vsel %vm1750_vm5, %v1727_v48, %v6226_v41 }
 0x1dc   : > { %v1921_v50 = vsel %vm1915_vm2, %v1888_v7, %v1600_v23  ;;  %v1758_v13 = vsel %vm1750_vm5, %v1725_v0, %v6218_v10  ;;  %v1793_v23 = vsel %vm1783_vm6, %v1760_v33, %v6343_v35  ;;  %v7981_v33 = vmov 0.0  }
 0x1dd   : > { %1369 = vrot.lane.b32.xlu0 %v583_v43, %s5376_s17  ;;  %1243 = vrot.lane.b32.xlu1 %v646_v29, %s5375_s16  ;;  %v1791_v2 = vsel %vm1783_vm6, %v1758_v13, %v6335_v15  ;;  %v586_v43 = vld [vmem:[#allocation2 + $0x128] sm:$0xff]  ;;  %2324 = vst.msk [vmem:[#allocation3 + $0x28] sm:$0x3] %vm2320_vm11, %v7981_v33  ;;  %2321 = vst.msk [vmem:[#allocation3 + $0x10] sm:$0x3] %vm2320_vm11, %v7981_v33 }
 0x1de   : > { %4561 = vmatmul.mubr.msk.f32.gmra.mrb[4].mxu0 %vm1960_vm10, %v1921_v50  ;;  %v1824_v21 = vsel %vm1816_vm7, %v1791_v2, %v1220_v9  ;;  %v1759_v9 = vsel %vm1750_vm5, %v1726_v3, %v6212_v5  ;;  %v1697_v3 = vsel %vm283_vm0, %v5275_v6, %v7979_v39  ;;  %2327 = vst.msk [vmem:[#allocation3 + $0x40] sm:$0x3] %vm2320_vm11, %v7981_v33  ;;  %2330 = vst.msk [vmem:[#allocation3 + $0x58] sm:$0x3] %vm2320_vm11, %v7981_v33  ;;  %v7990_v6 = vld [vmem:[#allocation66_spill] sm:$0xff] }
 0x1df   : > { %v1348_v45 = vpop.permute.xlu0 %1347  ;;  %v1346_v42 = vpop.permute.xlu1 %1345  ;;  %v1792_v22 = vsel %vm1783_vm6, %v1759_v9, %v6330_v11  ;;  %v589_v9 = vld [vmem:[#allocation2 + $0x150] sm:$0xff]  ;;  %2333 = vst.msk [vmem:[#allocation3 + $0x70] sm:$0x3] %vm2320_vm11, %v7981_v33  ;;  %2336 = vst.msk [vmem:[#allocation3 + $0x88] sm:$0x3] %vm2320_vm11, %v7981_v33 }
 0x1e0   : > { %v1856_v24 = vsel %vm1849_vm8, %v1823_v60, %v1346_v42  ;;  %v1857_v29 = vsel %vm1849_vm8, %v1824_v21, %v1348_v45  ;;  %v618_v45 = vld [vmem:[#allocation2 + $0x129] sm:$0xff]  ;;  %2339 = vst.msk [vmem:[#allocation3 + $0xa0] sm:$0x3] %vm2320_vm11, %v7981_v33  ;;  %2342 = vst.msk [vmem:[#allocation3 + $0xb8] sm:$0x3] %vm2320_vm11, %v7981_v33 }
 0x1e1   : > { %1497 = vrot.lane.b32.xlu0 %v615_v44, %s5377_s23  ;;  %1371 = vrot.lane.b32.xlu1 %v584_v51, %s5376_s17  ;;  %2345 = vst.msk [vmem:[#allocation3 + $0xd0] sm:$0x3] %vm2320_vm11, %v7981_v33  ;;  %2348 = vst.msk [vmem:[#allocation3 + $0xe8] sm:$0x3] %vm2320_vm11, %v7981_v33 }
 0x1e2   : > { %2351 = vst.msk [vmem:[#allocation3 + $0x100] sm:$0x3] %vm2320_vm11, %v7981_v33  ;;  %2354 = vst.msk [vmem:[#allocation3 + $0x118] sm:$0x3] %vm2320_vm11, %v7981_v33 }
 0x1e3   : > { %v1476_v25 = vpop.permute.xlu0 %1475  ;;  %v1474_v4 = vpop.permute.xlu1 %1473  ;;  %2357 = vst.msk [vmem:[#allocation3 + $0x130] sm:$0x3] %vm2320_vm11, %v7981_v33  ;;  %2360 = vst.msk [vmem:[#allocation3 + $0x148] sm:$0x3] %vm2320_vm11, %v7981_v33 }
 0x1e4   : > { %v1889_v18 = vsel %vm1882_vm9, %v1856_v24, %v1474_v4  ;;  %v1890_v10 = vsel %vm1882_vm9, %v1857_v29, %v1476_v25  ;;  %v7976_v4 = vld [vmem:[#allocation40_spill] sm:$0xff]  ;;  %2363 = vst.msk [vmem:[#allocation3 + $0x160] sm:$0x3] %vm2320_vm11, %v7981_v33  ;;  %2366 = vst.msk [vmem:[#allocation3 + $0x178] sm:$0x3] %vm2320_vm11, %v7981_v33 }
 0x1e5   : > { %1625 = vrot.lane.b32.xlu0 %v647_v27, %s5378_s26  ;;  %1499 = vrot.lane.b32.xlu1 %v616_v34, %s5377_s23  ;;  %2369 = vst.msk [vmem:[#allocation3 + $0x190] sm:$0x3] %vm2320_vm11, %v7981_v33  ;;  %2372 = vst.msk [vmem:[#allocation3 + $0x1a8] sm:$0x3] %vm2320_vm11, %v7981_v33 }
 0x1e7   : > { %v1222_v38 = vpop.permute.xlu0 %1221  ;;  %v1602_v54 = vpop.permute.xlu1 %1601 }
 0x1e8   : > { %v1922_v36 = vsel %vm1915_vm2, %v1889_v18, %v1602_v54  ;;  %v7977_v54 = vld [vmem:[#allocation18_spill] sm:$0xff] }
 0x1e9   : > { %1117 = vrot.lane.b32.xlu0 %v615_v44, %s5374_s7  ;;  %1627 = vrot.lane.b32.xlu1 %v648_v8, %s5378_s26  ;;  %v1825_v44 = vsel %vm1816_vm7, %v1792_v22, %v1222_v38 }
 0x1ea   : > { %4563 = vmatprep.mubr.msk.f32.mxu0 %vm1960_vm10, %v1922_v36 }
 0x1eb   : > { %v1224_v37 = vpop.permute.xlu0 %1223  ;;  %v1604_v46 = vpop.permute.xlu1 %1603 }
 0x1ec   : > { %v1923_v20 = vsel %vm1915_vm2, %v1890_v10, %v1604_v46  ;;  %v1826_v50 = vsel %vm1816_vm7, %v1793_v23, %v1224_v37  ;;  %v588_v37 = vld [vmem:[#allocation2 + $0x140] sm:$0xff] }
 0x1ed   : > { %1245 = vrot.lane.b32.xlu0 %v647_v27, %s5375_s16  ;;  %1119 = vrot.lane.b32.xlu1 %v616_v34, %s5374_s7  ;;  %v7975_v34 = vld [vmem:[#allocation15_spill] sm:$0xff]  ;;  %v651_v10 = vld [vmem:[#allocation2 + $0x13a] sm:$0xff] }
 0x1ee   : > { %4564 = vmatmul.mubr.msk.f32.gmra.mrb[6].mxu0 %vm1960_vm10, %v1923_v20  ;;  %v1695_v56 = vsel %vm283_vm0, %v5881_v19, %v7975_v34 }
 0x1ef   : > { %v1352_v15 = vpop.permute.xlu0 %1351  ;;  %v1350_v52 = vpop.permute.xlu1 %1349  ;;  %v1728_v30 = vsel %vm1717_vm4, %v1695_v56, %v7976_v4 }
 0x1f0   : > { %v1858_v5 = vsel %vm1849_vm8, %v1825_v44, %v1350_v52  ;;  %v1859_v41 = vsel %vm1849_vm8, %v1826_v50, %v1352_v15  ;;  %v1761_v59 = vsel %vm1750_vm5, %v1728_v30, %v6220_v26  ;;  %v1696_v26 = vsel %vm283_vm0, %v5901_v28, %v7977_v54  ;;  %v620_v15 = vld [vmem:[#allocation2 + $0x141] sm:$0xff]  ;;  %v621_v44 = vld [vmem:[#allocation2 + $0x151] sm:$0xff] }
 0x1f1   : > { %1373 = vrot.lane.b32.xlu0 %v585_v16, %s5376_s17  ;;  %1247 = vrot.lane.b32.xlu1 %v648_v8, %s5375_s16  ;;  %v1794_v58 = vsel %vm1783_vm6, %v1761_v59, %v6337_v14  ;;  %v619_v8 = vld [vmem:[#allocation2 + $0x139] sm:$0xff]  ;;  %v7978_v14 = vld [vmem:[#allocation43_spill] sm:$0xff] }
 0x1f2   : > { %v1729_v36 = vsel %vm1717_vm4, %v1696_v26, %v7978_v14  ;;  %v7986_v54 = vld [vmem:[#allocation44_spill] sm:$0xff]  ;;  %v591_v14 = vld [vmem:[#allocation2 + $0x168] sm:$0xff] }
 0x1f3   : > { %v1480_v55 = vpop.permute.xlu0 %1479  ;;  %v1478_v1 = vpop.permute.xlu1 %1477  ;;  %v1762_v21 = vsel %vm1750_vm5, %v1729_v36, %v6234_v32  ;;  %v7987_v36 = vld [vmem:[#allocation63_spill] sm:$0xff] }
 0x1f4   : > { %v1891_v51 = vsel %vm1882_vm9, %v1858_v5, %v1478_v1  ;;  %v1892_v42 = vsel %vm1882_vm9, %v1859_v41, %v1480_v55  ;;  %v7982_v41 = vld [vmem:[#allocation20_spill] sm:$0xff] }
 0x1f5   : > { %1501 = vrot.lane.b32.xlu0 %v617_v62, %s5377_s23  ;;  %1375 = vrot.lane.b32.xlu1 %v586_v43, %s5376_s17  ;;  %v7980_v43 = vld [vmem:[#allocation42_spill] sm:$0xff] }
 0x1f6   : > { %v1730_v61 = vsel %vm1717_vm4, %v1697_v3, %v7980_v43  ;;  %v655_v43 = vld [vmem:[#allocation2 + $0x16a] sm:$0xff] }
 0x1f7   : > { %v1608_v7 = vpop.permute.xlu0 %1607  ;;  %v1606_v11 = vpop.permute.xlu1 %1605  ;;  %v1763_v1 = vsel %vm1750_vm5, %v1730_v61, %v6228_v47 }
 0x1f8   : > { %v1924_v35 = vsel %vm1915_vm2, %v1891_v51, %v1606_v11  ;;  %v1925_v25 = vsel %vm1915_vm2, %v1892_v42, %v1608_v7  ;;  %v7983_v42 = vld [vmem:[#allocation45_spill] sm:$0xff] }
 0x1f9   : > { %1629 = vrot.lane.b32.xlu0 %v649_v63, %s5378_s26  ;;  %1503 = vrot.lane.b32.xlu1 %v618_v45, %s5377_s23 }
 0x1fa   : > { %4566 = vmatprep.mubr.msk.f32.mxu0 %vm1960_vm10, %v1924_v35 }
 0x1fb   : > { %v1226_v27 = vpop.permute.xlu0 %1225  ;;  %4567 = vmatmul.mubr.msk.f32.gmra.mrb[8].mxu0 %vm1960_vm10, %v1925_v25  ;;  %v1100_v49 = vpop.permute.xlu1 %1099  ;;  %v7984_v25 = vld [vmem:[#allocation64_spill] sm:$0xff] }
 0x1fc   : > { %v1827_v0 = vsel %vm1816_vm7, %v1794_v58, %v1226_v27  ;;  %v1795_v46 = vsel %vm1783_vm6, %v1762_v21, %v1100_v49  ;;  %v590_v27 = vld [vmem:[#allocation2 + $0x158] sm:$0xff] }
 0x1fd   : > { %1121 = vrot.lane.b32.xlu0 %v617_v62, %s5374_s7  ;;  %1631 = vrot.lane.b32.xlu1 %v650_v31, %s5378_s26 }
 0x1ff   : > { %v1354_v57 = vpop.permute.xlu0 %1353  ;;  %v1228_v38 = vpop.permute.xlu1 %1227 }
 0x200   : > { %v1860_v19 = vsel %vm1849_vm8, %v1827_v0, %v1354_v57  ;;  %v1828_v16 = vsel %vm1816_vm7, %v1795_v46, %v1228_v38  ;;  %v653_v57 = vld [vmem:[#allocation2 + $0x152] sm:$0xff]  ;;  %v654_v0 = vld [vmem:[#allocation2 + $0x15a] sm:$0xff] }
 0x201   : > { %1249 = vrot.lane.b32.xlu0 %v649_v63, %s5375_s16  ;;  %1123 = vrot.lane.b32.xlu1 %v618_v45, %s5374_s7  ;;  %v5276_v45 = vld [vmem:[#allocation2 + $0x98] sm:$0xff] }
 0x202   : > { %v1698_v51 = vsel %vm283_vm0, %v5276_v45, %v7982_v41  ;;  %v622_v38 = vld [vmem:[#allocation2 + $0x159] sm:$0xff] }
 0x203   : > { %v1482_v60 = vpop.permute.xlu0 %1481  ;;  %v1356_v24 = vpop.permute.xlu1 %1355  ;;  %v1731_v35 = vsel %vm1717_vm4, %v1698_v51, %v7983_v42  ;;  %v7991_v45 = vld [vmem:[#allocation21_spill] sm:$0xff]  ;;  %v7992_v51 = vld [vmem:[#allocation46_spill] sm:$0xff] }
 0x204   : > { %v1893_v13 = vsel %vm1882_vm9, %v1860_v19, %v1482_v60  ;;  %v1861_v20 = vsel %vm1849_vm8, %v1828_v16, %v1356_v24  ;;  %v623_v16 = vld [vmem:[#allocation2 + $0x169] sm:$0xff] }
 0x205   : > { %1377 = vrot.lane.b32.xlu0 %v587_v12, %s5376_s17  ;;  %1251 = vrot.lane.b32.xlu1 %v650_v31, %s5375_s16  ;;  %v1764_v31 = vsel %vm1750_vm5, %v1731_v35, %v7984_v25  ;;  %v593_v35 = vld [vmem:[#allocation2 + $0x180] sm:$0xff] }
 0x207   : > { %v1610_v18 = vpop.permute.xlu0 %1609  ;;  %v1484_v29 = vpop.permute.xlu1 %1483 }
 0x208   : > { %v1926_v2 = vsel %vm1915_vm2, %v1893_v13, %v1610_v18  ;;  %v1894_v52 = vsel %vm1882_vm9, %v1861_v20, %v1484_v29  ;;  %v7985_v13 = vld [vmem:[#allocation19_spill] sm:$0xff] }
 0x209   : > { %1505 = vrot.lane.b32.xlu0 %v619_v8, %s5377_s23  ;;  %4569 = vmatprep.mubr.msk.f32.mxu0 %vm1960_vm10, %v1926_v2 }
 0x20a   : > { %1379 = vrot.lane.b32.xlu1 %v588_v37, %s5376_s17 }
 0x20b   : > { %v1102_v28 = vpop.permute.xlu0 %1101  ;;  %v1612_v62 = vpop.permute.xlu1 %1611 }
 0x20c   : > { %v1927_v55 = vsel %vm1915_vm2, %v1894_v52, %v1612_v62  ;;  %v1796_v47 = vsel %vm1783_vm6, %v1763_v1, %v1102_v28  ;;  %v5278_v52 = vld [vmem:[#allocation2 + $0xb0] sm:$0xff]  ;;  %v7988_v62 = vld [vmem:[#allocation22_spill] sm:$0xff] }
 0x20d   : > { %1633 = vrot.lane.b32.xlu0 %v651_v10, %s5378_s26  ;;  %4570 = vmatmul.mubr.msk.f32.gmra.mrb[10].mxu0 %vm1960_vm10, %v1927_v55  ;;  %v1700_v55 = vsel %vm283_vm0, %v5278_v52, %v7988_v62  ;;  %v7997_v52 = vld [vmem:[#allocation23_spill] sm:$0xff] }
 0x20e   : > { %1507 = vrot.lane.b32.xlu1 %v620_v15, %s5377_s23 }
 0x20f   : > { %v1230_v32 = vpop.permute.xlu0 %1229  ;;  %v1104_v53 = vpop.permute.xlu1 %1103 }
 0x210   : > { %v1829_v22 = vsel %vm1816_vm7, %v1796_v47, %v1230_v32  ;;  %v1797_v34 = vsel %vm1783_vm6, %v1764_v31, %v1104_v53 }
 0x211   : > { %1125 = vrot.lane.b32.xlu0 %v619_v8, %s5374_s7  ;;  %v5277_v8 = vld [vmem:[#allocation2 + $0xa8] sm:$0xff] }
 0x212   : > { %1635 = vrot.lane.b32.xlu1 %v652_v17, %s5378_s26  ;;  %v1699_v18 = vsel %vm283_vm0, %v5277_v8, %v7985_v13  ;;  %v7996_v8 = vld [vmem:[#allocation68_spill] sm:$0xff] }
 0x213   : > { %v1358_v40 = vpop.permute.xlu0 %1357  ;;  %v1232_v48 = vpop.permute.xlu1 %1231  ;;  %v1732_v26 = vsel %vm1717_vm4, %v1699_v18, %v7986_v54  ;;  %v657_v54 = vld [vmem:[#allocation2 + $0x182] sm:$0xff] }
 0x214   : > { %v1862_v7 = vsel %vm1849_vm8, %v1829_v22, %v1358_v40  ;;  %v1830_v4 = vsel %vm1816_vm7, %v1797_v34, %v1232_v48  ;;  %v1765_v37 = vsel %vm1750_vm5, %v1732_v26, %v7987_v36  ;;  %v592_v40 = vld [vmem:[#allocation2 + $0x170] sm:$0xff] }
 0x215   : > { %1253 = vrot.lane.b32.xlu0 %v651_v10, %s5375_s16 }
 0x216   : > { %1127 = vrot.lane.b32.xlu1 %v620_v15, %s5374_s7 }
 0x217   : > { %v1486_v63 = vpop.permute.xlu0 %1485  ;;  %v1360_v23 = vpop.permute.xlu1 %1359 }
 0x218   : > { %v1895_v50 = vsel %vm1882_vm9, %v1862_v7, %v1486_v63  ;;  %v1863_v30 = vsel %vm1849_vm8, %v1830_v4, %v1360_v23  ;;  %v624_v63 = vld [vmem:[#allocation2 + $0x171] sm:$0xff]  ;;  %v625_v4 = vld [vmem:[#allocation2 + $0x181] sm:$0xff] }
 0x219   : > { %1381 = vrot.lane.b32.xlu0 %v589_v9, %s5376_s17  ;;  %v656_v23 = vld [vmem:[#allocation2 + $0x172] sm:$0xff] }
 0x21a   : > { %1255 = vrot.lane.b32.xlu1 %v652_v17, %s5375_s16  ;;  %v7989_v17 = vld [vmem:[#allocation47_spill] sm:$0xff] }
 0x21b   : > { %v1614_v5 = vpop.permute.xlu0 %1613  ;;  %v1488_v49 = vpop.permute.xlu1 %1487  ;;  %v1733_v53 = vsel %vm1717_vm4, %v1700_v55, %v7989_v17  ;;  %v7998_v55 = vld [vmem:[#allocation48_spill] sm:$0xff] }
 0x21c   : > { %v1928_v11 = vsel %vm1915_vm2, %v1895_v50, %v1614_v5  ;;  %v1896_v12 = vsel %vm1882_vm9, %v1863_v30, %v1488_v49  ;;  %v1766_v39 = vsel %vm1750_vm5, %v1733_v53, %v7990_v6  ;;  %v5279_v5 = vld [vmem:[#allocation2 + $0xc0] sm:$0xff]  ;;  %v595_v53 = vld [vmem:[#allocation2 + $0x198] sm:$0xff] }
 0x21d   : > { %1509 = vrot.lane.b32.xlu0 %v621_v44, %s5377_s23  ;;  %4572 = vmatprep.mubr.msk.f32.mxu0 %vm1960_vm10, %v1928_v11  ;;  %v1701_v41 = vsel %vm283_vm0, %v5279_v5, %v7991_v45  ;;  %v8002_v5 = vld [vmem:[#allocation70_spill] sm:$0xff] }
 0x21e   : > { %1383 = vrot.lane.b32.xlu1 %v590_v27, %s5376_s17  ;;  %v1734_v11 = vsel %vm1717_vm4, %v1701_v41, %v7992_v51  ;;  %v7993_v27 = vld [vmem:[#allocation65_spill] sm:$0xff] }
 0x21f   : > { %v1106_v56 = vpop.permute.xlu0 %1105  ;;  %v1616_v59 = vpop.permute.xlu1 %1615  ;;  %v1767_v25 = vsel %vm1750_vm5, %v1734_v11, %v7993_v27  ;;  %v659_v51 = vld [vmem:[#allocation2 + $0x19a] sm:$0xff]  ;;  %v2438_v11 = vld [vmem:[#allocation3 + $0x1] sm:$0xff] }
 0x220   : > { %v1929_v60 = vsel %vm1915_vm2, %v1896_v12, %v1616_v59  ;;  %v1798_v29 = vsel %vm1783_vm6, %v1765_v37, %v1106_v56  ;;  %v5280_v12 = vld [vmem:[#allocation2 + $0xc8] sm:$0xff]  ;;  %v7994_v59 = vld [vmem:[#allocation24_spill] sm:$0xff] }
 0x221   : > { %1637 = vrot.lane.b32.xlu0 %v653_v57, %s5378_s26  ;;  %4573 = vmatmul.mubr.msk.f32.gmra.mrb[12].mxu0 %vm1960_vm10, %v1929_v60  ;;  %v1702_v60 = vsel %vm283_vm0, %v5280_v12, %v7994_v59  ;;  %v626_v37 = vld [vmem:[#allocation2 + $0x189] sm:$0xff] }
 0x222   : > { %1511 = vrot.lane.b32.xlu1 %v622_v38, %s5377_s23 }
 0x223   : > { %v1234_v58 = vpop.permute.xlu0 %1233  ;;  %v1108_v19 = vpop.permute.xlu1 %1107 }
 0x224   : > { %v1831_v10 = vsel %vm1816_vm7, %v1798_v29, %v1234_v58  ;;  %v1799_v61 = vsel %vm1783_vm6, %v1766_v39, %v1108_v19 }
 0x225   : > { %1129 = vrot.lane.b32.xlu0 %v621_v44, %s5374_s7 }
 0x226   : > { %1639 = vrot.lane.b32.xlu1 %v654_v0, %s5378_s26 }
 0x227   : > { %v1362_v24 = vpop.permute.xlu0 %1361  ;;  %v1236_v2 = vpop.permute.xlu1 %1235 }
 0x228   : > { %v1864_v46 = vsel %vm1849_vm8, %v1831_v10, %v1362_v24  ;;  %v1832_v9 = vsel %vm1816_vm7, %v1799_v61, %v1236_v2  ;;  %v594_v24 = vld [vmem:[#allocation2 + $0x188] sm:$0xff] }
 0x229   : > { %1257 = vrot.lane.b32.xlu0 %v653_v57, %s5375_s16 }
 0x22a   : > { %1131 = vrot.lane.b32.xlu1 %v622_v38, %s5374_s7 }
 0x22b   : > { %v1490_v21 = vpop.permute.xlu0 %1489  ;;  %v1364_v28 = vpop.permute.xlu1 %1363 }
 0x22c   : > { %v1897_v20 = vsel %vm1882_vm9, %v1864_v46, %v1490_v21  ;;  %v1865_v1 = vsel %vm1849_vm8, %v1832_v9, %v1364_v28  ;;  %v658_v28 = vld [vmem:[#allocation2 + $0x18a] sm:$0xff]  ;;  %v627_v9 = vld [vmem:[#allocation2 + $0x199] sm:$0xff] }
 0x22d   : > { %1385 = vrot.lane.b32.xlu0 %v591_v14, %s5376_s17 }
 0x22e   : > { %1259 = vrot.lane.b32.xlu1 %v654_v0, %s5375_s16  ;;  %v7995_v0 = vld [vmem:[#allocation49_spill] sm:$0xff] }
 0x22f   : > { %v1618_v15 = vpop.permute.xlu0 %1617  ;;  %v1492_v3 = vpop.permute.xlu1 %1491  ;;  %v1735_v19 = vsel %vm1717_vm4, %v1702_v60, %v7995_v0  ;;  %v5283_v60 = vld [vmem:[#allocation2 + $0xf0] sm:$0xff] }
 0x230   : > { %v1930_v32 = vsel %vm1915_vm2, %v1897_v20, %v1618_v15  ;;  %v1898_v33 = vsel %vm1882_vm9, %v1865_v1, %v1492_v3  ;;  %v1768_v13 = vsel %vm1750_vm5, %v1735_v19, %v7996_v8  ;;  %v5281_v15 = vld [vmem:[#allocation2 + $0xd8] sm:$0xff]  ;;  %v8004_v19 = vld [vmem:[#allocation50_spill] sm:$0xff] }
 0x231   : > { %1513 = vrot.lane.b32.xlu0 %v623_v16, %s5377_s23  ;;  %4575 = vmatprep.mubr.msk.f32.mxu0 %vm1960_vm10, %v1930_v32  ;;  %v1703_v62 = vsel %vm283_vm0, %v5281_v15, %v7997_v52  ;;  %v8008_v15 = vld [vmem:[#allocation72_spill] sm:$0xff] }
 0x232   : > { %1387 = vrot.lane.b32.xlu1 %v592_v40, %s5376_s17  ;;  %v1736_v32 = vsel %vm1717_vm4, %v1703_v62, %v7998_v55  ;;  %v7999_v40 = vld [vmem:[#allocation67_spill] sm:$0xff] }
 0x233   : > { %v1110_v48 = vpop.permute.xlu0 %1109  ;;  %v1620_v47 = vpop.permute.xlu1 %1619  ;;  %v1769_v6 = vsel %vm1750_vm5, %v1736_v32, %v7999_v40 }
 0x234   : > { %v1931_v22 = vsel %vm1915_vm2, %v1898_v33, %v1620_v47  ;;  %v1800_v49 = vsel %vm1783_vm6, %v1767_v25, %v1110_v48  ;;  %v5282_v33 = vld [vmem:[#allocation2 + $0xe0] sm:$0xff] }
 0x235   : > { %1641 = vrot.lane.b32.xlu0 %v655_v43, %s5378_s26  ;;  %4576 = vmatmul.mubr.msk.f32.gmra.mrb[14].mxu0 %vm1960_vm10, %v1931_v22  ;;  %v8000_v47 = vld [vmem:[#allocation26_spill] sm:$0xff] }
 0x236   : > { %1515 = vrot.lane.b32.xlu1 %v624_v63, %s5377_s23  ;;  %v1704_v22 = vsel %vm283_vm0, %v5282_v33, %v8000_v47 }
 0x237   : > { %v1238_v7 = vpop.permute.xlu0 %1237  ;;  %v1112_v44 = vpop.permute.xlu1 %1111 }
 0x238   : > { %v1833_v57 = vsel %vm1816_vm7, %v1800_v49, %v1238_v7  ;;  %v1801_v26 = vsel %vm1783_vm6, %v1768_v13, %v1112_v44  ;;  %v628_v49 = vld [vmem:[#allocation2 + $0x1a1] sm:$0xff] }
 0x239   : > { %1133 = vrot.lane.b32.xlu0 %v623_v16, %s5374_s7  ;;  %v8005_v13 = vld [vmem:[#allocation69_spill] sm:$0xff] }
 0x23a   : > { %1643 = vrot.lane.b32.xlu1 %v656_v23, %s5378_s26 }
 0x23b   : > { %v1366_v50 = vpop.permute.xlu0 %1365  ;;  %v1240_v42 = vpop.permute.xlu1 %1239 }
 0x23c   : > { %v1866_v34 = vsel %vm1849_vm8, %v1833_v57, %v1366_v50  ;;  %v1834_v14 = vsel %vm1816_vm7, %v1801_v26, %v1240_v42  ;;  %v596_v50 = vld [vmem:[#allocation2 + $0x1a0] sm:$0xff] }
 0x23d   : > { %1261 = vrot.lane.b32.xlu0 %v655_v43, %s5375_s16  ;;  %v2439_v42 = vld [vmem:[#allocation3 + $0x9] sm:$0xff] }
 0x23e   : > { %1135 = vrot.lane.b32.xlu1 %v624_v63, %s5374_s7  ;;  %v4795_v57 = vpack.i.bf16 %v2439_v42, %v2438_v11  ;;  %v5286_v11 = vld [vmem:[#allocation2 + $0x110] sm:$0xff]  ;;  %v8012_v42 = vld [vmem:[#allocation30_spill] sm:$0xff] }
 0x23f   : > { %v1494_v31 = vpop.permute.xlu0 %1493  ;;  %v1368_v56 = vpop.permute.xlu1 %1367 }
 0x240   : > { %v1899_v30 = vsel %vm1882_vm9, %v1866_v34, %v1494_v31  ;;  %v1867_v36 = vsel %vm1849_vm8, %v1834_v14, %v1368_v56 }
 0x241   : > { %1389 = vrot.lane.b32.xlu0 %v593_v35, %s5376_s17 }
 0x242   : > { %1263 = vrot.lane.b32.xlu1 %v656_v23, %s5375_s16  ;;  %v8001_v23 = vld [vmem:[#allocation51_spill] sm:$0xff] }
 0x243   : > { %v1622_v38 = vpop.permute.xlu0 %1621  ;;  %v1496_v18 = vpop.permute.xlu1 %1495  ;;  %v1737_v44 = vsel %vm1717_vm4, %v1704_v22, %v8001_v23  ;;  %v8011_v22 = vld [vmem:[#allocation71_spill] sm:$0xff] }
 0x244   : > { %v1932_v58 = vsel %vm1915_vm2, %v1899_v30, %v1622_v38  ;;  %v1900_v21 = vsel %vm1882_vm9, %v1867_v36, %v1496_v18  ;;  %v1770_v45 = vsel %vm1750_vm5, %v1737_v44, %v8002_v5  ;;  %v660_v38 = vld [vmem:[#allocation2 + $0x1a2] sm:$0xff] }
 0x245   : > { %1517 = vrot.lane.b32.xlu0 %v625_v4, %s5377_s23  ;;  %4578 = vmatprep.mubr.msk.f32.mxu0 %vm1960_vm10, %v1932_v58  ;;  %v8003_v58 = vld [vmem:[#allocation25_spill] sm:$0xff] }
 0x246   : > { %1391 = vrot.lane.b32.xlu1 %v594_v24, %s5376_s17  ;;  %v1705_v0 = vsel %vm283_vm0, %v5283_v60, %v8003_v58 }
 0x247   : > { %v1114_v2 = vpop.permute.xlu0 %1113  ;;  %v1624_v29 = vpop.permute.xlu1 %1623  ;;  %v1738_v24 = vsel %vm1717_vm4, %v1705_v0, %v8004_v19 }
 0x248   : > { %v1933_v10 = vsel %vm1915_vm2, %v1900_v21, %v1624_v29  ;;  %v1802_v3 = vsel %vm1783_vm6, %v1769_v6, %v1114_v2  ;;  %v1771_v18 = vsel %vm1750_vm5, %v1738_v24, %v8005_v13  ;;  %v5284_v29 = vld [vmem:[#allocation2 + $0xf8] sm:$0xff]  ;;  %v5287_v24 = vld [vmem:[#allocation2 + $0x120] sm:$0xff] }
 0x249   : > { %1645 = vrot.lane.b32.xlu0 %v657_v54, %s5378_s26  ;;  %4579 = vmatmul.mubr.msk.f32.gmra.mrb[16].mxu0 %vm1960_vm10, %v1933_v10  ;;  %v8006_v10 = vld [vmem:[#allocation28_spill] sm:$0xff] }
 0x24a   : > { %1519 = vrot.lane.b32.xlu1 %v626_v37, %s5377_s23 }
 0x24b   : > { %v1242_v46 = vpop.permute.xlu0 %1241  ;;  %v1116_v16 = vpop.permute.xlu1 %1115 }
 0x24c   : > { %v1835_v43 = vsel %vm1816_vm7, %v1802_v3, %v1242_v46  ;;  %v1803_v35 = vsel %vm1783_vm6, %v1770_v45, %v1116_v16  ;;  %v1706_v46 = vsel %vm283_vm0, %v5284_v29, %v8006_v10  ;;  %v8007_v16 = vld [vmem:[#allocation53_spill] sm:$0xff] }
 0x24d   : > { %1137 = vrot.lane.b32.xlu0 %v625_v4, %s5374_s7  ;;  %v6795_v29 = vld [vmem:[#allocation4] ss:$0 sm:$0xff] }
 0x24e   : > { %1647 = vrot.lane.b32.xlu1 %v658_v28, %s5378_s26 }
 0x24f   : > { %v1370_v20 = vpop.permute.xlu0 %1369  ;;  %v1244_v17 = vpop.permute.xlu1 %1243 }
 0x250   : > { %v1868_v61 = vsel %vm1849_vm8, %v1835_v43, %v1370_v20  ;;  %v1836_v25 = vsel %vm1816_vm7, %v1803_v35, %v1244_v17  ;;  %v1739_v20 = vsel %vm1717_vm4, %v1706_v46, %v8007_v16  ;;  %v1708_v35 = vsel %vm283_vm0, %v5286_v11, %v8012_v42 }
 0x251   : > { %1265 = vrot.lane.b32.xlu0 %v657_v54, %s5375_s16  ;;  %v1772_v52 = vsel %vm1750_vm5, %v1739_v20, %v8008_v15  ;;  %v5288_v15 = vld [vmem:[#allocation2 + $0x128] sm:$0xff] }
 0x252   : > { %1139 = vrot.lane.b32.xlu1 %v626_v37, %s5374_s7 }
 0x253   : > { %v1498_v39 = vpop.permute.xlu0 %1497  ;;  %v1372_v48 = vpop.permute.xlu1 %1371 }
 0x254   : > { %v1901_v1 = vsel %vm1882_vm9, %v1868_v61, %v1498_v39  ;;  %v1869_v31 = vsel %vm1849_vm8, %v1836_v25, %v1372_v48  ;;  %v5285_v48 = vld [vmem:[#allocation2 + $0x108] sm:$0xff] }
 0x255   : > { %1393 = vrot.lane.b32.xlu0 %v595_v53, %s5376_s17  ;;  %v8013_v25 = vld [vmem:[#allocation55_spill] sm:$0xff] }
 0x256   : > { %1267 = vrot.lane.b32.xlu1 %v658_v28, %s5375_s16 }
 0x257   : > { %v1626_v63 = vpop.permute.xlu0 %1625  ;;  %v1500_v41 = vpop.permute.xlu1 %1499 }
 0x258   : > { %v1934_v7 = vsel %vm1915_vm2, %v1901_v1, %v1626_v63  ;;  %v1902_v34 = vsel %vm1882_vm9, %v1869_v31, %v1500_v41  ;;  %v8010_v63 = vld [vmem:[#allocation52_spill] sm:$0xff]  ;;  %v1741_v31 = vsel %vm1717_vm4, %v1708_v35, %v8013_v25  ;;  %v3662_v25 = vld [vmem:[%s7878_s3 + $0x28] sm:$0xff] }
 0x259   : > { %1521 = vrot.lane.b32.xlu0 %v627_v9, %s5377_s23  ;;  %4581 = vmatprep.mubr.msk.f32.mxu0 %vm1960_vm10, %v1934_v7  ;;  %v8009_v9 = vld [vmem:[#allocation27_spill] sm:$0xff] }
 0x25a   : > { %1395 = vrot.lane.b32.xlu1 %v596_v50, %s5376_s17  ;;  %v1707_v1 = vsel %vm283_vm0, %v5285_v48, %v8009_v9 }
 0x25b   : > { %v1118_v27 = vpop.permute.xlu0 %1117  ;;  %v1628_v56 = vpop.permute.xlu1 %1627  ;;  %v1740_v33 = vsel %vm1717_vm4, %v1707_v1, %v8010_v63  ;;  %v3657_v63 = vld [vmem:[%s7878_s3] sm:$0xff] }
 0x25c   : > { %v1935_v4 = vsel %vm1915_vm2, %v1902_v34, %v1628_v56  ;;  %v1804_v26 = vsel %vm1783_vm6, %v1771_v18, %v1118_v27  ;;  %v1773_v7 = vsel %vm1750_vm5, %v1740_v33, %v8011_v22  ;;  %v8016_v18 = vld [vmem:[#allocation54_spill] sm:$0xff]  ;;  %v5379_v22 = vmov 0.0|0.0  }
 0x25d   : > { %1649 = vrot.lane.b32.xlu0 %v659_v51, %s5378_s26  ;;  %4582 = vmatmul.mubr.msk.f32.gmra.mrb[18].mxu0 %vm1960_vm10, %v1935_v4  ;;  %v3658_v33 = vld [vmem:[%s7878_s3 + $0x8] sm:$0xff] }
 0x25e   : > { %1523 = vrot.lane.b32.xlu1 %v628_v49, %s5377_s23  ;;  %v8014_v49 = vld [vmem:[#allocation74_spill] sm:$0xff]  ;;  %4722 = vmatprep.subr.bf16.mxu1 %v5379_v22 }
 0x25f   : > { %v1246_v30 = vpop.permute.xlu0 %1245  ;;  %v1120_v12 = vpop.permute.xlu1 %1119  ;;  %4666 = vmatprep.subr.bf16.mxu0 %v5379_v22 }
 0x260   : > { %v1837_v2 = vsel %vm1816_vm7, %v1804_v26, %v1246_v30  ;;  %v1805_v55 = vsel %vm1783_vm6, %v1772_v52, %v1120_v12  ;;  %v8018_v52 = vld [vmem:[#allocation32_spill] sm:$0xff] }
 0x261   : > { %4796 = vrot.lane.b32.xlu0 %v4795_v57, %s5378_s26  ;;  %v1774_v57 = vsel %vm1750_vm5, %v1741_v31, %v8014_v49  ;;  %v5289_v49 = vld [vmem:[#allocation2 + $0x138] sm:$0xff] }
 0x262   : > { %1651 = vrot.lane.b32.xlu1 %v660_v38, %s5378_s26 }
 0x263   : > { %v1374_v59 = vpop.permute.xlu0 %1373  ;;  %v1248_v8 = vpop.permute.xlu1 %1247 }
 0x264   : > { %v1870_v14 = vsel %vm1849_vm8, %v1837_v2, %v1374_v59  ;;  %v1838_v17 = vsel %vm1816_vm7, %v1805_v55, %v1248_v8  ;;  %v8015_v8 = vld [vmem:[#allocation29_spill] sm:$0xff] }
 0x265   : > { %v1709_v13 = vsel %vm283_vm0, %v5287_v24, %v8015_v8  ;;  %v8017_v2 = vld [vmem:[#allocation73_spill] sm:$0xff] }
 0x267   : > { %v1502_v54 = vpop.permute.xlu0 %1501  ;;  %v1376_v36 = vpop.permute.xlu1 %1375 }
 0x268   : > { %v1903_v37 = vsel %vm1882_vm9, %v1870_v14, %v1502_v54  ;;  %v1871_v53 = vsel %vm1849_vm8, %v1838_v17, %v1376_v36  ;;  %v1742_v54 = vsel %vm1717_vm4, %v1709_v13, %v8016_v18 }
 0x269   : > { %v1775_v14 = vsel %vm1750_vm5, %v1742_v54, %v8017_v2 }
 0x26b   : > { %v1630_v21 = vpop.permute.xlu0 %1629  ;;  %v1504_v62 = vpop.permute.xlu1 %1503 }
 0x26c   : > { %v1936_v28 = vsel %vm1915_vm2, %v1903_v37, %v1630_v21  ;;  %v1904_v40 = vsel %vm1882_vm9, %v1871_v53, %v1504_v62  ;;  %v1710_v62 = vsel %vm283_vm0, %v5288_v15, %v8018_v52  ;;  %v8019_v53 = vld [vmem:[#allocation57_spill] sm:$0xff] }
 0x26d   : > { %4584 = vmatprep.mubr.msk.f32.mxu0 %vm1960_vm10, %v1936_v28 }
 0x26f   : > { %v1122_v32 = vpop.permute.xlu0 %1121  ;;  %v1632_v6 = vpop.permute.xlu1 %1631 }
 0x270   : > { %v1937_v39 = vsel %vm1915_vm2, %v1904_v40, %v1632_v6  ;;  %v1806_v44 = vsel %vm1783_vm6, %v1773_v7, %v1122_v32  ;;  %v1743_v40 = vsel %vm1717_vm4, %v1710_v62, %v8019_v53  ;;  %v4667_v7 = vpack.c.bf16 %v3658_v33, %v3657_v63  ;;  %v8025_v62 = vld [vmem:[#allocation59_spill] sm:$0xff] }
 0x271   : > { %4585 = vmatmul.mubr.msk.f32.gmra.mrb[20].mxu0 %vm1960_vm10, %v1937_v39  ;;  %v8020_v39 = vld [vmem:[#allocation76_spill] sm:$0xff] }
 0x272   : > { %4738 = vmatpush1.bf16.msra.mxu1 %v4667_v7  ;;  %4668 = vmatpush1.bf16.msra.mxu0 %v4667_v7  ;;  %v3670_v7 = vld [vmem:[%s7878_s3 + $0x68] sm:$0xff] }
 0x273   : > { %v1250_v3 = vpop.permute.xlu0 %1249  ;;  %v1124_v43 = vpop.permute.xlu1 %1123  ;;  %4723 = vmatprep.subr.bf16.mxu1 %v5379_v22  ;;  %4669 = vmatprep.subr.bf16.mxu0 %v5379_v22 }
 0x274   : > { %v1839_v50 = vsel %vm1816_vm7, %v1806_v44, %v1250_v3  ;;  %v1807_v56 = vsel %vm1783_vm6, %v1774_v57, %v1124_v43  ;;  %v1776_v3 = vsel %vm1750_vm5, %v1743_v40, %v8020_v39  ;;  %v8021_v57 = vld [vmem:[#allocation31_spill] sm:$0xff] }
 0x275   : > { %v3667_v39 = vld [vmem:[%s7878_s3 + $0x50] sm:$0xff] }
 0x277   : > { %v1378_v61 = vpop.permute.xlu0 %1377  ;;  %v1252_v47 = vpop.permute.xlu1 %1251 }
 0x278   : > { %v1872_v5 = vsel %vm1849_vm8, %v1839_v50, %v1378_v61  ;;  %v1840_v30 = vsel %vm1816_vm7, %v1807_v56, %v1252_v47  ;;  %v8022_v56 = vld [vmem:[#allocation56_spill] sm:$0xff] }
 0x27b   : > { %v1506_v23 = vpop.permute.xlu0 %1505 }
 0x27c   : > { %v1380_v45 = vpop.permute.xlu1 %1379  ;;  %v1905_v41 = vsel %vm1882_vm9, %v1872_v5, %v1506_v23 }
 0x27d   : > { %v1873_v38 = vsel %vm1849_vm8, %v1840_v30, %v1380_v45 }
 0x27f   : > { %v1634_v51 = vpop.permute.xlu0 %1633 }
 0x280   : > { %v1938_v27 = vsel %vm1915_vm2, %v1905_v41, %v1634_v51  ;;  %v1508_v34 = vpop.permute.xlu1 %1507  ;;  %v3659_v41 = vld [vmem:[%s7878_s3 + $0x10] sm:$0xff]  ;;  %v3660_v51 = vld [vmem:[%s7878_s3 + $0x18] sm:$0xff] }
 0x281   : > { %4587 = vmatprep.mubr.msk.f32.mxu0 %vm1960_vm10, %v1938_v27  ;;  %v1906_v12 = vsel %vm1882_vm9, %v1873_v38, %v1508_v34  ;;  %v4670_v11 = vpack.c.bf16 %v3660_v51, %v3659_v41  ;;  %v3661_v27 = vld [vmem:[%s7878_s3 + $0x20] sm:$0xff]  ;;  %v1711_v34 = vsel %vm283_vm0, %v5289_v49, %v8021_v57  ;;  %v8023_v38 = vld [vmem:[#allocation75_spill] sm:$0xff] }
 0x282   : > { %v4673_v31 = vpack.c.bf16 %v3662_v25, %v3661_v27  ;;  %v3671_v51 = vld [vmem:[%s7878_s3 + $0x70] sm:$0xff]  ;;  %v8028_v49 = vld [vmem:[#allocation58_spill] sm:$0xff] }
 0x283   : > { %v1126_v4 = vpop.permute.xlu0 %1125  ;;  %4739 = vmatpush1.bf16.msra.mxu1 %v4670_v11  ;;  %4671 = vmatpush1.bf16.msra.mxu0 %v4670_v11  ;;  %v3672_v11 = vld [vmem:[%s7878_s3 + $0x78] sm:$0xff] }
 0x284   : > { %v1636_v59 = vpop.permute.xlu1 %1635  ;;  %v1808_v37 = vsel %vm1783_vm6, %v1775_v14, %v1126_v4  ;;  %4724 = vmatprep.subr.bf16.mxu1 %v5379_v22  ;;  %4672 = vmatprep.subr.bf16.mxu0 %v5379_v22  ;;  %v1744_v4 = vsel %vm1717_vm4, %v1711_v34, %v8022_v56 }
 0x285   : > { %v1939_v60 = vsel %vm1915_vm2, %v1906_v12, %v1636_v59  ;;  %v1777_v12 = vsel %vm1750_vm5, %v1744_v4, %v8023_v38  ;;  %v8029_v4 = vld [vmem:[#allocation77_spill] sm:$0xff] }
 0x286   : > { %4588 = vmatmul.mubr.msk.f32.gmra.mrb[22].mxu0 %vm1960_vm10, %v1939_v60 }
 0x287   : > { %v1254_v58 = vpop.permute.xlu0 %1253  ;;  %4740 = vmatpush1.bf16.msra.mxu1 %v4673_v31  ;;  %4674 = vmatpush1.bf16.msra.mxu0 %v4673_v31  ;;  %v4688_v31 = vpack.c.bf16 %v3672_v11, %v3671_v51 }
 0x288   : > { %v1128_v0 = vpop.permute.xlu1 %1127  ;;  %v1841_v21 = vsel %vm1816_vm7, %v1808_v37, %v1254_v58  ;;  %4725 = vmatprep.subr.bf16.mxu1 %v5379_v22  ;;  %v3663_v58 = vld [vmem:[%s7878_s3 + $0x30] sm:$0xff]  ;;  %4675 = vmatprep.subr.bf16.mxu0 %v5379_v22 }
 0x289   : > { %v1809_v48 = vsel %vm1783_vm6, %v1776_v3, %v1128_v0  ;;  %v3664_v0 = vld [vmem:[%s7878_s3 + $0x38] sm:$0xff] }
 0x28a   : > { %v4676_v13 = vpack.c.bf16 %v3664_v0, %v3663_v58  ;;  %v3668_v3 = vld [vmem:[%s7878_s3 + $0x58] sm:$0xff]  ;;  %v3674_v58 = vld [vmem:[%s7878_s3 + $0x88] sm:$0xff] }
 0x28b   : > { %v1382_v19 = vpop.permute.xlu0 %1381 }
 0x28c   : > { %v1256_v26 = vpop.permute.xlu1 %1255  ;;  %v1874_v10 = vsel %vm1849_vm8, %v1841_v21, %v1382_v19  ;;  %4741 = vmatpush1.bf16.msra.mxu1 %v4676_v13  ;;  %4677 = vmatpush1.bf16.msra.mxu0 %v4676_v13 }
 0x28d   : > { %v1842_v47 = vsel %vm1816_vm7, %v1809_v48, %v1256_v26  ;;  %4726 = vmatprep.subr.bf16.mxu1 %v5379_v22  ;;  %4678 = vmatprep.subr.bf16.mxu0 %v5379_v22 }
 0x28f   : > { %v1510_v36 = vpop.permute.xlu0 %1509 }
 0x290   : > { %v1384_v46 = vpop.permute.xlu1 %1383  ;;  %v1907_v28 = vsel %vm1882_vm9, %v1874_v10, %v1510_v36  ;;  %v3665_v10 = vld [vmem:[%s7878_s3 + $0x40] sm:$0xff] }
 0x291   : > { %v4556_v20 = vpop.f32.mrb[0].mxu0  ;;  %v1875_v23 = vsel %vm1849_vm8, %v1842_v47, %v1384_v46  ;;  %v3666_v46 = vld [vmem:[%s7878_s3 + $0x48] sm:$0xff]  ;;  %v3669_v47 = vld [vmem:[%s7878_s3 + $0x60] sm:$0xff] }
 0x292   : > { %v2133_v32 = vadd.f32 %v4556_v20, %v6795_v29  ;;  %v2127_v17 = vpop.f32.mrb[1].mxu0  ;;  %v4679_v52 = vpack.c.bf16 %v3666_v46, %v3665_v10  ;;  %v8031_v10 = vld [vmem:[#allocation61_spill] sm:$0xff] }
 0x293   : > { %v1638_v16 = vpop.permute.xlu0 %1637  ;;  %v2128_v6 = vadd.f32 %v6795_v29, %v2127_v17 }
 0x294   : > { %v1940_v55 = vsel %vm1915_vm2, %v1907_v28, %v1638_v16  ;;  %v2287_v43 = vmax.f32 %v2133_v32, 0.0  ;;  %v1512_v61 = vpop.permute.xlu1 %1511  ;;  %v5290_v28 = vld [vmem:[#allocation2 + $0x140] sm:$0xff]  ;;  %4742 = vmatpush1.bf16.msra.mxu1 %v4679_v52  ;;  %4680 = vmatpush1.bf16.msra.mxu0 %v4679_v52 }
 0x295   : > { %4590 = vmatprep.mubr.msk.f32.mxu0 %vm1960_vm10, %v1940_v55  ;;  %v2286_v9 = vmax.f32 %v2128_v6, 0.0  ;;  %v1908_v44 = vsel %vm1882_vm9, %v1875_v23, %v1512_v61  ;;  %v8024_v16 = vld [vmem:[#allocation34_spill] sm:$0xff]  ;;  %4727 = vmatprep.subr.bf16.mxu1 %v5379_v22  ;;  %v4682_v61 = vpack.c.bf16 %v3668_v3, %v3667_v39 }
 0x296   : > { %2375 = vst.msk [vmem:[#allocation3 + $0x21] sm:$0xff] %vm1915_vm2, %v2287_v43  ;;  %v1712_v20 = vsel %vm283_vm0, %v5290_v28, %v8024_v16  ;;  %v8026_v32 = vld [vmem:[#allocation78_spill] sm:$0xff]  ;;  %4681 = vmatprep.subr.bf16.mxu0 %v5379_v22  ;;  %v8032_v28 = vld [vmem:[#allocation80_spill] sm:$0xff] }
 0x297   : > { %v1130_v1 = vpop.permute.xlu0 %1129  ;;  %2374 = vst.msk [vmem:[#allocation3 + $0x19] sm:$0xff] %vm1915_vm2, %v2286_v9  ;;  %v1745_v55 = vsel %vm1717_vm4, %v1712_v20, %v8025_v62  ;;  %v3677_v62 = vld [vmem:[%s7878_s3 + $0xa0] sm:$0xff] }
 0x298   : > { %v1640_v50 = vpop.permute.xlu1 %1639  ;;  %v1810_v19 = vsel %vm1783_vm6, %v1777_v12, %v1130_v1  ;;  %v1778_v17 = vsel %vm1750_vm5, %v1745_v55, %v8026_v32  ;;  %4743 = vmatpush1.bf16.msra.mxu1 %v4682_v61  ;;  %4683 = vmatpush1.bf16.msra.mxu0 %v4682_v61  ;;  %v3679_v61 = vld [vmem:[%s7878_s3 + $0xb0] sm:$0xff] }
 0x299   : > { %v1941_v5 = vsel %vm1915_vm2, %v1908_v44, %v1640_v50  ;;  %4728 = vmatprep.subr.bf16.mxu1 %v5379_v22  ;;  %4684 = vmatprep.subr.bf16.mxu0 %v5379_v22  ;;  %v4685_v44 = vpack.c.bf16 %v3670_v7, %v3669_v47 }
 0x29a   : > { %4591 = vmatmul.mubr.msk.f32.gmra.mrb[24].mxu0 %vm1960_vm10, %v1941_v5 }
 0x29b   : > { %v1258_v45 = vpop.permute.xlu0 %1257 }
 0x29c   : > { %v1132_v42 = vpop.permute.xlu1 %1131  ;;  %v1843_v18 = vsel %vm1816_vm7, %v1810_v19, %v1258_v45  ;;  %4744 = vmatpush1.bf16.msra.mxu1 %v4685_v44  ;;  %4686 = vmatpush1.bf16.msra.mxu0 %v4685_v44 }
 0x29d   : > { %v1811_v40 = vsel %vm1783_vm6, %v1778_v17, %v1132_v42  ;;  %v5291_v42 = vld [vmem:[#allocation2 + $0x150] sm:$0xff]  ;;  %4729 = vmatprep.subr.bf16.mxu1 %v5379_v22  ;;  %4687 = vmatprep.subr.bf16.mxu0 %v5379_v22  ;;  %v3678_v17 = vld [vmem:[%s7878_s3 + $0xa8] sm:$0xff] }
 0x29f   : > { %v1386_v35 = vpop.permute.xlu0 %1385 }
 0x2a0   : > { %v1260_v30 = vpop.permute.xlu1 %1259  ;;  %v1876_v26 = vsel %vm1849_vm8, %v1843_v18, %v1386_v35  ;;  %v8027_v35 = vld [vmem:[#allocation33_spill] sm:$0xff]  ;;  %4745 = vmatpush1.bf16.msra.mxu1 %v4688_v31  ;;  %4689 = vmatpush1.bf16.msra.mxu0 %v4688_v31 }
 0x2a1   : > { %v4559_v60 = vpop.f32.mrb[2].mxu0  ;;  %v1844_v43 = vsel %vm1816_vm7, %v1811_v40, %v1260_v30  ;;  %v1713_v27 = vsel %vm283_vm0, %v5291_v42, %v8027_v35  ;;  %4730 = vmatprep.subr.bf16.mxu1 %v5379_v22  ;;  %4690 = vmatprep.subr.bf16.mxu0 %v5379_v22  ;;  %v8034_v42 = vld [vmem:[#allocation60_spill] sm:$0xff] }
 0x2a2   : > { %v2143_v24 = vadd.f32 %v4559_v60, %v6795_v29  ;;  %v2137_v8 = vpop.f32.mrb[3].mxu0  ;;  %v1746_v57 = vsel %vm1717_vm4, %v1713_v27, %v8028_v49  ;;  %v3673_v60 = vld [vmem:[%s7878_s3 + $0x80] sm:$0xff] }
 0x2a3   : > { %v1514_v59 = vpop.permute.xlu0 %1513  ;;  %v2138_v54 = vadd.f32 %v6795_v29, %v2137_v8  ;;  %v1779_v30 = vsel %vm1750_vm5, %v1746_v57, %v8029_v4  ;;  %v4691_v19 = vpack.c.bf16 %v3674_v58, %v3673_v60  ;;  %v3685_v58 = vld [vmem:[%s7878_s3 + $0xe0] sm:$0xff] }
 0x2a4   : > { %v2289_v2 = vmax.f32 %v2143_v24, 0.0  ;;  %v1388_v14 = vpop.permute.xlu1 %1387  ;;  %v1909_v36 = vsel %vm1882_vm9, %v1876_v26, %v1514_v59  ;;  %v3676_v26 = vld [vmem:[%s7878_s3 + $0x98] sm:$0xff] }
 0x2a5   : > { %v2288_v37 = vmax.f32 %v2138_v54, 0.0  ;;  %v1877_v48 = vsel %vm1849_vm8, %v1844_v43, %v1388_v14  ;;  %v3675_v54 = vld [vmem:[%s7878_s3 + $0x90] sm:$0xff]  ;;  %4746 = vmatpush1.bf16.msra.mxu1 %v4691_v19  ;;  %4692 = vmatpush1.bf16.msra.mxu0 %v4691_v19  ;;  %v8036_v19 = vld [vmem:[#allocation37_spill] sm:$0xff] }
 0x2a6   : > { %2377 = vst.msk [vmem:[#allocation3 + $0x39] sm:$0xff] %vm1915_vm2, %v2289_v2  ;;  %v5292_v2 = vld [vmem:[#allocation2 + $0x158] sm:$0xff]  ;;  %4731 = vmatprep.subr.bf16.mxu1 %v5379_v22  ;;  %4693 = vmatprep.subr.bf16.mxu0 %v5379_v22 }
 0x2a7   : > { %v1642_v21 = vpop.permute.xlu0 %1641  ;;  %2376 = vst.msk [vmem:[#allocation3 + $0x31] sm:$0xff] %vm1915_vm2, %v2288_v37  ;;  %v8030_v14 = vld [vmem:[#allocation36_spill] sm:$0xff] }
 0x2a8   : > { %v1942_v15 = vsel %vm1915_vm2, %v1909_v36, %v1642_v21  ;;  %v1516_v53 = vpop.permute.xlu1 %1515  ;;  %v1714_v36 = vsel %vm283_vm0, %v5292_v2, %v8030_v14  ;;  %v4694_v21 = vpack.c.bf16 %v3676_v26, %v3675_v54  ;;  %v8037_v26 = vld [vmem:[#allocation62_spill] sm:$0xff] }
 0x2a9   : > { %4593 = vmatprep.mubr.msk.f32.mxu0 %vm1960_vm10, %v1942_v15  ;;  %v1910_v9 = vsel %vm1882_vm9, %v1877_v48, %v1516_v53  ;;  %v1747_v46 = vsel %vm1717_vm4, %v1714_v36, %v8031_v10  ;;  %v3680_v48 = vld [vmem:[%s7878_s3 + $0xb8] sm:$0xff] }
 0x2aa   : > { %v1780_v16 = vsel %vm1750_vm5, %v1747_v46, %v8032_v28  ;;  %4747 = vmatpush1.bf16.msra.mxu1 %v4694_v21  ;;  %4695 = vmatpush1.bf16.msra.mxu0 %v4694_v21  ;;  %v3686_v21 = vld [vmem:[%s7878_s3 + $0xe8] sm:$0xff]  ;;  %v8038_v10 = vld [vmem:[#allocation81_spill] sm:$0xff] }
 0x2ab   : > { %v1134_v6 = vpop.permute.xlu0 %1133  ;;  %4732 = vmatprep.subr.bf16.mxu1 %v5379_v22  ;;  %4696 = vmatprep.subr.bf16.mxu0 %v5379_v22 }
 0x2ac   : > { %v1644_v1 = vpop.permute.xlu1 %1643  ;;  %v1812_v59 = vsel %vm1783_vm6, %v1779_v30, %v1134_v6  ;;  %v4697_v6 = vpack.c.bf16 %v3678_v17, %v3677_v62  ;;  %v3687_v62 = vld [vmem:[%s7878_s3 + $0xf0] sm:$0xff] }
 0x2ad   : > { %v1943_v63 = vsel %vm1915_vm2, %v1910_v9, %v1644_v1 }
 0x2ae   : > { %4594 = vmatmul.mubr.msk.f32.gmra.mrb[26].mxu0 %vm1960_vm10, %v1943_v63  ;;  %4748 = vmatpush1.bf16.msra.mxu1 %v4697_v6  ;;  %v4700_v63 = vpack.c.bf16 %v3680_v48, %v3679_v61 }
 0x2af   : > { %v1262_v33 = vpop.permute.xlu0 %1261  ;;  %4733 = vmatprep.subr.bf16.mxu1 %v5379_v22  ;;  %4698 = vmatpush1.bf16.msra.mxu0 %v4697_v6 }
 0x2b0   : > { %v1136_v23 = vpop.permute.xlu1 %1135  ;;  %v1845_v0 = vsel %vm1816_vm7, %v1812_v59, %v1262_v33  ;;  %4699 = vmatprep.subr.bf16.mxu0 %v5379_v22 }
 0x2b1   : > { %v4562_v5 = vpop.f32.mrb[4].mxu0  ;;  %v1813_v15 = vsel %vm1783_vm6, %v1780_v16, %v1136_v23 }
 0x2b2   : > { %v2153_v45 = vadd.f32 %v4562_v5, %v6795_v29  ;;  %v2147_v41 = vpop.f32.mrb[5].mxu0  ;;  %4749 = vmatpush1.bf16.msra.mxu1 %v4700_v63  ;;  %v3682_v5 = vld [vmem:[%s7878_s3 + $0xc8] sm:$0xff] }
 0x2b3   : > { %v1390_v50 = vpop.permute.xlu0 %1389  ;;  %v2148_v25 = vadd.f32 %v6795_v29, %v2147_v41  ;;  %v8033_v41 = vld [vmem:[#allocation35_spill] sm:$0xff]  ;;  %4734 = vmatprep.subr.bf16.mxu1 %v5379_v22  ;;  %4701 = vmatpush1.bf16.msra.mxu0 %v4700_v63 }
 0x2b4   : > { %v2291_v34 = vmax.f32 %v2153_v45, 0.0  ;;  %v1264_v56 = vpop.permute.xlu1 %1263  ;;  %v1878_v24 = vsel %vm1849_vm8, %v1845_v0, %v1390_v50  ;;  %v3681_v50 = vld [vmem:[%s7878_s3 + $0xc0] sm:$0xff]  ;;  %v5293_v45 = vld [vmem:[#allocation2 + $0x168] sm:$0xff]  ;;  %4702 = vmatprep.subr.bf16.mxu0 %v5379_v22  ;;  %v5294_v0 = vld [vmem:[#allocation2 + $0x170] sm:$0xff] }
 0x2b5   : > { %v2290_v38 = vmax.f32 %v2148_v25, 0.0  ;;  %v1846_v55 = vsel %vm1816_vm7, %v1813_v15, %v1264_v56  ;;  %v1715_v51 = vsel %vm283_vm0, %v5293_v45, %v8033_v41  ;;  %v4703_v11 = vpack.c.bf16 %v3682_v5, %v3681_v50  ;;  %v8035_v25 = vld [vmem:[#allocation79_spill] sm:$0xff]  ;;  %v3684_v56 = vld [vmem:[%s7878_s3 + $0xd8] sm:$0xff] }
 0x2b6   : > { %2379 = vst.msk [vmem:[#allocation3 + $0x51] sm:$0xff] %vm1915_vm2, %v2291_v34  ;;  %v1748_v35 = vsel %vm1717_vm4, %v1715_v51, %v8034_v42  ;;  %v3683_v34 = vld [vmem:[%s7878_s3 + $0xd0] sm:$0xff] }
 0x2b7   : > { %v1518_v12 = vpop.permute.xlu0 %1517  ;;  %2378 = vst.msk [vmem:[#allocation3 + $0x49] sm:$0xff] %vm1915_vm2, %v2290_v38  ;;  %v1781_v31 = vsel %vm1750_vm5, %v1748_v35, %v8035_v25  ;;  %4750 = vmatpush1.bf16.msra.mxu1 %v4703_v11  ;;  %v4706_v30 = vpack.c.bf16 %v3684_v56, %v3683_v34  ;;  %4704 = vmatpush1.bf16.msra.mxu0 %v4703_v11 }
 0x2b8   : > { %v1392_v8 = vpop.permute.xlu1 %1391  ;;  %v1911_v13 = vsel %vm1882_vm9, %v1878_v24, %v1518_v12  ;;  %4735 = vmatprep.subr.bf16.mxu1 %v5379_v22  ;;  %4705 = vmatprep.subr.bf16.mxu0 %v5379_v22  ;;  %v1716_v24 = vsel %vm283_vm0, %v5294_v0, %v8036_v19 }
 0x2b9   : > { %v1879_v32 = vsel %vm1849_vm8, %v1846_v55, %v1392_v8  ;;  %v1749_v2 = vsel %vm1717_vm4, %v1716_v24, %v8037_v26  ;;  %v3688_v55 = vld [vmem:[%s7878_s3 + $0xf8] sm:$0xff] }
 0x2ba   : > { %v1782_v46 = vsel %vm1750_vm5, %v1749_v2, %v8038_v10  ;;  %v2470_v10 = vld [vmem:[#allocation3 + $0x2] sm:$0xff] }
 0x2bb   : > { %v1646_v18 = vpop.permute.xlu0 %1645  ;;  %4751 = vmatpush1.bf16.msra.mxu1 %v4706_v30  ;;  %4707 = vmatpush1.bf16.msra.mxu0 %v4706_v30 }
 0x2bc   : > { %v1944_v37 = vsel %vm1915_vm2, %v1911_v13, %v1646_v18  ;;  %v1520_v20 = vpop.permute.xlu1 %1519  ;;  %4736 = vmatprep.subr.bf16.mxu1 %v5379_v22  ;;  %4708 = vmatprep.subr.bf16.mxu0 %v5379_v22 }
 0x2bd   : > { %4596 = vmatprep.mubr.msk.f32.mxu0 %vm1960_vm10, %v1944_v37  ;;  %v1912_v53 = vsel %vm1882_vm9, %v1879_v32, %v1520_v20  ;;  %v4709_v20 = vpack.c.bf16 %v3686_v21, %v3685_v58 }
 0x2be   : > { %v7005_v18 = vld [vmem:[#allocation3 + $0x49] sm:$0xff] }
 0x2bf   : > { %v1138_v52 = vpop.permute.xlu0 %1137  ;;  %4752 = vmatpush1.bf16.msra.mxu1 %v4709_v20  ;;  %4710 = vmatpush1.bf16.msra.mxu0 %v4709_v20 }
 0x2c0   : > { %v1648_v40 = vpop.permute.xlu1 %1647  ;;  %v1814_v57 = vsel %vm1783_vm6, %v1781_v31, %v1138_v52  ;;  %4737 = vmatprep.subr.bf16.mxu1 %v5379_v22  ;;  %4711 = vmatprep.subr.bf16.mxu0 %v5379_v22  ;;  %v7051_v22 = vld [vmem:[#allocation3 + $0x51] sm:$0xff] }
 0x2c1   : > { %v1945_v39 = vsel %vm1915_vm2, %v1912_v53, %v1648_v40  ;;  %v4565_v43 = vpop.f32.mrb[6].mxu0  ;;  %v4712_v53 = vpack.c.bf16 %v3688_v55, %v3687_v62 }
 0x2c2   : > { %v2163_v9 = vadd.f32 %v4565_v43, %v6795_v29  ;;  %v2157_v1 = vpop.f32.mrb[7].mxu0  ;;  %4597 = vmatmul.mubr.msk.f32.gmra.mrb[28].mxu0 %vm1960_vm10, %v1945_v39  ;;  %v7040_v43 = vld [vmem:[#allocation3 + $0x4a] sm:$0xff] }
 0x2c3   : > { %v1266_v3 = vpop.permute.xlu0 %1265  ;;  %v2158_v33 = vadd.f32 %v6795_v29, %v2157_v1  ;;  %4753 = vmatpush1.bf16.msra.mxu1 %v4712_v53  ;;  %4713 = vmatpush1.bf16.msra.mxu0 %v4712_v53 }
 0x2c4   : > { %v2293_v47 = vmax.f32 %v2163_v9, 0.0  ;;  %v1140_v7 = vpop.permute.xlu1 %1139  ;;  %v1847_v4 = vsel %vm1816_vm7, %v1814_v57, %v1266_v3 }
 0x2c5   : > { %v2292_v23 = vmax.f32 %v2158_v33, 0.0  ;;  %v1815_v15 = vsel %vm1783_vm6, %v1782_v46, %v1140_v7  ;;  %v7053_v7 = vld [vmem:[#allocation3 + $0x52] sm:$0xff] }
 0x2c6   : > { %2381 = vst.msk [vmem:[#allocation3 + $0x69] sm:$0xff] %vm1915_vm2, %v2293_v47  ;;  %v7101_v46 = vld [vmem:[#allocation3 + $0x30] sm:$0xff] }
 0x2c7   : > { %v1394_v44 = vpop.permute.xlu0 %1393  ;;  %2380 = vst.msk [vmem:[#allocation3 + $0x61] sm:$0xff] %vm1915_vm2, %v2292_v23 }
 0x2c8   : > { %v1268_v27 = vpop.permute.xlu1 %1267  ;;  %v1880_v38 = vsel %vm1849_vm8, %v1847_v4, %v1394_v44 }
 0x2c9   : > { %v1848_v32 = vsel %vm1816_vm7, %v1815_v15, %v1268_v27  ;;  %v2502_v15 = vld [vmem:[#allocation3 + $0x18] sm:$0xff] }
 0x2cb   : > { %v1522_v49 = vpop.permute.xlu0 %1521 }
 0x2cc   : > { %v1396_v12 = vpop.permute.xlu1 %1395  ;;  %v1913_v59 = vsel %vm1882_vm9, %v1880_v38, %v1522_v49 }
 0x2cd   : > { %v1881_v40 = vsel %vm1849_vm8, %v1848_v32, %v1396_v12  ;;  %v2573_v33 = vld [vmem:[#allocation3 + $0x6a] sm:$0xff] }
 0x2ce   : > { %v4568_v13 = vpop.f32.mrb[8].mxu0  ;;  %v7007_v54 = vld [vmem:[#allocation3 + $0x62] sm:$0xff]  ;;  %v4815_v23 = vpack.i.bf16 %v7051_v22, %v2573_v33 }
 0x2cf   : > { %v1650_v60 = vpop.permute.xlu0 %1649  ;;  %v2173_v14 = vadd.f32 %v4568_v13, %v6795_v29  ;;  %v2167_v36 = vpop.f32.mrb[9].mxu0  ;;  %v4800_v37 = vpack.i.bf16 %v7005_v18, %v7007_v54  ;;  %v7042_v48 = vld [vmem:[#allocation3 + $0x60] sm:$0xff]  ;;  %v7063_v42 = vld [vmem:[#allocation3 + $0x68] sm:$0xff] }
 0x2d0   : > { %v1946_v8 = vsel %vm1915_vm2, %v1913_v59, %v1650_v60  ;;  %v2168_v28 = vadd.f32 %v6795_v29, %v2167_v36  ;;  %v1524_v16 = vpop.permute.xlu1 %1523  ;;  %v7065_v35 = vld [vmem:[#allocation3 + $0x61] sm:$0xff]  ;;  %v7080_v12 = vld [vmem:[#allocation3 + $0x69] sm:$0xff] }
 0x2d1   : > { %4599 = vmatprep.mubr.msk.f32.mxu0 %vm1960_vm10, %v1946_v8  ;;  %v2295_v52 = vmax.f32 %v2173_v14, 0.0  ;;  %4801 = vrot.lane.b32.xlu1 %v4800_v37, %s5378_s26  ;;  %v1914_v6 = vsel %vm1882_vm9, %v1881_v40, %v1524_v16  ;;  %v2566_v37 = vld [vmem:[#allocation3 + $0x1a] sm:$0xff]  ;;  %v7105_v16 = vld [vmem:[#allocation3 + $0x31] sm:$0xff] }
 0x2d2   : > { %v2294_v17 = vmax.f32 %v2168_v28, 0.0  ;;  %v4875_v28 = vpack.i.bf16 %v2470_v10, %v7101_v46  ;;  %v4885_v62 = vpack.i.bf16 %v2502_v15, %v7105_v16 }
 0x2d3   : > { %2383 = vst.msk [vmem:[#allocation3 + $0x81] sm:$0xff] %vm1915_vm2, %v2295_v52 }
 0x2d4   : > { %2382 = vst.msk [vmem:[#allocation3 + $0x79] sm:$0xff] %vm1915_vm2, %v2294_v17  ;;  %v1652_v39 = vpop.permute.xlu1 %1651 }
 0x2d5   : > { %v1947_v3 = vsel %vm1915_vm2, %v1914_v6, %v1652_v39 }
 0x2d6   : > { %4600 = vmatmul.mubr.msk.f32.gmra.mrb[30].mxu0 %vm1960_vm10, %v1947_v3 }
 0x2da   : > { %v7057_v5 = vld [vmem:[#allocation3 + $0x81] sm:$0xff] }
 0x2db   : > { %v2605_v61 = vld [vmem:[#allocation3 + $0x78] sm:$0xff]  ;;  %v2606_v47 = vld [vmem:[#allocation3 + $0x80] sm:$0xff]  ;;  %v4825_v25 = vpack.i.bf16 %v7063_v42, %v7057_v5 }
 0x2dc   : > { %v7044_v9 = vld [vmem:[#allocation3 + $0x79] sm:$0xff]  ;;  %v4805_v1 = vpack.i.bf16 %v7040_v43, %v2605_v61  ;;  %v4820_v44 = vpack.i.bf16 %v7053_v7, %v2606_v47  ;;  %v2575_v30 = vld [vmem:[#allocation3 + $0x82] sm:$0xff] }
 0x2dd   : > { %v4810_v63 = vpack.i.bf16 %v7042_v48, %v7044_v9  ;;  %v2574_v45 = vld [vmem:[#allocation3 + $0x7a] sm:$0xff]  ;;  %v4845_v59 = vpack.i.bf16 %v7080_v12, %v2575_v30 }
 0x2de   : > { %4806 = vrot.lane.b32.xlu0 %v4805_v1, %s5380_s24  ;;  %v4830_v31 = vpack.i.bf16 %v7065_v35, %v2574_v45 }
 0x2df   : > { %4811 = vrot.lane.b32.xlu1 %v4810_v63, %s5381_s25 }
 0x2e0   : > { %v4571_v50 = vpop.f32.mrb[10].mxu0 }
 0x2e1   : > { %v2183_v41 = vadd.f32 %v4571_v50, %v6795_v29  ;;  %v2177_v51 = vpop.f32.mrb[11].mxu0 }
 0x2e2   : > { %4816 = vrot.lane.b32.xlu0 %v4815_v23, %s5378_s26  ;;  %v2178_v11 = vadd.f32 %v6795_v29, %v2177_v51  ;;  %v2471_v23 = vld [vmem:[#allocation3 + $0xa] sm:$0xff] }
 0x2e3   : > { %4821 = vrot.lane.b32.xlu1 %v4820_v44, %s5380_s24  ;;  %v2297_v27 = vmax.f32 %v2183_v41, 0.0  ;;  %v2600_v44 = vld [vmem:[#allocation3 + $0x38] sm:$0xff] }
 0x2e4   : > { %v2296_v49 = vmax.f32 %v2178_v11, 0.0  ;;  %v4900_v41 = vpack.i.bf16 %v2471_v23, %v2600_v44  ;;  %v7133_v11 = vld [vmem:[#allocation3 + $0x39] sm:$0xff]  ;;  %v3689_v23 = vld [vmem:[%s7878_s3 + $0x100] sm:$0xff] }
 0x2e5   : > { %2385 = vst.msk [vmem:[#allocation3 + $0x99] sm:$0xff] %vm1915_vm2, %v2297_v27  ;;  %v2503_v27 = vld [vmem:[#allocation3 + $0x20] sm:$0xff] }
 0x2e6   : > { %4826 = vrot.lane.b32.xlu0 %v4825_v25, %s5381_s25  ;;  %2384 = vst.msk [vmem:[#allocation3 + $0x91] sm:$0xff] %vm1915_vm2, %v2296_v49  ;;  %v4910_v25 = vpack.i.bf16 %v2503_v27, %v7133_v11 }
 0x2e7   : > { %4831 = vrot.lane.b32.xlu1 %v4830_v31, %s5378_s26  ;;  %v2568_v31 = vld [vmem:[#allocation3 + $0x32] sm:$0xff] }
 0x2ec   : > { %v7083_v58 = vld [vmem:[#allocation3 + $0x99] sm:$0xff] }
 0x2ed   : > { %v2607_v57 = vld [vmem:[#allocation3 + $0x90] sm:$0xff]  ;;  %v2608_v38 = vld [vmem:[#allocation3 + $0x98] sm:$0xff] }
 0x2ee   : > { %v7074_v34 = vld [vmem:[#allocation3 + $0x91] sm:$0xff]  ;;  %v4835_v56 = vpack.i.bf16 %v7007_v54, %v2607_v57  ;;  %v4850_v60 = vpack.i.bf16 %v2573_v33, %v2608_v38  ;;  %v4855_v54 = vpack.i.bf16 %v2606_v47, %v7083_v58  ;;  %v7094_v14 = vld [vmem:[#allocation3 + $0x9a] sm:$0xff] }
 0x2ef   : > { %v4840_v4 = vpack.i.bf16 %v2605_v61, %v7074_v34  ;;  %v7085_v0 = vld [vmem:[#allocation3 + $0x92] sm:$0xff]  ;;  %v4865_v21 = vpack.i.bf16 %v7094_v14, %v2566_v37  ;;  %v2567_v61 = vld [vmem:[#allocation3 + $0x22] sm:$0xff] }
 0x2f0   : > { %4836 = vrot.lane.b32.xlu0 %v4835_v56, %s5380_s24  ;;  %v4860_v26 = vpack.i.bf16 %v7044_v9, %v7085_v0  ;;  %v4890_v63 = vpack.i.bf16 %v2567_v61, %v7057_v5 }
 0x2f1   : > { %4841 = vrot.lane.b32.xlu1 %v4840_v4, %s5381_s25 }
 0x2f4   : > { %v4574_v19 = vpop.f32.mrb[12].mxu0  ;;  %4846 = vrot.lane.b32.xlu0 %v4845_v59, %s5378_s26 }
 0x2f5   : > { %4851 = vrot.lane.b32.xlu1 %v4850_v60, %s5380_s24  ;;  %v2193_v24 = vadd.f32 %v4574_v19, %v6795_v29  ;;  %v2187_v8 = vpop.f32.mrb[13].mxu0 }
 0x2f6   : > { %v2188_v13 = vadd.f32 %v6795_v29, %v2187_v8 }
 0x2f7   : > { %v2299_v2 = vmax.f32 %v2193_v24, 0.0 }
 0x2f8   : > { %v2298_v36 = vmax.f32 %v2188_v13, 0.0  ;;  %4856 = vrot.lane.b32.xlu0 %v4855_v54, %s5381_s25  ;;  %v4940_v54 = vpack.i.bf16 %v7101_v46, %v7005_v18  ;;  %v7171_v18 = vld [vmem:[#allocation3 + $0x50] sm:$0xff] }
 0x2f9   : > { %4861 = vrot.lane.b32.xlu1 %v4860_v26, %s5378_s26  ;;  %2387 = vst.msk [vmem:[#allocation3 + $0xb1] sm:$0xff] %vm1915_vm2, %v2299_v2 }
 0x2fa   : > { %2386 = vst.msk [vmem:[#allocation3 + $0xa9] sm:$0xff] %vm1915_vm2, %v2298_v36  ;;  %v2569_v36 = vld [vmem:[#allocation3 + $0x3a] sm:$0xff] }
 0x2fb   : > { %v5020_v27 = vpack.i.bf16 %v2569_v36, %v7063_v42 }
 0x2fc   : > { %4866 = vrot.lane.b32.xlu0 %v4865_v21, %s5378_s26  ;;  %v7164_v21 = vld [vmem:[#allocation3 + $0x21] sm:$0xff] }
 0x300   : > { %4876 = vrot.lane.b32.xlu0 %v4875_v28, %s5380_s24  ;;  %v7117_v40 = vld [vmem:[#allocation3 + $0xb1] sm:$0xff] }
 0x301   : > { %v2609_v20 = vld [vmem:[#allocation3 + $0xa8] sm:$0xff]  ;;  %v7111_v32 = vld [vmem:[#allocation3 + $0xb0] sm:$0xff]  ;;  %v4905_v33 = vpack.i.bf16 %v2608_v38, %v7117_v40 }
 0x302   : > { %v4870_v52 = vpack.i.bf16 %v2574_v45, %v2609_v20  ;;  %v7109_v55 = vld [vmem:[#allocation3 + $0xa9] sm:$0xff]  ;;  %v4895_v53 = vpack.i.bf16 %v2575_v30, %v7111_v32  ;;  %v7151_v60 = vld [vmem:[#allocation3 + $0xb2] sm:$0xff] }
 0x303   : > { %v4880_v17 = vpack.i.bf16 %v2607_v57, %v7109_v55  ;;  %v7125_v50 = vld [vmem:[#allocation3 + $0xaa] sm:$0xff]  ;;  %v7139_v57 = vld [vmem:[#allocation3 + $0x19] sm:$0xff]  ;;  %v4945_v13 = vpack.i.bf16 %v7083_v58, %v7151_v60  ;;  %v4950_v58 = vpack.i.bf16 %v7164_v21, %v2569_v36 }
 0x304   : > { %4871 = vrot.lane.b32.xlu1 %v4870_v52, %s5380_s24  ;;  %4886 = vrot.lane.b32.xlu0 %v4885_v62, %s5381_s25  ;;  %v4915_v51 = vpack.i.bf16 %v7074_v34, %v7125_v50  ;;  %v4920_v4 = vpack.i.bf16 %v7139_v57, %v2568_v31  ;;  %v7145_v30 = vld [vmem:[#allocation3 + $0x48] sm:$0xff]  ;;  %v4970_v52 = vpack.i.bf16 %v2600_v44, %v7051_v22  ;;  %v3690_v44 = vld [vmem:[%s7878_s3 + $0x108] sm:$0xff] }
 0x305   : > { %v4930_v59 = vpack.i.bf16 %v2566_v37, %v7145_v30 }
 0x308   : > { %v4577_v6 = vpop.f32.mrb[14].mxu0  ;;  %4881 = vrot.lane.b32.xlu1 %v4880_v17, %s5381_s25  ;;  %4896 = vrot.lane.b32.xlu0 %v4895_v53, %s5380_s24 }
 0x309   : > { %v2203_v39 = vadd.f32 %v4577_v6, %v6795_v29  ;;  %v2197_v3 = vpop.f32.mrb[15].mxu0 }
 0x30a   : > { %v2198_v1 = vadd.f32 %v6795_v29, %v2197_v3 }
 0x30b   : > { %v2301_v47 = vmax.f32 %v2203_v39, 0.0 }
 0x30c   : > { %v2300_v45 = vmax.f32 %v2198_v1, 0.0  ;;  %4891 = vrot.lane.b32.xlu1 %v4890_v63, %s5378_s26  ;;  %4906 = vrot.lane.b32.xlu0 %v4905_v33, %s5381_s25 }
 0x30d   : > { %2389 = vst.msk [vmem:[#allocation3 + $0xc9] sm:$0xff] %vm1915_vm2, %v2301_v47 }
 0x30e   : > { %2388 = vst.msk [vmem:[#allocation3 + $0xc1] sm:$0xff] %vm1915_vm2, %v2300_v45  ;;  %v5010_v45 = vpack.i.bf16 %v7133_v11, %v7053_v7  ;;  %v5030_v11 = vpack.i.bf16 %v7171_v18, %v7080_v12 }
 0x310   : > { %4901 = vrot.lane.b32.xlu1 %v4900_v41, %s5380_s24  ;;  %4916 = vrot.lane.b32.xlu0 %v4915_v51, %s5378_s26 }
 0x314   : > { %4911 = vrot.lane.b32.xlu1 %v4910_v25, %s5381_s25  ;;  %v7169_v28 = vld [vmem:[#allocation3 + $0xc9] sm:$0xff] }
 0x315   : > { %v2611_v49 = vld [vmem:[#allocation3 + $0xc0] sm:$0xff]  ;;  %v2612_v2 = vld [vmem:[#allocation3 + $0xc8] sm:$0xff]  ;;  %v4965_v46 = vpack.i.bf16 %v7111_v32, %v7169_v28  ;;  %v4980_v32 = vpack.i.bf16 %v7105_v16, %v7040_v43  ;;  %v5000_v16 = vpack.i.bf16 %v7145_v30, %v7065_v35 }
 0x316   : > { %v4925_v56 = vpack.i.bf16 %v7085_v0, %v2611_v49  ;;  %v7143_v34 = vld [vmem:[#allocation3 + $0xc1] sm:$0xff]  ;;  %v4955_v10 = vpack.i.bf16 %v7094_v14, %v2612_v2  ;;  %v2581_v63 = vld [vmem:[#allocation3 + $0xca] sm:$0xff] }
 0x317   : > { %v4935_v38 = vpack.i.bf16 %v2609_v20, %v7143_v34  ;;  %v4960_v20 = vpack.i.bf16 %v2567_v61, %v7171_v18  ;;  %v2580_v15 = vld [vmem:[#allocation3 + $0xc2] sm:$0xff]  ;;  %v4990_v61 = vpack.i.bf16 %v2568_v31, %v7042_v48  ;;  %v5005_v43 = vpack.i.bf16 %v7117_v40, %v2581_v63 }
 0x318   : > { %4926 = vrot.lane.b32.xlu0 %v4925_v56, %s5380_s24  ;;  %4921 = vrot.lane.b32.xlu1 %v4920_v4, %s5378_s26  ;;  %v4975_v14 = vpack.i.bf16 %v7109_v55, %v2580_v15 }
 0x31c   : > { %v4580_v19 = vpop.f32.mrb[16].mxu0  ;;  %4936 = vrot.lane.b32.xlu0 %v4935_v38, %s5381_s25  ;;  %4931 = vrot.lane.b32.xlu1 %v4930_v59, %s5380_s24 }
 0x31d   : > { %v2213_v0 = vadd.f32 %v4580_v19, %v6795_v29  ;;  %v2207_v24 = vpop.f32.mrb[17].mxu0 }
 0x31e   : > { %v2208_v8 = vadd.f32 %v6795_v29, %v2207_v24 }
 0x31f   : > { %v2303_v26 = vmax.f32 %v2213_v0, 0.0 }
 0x320   : > { %v2302_v37 = vmax.f32 %v2208_v8, 0.0  ;;  %4946 = vrot.lane.b32.xlu0 %v4945_v13, %s5378_s26  ;;  %4941 = vrot.lane.b32.xlu1 %v4940_v54, %s5381_s25  ;;  %v7242_v13 = vpop.permute.xlu0 %4796 }
 0x321   : > { %2391 = vst.msk [vmem:[#allocation3 + $0xe1] sm:$0xff] %vm1915_vm2, %v2303_v26 }
 0x322   : > { %2390 = vst.msk [vmem:[#allocation3 + $0xd9] sm:$0xff] %vm1915_vm2, %v2302_v37 }
 0x324   : > { %4956 = vrot.lane.b32.xlu0 %v4955_v10, %s5380_s24  ;;  %4951 = vrot.lane.b32.xlu1 %v4950_v58, %s5378_s26 }
 0x328   : > { %4966 = vrot.lane.b32.xlu0 %v4965_v46, %s5381_s25  ;;  %4961 = vrot.lane.b32.xlu1 %v4960_v20, %s5380_s24  ;;  %v7216_v41 = vld [vmem:[#allocation3 + $0xe1] sm:$0xff] }
 0x329   : > { %v2613_v62 = vld [vmem:[#allocation3 + $0xd8] sm:$0xff]  ;;  %v2614_v47 = vld [vmem:[#allocation3 + $0xe0] sm:$0xff]  ;;  %v5025_v51 = vpack.i.bf16 %v2612_v2, %v7216_v41 }
 0x32a   : > { %v4985_v17 = vpack.i.bf16 %v7125_v50, %v2613_v62  ;;  %v7187_v53 = vld [vmem:[#allocation3 + $0xd9] sm:$0xff]  ;;  %v7210_v50 = vpack.c.bf16 %v3690_v44, %v3689_v23  ;;  %v5015_v40 = vpack.i.bf16 %v7151_v60, %v2614_v47  ;;  %v2583_v24 = vld [vmem:[#allocation3 + $0xe2] sm:$0xff] }
 0x32b   : > { %v4995_v3 = vpack.i.bf16 %v2611_v49, %v7187_v53  ;;  %v7222_v25 = vld [vmem:[#allocation3 + $0xda] sm:$0xff]  ;;  %v5050_v26 = vpack.i.bf16 %v7169_v28, %v2583_v24 }
 0x32c   : > { %4976 = vrot.lane.b32.xlu0 %v4975_v14, %s5378_s26  ;;  %4971 = vrot.lane.b32.xlu1 %v4970_v52, %s5381_s25  ;;  %v5035_v7 = vpack.i.bf16 %v7143_v34, %v7222_v25 }
 0x32d   : > { %4715 = vmatprep.subr.bf16.mxu0 %v7210_v50 }
 0x330   : > { %v4583_v6 = vpop.f32.mrb[18].mxu0  ;;  %4986 = vrot.lane.b32.xlu0 %v4985_v17, %s5380_s24  ;;  %4981 = vrot.lane.b32.xlu1 %v4980_v32, %s5378_s26 }
 0x331   : > { %v2223_v55 = vadd.f32 %v4583_v6, %v6795_v29  ;;  %v2217_v22 = vpop.f32.mrb[19].mxu0 }
 0x332   : > { %v2218_v39 = vadd.f32 %v6795_v29, %v2217_v22 }
 0x333   : > { %v2305_v1 = vmax.f32 %v2223_v55, 0.0 }
 0x334   : > { %v2304_v33 = vmax.f32 %v2218_v39, 0.0  ;;  %4996 = vrot.lane.b32.xlu0 %v4995_v3, %s5381_s25  ;;  %4991 = vrot.lane.b32.xlu1 %v4990_v61, %s5380_s24 }
 0x335   : > { %2393 = vst.msk [vmem:[#allocation3 + $0xf9] sm:$0xff] %vm1915_vm2, %v2305_v1 }
 0x336   : > { %2392 = vst.msk [vmem:[#allocation3 + $0xf1] sm:$0xff] %vm1915_vm2, %v2304_v33 }
 0x338   : > { %5006 = vrot.lane.b32.xlu0 %v5005_v43, %s5378_s26  ;;  %5001 = vrot.lane.b32.xlu1 %v5000_v16, %s5381_s25 }
 0x33c   : > { %5016 = vrot.lane.b32.xlu0 %v5015_v40, %s5380_s24  ;;  %5011 = vrot.lane.b32.xlu1 %v5010_v45, %s5378_s26  ;;  %v7249_v36 = vld [vmem:[#allocation3 + $0xf9] sm:$0xff] }
 0x33d   : > { %v7230_v31 = vld [vmem:[#allocation3 + $0xf1] sm:$0xff]  ;;  %v5060_v46 = vpack.i.bf16 %v2614_v47, %v7249_v36 }
 0x33e   : > { %v2615_v49 = vld [vmem:[#allocation3 + $0xf0] sm:$0xff]  ;;  %v5045_v60 = vpack.i.bf16 %v2613_v62, %v7230_v31  ;;  %v7237_v0 = vld [vmem:[#allocation3 + $0xf8] sm:$0xff] }
 0x33f   : > { %v5040_v19 = vpack.i.bf16 %v2580_v15, %v2615_v49  ;;  %v7247_v2 = vld [vmem:[#allocation3 + $0xf2] sm:$0xff] }
 0x340   : > { %5026 = vrot.lane.b32.xlu0 %v5025_v51, %s5381_s25  ;;  %5021 = vrot.lane.b32.xlu1 %v5020_v27, %s5380_s24  ;;  %v5065_v58 = vpack.i.bf16 %v7187_v53, %v7247_v2 }
 0x343   : > { %v4802_v54 = vpop.permute.xlu1 %4801 }
 0x344   : > { %v4586_v56 = vpop.f32.mrb[20].mxu0  ;;  %5036 = vrot.lane.b32.xlu0 %v5035_v7, %s5378_s26  ;;  %5031 = vrot.lane.b32.xlu1 %v5030_v11, %s5381_s25  ;;  %v4804_v37 = vunpack.i.h.bf16 %v4802_v54  ;;  %v4803_v10 = vunpack.i.l.bf16 %v4802_v54 }
 0x345   : > { %v2233_v4 = vadd.f32 %v4586_v56, %v6795_v29  ;;  %v2227_v38 = vpop.f32.mrb[21].mxu0 }
 0x346   : > { %v2228_v59 = vadd.f32 %v6795_v29, %v2227_v38  ;;  %v5055_v29 = vpack.i.bf16 %v2581_v63, %v7237_v0  ;;  %v3567_v17 = vsel %vm1915_vm2, %v7065_v35, %v4803_v10  ;;  %v3469_v6 = vsel %vm1915_vm2, %v7145_v30, %v4804_v37  ;;  %v7276_v30 = vld [vmem:[#allocation3 + $0xfa] sm:$0xff] }
 0x347   : > { %v2307_v34 = vmax.f32 %v2233_v4, 0.0  ;;  %v5080_v27 = vpack.i.bf16 %v7216_v41, %v7276_v30  ;;  %v7291_v4 = vld [vmem:[#allocation4] ss:$0 sm:$0xff] }
 0x348   : > { %v2306_v8 = vmax.f32 %v2228_v59, 0.0  ;;  %5046 = vrot.lane.b32.xlu0 %v5045_v60, %s5381_s25  ;;  %5041 = vrot.lane.b32.xlu1 %v5040_v19, %s5380_s24 }
 0x349   : > { %2395 = vst.msk [vmem:[#allocation3 + $0x111] sm:$0xff] %vm1915_vm2, %v2307_v34 }
 0x34a   : > { %2394 = vst.msk [vmem:[#allocation3 + $0x109] sm:$0xff] %vm1915_vm2, %v2306_v8 }
 0x34c   : > { %5056 = vrot.lane.b32.xlu0 %v5055_v29, %s5380_s24  ;;  %5051 = vrot.lane.b32.xlu1 %v5050_v26, %s5378_s26 }
 0x350   : > { %v4807_v20 = vpop.permute.xlu0 %4806  ;;  %5066 = vrot.lane.b32.xlu0 %v5065_v58, %s5378_s26  ;;  %5061 = vrot.lane.b32.xlu1 %v5060_v46, %s5381_s25  ;;  %v7289_v56 = vld [vmem:[#allocation3 + $0x111] sm:$0xff] }
 0x351   : > { %v4812_v15 = vpop.permute.xlu1 %4811  ;;  %v4809_v28 = vunpack.i.h.bf16 %v4807_v20  ;;  %v4808_v14 = vunpack.i.l.bf16 %v4807_v20  ;;  %v7260_v32 = vld [vmem:[#allocation3 + $0x109] sm:$0xff]  ;;  %v5090_v8 = vpack.i.bf16 %v7237_v0, %v7289_v56 }
 0x352   : > { %v4814_v52 = vunpack.i.h.bf16 %v4812_v15  ;;  %v4813_v62 = vunpack.i.l.bf16 %v4812_v15  ;;  %v7262_v53 = vld [vmem:[#allocation3 + $0x108] sm:$0xff]  ;;  %v5075_v22 = vpack.i.bf16 %v2615_v49, %v7260_v32  ;;  %v7273_v33 = vld [vmem:[#allocation3 + $0x110] sm:$0xff] }
 0x353   : > { %v3599_v55 = vsel %vm3495_vm12, %v3567_v17, %v4808_v14  ;;  %v5070_v39 = vpack.i.bf16 %v7222_v25, %v7262_v53  ;;  %v3502_v3 = vsel %vm3495_vm12, %v3469_v6, %v4809_v28  ;;  %v5085_v44 = vpack.i.bf16 %v2583_v24, %v7273_v33  ;;  %v7286_v25 = vld [vmem:[#allocation3 + $0x10a] sm:$0xff] }
 0x354   : > { %v4817_v61 = vpop.permute.xlu0 %4816  ;;  %v3631_v35 = vsel %vm3528_vm13, %v3599_v55, %v4813_v62  ;;  %v3535_v63 = vsel %vm3528_vm13, %v3502_v3, %v4814_v52  ;;  %5076 = vrot.lane.b32.xlu0 %v5075_v22, %s5381_s25  ;;  %v5095_v34 = vpack.i.bf16 %v7230_v31, %v7286_v25 }
 0x355   : > { %v4822_v1 = vpop.permute.xlu1 %4821  ;;  %v4819_v43 = vunpack.i.h.bf16 %v4817_v61  ;;  %v4818_v16 = vunpack.i.l.bf16 %v4817_v61  ;;  %3890 = vmatprep.mubr.f32.mxu1 %v3631_v35  ;;  %5071 = vrot.lane.b32.xlu1 %v5070_v39, %s5380_s24 }
 0x356   : > { %v4824_v47 = vunpack.i.h.bf16 %v4822_v1  ;;  %v4823_v23 = vunpack.i.l.bf16 %v4822_v1  ;;  %3891 = vmatmul.mubr.f32.vlgmr.msra.gmra.mrb[0].mxu1 %v3535_v63 }
 0x357   : > { %v3568_v40 = vsel %vm1915_vm2, %v7080_v12, %v4818_v16  ;;  %v3470_v45 = vsel %vm1915_vm2, %v7171_v18, %v4819_v43  ;;  %v7327_v43 = vld [vmem:[#allocation3 + $0x112] sm:$0xff] }
 0x358   : > { %v4827_v51 = vpop.permute.xlu0 %4826  ;;  %5086 = vrot.lane.b32.xlu0 %v5085_v44, %s5380_s24  ;;  %v3600_v38 = vsel %vm3495_vm12, %v3568_v40, %v4823_v23  ;;  %v3503_v41 = vsel %vm3495_vm12, %v3470_v45, %v4824_v47  ;;  %v5110_v40 = vpack.i.bf16 %v7249_v36, %v7327_v43 }
 0x359   : > { %v4829_v7 = vunpack.i.h.bf16 %v4827_v51  ;;  %v4828_v11 = vunpack.i.l.bf16 %v4827_v51  ;;  %v4589_v49 = vpop.f32.mrb[22].mxu0  ;;  %5081 = vrot.lane.b32.xlu1 %v5080_v27, %s5378_s26  ;;  %v4832_v29 = vpop.permute.xlu1 %4831 }
 0x35a   : > { %v2243_v12 = vadd.f32 %v7291_v4, %v4589_v49  ;;  %v2237_v18 = vpop.f32.mrb[23].mxu0  ;;  %v4834_v26 = vunpack.i.h.bf16 %v4832_v29  ;;  %v4833_v37 = vunpack.i.l.bf16 %v4832_v29 }
 0x35b   : > { %v2238_v59 = vadd.f32 %v7291_v4, %v2237_v18  ;;  %v3632_v60 = vsel %vm3528_vm13, %v3600_v38, %v4828_v11  ;;  %v3536_v19 = vsel %vm3528_vm13, %v3503_v41, %v4829_v7 }
 0x35c   : > { %v2309_v24 = vmax.f32 %v2243_v12, 0.0  ;;  %3895 = vmatprep.mubr.f32.mxu1 %v3632_v60  ;;  %5096 = vrot.lane.b32.xlu0 %v5095_v34, %s5378_s26  ;;  %v3569_v0 = vsel %vm1915_vm2, %v7044_v9, %v4833_v37  ;;  %v3471_v28 = vsel %vm1915_vm2, %v7042_v48, %v4834_v26  ;;  %v4798_v60 = vunpack.i.l.bf16 %v7242_v13 }
 0x35d   : > { %v2308_v54 = vmax.f32 %v2238_v59, 0.0  ;;  %3896 = vmatmul.mubr.f32.gmra.mrb[2].mxu1 %v3536_v19  ;;  %5091 = vrot.lane.b32.xlu1 %v5090_v8, %s5381_s25  ;;  %v2406_v19 = vld [vmem:[#allocation3] sm:$0xff] }
 0x35e   : > { %2397 = vst.msk [vmem:[#allocation3 + $0x129] sm:$0xff] %vm1915_vm2, %v2309_v24 }
 0x35f   : > { %2396 = vst.msk [vmem:[#allocation3 + $0x121] sm:$0xff] %vm1915_vm2, %v2308_v54 }
 0x362   : > { %v4837_v10 = vpop.permute.xlu0 %4836 }
 0x363   : > { %v4842_v31 = vpop.permute.xlu1 %4841  ;;  %v4839_v58 = vunpack.i.h.bf16 %v4837_v10  ;;  %v4838_v46 = vunpack.i.l.bf16 %v4837_v10 }
 0x364   : > { %v4844_v20 = vunpack.i.h.bf16 %v4842_v31  ;;  %v4843_v15 = vunpack.i.l.bf16 %v4842_v31 }
 0x365   : > { %v3601_v14 = vsel %vm3495_vm12, %v3569_v0, %v4838_v46  ;;  %v3504_v52 = vsel %vm3495_vm12, %v3471_v28, %v4839_v58  ;;  %v7343_v7 = vld [vmem:[#allocation3 + $0x129] sm:$0xff] }
 0x366   : > { %v7314_v62 = vld [vmem:[#allocation3 + $0x121] sm:$0xff]  ;;  %v4847_v6 = vpop.permute.xlu0 %4846  ;;  %v3633_v22 = vsel %vm3528_vm13, %v3601_v14, %v4843_v15  ;;  %v3537_v39 = vsel %vm3528_vm13, %v3504_v52, %v4844_v20  ;;  %v5120_v41 = vpack.i.bf16 %v7273_v33, %v7343_v7  ;;  %v3463_v33 = vsel %vm1915_vm2, %v2406_v19, %v4798_v60 }
 0x367   : > { %v7316_v17 = vld [vmem:[#allocation3 + $0x120] sm:$0xff]  ;;  %v4852_v55 = vpop.permute.xlu1 %4851  ;;  %v5105_v9 = vpack.i.bf16 %v7262_v53, %v7314_v62  ;;  %v4849_v3 = vunpack.i.h.bf16 %v4847_v6  ;;  %v4848_v61 = vunpack.i.l.bf16 %v4847_v6  ;;  %3900 = vmatprep.mubr.f32.mxu1 %v3633_v22  ;;  %v7324_v1 = vld [vmem:[#allocation3 + $0x128] sm:$0xff] }
 0x368   : > { %v5100_v48 = vpack.i.bf16 %v7247_v2, %v7316_v17  ;;  %v4854_v35 = vunpack.i.h.bf16 %v4852_v55  ;;  %v4853_v63 = vunpack.i.l.bf16 %v4852_v55  ;;  %3901 = vmatmul.mubr.f32.gmra.mrb[4].mxu1 %v3537_v39  ;;  %v5115_v47 = vpack.i.bf16 %v7276_v30, %v7324_v1  ;;  %v7338_v45 = vld [vmem:[#allocation3 + $0x122] sm:$0xff]  ;;  %v2544_v39 = vld [vmem:[#allocation3 + $0x91] sm:$0xff] }
 0x369   : > { %5106 = vrot.lane.b32.xlu0 %v5105_v9, %s5381_s25  ;;  %v3570_v53 = vsel %vm1915_vm2, %v7057_v5, %v4848_v61  ;;  %v3472_v2 = vsel %vm1915_vm2, %v7063_v42, %v4849_v3  ;;  %v5125_v18 = vpack.i.bf16 %v7260_v32, %v7338_v45  ;;  %v3691_v20 = vld [vmem:[%s7878_s3 + $0x110] sm:$0xff]  ;;  %v3692_v15 = vld [vmem:[%s7878_s3 + $0x118] sm:$0xff] }
 0x36a   : > { %5101 = vrot.lane.b32.xlu1 %v5100_v48, %s5380_s24  ;;  %v4857_v16 = vpop.permute.xlu0 %4856  ;;  %v3602_v27 = vsel %vm3495_vm12, %v3570_v53, %v4853_v63  ;;  %v3505_v5 = vsel %vm3495_vm12, %v3472_v2, %v4854_v35  ;;  %v2416_v63 = vld [vmem:[#allocation3 + $0x78] sm:$0xff]  ;;  %v4718_v53 = vpack.c.bf16 %v3692_v15, %v3691_v20 }
 0x36b   : > { %v4859_v23 = vunpack.i.h.bf16 %v4857_v16  ;;  %v4858_v44 = vunpack.i.l.bf16 %v4857_v16  ;;  %v4862_v34 = vpop.permute.xlu1 %4861 }
 0x36c   : > { %v4863_v29 = vunpack.i.l.bf16 %v4862_v34  ;;  %v4864_v10 = vunpack.i.h.bf16 %v4862_v34 }
 0x36d   : > { %v4592_v51 = vpop.f32.mrb[24].mxu0  ;;  %5116 = vrot.lane.b32.xlu0 %v5115_v47, %s5380_s24  ;;  %v3634_v11 = vsel %vm3528_vm13, %v3602_v27, %v4858_v44  ;;  %v3538_v36 = vsel %vm3528_vm13, %v3505_v5, %v4859_v23 }
 0x36e   : > { %v2253_v42 = vadd.f32 %v7291_v4, %v4592_v51  ;;  %5111 = vrot.lane.b32.xlu1 %v5110_v40, %s5378_s26  ;;  %v2247_v30 = vpop.f32.mrb[25].mxu0  ;;  %v7350_v12 = vpop.permute.xlu0 %4866  ;;  %3905 = vmatprep.mubr.f32.mxu1 %v3634_v11  ;;  %v3571_v35 = vsel %vm1915_vm2, %v2544_v39, %v4863_v29  ;;  %v3473_v23 = vsel %vm1915_vm2, %v2416_v63, %v4864_v10  ;;  %v7388_v40 = vld [vmem:[#allocation3 + $0x12a] sm:$0xff] }
 0x36f   : > { %v2248_v49 = vadd.f32 %v7291_v4, %v2247_v30  ;;  %3906 = vmatmul.mubr.f32.gmra.mrb[6].mxu1 %v3538_v36  ;;  %v4868_v32 = vunpack.i.l.bf16 %v7350_v12  ;;  %v4869_v2 = vunpack.i.h.bf16 %v7350_v12  ;;  %v5140_v36 = vpack.i.bf16 %v7289_v56, %v7388_v40  ;;  %v2407_v10 = vld [vmem:[#allocation3 + $0x8] sm:$0xff] }
 0x370   : > { %v2311_v38 = vmax.f32 %v2253_v42, 0.0 }
 0x371   : > { %v2310_v59 = vmax.f32 %v2248_v49, 0.0  ;;  %5126 = vrot.lane.b32.xlu0 %v5125_v18, %s5378_s26  ;;  %v3561_v46 = vsel %vm1915_vm2, %v7139_v57, %v4868_v32  ;;  %v2545_v49 = vld [vmem:[#allocation3 + $0x99] sm:$0xff] }
 0x372   : > { %2399 = vst.msk [vmem:[#allocation3 + $0x141] sm:$0xff] %vm1915_vm2, %v2311_v38  ;;  %5121 = vrot.lane.b32.xlu1 %v5120_v41, %s5381_s25  ;;  %v4877_v24 = vpop.permute.xlu0 %4876  ;;  %v3572_v41 = vsel %vm1915_vm2, %v2545_v49, %v4869_v2 }
 0x373   : > { %2398 = vst.msk [vmem:[#allocation3 + $0x139] sm:$0xff] %vm1915_vm2, %v2310_v59  ;;  %v4879_v8 = vunpack.i.h.bf16 %v4877_v24  ;;  %v4878_v54 = vunpack.i.l.bf16 %v4877_v24 }
 0x375   : > { %v3496_v0 = vsel %vm3495_vm12, %v3463_v33, %v4879_v8  ;;  %v3593_v52 = vsel %vm3495_vm12, %v3561_v46, %v4878_v54 }
 0x376   : > { %v4872_v26 = vpop.permute.xlu1 %4871  ;;  %v4887_v37 = vpop.permute.xlu0 %4886 }
 0x377   : > { %v4889_v31 = vunpack.i.h.bf16 %v4887_v37  ;;  %v4888_v58 = vunpack.i.l.bf16 %v4887_v37  ;;  %v4874_v28 = vunpack.i.h.bf16 %v4872_v26  ;;  %v4873_v14 = vunpack.i.l.bf16 %v4872_v26 }
 0x379   : > { %v3625_v6 = vsel %vm3528_vm13, %v3593_v52, %v4888_v58  ;;  %v3529_v55 = vsel %vm3528_vm13, %v3496_v0, %v4889_v31  ;;  %v7401_v12 = vld [vmem:[#allocation3 + $0x141] sm:$0xff] }
 0x37a   : > { %v7375_v22 = vld [vmem:[#allocation3 + $0x139] sm:$0xff]  ;;  %v4882_v9 = vpop.permute.xlu1 %4881  ;;  %v4897_v48 = vpop.permute.xlu0 %4896  ;;  %3860 = vmatprep.mubr.f32.mxu0 %v3625_v6  ;;  %v5150_v54 = vpack.i.bf16 %v7324_v1, %v7401_v12 }
 0x37b   : > { %v7377_v57 = vld [vmem:[#allocation3 + $0x138] sm:$0xff]  ;;  %v5135_v3 = vpack.i.bf16 %v7316_v17, %v7375_v22  ;;  %v4884_v16 = vunpack.i.h.bf16 %v4882_v9  ;;  %v4883_v47 = vunpack.i.l.bf16 %v4882_v9  ;;  %3861 = vmatmul.mubr.f32.vlgmr.msra.gmra.mrb[32].mxu0 %v3529_v55  ;;  %v7386_v44 = vld [vmem:[#allocation3 + $0x140] sm:$0xff]  ;;  %v4898_v51 = vunpack.i.l.bf16 %v4897_v48 }
 0x37c   : > { %v5130_v61 = vpack.i.bf16 %v7286_v25, %v7377_v57  ;;  %v3603_v25 = vsel %vm3495_vm12, %v3571_v35, %v4873_v14  ;;  %v3506_v17 = vsel %vm3495_vm12, %v3473_v23, %v4874_v28  ;;  %4717 = vmatpush3.bf16.msra.mxu0 %v7210_v50  ;;  %v5145_v11 = vpack.i.bf16 %v7327_v43, %v7386_v44  ;;  %v7404_v59 = vld [vmem:[#allocation3 + $0x13a] sm:$0xff]  ;;  %v2546_v23 = vld [vmem:[#allocation3 + $0xa9] sm:$0xff] }
 0x37d   : > { %5136 = vrot.lane.b32.xlu0 %v5135_v3, %s5381_s25  ;;  %v3635_v27 = vsel %vm3528_vm13, %v3603_v25, %v4883_v47  ;;  %v3539_v5 = vsel %vm3528_vm13, %v3506_v17, %v4884_v16  ;;  %4719 = vmatprep.subr.bf16.mxu0 %v4718_v53  ;;  %v4799_v50 = vunpack.i.h.bf16 %v7242_v13  ;;  %v4899_v60 = vunpack.i.h.bf16 %v4897_v48  ;;  %v2417_v43 = vld [vmem:[#allocation3 + $0x80] sm:$0xff]  ;;  %v2418_v16 = vld [vmem:[#allocation3 + $0x90] sm:$0xff] }
 0x37e   : > { %5131 = vrot.lane.b32.xlu1 %v5130_v61, %s5380_s24  ;;  %v4892_v42 = vpop.permute.xlu1 %4891  ;;  %3910 = vmatprep.mubr.f32.mxu1 %v3635_v27  ;;  %v4907_v30 = vpop.permute.xlu0 %4906  ;;  %v3604_v56 = vsel %vm3495_vm12, %v3572_v41, %v4898_v51  ;;  %v5155_v26 = vpack.i.bf16 %v7314_v62, %v7404_v59 }
 0x37f   : > { %v4893_v18 = vunpack.i.l.bf16 %v4892_v42  ;;  %v4908_v38 = vunpack.i.l.bf16 %v4907_v30  ;;  %3911 = vmatmul.mubr.f32.gmra.mrb[8].mxu1 %v3539_v5  ;;  %v4909_v13 = vunpack.i.h.bf16 %v4907_v30  ;;  %v4894_v31 = vunpack.i.h.bf16 %v4892_v42 }
 0x380   : > { %4721 = vmatpush3.bf16.msra.mxu0 %v4718_v53  ;;  %v3464_v0 = vsel %vm1915_vm2, %v2407_v10, %v4799_v50 }
 0x381   : > { %v4595_v19 = vpop.f32.mrb[26].mxu0  ;;  %5146 = vrot.lane.b32.xlu0 %v5145_v11, %s5380_s24  ;;  %v3636_v32 = vsel %vm3528_vm13, %v3604_v56, %v4908_v38  ;;  %v3474_v8 = vsel %vm1915_vm2, %v2417_v43, %v4893_v18  ;;  %v3562_v6 = vsel %vm1915_vm2, %v7164_v21, %v4894_v31  ;;  %v7443_v38 = vld [vmem:[#allocation3 + $0x142] sm:$0xff] }
 0x382   : > { %5141 = vrot.lane.b32.xlu1 %v5140_v36, %s5378_s26  ;;  %v2263_v34 = vadd.f32 %v7291_v4, %v4595_v19  ;;  %v2257_v24 = vpop.f32.mrb[27].mxu0  ;;  %v4902_v29 = vpop.permute.xlu1 %4901  ;;  %3915 = vmatprep.mubr.f32.mxu1 %v3636_v32  ;;  %v3507_v37 = vsel %vm3495_vm12, %v3474_v8, %v4899_v60  ;;  %v2536_v32 = vld [vmem:[#allocation3 + $0x31] sm:$0xff] }
 0x383   : > { %v2258_v33 = vadd.f32 %v7291_v4, %v2257_v24  ;;  %v4904_v20 = vunpack.i.h.bf16 %v4902_v29  ;;  %v4903_v15 = vunpack.i.l.bf16 %v4902_v29  ;;  %v3540_v1 = vsel %vm3528_vm13, %v3507_v37, %v4909_v13  ;;  %v4917_v62 = vpop.permute.xlu0 %4916  ;;  %v2408_v8 = vld [vmem:[#allocation3 + $0x18] sm:$0xff] }
 0x384   : > { %v2313_v58 = vmax.f32 %v2263_v34, 0.0  ;;  %3916 = vmatmul.mubr.f32.gmra.mrb[10].mxu1 %v3540_v1  ;;  %v4919_v3 = vunpack.i.h.bf16 %v4917_v62  ;;  %v4918_v61 = vunpack.i.l.bf16 %v4917_v62  ;;  %v5170_v24 = vpack.i.bf16 %v7343_v7, %v7443_v38 }
 0x385   : > { %v2312_v46 = vmax.f32 %v2258_v33, 0.0  ;;  %5156 = vrot.lane.b32.xlu0 %v5155_v26, %s5378_s26  ;;  %v3594_v55 = vsel %vm3495_vm12, %v3562_v6, %v4903_v15  ;;  %v3497_v39 = vsel %vm3495_vm12, %v3464_v0, %v4904_v20 }
 0x386   : > { %5151 = vrot.lane.b32.xlu1 %v5150_v54, %s5381_s25  ;;  %2401 = vst.msk [vmem:[#allocation3 + $0x159] sm:$0xff] %vm1915_vm2, %v2313_v58  ;;  %v4912_v28 = vpop.permute.xlu1 %4911  ;;  %v3573_v5 = vsel %vm1915_vm2, %v2546_v23, %v4918_v61  ;;  %v3475_v42 = vsel %vm1915_vm2, %v2418_v16, %v4919_v3  ;;  %v2419_v3 = vld [vmem:[#allocation3 + $0x98] sm:$0xff] }
 0x387   : > { %2400 = vst.msk [vmem:[#allocation3 + $0x151] sm:$0xff] %vm1915_vm2, %v2312_v46  ;;  %v4914_v14 = vunpack.i.h.bf16 %v4912_v28  ;;  %v4913_v52 = vunpack.i.l.bf16 %v4912_v28 }
 0x389   : > { %v3626_v9 = vsel %vm3528_vm13, %v3594_v55, %v4913_v52  ;;  %v3530_v48 = vsel %vm3528_vm13, %v3497_v39, %v4914_v14 }
 0x38a   : > { %v4927_v35 = vpop.permute.xlu0 %4926  ;;  %3865 = vmatprep.mubr.f32.mxu0 %v3626_v9  ;;  %v4922_v63 = vpop.permute.xlu1 %4921 }
 0x38b   : > { %3866 = vmatmul.mubr.f32.gmra.mrb[34].mxu0 %v3530_v48  ;;  %v4929_v53 = vunpack.i.h.bf16 %v4927_v35  ;;  %v4928_v2 = vunpack.i.l.bf16 %v4927_v35  ;;  %v4924_v30 = vunpack.i.h.bf16 %v4922_v63  ;;  %v4923_v11 = vunpack.i.l.bf16 %v4922_v63 }
 0x38d   : > { %v7455_v54 = vld [vmem:[#allocation3 + $0x159] sm:$0xff]  ;;  %v3563_v29 = vsel %vm1915_vm2, %v2536_v32, %v4923_v11  ;;  %v3465_v26 = vsel %vm1915_vm2, %v2408_v8, %v4924_v30 }
 0x38e   : > { %v7431_v47 = vld [vmem:[#allocation3 + $0x151] sm:$0xff]  ;;  %v4937_v51 = vpop.permute.xlu0 %4936  ;;  %v4932_v25 = vpop.permute.xlu1 %4931  ;;  %v5180_v1 = vpack.i.bf16 %v7386_v44, %v7455_v54 }
 0x38f   : > { %v7433_v21 = vld [vmem:[#allocation3 + $0x150] sm:$0xff]  ;;  %v5165_v17 = vpack.i.bf16 %v7377_v57, %v7431_v47  ;;  %v4939_v36 = vunpack.i.h.bf16 %v4937_v51  ;;  %v4938_v49 = vunpack.i.l.bf16 %v4937_v51  ;;  %v7441_v18 = vld [vmem:[#allocation3 + $0x158] sm:$0xff]  ;;  %v4934_v41 = vunpack.i.h.bf16 %v4932_v25 }
 0x390   : > { %v5160_v27 = vpack.i.bf16 %v7338_v45, %v7433_v21  ;;  %v4933_v50 = vunpack.i.l.bf16 %v4932_v25  ;;  %v3605_v45 = vsel %vm3495_vm12, %v3573_v5, %v4928_v2  ;;  %v3508_v57 = vsel %vm3495_vm12, %v3475_v42, %v4929_v53  ;;  %v7459_v37 = vld [vmem:[#allocation3 + $0x152] sm:$0xff] }
 0x391   : > { %5166 = vrot.lane.b32.xlu0 %v5165_v17, %s5381_s25  ;;  %v3637_v60 = vsel %vm3528_vm13, %v3605_v45, %v4938_v49  ;;  %v3541_v19 = vsel %vm3528_vm13, %v3508_v57, %v4939_v36  ;;  %v5175_v34 = vpack.i.bf16 %v7388_v40, %v7441_v18  ;;  %v3498_v31 = vsel %vm3495_vm12, %v3465_v26, %v4934_v41  ;;  %v2547_v44 = vld [vmem:[#allocation3 + $0xb1] sm:$0xff]  ;;  %v2537_v36 = vld [vmem:[#allocation3 + $0x39] sm:$0xff] }
 0x392   : > { %5161 = vrot.lane.b32.xlu1 %v5160_v27, %s5380_s24  ;;  %v4947_v56 = vpop.permute.xlu0 %4946  ;;  %3920 = vmatprep.mubr.f32.mxu1 %v3637_v60  ;;  %v4942_v43 = vpop.permute.xlu1 %4941  ;;  %v3595_v7 = vsel %vm3495_vm12, %v3563_v29, %v4933_v50  ;;  %v5185_v6 = vpack.i.bf16 %v7375_v22, %v7459_v37  ;;  %v2409_v49 = vld [vmem:[#allocation3 + $0x20] sm:$0xff] }
 0x393   : > { %v4944_v13 = vunpack.i.h.bf16 %v4942_v43  ;;  %v4943_v33 = vunpack.i.l.bf16 %v4942_v43  ;;  %3921 = vmatmul.mubr.f32.gmra.mrb[12].mxu1 %v3541_v19  ;;  %v4949_v0 = vunpack.i.h.bf16 %v4947_v56  ;;  %v4948_v62 = vunpack.i.l.bf16 %v4947_v56 }
 0x395   : > { %v4598_v10 = vpop.f32.mrb[28].mxu0  ;;  %5176 = vrot.lane.b32.xlu0 %v5175_v34, %s5380_s24  ;;  %v3627_v20 = vsel %vm3528_vm13, %v3595_v7, %v4943_v33  ;;  %v3531_v15 = vsel %vm3528_vm13, %v3498_v31, %v4944_v13  ;;  %v3574_v63 = vsel %vm1915_vm2, %v2547_v44, %v4948_v62  ;;  %v3476_v22 = vsel %vm1915_vm2, %v2419_v3, %v4949_v0  ;;  %v7499_v7 = vld [vmem:[#allocation3 + $0x15a] sm:$0xff]  ;;  %v2420_v62 = vld [vmem:[#allocation3 + $0xa8] sm:$0xff] }
 0x396   : > { %5171 = vrot.lane.b32.xlu1 %v5170_v24, %s5378_s26  ;;  %v2273_v58 = vadd.f32 %v7291_v4, %v4598_v10  ;;  %v2267_v46 = vpop.f32.mrb[29].mxu0  ;;  %v4957_v14 = vpop.permute.xlu0 %4956  ;;  %3870 = vmatprep.mubr.f32.mxu0 %v3627_v20 }
 0x397   : > { %v2268_v28 = vadd.f32 %v7291_v4, %v2267_v46  ;;  %v4952_v52 = vpop.permute.xlu1 %4951  ;;  %3871 = vmatmul.mubr.f32.gmra.mrb[36].mxu0 %v3531_v15  ;;  %v4959_v9 = vunpack.i.h.bf16 %v4957_v14  ;;  %v4958_v48 = vunpack.i.l.bf16 %v4957_v14  ;;  %v2548_v46 = vld [vmem:[#allocation3 + $0xc1] sm:$0xff] }
 0x398   : > { %v2315_v55 = vmax.f32 %v2273_v58, 0.0  ;;  %v4954_v53 = vunpack.i.h.bf16 %v4952_v52  ;;  %v4953_v2 = vunpack.i.l.bf16 %v4952_v52 }
 0x399   : > { %v2314_v39 = vmax.f32 %v2268_v28, 0.0  ;;  %5186 = vrot.lane.b32.xlu0 %v5185_v6, %s5378_s26  ;;  %v3606_v17 = vsel %vm3495_vm12, %v3574_v63, %v4958_v48  ;;  %v3509_v27 = vsel %vm3495_vm12, %v3476_v22, %v4959_v9 }
 0x39a   : > { %5181 = vrot.lane.b32.xlu1 %v5180_v1, %s5381_s25  ;;  %2403 = vst.msk [vmem:[#allocation3 + $0x171] sm:$0xff] %vm1915_vm2, %v2315_v55  ;;  %v4967_v61 = vpop.permute.xlu0 %4966  ;;  %v3564_v45 = vsel %vm1915_vm2, %v2537_v36, %v4953_v2  ;;  %v3466_v57 = vsel %vm1915_vm2, %v2409_v49, %v4954_v53  ;;  %v5200_v1 = vpack.i.bf16 %v7401_v12, %v7499_v7 }
 0x39b   : > { %2402 = vst.msk [vmem:[#allocation3 + $0x169] sm:$0xff] %vm1915_vm2, %v2314_v39  ;;  %v4962_v35 = vpop.permute.xlu1 %4961  ;;  %v4969_v16 = vunpack.i.h.bf16 %v4967_v61  ;;  %v4968_v23 = vunpack.i.l.bf16 %v4967_v61 }
 0x39c   : > { %v4964_v51 = vunpack.i.h.bf16 %v4962_v35  ;;  %v4963_v25 = vunpack.i.l.bf16 %v4962_v35 }
 0x39d   : > { %v3638_v5 = vsel %vm3528_vm13, %v3606_v17, %v4968_v23  ;;  %v3542_v42 = vsel %vm3528_vm13, %v3509_v27, %v4969_v16  ;;  %v2410_v17 = vld [vmem:[#allocation3 + $0x30] sm:$0xff] }
 0x39e   : > { %v4977_v30 = vpop.permute.xlu0 %4976  ;;  %3925 = vmatprep.mubr.f32.mxu1 %v3638_v5  ;;  %v3596_v60 = vsel %vm3495_vm12, %v3564_v45, %v4963_v25  ;;  %v3499_v19 = vsel %vm3495_vm12, %v3466_v57, %v4964_v51 }
 0x39f   : > { %v4972_v11 = vpop.permute.xlu1 %4971  ;;  %3926 = vmatmul.mubr.f32.gmra.mrb[14].mxu1 %v3542_v42  ;;  %v4978_v32 = vunpack.i.l.bf16 %v4977_v30  ;;  %v4979_v26 = vunpack.i.h.bf16 %v4977_v30  ;;  %v2538_v42 = vld [vmem:[#allocation3 + $0x49] sm:$0xff] }
 0x3a0   : > { %v4974_v41 = vunpack.i.h.bf16 %v4972_v11  ;;  %v4973_v50 = vunpack.i.l.bf16 %v4972_v11 }
 0x3a1   : > { %v3575_v0 = vsel %vm1915_vm2, %v2548_v46, %v4978_v32  ;;  %v3477_v6 = vsel %vm1915_vm2, %v2420_v62, %v4979_v26  ;;  %v7511_v39 = vld [vmem:[#allocation3 + $0x171] sm:$0xff] }
 0x3a2   : > { %v3628_v56 = vsel %vm3528_vm13, %v3596_v60, %v4973_v50  ;;  %v3532_v43 = vsel %vm3528_vm13, %v3499_v19, %v4974_v41  ;;  %v7489_v34 = vld [vmem:[#allocation3 + $0x169] sm:$0xff]  ;;  %v4987_v8 = vpop.permute.xlu0 %4986  ;;  %v5210_v25 = vpack.i.bf16 %v7441_v18, %v7511_v39 }
 0x3a3   : > { %v7491_v24 = vld [vmem:[#allocation3 + $0x168] sm:$0xff]  ;;  %3875 = vmatprep.mubr.f32.mxu0 %v3628_v56  ;;  %v4982_v13 = vpop.permute.xlu1 %4981  ;;  %v5195_v33 = vpack.i.bf16 %v7433_v21, %v7489_v34  ;;  %v7497_v10 = vld [vmem:[#allocation3 + $0x170] sm:$0xff]  ;;  %v4989_v31 = vunpack.i.h.bf16 %v4987_v8  ;;  %v4988_v58 = vunpack.i.l.bf16 %v4987_v8 }
 0x3a4   : > { %v5190_v29 = vpack.i.bf16 %v7404_v59, %v7491_v24  ;;  %3876 = vmatmul.mubr.f32.gmra.mrb[38].mxu0 %v3532_v43  ;;  %v5205_v21 = vpack.i.bf16 %v7443_v38, %v7497_v10  ;;  %v4984_v28 = vunpack.i.h.bf16 %v4982_v13  ;;  %v7509_v55 = vld [vmem:[#allocation3 + $0x16a] sm:$0xff]  ;;  %v4983_v9 = vunpack.i.l.bf16 %v4982_v13 }
 0x3a5   : > { %5196 = vrot.lane.b32.xlu0 %v5195_v33, %s5381_s25  ;;  %v3607_v12 = vsel %vm3495_vm12, %v3575_v0, %v4988_v58  ;;  %v3510_v3 = vsel %vm3495_vm12, %v3477_v6, %v4989_v31  ;;  %v5215_v51 = vpack.i.bf16 %v7431_v47, %v7509_v55  ;;  %v2549_v43 = vld [vmem:[#allocation3 + $0xc9] sm:$0xff] }
 0x3a6   : > { %5191 = vrot.lane.b32.xlu1 %v5190_v29, %s5380_s24  ;;  %v4997_v20 = vpop.permute.xlu0 %4996  ;;  %v3467_v30 = vsel %vm1915_vm2, %v2410_v17, %v4984_v28  ;;  %v2421_v32 = vld [vmem:[#allocation3 + $0xb0] sm:$0xff] }
 0x3a7   : > { %v4992_v15 = vpop.permute.xlu1 %4991  ;;  %v4999_v14 = vunpack.i.h.bf16 %v4997_v20  ;;  %v4998_v52 = vunpack.i.l.bf16 %v4997_v20 }
 0x3a8   : > { %v4994_v48 = vunpack.i.h.bf16 %v4992_v15  ;;  %v4993_v61 = vunpack.i.l.bf16 %v4992_v15 }
 0x3a9   : > { %v4601_v44 = vpop.f32.mrb[30].mxu0  ;;  %5206 = vrot.lane.b32.xlu0 %v5205_v21, %s5380_s24  ;;  %v3639_v22 = vsel %vm3528_vm13, %v3607_v12, %v4998_v52  ;;  %v3543_v53 = vsel %vm3528_vm13, %v3510_v3, %v4999_v14  ;;  %v2411_v12 = vld [vmem:[#allocation3 + $0x38] sm:$0xff] }
 0x3aa   : > { %5201 = vrot.lane.b32.xlu1 %v5200_v1, %s5378_s26  ;;  %v2283_v35 = vadd.f32 %v7291_v4, %v4601_v44  ;;  %v2277_v63 = vpop.f32.mrb[31].mxu0  ;;  %v5007_v16 = vpop.permute.xlu0 %5006  ;;  %3930 = vmatprep.mubr.f32.mxu1 %v3639_v22  ;;  %v3500_v47 = vsel %vm3495_vm12, %v3467_v30, %v4994_v48  ;;  %v2539_v44 = vld [vmem:[#allocation3 + $0x51] sm:$0xff] }
 0x3ab   : > { %v2278_v2 = vadd.f32 %v7291_v4, %v2277_v63  ;;  %v5002_v23 = vpop.permute.xlu1 %5001  ;;  %3931 = vmatmul.mubr.f32.gmra.mrb[16].mxu1 %v3543_v53  ;;  %v3565_v4 = vsel %vm1915_vm2, %v2538_v42, %v4983_v9  ;;  %v5009_v41 = vunpack.i.h.bf16 %v5007_v16  ;;  %v5008_v50 = vunpack.i.l.bf16 %v5007_v16  ;;  %v7553_v53 = vld [vmem:[#allocation3 + $0x172] sm:$0xff] }
 0x3ac   : > { %v2317_v27 = vmax.f32 %v2283_v35, 0.0  ;;  %v5004_v5 = vunpack.i.h.bf16 %v5002_v23  ;;  %v5003_v36 = vunpack.i.l.bf16 %v5002_v23  ;;  %v3597_v18 = vsel %vm3495_vm12, %v3565_v4, %v4993_v61 }
 0x3ad   : > { %v2316_v11 = vmax.f32 %v2278_v2, 0.0  ;;  %5216 = vrot.lane.b32.xlu0 %v5215_v51, %s5378_s26  ;;  %v3576_v33 = vsel %vm1915_vm2, %v2549_v43, %v5008_v50  ;;  %v3478_v29 = vsel %vm1915_vm2, %v2421_v32, %v5009_v41  ;;  %v5230_v30 = vpack.i.bf16 %v7455_v54, %v7553_v53 }
 0x3ae   : > { %5211 = vrot.lane.b32.xlu1 %v5210_v25, %s5381_s25  ;;  %2405 = vst.msk [vmem:[#allocation3 + $0x189] sm:$0xff] %vm1915_vm2, %v2317_v27  ;;  %v3533_v49 = vsel %vm3528_vm13, %v3500_v47, %v5004_v5  ;;  %v5017_v45 = vpop.permute.xlu0 %5016  ;;  %v3629_v60 = vsel %vm3528_vm13, %v3597_v18, %v5003_v36 }
 0x3af   : > { %2404 = vst.msk [vmem:[#allocation3 + $0x181] sm:$0xff] %vm1915_vm2, %v2316_v11  ;;  %v5012_v57 = vpop.permute.xlu1 %5011  ;;  %3880 = vmatprep.mubr.f32.mxu0 %v3629_v60  ;;  %v5019_v19 = vunpack.i.h.bf16 %v5017_v45  ;;  %v5018_v56 = vunpack.i.l.bf16 %v5017_v45  ;;  %v2422_v11 = vld [vmem:[#allocation3 + $0xc0] sm:$0xff]  ;;  %v2663_v45 = vld [vmem:[#allocation3 + $0x32] sm:$0xff] }
 0x3b0   : > { %3881 = vmatmul.mubr.f32.gmra.mrb[40].mxu0 %v3533_v49  ;;  %v5014_v26 = vunpack.i.h.bf16 %v5012_v57  ;;  %v5013_v31 = vunpack.i.l.bf16 %v5012_v57  ;;  %v2550_v49 = vld [vmem:[#allocation3 + $0xd9] sm:$0xff] }
 0x3b1   : > { %v3608_v21 = vsel %vm3495_vm12, %v3576_v33, %v5018_v56  ;;  %v3511_v1 = vsel %vm3495_vm12, %v3478_v29, %v5019_v19 }
 0x3b2   : > { %v5027_v8 = vpop.permute.xlu0 %5026  ;;  %v3566_v35 = vsel %vm1915_vm2, %v2539_v44, %v5013_v31  ;;  %v3468_v63 = vsel %vm1915_vm2, %v2411_v12, %v5014_v26  ;;  %v2666_v44 = vld [vmem:[#allocation3 + $0x52] sm:$0xff] }
 0x3b3   : > { %v5022_v13 = vpop.permute.xlu1 %5021  ;;  %v5029_v58 = vunpack.i.h.bf16 %v5027_v8  ;;  %v5028_v46 = vunpack.i.l.bf16 %v5027_v8 }
 0x3b4   : > { %v5024_v20 = vunpack.i.h.bf16 %v5022_v13  ;;  %v5023_v15 = vunpack.i.l.bf16 %v5022_v13  ;;  %v2664_v13 = vld [vmem:[#allocation3 + $0x3a] sm:$0xff] }
 0x3b5   : > { %v3640_v0 = vsel %vm3528_vm13, %v3608_v21, %v5028_v46  ;;  %v3544_v62 = vsel %vm3528_vm13, %v3511_v1, %v5029_v58  ;;  %v7567_v50 = vld [vmem:[#allocation3 + $0x189] sm:$0xff]  ;;  %v2661_v46 = vld [vmem:[#allocation3 + $0x199] sm:$0xff] }
 0x3b6   : > { %v7541_v28 = vld [vmem:[#allocation3 + $0x181] sm:$0xff]  ;;  %v5037_v52 = vpop.permute.xlu0 %5036  ;;  %3935 = vmatprep.mubr.f32.mxu1 %v3640_v0  ;;  %v3598_v23 = vsel %vm3495_vm12, %v3566_v35, %v5023_v15  ;;  %v3501_v51 = vsel %vm3495_vm12, %v3468_v63, %v5024_v20  ;;  %v5240_v29 = vpack.i.bf16 %v7497_v10, %v7567_v50  ;;  %v2629_v20 = vld [vmem:[#allocation3 + $0x198] sm:$0xff]  ;;  %v2665_v1 = vld [vmem:[#allocation3 + $0x4a] sm:$0xff] }
 0x3b7   : > { %v7543_v14 = vld [vmem:[#allocation3 + $0x180] sm:$0xff]  ;;  %v5032_v6 = vpop.permute.xlu1 %5031  ;;  %v5225_v9 = vpack.i.bf16 %v7491_v24, %v7541_v28  ;;  %3936 = vmatmul.mubr.f32.gmra.mrb[18].mxu1 %v3544_v62  ;;  %v7551_v22 = vld [vmem:[#allocation3 + $0x188] sm:$0xff]  ;;  %v5039_v2 = vunpack.i.h.bf16 %v5037_v52  ;;  %v5038_v16 = vunpack.i.l.bf16 %v5037_v52 }
 0x3b8   : > { %v5220_v48 = vpack.i.bf16 %v7459_v37, %v7543_v14  ;;  %v5034_v3 = vunpack.i.h.bf16 %v5032_v6  ;;  %v5033_v61 = vunpack.i.l.bf16 %v5032_v6  ;;  %v5235_v42 = vpack.i.bf16 %v7499_v7, %v7551_v22  ;;  %v7565_v41 = vld [vmem:[#allocation3 + $0x182] sm:$0xff] }
 0x3b9   : > { %5226 = vrot.lane.b32.xlu0 %v5225_v9, %s5381_s25  ;;  %v3577_v57 = vsel %vm1915_vm2, %v2550_v49, %v5038_v16  ;;  %v3479_v60 = vsel %vm1915_vm2, %v2422_v11, %v5039_v2  ;;  %v5245_v33 = vpack.i.bf16 %v7489_v34, %v7565_v41  ;;  %v2551_v0 = vld [vmem:[#allocation3 + $0xe1] sm:$0xff]  ;;  %v5255_v12 = vpack.i.bf16 %v7543_v14, %v2661_v46  ;;  %v7591_v2 = vld [vmem:[#allocation3 + $0x18a] sm:$0xff] }
 0x3ba   : > { %5221 = vrot.lane.b32.xlu1 %v5220_v48, %s5380_s24  ;;  %v3630_v25 = vsel %vm3528_vm13, %v3598_v23, %v5033_v61  ;;  %v3534_v17 = vsel %vm3528_vm13, %v3501_v51, %v5034_v3  ;;  %v5047_v27 = vpop.permute.xlu0 %5046  ;;  %v2423_v62 = vld [vmem:[#allocation3 + $0xc8] sm:$0xff]  ;;  %v5250_v3 = vpack.i.bf16 %v7509_v55, %v2629_v20  ;;  %v2630_v63 = vld [vmem:[#allocation3 + $0x1a0] sm:$0xff]  ;;  %v5260_v11 = vpack.i.bf16 %v7511_v39, %v7591_v2 }
 0x3bb   : > { %v5042_v5 = vpop.permute.xlu1 %5041  ;;  %3885 = vmatprep.mubr.f32.mxu0 %v3630_v25  ;;  %v5049_v36 = vunpack.i.h.bf16 %v5047_v27  ;;  %v5048_v4 = vunpack.i.l.bf16 %v5047_v27  ;;  %v2667_v16 = vld [vmem:[#allocation3 + $0x62] sm:$0xff] }
 0x3bc   : > { %v5044_v47 = vunpack.i.h.bf16 %v5042_v5  ;;  %v5043_v18 = vunpack.i.l.bf16 %v5042_v5  ;;  %3886 = vmatmul.mubr.f32.gmra.mrb[42].mxu0 %v3534_v17 }
 0x3bd   : > { %5236 = vrot.lane.b32.xlu0 %v5235_v42, %s5380_s24  ;;  %4610 = vmatprep.mubr.msk.f32.mxu0 %vm1915_vm2, %v2663_v45  ;;  %v2668_v42 = vld [vmem:[#allocation3 + $0x6a] sm:$0xff] }
 0x3be   : > { %5231 = vrot.lane.b32.xlu1 %v5230_v30, %s5378_s26  ;;  %v3609_v19 = vsel %vm3495_vm12, %v3577_v57, %v5043_v18  ;;  %v3512_v56 = vsel %vm3495_vm12, %v3479_v60, %v5044_v47  ;;  %v5057_v43 = vpop.permute.xlu0 %5056  ;;  %v5265_v30 = vpack.i.bf16 %v7553_v53, %v2630_v63  ;;  %v2662_v18 = vld [vmem:[#allocation3 + $0x1a1] sm:$0xff]  ;;  %v2552_v60 = vld [vmem:[#allocation3 + $0xf1] sm:$0xff] }
 0x3bf   : > { %v5052_v32 = vpop.permute.xlu1 %5051  ;;  %v3641_v8 = vsel %vm3528_vm13, %v3609_v19, %v5048_v4  ;;  %v3545_v26 = vsel %vm3528_vm13, %v3512_v56, %v5049_v36  ;;  %v5059_v15 = vunpack.i.h.bf16 %v5057_v43  ;;  %v5058_v21 = vunpack.i.l.bf16 %v5057_v43  ;;  %v2669_v57 = vld [vmem:[#allocation3 + $0x7a] sm:$0xff] }
 0x3c0   : > { %v5054_v31 = vunpack.i.h.bf16 %v5052_v32  ;;  %v5053_v58 = vunpack.i.l.bf16 %v5052_v32  ;;  %3940 = vmatprep.mubr.f32.mxu1 %v3641_v8  ;;  %4611 = vmatmul.mubr.msk.f32.vlgmr.msra.gmra.mrb[44].mxu0 %vm1915_vm2, %v2664_v13  ;;  %v2424_v19 = vld [vmem:[#allocation3 + $0xd8] sm:$0xff]  ;;  %v2670_v13 = vld [vmem:[#allocation3 + $0x82] sm:$0xff] }
 0x3c1   : > { %5246 = vrot.lane.b32.xlu0 %v5245_v33, %s5378_s26  ;;  %3941 = vmatmul.mubr.f32.gmra.mrb[20].mxu1 %v3545_v26  ;;  %v5270_v33 = vpack.i.bf16 %v7551_v22, %v2662_v18  ;;  %v2553_v22 = vld [vmem:[#allocation3 + $0xf9] sm:$0xff] }
 0x3c2   : > { %5241 = vrot.lane.b32.xlu1 %v5240_v29, %s5381_s25  ;;  %4613 = vmatprep.mubr.msk.f32.mxu0 %vm1915_vm2, %v2665_v1  ;;  %v3578_v52 = vsel %vm1915_vm2, %v2551_v0, %v5053_v58  ;;  %v3480_v6 = vsel %vm1915_vm2, %v2423_v62, %v5054_v31  ;;  %v5067_v9 = vpop.permute.xlu0 %5066  ;;  %v2425_v0 = vld [vmem:[#allocation3 + $0xe0] sm:$0xff] }
 0x3c3   : > { %v5062_v48 = vpop.permute.xlu1 %5061  ;;  %v3610_v23 = vsel %vm3495_vm12, %v3578_v52, %v5058_v21  ;;  %v3513_v51 = vsel %vm3495_vm12, %v3480_v6, %v5059_v15  ;;  %v5069_v25 = vunpack.i.h.bf16 %v5067_v9  ;;  %v5068_v14 = vunpack.i.l.bf16 %v5067_v9  ;;  %v2671_v15 = vld [vmem:[#allocation3 + $0x92] sm:$0xff]  ;;  %v2672_v62 = vld [vmem:[#allocation3 + $0x9a] sm:$0xff] }
 0x3c4   : > { %v5064_v61 = vunpack.i.h.bf16 %v5062_v48  ;;  %v5063_v35 = vunpack.i.l.bf16 %v5062_v48  ;;  %4614 = vmatmul.mubr.msk.f32.gmra.mrb[46].mxu0 %vm1915_vm2, %v2666_v44  ;;  %v2673_v48 = vld [vmem:[#allocation3 + $0xaa] sm:$0xff] }
 0x3c5   : > { %5256 = vrot.lane.b32.xlu0 %v5255_v12, %s5381_s25  ;;  %4616 = vmatprep.mubr.msk.f32.mxu0 %vm1915_vm2, %v2667_v16  ;;  %v3579_v56 = vsel %vm1915_vm2, %v2552_v60, %v5068_v14  ;;  %v3481_v43 = vsel %vm1915_vm2, %v2424_v19, %v5069_v25  ;;  %v2674_v16 = vld [vmem:[#allocation3 + $0xb2] sm:$0xff]  ;;  %v2676_v25 = vld [vmem:[#allocation3 + $0xca] sm:$0xff]  ;;  %v2677_v14 = vld [vmem:[#allocation3 + $0xda] sm:$0xff] }
 0x3c6   : > { %5251 = vrot.lane.b32.xlu1 %v5250_v3, %s5380_s24  ;;  %v3642_v17 = vsel %vm3528_vm13, %v3610_v23, %v5063_v35  ;;  %v3546_v27 = vsel %vm3528_vm13, %v3513_v51, %v5064_v61  ;;  %v5077_v5 = vpop.permute.xlu0 %5076  ;;  %v2675_v23 = vld [vmem:[#allocation3 + $0xc2] sm:$0xff] }
 0x3c7   : > { %3945 = vmatprep.mubr.f32.mxu1 %v3642_v17  ;;  %v5079_v36 = vunpack.i.h.bf16 %v5077_v5  ;;  %v5078_v4 = vunpack.i.l.bf16 %v5077_v5  ;;  %v5072_v47 = vpop.permute.xlu1 %5071 }
 0x3c8   : > { %3946 = vmatmul.mubr.f32.gmra.mrb[22].mxu1 %v3546_v27  ;;  %4617 = vmatmul.mubr.msk.f32.gmra.mrb[48].mxu0 %vm1915_vm2, %v2668_v42  ;;  %v5074_v49 = vunpack.i.h.bf16 %v5072_v47  ;;  %v5073_v45 = vunpack.i.l.bf16 %v5072_v47  ;;  %v2678_v42 = vld [vmem:[#allocation3 + $0xe2] sm:$0xff] }
 0x3c9   : > { %5266 = vrot.lane.b32.xlu0 %v5265_v30, %s5380_s24  ;;  %4619 = vmatprep.mubr.msk.f32.mxu0 %vm1915_vm2, %v2669_v57 }
 0x3ca   : > { %5261 = vrot.lane.b32.xlu1 %v5260_v11, %s5378_s26  ;;  %v5087_v32 = vpop.permute.xlu0 %5086  ;;  %v3611_v8 = vsel %vm3495_vm12, %v3579_v56, %v5073_v45  ;;  %v3514_v29 = vsel %vm3495_vm12, %v3481_v43, %v5074_v49  ;;  %v2554_v49 = vld [vmem:[#allocation3 + $0x109] sm:$0xff]  ;;  %v2680_v43 = vld [vmem:[#allocation3 + $0xfa] sm:$0xff] }
 0x3cb   : > { %v5082_v26 = vpop.permute.xlu1 %5081  ;;  %v3643_v31 = vsel %vm3528_vm13, %v3611_v8, %v5078_v4  ;;  %v3547_v58 = vsel %vm3528_vm13, %v3514_v29, %v5079_v36  ;;  %v5089_v21 = vunpack.i.h.bf16 %v5087_v32  ;;  %v5088_v1 = vunpack.i.l.bf16 %v5087_v32  ;;  %v2679_v4 = vld [vmem:[#allocation3 + $0xf2] sm:$0xff]  ;;  %v2681_v29 = vld [vmem:[#allocation3 + $0x10a] sm:$0xff] }
 0x3cc   : > { %4620 = vmatmul.mubr.msk.f32.gmra.mrb[50].mxu0 %vm1915_vm2, %v2670_v13  ;;  %v5084_v46 = vunpack.i.h.bf16 %v5082_v26  ;;  %v5083_v20 = vunpack.i.l.bf16 %v5082_v26  ;;  %3950 = vmatprep.mubr.f32.mxu1 %v3643_v31  ;;  %v2426_v45 = vld [vmem:[#allocation3 + $0xf0] sm:$0xff] }
 0x3cd   : > { %3951 = vmatmul.mubr.f32.gmra.mrb[24].mxu1 %v3547_v58  ;;  %4622 = vmatprep.mubr.msk.f32.mxu0 %vm1915_vm2, %v2671_v15  ;;  %v2427_v15 = vld [vmem:[#allocation3 + $0xf8] sm:$0xff] }
 0x3ce   : > { %5271 = vrot.lane.b32.xlu1 %v5270_v33, %s5381_s25  ;;  %v3580_v52 = vsel %vm1915_vm2, %v2553_v22, %v5083_v20  ;;  %v3482_v6 = vsel %vm1915_vm2, %v2425_v0, %v5084_v46  ;;  %v5097_v51 = vpop.permute.xlu0 %5096  ;;  %v2555_v20 = vld [vmem:[#allocation3 + $0x111] sm:$0xff] }
 0x3cf   : > { %v5092_v9 = vpop.permute.xlu1 %5091  ;;  %v3612_v3 = vsel %vm3495_vm12, %v3580_v52, %v5088_v1  ;;  %v3515_v61 = vsel %vm3495_vm12, %v3482_v6, %v5089_v21  ;;  %v5099_v17 = vunpack.i.h.bf16 %v5097_v51  ;;  %v5098_v27 = vunpack.i.l.bf16 %v5097_v51  ;;  %v2682_v21 = vld [vmem:[#allocation3 + $0x112] sm:$0xff] }
 0x3d0   : > { %4623 = vmatmul.mubr.msk.f32.gmra.mrb[52].mxu0 %vm1915_vm2, %v2672_v62  ;;  %v5094_v44 = vunpack.i.h.bf16 %v5092_v9  ;;  %v5093_v12 = vunpack.i.l.bf16 %v5092_v9  ;;  %v2683_v62 = vld [vmem:[#allocation3 + $0x122] sm:$0xff] }
 0x3d1   : > { %4625 = vmatprep.mubr.msk.f32.mxu0 %vm1915_vm2, %v2673_v48  ;;  %v3581_v57 = vsel %vm1915_vm2, %v2554_v49, %v5098_v27  ;;  %v3483_v60 = vsel %vm1915_vm2, %v2426_v45, %v5099_v17 }
 0x3d2   : > { %v3644_v35 = vsel %vm3528_vm13, %v3612_v3, %v5093_v12  ;;  %v3548_v63 = vsel %vm3528_vm13, %v3515_v61, %v5094_v44 }
 0x3d3   : > { %3955 = vmatprep.mubr.f32.mxu1 %v3644_v35 }
 0x3d4   : > { %4626 = vmatmul.mubr.msk.f32.gmra.mrb[54].mxu0 %vm1915_vm2, %v2674_v16  ;;  %3956 = vmatmul.mubr.f32.gmra.mrb[26].mxu1 %v3548_v63 }
 0x3d5   : > { %4628 = vmatprep.mubr.msk.f32.mxu0 %vm1915_vm2, %v2675_v23 }
 0x3d8   : > { %4629 = vmatmul.mubr.msk.f32.gmra.mrb[56].mxu0 %vm1915_vm2, %v2676_v25 }
 0x3d9   : > { %4631 = vmatprep.mubr.msk.f32.mxu0 %vm1915_vm2, %v2677_v14 }
 0x3db   : > { %v5107_v5 = vpop.permute.xlu0 %5106 }
 0x3dc   : > { %v5109_v30 = vunpack.i.h.bf16 %v5107_v5  ;;  %v5108_v11 = vunpack.i.l.bf16 %v5107_v5  ;;  %v5102_v36 = vpop.permute.xlu1 %5101  ;;  %4632 = vmatmul.mubr.msk.f32.gmra.mrb[58].mxu0 %vm1915_vm2, %v2678_v42 }
 0x3dd   : > { %v5104_v47 = vunpack.i.h.bf16 %v5102_v36  ;;  %v5103_v18 = vunpack.i.l.bf16 %v5102_v36  ;;  %4634 = vmatprep.mubr.msk.f32.mxu0 %vm1915_vm2, %v2679_v4 }
 0x3df   : > { %v5117_v19 = vpop.permute.xlu0 %5116  ;;  %v3613_v56 = vsel %vm3495_vm12, %v3581_v57, %v5103_v18  ;;  %v3516_v32 = vsel %vm3495_vm12, %v3483_v60, %v5104_v47  ;;  %v2557_v47 = vld [vmem:[#allocation3 + $0x129] sm:$0xff]  ;;  %v2693_v57 = vld [vmem:[#allocation3 + $0x19a] sm:$0xff] }
 0x3e0   : > { %v5112_v8 = vpop.permute.xlu1 %5111  ;;  %v3645_v13 = vsel %vm3528_vm13, %v3613_v56, %v5108_v11  ;;  %4635 = vmatmul.mubr.msk.f32.gmra.mrb[60].mxu0 %vm1915_vm2, %v2680_v43  ;;  %v3549_v33 = vsel %vm3528_vm13, %v3516_v32, %v5109_v30  ;;  %v5119_v58 = vunpack.i.h.bf16 %v5117_v19  ;;  %v5118_v46 = vunpack.i.l.bf16 %v5117_v19  ;;  %v2429_v18 = vld [vmem:[#allocation3 + $0x110] sm:$0xff] }
 0x3e1   : > { %v5114_v26 = vunpack.i.h.bf16 %v5112_v8  ;;  %v5113_v31 = vunpack.i.l.bf16 %v5112_v8  ;;  %3960 = vmatprep.mubr.f32.mxu1 %v3645_v13  ;;  %4637 = vmatprep.mubr.msk.f32.mxu0 %vm1915_vm2, %v2681_v29 }
 0x3e2   : > { %3961 = vmatmul.mubr.f32.gmra.mrb[28].mxu1 %v3549_v33 }
 0x3e3   : > { %v3582_v1 = vsel %vm1915_vm2, %v2555_v20, %v5113_v31  ;;  %v3484_v22 = vsel %vm1915_vm2, %v2427_v15, %v5114_v26  ;;  %v5127_v3 = vpop.permute.xlu0 %5126  ;;  %v2558_v15 = vld [vmem:[#allocation3 + $0x139] sm:$0xff] }
 0x3e4   : > { %v5122_v0 = vpop.permute.xlu1 %5121  ;;  %4638 = vmatmul.mubr.msk.f32.gmra.mrb[62].mxu0 %vm1915_vm2, %v2682_v21  ;;  %v3614_v9 = vsel %vm3495_vm12, %v3582_v1, %v5118_v46  ;;  %v3517_v48 = vsel %vm3495_vm12, %v3484_v22, %v5119_v58  ;;  %v5129_v61 = vunpack.i.h.bf16 %v5127_v3  ;;  %v5128_v35 = vunpack.i.l.bf16 %v5127_v3  ;;  %v2430_v21 = vld [vmem:[#allocation3 + $0x120] sm:$0xff] }
 0x3e5   : > { %v5124_v52 = vunpack.i.h.bf16 %v5122_v0  ;;  %v5123_v6 = vunpack.i.l.bf16 %v5122_v0  ;;  %4640 = vmatprep.mubr.msk.f32.mxu0 %vm1915_vm2, %v2683_v62 }
 0x3e7   : > { %v3646_v44 = vsel %vm3528_vm13, %v3614_v9, %v5123_v6  ;;  %v3550_v12 = vsel %vm3528_vm13, %v3517_v48, %v5124_v52 }
 0x3e8   : > { %3965 = vmatprep.mubr.f32.mxu1 %v3646_v44  ;;  %4641 = vmatmul.mubr.msk.f32.gmra.mrb[64].mxu0 %vm1915_vm2, %v7388_v40  ;;  %v2556_v40 = vld [vmem:[#allocation3 + $0x121] sm:$0xff] }
 0x3e9   : > { %3966 = vmatmul.mubr.f32.gmra.mrb[30].mxu1 %v3550_v12  ;;  %4643 = vmatprep.mubr.msk.f32.mxu0 %vm1915_vm2, %v7404_v59  ;;  %v2428_v59 = vld [vmem:[#allocation3 + $0x108] sm:$0xff] }
 0x3ea   : > { %v3485_v17 = vsel %vm1915_vm2, %v2428_v59, %v5129_v61 }
 0x3ec   : > { %4644 = vmatmul.mubr.msk.f32.gmra.mrb[66].mxu0 %vm1915_vm2, %v7443_v38  ;;  %v3583_v38 = vsel %vm1915_vm2, %v2556_v40, %v5128_v35  ;;  %v2559_v35 = vld [vmem:[#allocation3 + $0x141] sm:$0xff] }
 0x3ed   : > { %4646 = vmatprep.mubr.msk.f32.mxu0 %vm1915_vm2, %v7459_v37 }
 0x3ef   : > { %v5137_v63 = vpop.permute.xlu0 %5136 }
 0x3f0   : > { %v5132_v16 = vpop.permute.xlu1 %5131  ;;  %v5139_v23 = vunpack.i.h.bf16 %v5137_v63  ;;  %v5138_v51 = vunpack.i.l.bf16 %v5137_v63  ;;  %4647 = vmatmul.mubr.msk.f32.gmra.mrb[68].mxu0 %vm1915_vm2, %v7499_v7  ;;  %v2431_v63 = vld [vmem:[#allocation3 + $0x128] sm:$0xff] }
 0x3f1   : > { %v5134_v25 = vunpack.i.h.bf16 %v5132_v16  ;;  %v5133_v14 = vunpack.i.l.bf16 %v5132_v16  ;;  %4649 = vmatprep.mubr.msk.f32.mxu0 %vm1915_vm2, %v7509_v55 }
 0x3f3   : > { %v3615_v37 = vsel %vm3495_vm12, %v3583_v38, %v5133_v14  ;;  %v3518_v27 = vsel %vm3495_vm12, %v3485_v17, %v5134_v25  ;;  %v5147_v5 = vpop.permute.xlu0 %5146 }
 0x3f4   : > { %v5142_v42 = vpop.permute.xlu1 %5141  ;;  %v3647_v30 = vsel %vm3528_vm13, %v3615_v37, %v5138_v51  ;;  %v3551_v11 = vsel %vm3528_vm13, %v3518_v27, %v5139_v23  ;;  %4650 = vmatmul.mubr.msk.f32.gmra.mrb[70].mxu0 %vm1915_vm2, %v7553_v53  ;;  %v5149_v55 = vunpack.i.h.bf16 %v5147_v5  ;;  %v5148_v4 = vunpack.i.l.bf16 %v5147_v5 }
 0x3f5   : > { %v5144_v7 = vunpack.i.h.bf16 %v5142_v42  ;;  %v5143_v36 = vunpack.i.l.bf16 %v5142_v42  ;;  %3970 = vmatprep.mubr.f32.mxu1 %v3647_v30  ;;  %4652 = vmatprep.mubr.msk.f32.mxu0 %vm1915_vm2, %v7565_v41  ;;  %v2694_v41 = vld [vmem:[#allocation3 + $0x1a2] sm:$0xff] }
 0x3f6   : > { %3971 = vmatmul.mubr.f32.gmra.mrb[32].mxu1 %v3551_v11 }
 0x3f7   : > { %v3584_v49 = vsel %vm1915_vm2, %v2557_v47, %v5143_v36  ;;  %v3486_v45 = vsel %vm1915_vm2, %v2429_v18, %v5144_v7  ;;  %v5157_v13 = vpop.permute.xlu0 %5156  ;;  %v2432_v47 = vld [vmem:[#allocation3 + $0x138] sm:$0xff] }
 0x3f8   : > { %v5152_v60 = vpop.permute.xlu1 %5151  ;;  %4653 = vmatmul.mubr.msk.f32.gmra.mrb[72].mxu0 %vm1915_vm2, %v7591_v2  ;;  %v3616_v53 = vsel %vm3495_vm12, %v3584_v49, %v5148_v4  ;;  %v3519_v43 = vsel %vm3495_vm12, %v3486_v45, %v5149_v55  ;;  %v5159_v33 = vunpack.i.h.bf16 %v5157_v13  ;;  %v5158_v29 = vunpack.i.l.bf16 %v5157_v13  ;;  %v2560_v4 = vld [vmem:[#allocation3 + $0x151] sm:$0xff]  ;;  %v2433_v13 = vld [vmem:[#allocation3 + $0x140] sm:$0xff] }
 0x3f9   : > { %v5154_v19 = vunpack.i.h.bf16 %v5152_v60  ;;  %v5153_v56 = vunpack.i.l.bf16 %v5152_v60  ;;  %4655 = vmatprep.mubr.msk.f32.mxu0 %vm1915_vm2, %v2693_v57 }
 0x3fa   : > { %v3585_v1 = vsel %vm1915_vm2, %v2558_v15, %v5158_v29  ;;  %v3487_v22 = vsel %vm1915_vm2, %v2430_v21, %v5159_v33 }
 0x3fb   : > { %v3648_v32 = vsel %vm3528_vm13, %v3616_v53, %v5153_v56  ;;  %v3552_v8 = vsel %vm3528_vm13, %v3519_v43, %v5154_v19 }
 0x3fc   : > { %3975 = vmatprep.mubr.f32.mxu1 %v3648_v32  ;;  %4656 = vmatmul.mubr.msk.f32.gmra.mrb[74].mxu0 %vm1915_vm2, %v2694_v41 }
 0x3fd   : > { %3976 = vmatmul.mubr.f32.gmra.mrb[34].mxu1 %v3552_v8 }
 0x403   : > { %v5167_v26 = vpop.permute.xlu0 %5166 }
 0x404   : > { %v5162_v2 = vpop.permute.xlu1 %5161  ;;  %v5169_v31 = vunpack.i.h.bf16 %v5167_v26  ;;  %v5168_v58 = vunpack.i.l.bf16 %v5167_v26 }
 0x405   : > { %v5164_v46 = vunpack.i.h.bf16 %v5162_v2  ;;  %v5163_v20 = vunpack.i.l.bf16 %v5162_v2 }
 0x407   : > { %v3617_v0 = vsel %vm3495_vm12, %v3585_v1, %v5163_v20  ;;  %v3520_v62 = vsel %vm3495_vm12, %v3487_v22, %v5164_v46  ;;  %v5177_v52 = vpop.permute.xlu0 %5176 }
 0x408   : > { %v5172_v6 = vpop.permute.xlu1 %5171  ;;  %v3649_v9 = vsel %vm3528_vm13, %v3617_v0, %v5168_v58  ;;  %v3553_v48 = vsel %vm3528_vm13, %v3520_v62, %v5169_v31  ;;  %v5179_v3 = vunpack.i.h.bf16 %v5177_v52  ;;  %v5178_v61 = vunpack.i.l.bf16 %v5177_v52 }
 0x409   : > { %v5174_v44 = vunpack.i.h.bf16 %v5172_v6  ;;  %v5173_v12 = vunpack.i.l.bf16 %v5172_v6  ;;  %3980 = vmatprep.mubr.f32.mxu1 %v3649_v9 }
 0x40a   : > { %3981 = vmatmul.mubr.f32.gmra.mrb[36].mxu1 %v3553_v48 }
 0x40b   : > { %v3586_v16 = vsel %vm1915_vm2, %v2559_v35, %v5173_v12  ;;  %v3488_v23 = vsel %vm1915_vm2, %v2431_v63, %v5174_v44  ;;  %v5187_v37 = vpop.permute.xlu0 %5186  ;;  %v2434_v12 = vld [vmem:[#allocation3 + $0x150] sm:$0xff] }
 0x40c   : > { %v5182_v51 = vpop.permute.xlu1 %5181  ;;  %v3618_v40 = vsel %vm3495_vm12, %v3586_v16, %v5178_v61  ;;  %v3521_v59 = vsel %vm3495_vm12, %v3488_v23, %v5179_v3  ;;  %v5189_v27 = vunpack.i.h.bf16 %v5187_v37  ;;  %v5188_v5 = vunpack.i.l.bf16 %v5187_v37  ;;  %v2435_v37 = vld [vmem:[#allocation3 + $0x158] sm:$0xff] }
 0x40d   : > { %v5184_v25 = vunpack.i.h.bf16 %v5182_v51  ;;  %v5183_v14 = vunpack.i.l.bf16 %v5182_v51 }
 0x40e   : > { %v3587_v18 = vsel %vm1915_vm2, %v2560_v4, %v5188_v5  ;;  %v3489_v49 = vsel %vm1915_vm2, %v2432_v47, %v5189_v27 }
 0x40f   : > { %v3650_v38 = vsel %vm3528_vm13, %v3618_v40, %v5183_v14  ;;  %v3554_v17 = vsel %vm3528_vm13, %v3521_v59, %v5184_v25 }
 0x410   : > { %3985 = vmatprep.mubr.f32.mxu1 %v3650_v38 }
 0x411   : > { %3986 = vmatmul.mubr.f32.gmra.mrb[38].mxu1 %v3554_v17 }
 0x417   : > { %v5197_v42 = vpop.permute.xlu0 %5196 }
 0x418   : > { %v5192_v30 = vpop.permute.xlu1 %5191  ;;  %v5199_v11 = vunpack.i.h.bf16 %v5197_v42  ;;  %v5198_v7 = vunpack.i.l.bf16 %v5197_v42 }
 0x419   : > { %v5194_v36 = vunpack.i.h.bf16 %v5192_v30  ;;  %v5193_v55 = vunpack.i.l.bf16 %v5192_v30 }
 0x41b   : > { %v3619_v45 = vsel %vm3495_vm12, %v3587_v18, %v5193_v55  ;;  %v3522_v57 = vsel %vm3495_vm12, %v3489_v49, %v5194_v36  ;;  %v5207_v60 = vpop.permute.xlu0 %5206 }
 0x41c   : > { %v5202_v19 = vpop.permute.xlu1 %5201  ;;  %v3651_v56 = vsel %vm3528_vm13, %v3619_v45, %v5198_v7  ;;  %v3555_v53 = vsel %vm3528_vm13, %v3522_v57, %v5199_v11  ;;  %v5209_v32 = vunpack.i.h.bf16 %v5207_v60  ;;  %v5208_v8 = vunpack.i.l.bf16 %v5207_v60 }
 0x41d   : > { %v5204_v43 = vunpack.i.h.bf16 %v5202_v19  ;;  %v5203_v41 = vunpack.i.l.bf16 %v5202_v19  ;;  %3990 = vmatprep.mubr.f32.mxu1 %v3651_v56 }
 0x41e   : > { %3991 = vmatmul.mubr.f32.gmra.mrb[40].mxu1 %v3555_v53 }
 0x41f   : > { %v3588_v33 = vsel %vm1915_vm2, %v7455_v54, %v5203_v41  ;;  %v3490_v29 = vsel %vm1915_vm2, %v2433_v13, %v5204_v43  ;;  %v5217_v21 = vpop.permute.xlu0 %5216 }
 0x420   : > { %v5212_v26 = vpop.permute.xlu1 %5211  ;;  %v3620_v58 = vsel %vm3495_vm12, %v3588_v33, %v5208_v8  ;;  %v3523_v46 = vsel %vm3495_vm12, %v3490_v29, %v5209_v32  ;;  %v5219_v1 = vunpack.i.h.bf16 %v5217_v21  ;;  %v5218_v22 = vunpack.i.l.bf16 %v5217_v21 }
 0x421   : > { %v5214_v2 = vunpack.i.h.bf16 %v5212_v26  ;;  %v5213_v31 = vunpack.i.l.bf16 %v5212_v26 }
 0x422   : > { %v3589_v3 = vsel %vm1915_vm2, %v7489_v34, %v5218_v22  ;;  %v3491_v61 = vsel %vm1915_vm2, %v2434_v12, %v5219_v1 }
 0x423   : > { %v3652_v20 = vsel %vm3528_vm13, %v3620_v58, %v5213_v31  ;;  %v3556_v15 = vsel %vm3528_vm13, %v3523_v46, %v5214_v2 }
 0x424   : > { %3995 = vmatprep.mubr.f32.mxu1 %v3652_v20 }
 0x425   : > { %3996 = vmatmul.mubr.f32.gmra.mrb[42].mxu1 %v3556_v15 }
 0x429   : > { %v7704_v0 = vpop.f32.mrb[0].mxu1 }
 0x42a   : > { %v3894_v54 = vpop.f32.mrb[1].mxu1 }
 0x42b   : > { %v5227_v62 = vpop.permute.xlu0 %5226 }
 0x42c   : > { %v5222_v52 = vpop.permute.xlu1 %5221  ;;  %v5229_v6 = vunpack.i.h.bf16 %v5227_v62  ;;  %v5228_v9 = vunpack.i.l.bf16 %v5227_v62 }
 0x42d   : > { %v5224_v48 = vunpack.i.h.bf16 %v5222_v52  ;;  %v5223_v44 = vunpack.i.l.bf16 %v5222_v52 }
 0x42f   : > { %v3621_v35 = vsel %vm3495_vm12, %v3589_v3, %v5223_v44  ;;  %v3524_v63 = vsel %vm3495_vm12, %v3491_v61, %v5224_v48  ;;  %v5237_v16 = vpop.permute.xlu0 %5236 }
 0x430   : > { %v5232_v23 = vpop.permute.xlu1 %5231  ;;  %v3653_v51 = vsel %vm3528_vm13, %v3621_v35, %v5228_v9  ;;  %v3557_v25 = vsel %vm3528_vm13, %v3524_v63, %v5229_v6  ;;  %v7713_v59 = vpop.f32.mrb[2].mxu1  ;;  %v5239_v38 = vunpack.i.h.bf16 %v5237_v16  ;;  %v5238_v17 = vunpack.i.l.bf16 %v5237_v16 }
 0x431   : > { %v5234_v14 = vunpack.i.h.bf16 %v5232_v23  ;;  %v5233_v40 = vunpack.i.l.bf16 %v5232_v23  ;;  %4000 = vmatprep.mubr.f32.mxu1 %v3653_v51  ;;  %v3899_v34 = vpop.f32.mrb[3].mxu1 }
 0x432   : > { %4001 = vmatmul.mubr.f32.gmra.mrb[44].mxu1 %v3557_v25 }
 0x433   : > { %v3590_v27 = vsel %vm1915_vm2, %v7511_v39, %v5233_v40  ;;  %v3492_v5 = vsel %vm1915_vm2, %v2435_v37, %v5234_v14  ;;  %v5247_v42 = vpop.permute.xlu0 %5246 }
 0x434   : > { %v5242_v30 = vpop.permute.xlu1 %5241  ;;  %v5249_v36 = vunpack.i.h.bf16 %v5247_v42  ;;  %v5248_v55 = vunpack.i.l.bf16 %v5247_v42  ;;  %v3622_v4 = vsel %vm3495_vm12, %v3590_v27, %v5238_v17  ;;  %v3525_v47 = vsel %vm3495_vm12, %v3492_v5, %v5239_v38 }
 0x435   : > { %v5244_v11 = vunpack.i.h.bf16 %v5242_v30  ;;  %v5243_v7 = vunpack.i.l.bf16 %v5242_v30 }
 0x436   : > { %v3591_v53 = vsel %vm1915_vm2, %v7541_v28, %v5248_v55  ;;  %v3493_v43 = vsel %vm1915_vm2, %v7491_v24, %v5249_v36 }
 0x437   : > { %v3654_v18 = vsel %vm3528_vm13, %v3622_v4, %v5243_v7  ;;  %v3558_v49 = vsel %vm3528_vm13, %v3525_v47, %v5244_v11  ;;  %v5257_v45 = vpop.permute.xlu0 %5256  ;;  %v7754_v7 = vld [vmem:[#allocation6] ss:$0 sm:$0xff] }
 0x438   : > { %v5252_v57 = vpop.permute.xlu1 %5251  ;;  %4005 = vmatprep.mubr.f32.mxu1 %v3654_v18  ;;  %v5259_v39 = vunpack.i.h.bf16 %v5257_v45  ;;  %v5258_v60 = vunpack.i.l.bf16 %v5257_v45 }
 0x439   : > { %v5254_v19 = vunpack.i.h.bf16 %v5252_v57  ;;  %v5253_v56 = vunpack.i.l.bf16 %v5252_v57  ;;  %4006 = vmatmul.mubr.f32.gmra.mrb[46].mxu1 %v3558_v49 }
 0x43b   : > { %v3623_v41 = vsel %vm3495_vm12, %v3591_v53, %v5253_v56  ;;  %v3526_v32 = vsel %vm3495_vm12, %v3493_v43, %v5254_v19  ;;  %v5267_v8 = vpop.permute.xlu0 %5266  ;;  %v7730_v31 = vpop.f32.mrb[4].mxu1 }
 0x43c   : > { %v5262_v13 = vpop.permute.xlu1 %5261  ;;  %v3655_v33 = vsel %vm3528_vm13, %v3623_v41, %v5258_v60  ;;  %v3559_v29 = vsel %vm3528_vm13, %v3526_v32, %v5259_v39  ;;  %v5269_v58 = vunpack.i.h.bf16 %v5267_v8  ;;  %v5268_v28 = vunpack.i.l.bf16 %v5267_v8  ;;  %v3904_v46 = vpop.f32.mrb[5].mxu1 }
 0x43d   : > { %v5264_v26 = vunpack.i.h.bf16 %v5262_v13  ;;  %v5263_v2 = vunpack.i.l.bf16 %v5262_v13  ;;  %4010 = vmatprep.mubr.f32.mxu1 %v3655_v33 }
 0x43e   : > { %4011 = vmatmul.mubr.f32.gmra.mrb[48].mxu1 %v3559_v29 }
 0x43f   : > { %v3592_v24 = vsel %vm1915_vm2, %v7567_v50, %v5263_v2  ;;  %v3494_v20 = vsel %vm1915_vm2, %v7497_v10, %v5264_v26 }
 0x440   : > { %v5272_v15 = vpop.permute.xlu1 %5271  ;;  %v3624_v22 = vsel %vm3495_vm12, %v3592_v24, %v5268_v28  ;;  %v3527_v54 = vsel %vm3495_vm12, %v3494_v20, %v5269_v58  ;;  %v3898_v20 = vadd.f32 %v7754_v7, %v7713_v59 }
 0x441   : > { %v5274_v21 = vunpack.i.h.bf16 %v5272_v15  ;;  %v5273_v1 = vunpack.i.l.bf16 %v5272_v15 }
 0x442   : > { %v7740_v6 = vpop.f32.mrb[6].mxu1 }
 0x443   : > { %v3656_v62 = vsel %vm3528_vm13, %v3624_v22, %v5273_v1  ;;  %v3560_v52 = vsel %vm3528_vm13, %v3527_v54, %v5274_v21  ;;  %v3909_v9 = vpop.f32.mrb[7].mxu1  ;;  %v3893_v21 = vadd.f32 %v7754_v7, %v7704_v0  ;;  %v3903_v0 = vadd.f32 %v7754_v7, %v7730_v31 }
 0x444   : > { %4015 = vmatprep.mubr.f32.mxu1 %v3656_v62 }
 0x445   : > { %4016 = vmatmul.mubr.f32.gmra.mrb[50].mxu1 %v3560_v52 }
 0x44e   : > { %v3862_v50 = vpop.f32.mrb[32].mxu0 }
 0x44f   : > { %v3864_v48 = vpop.f32.mrb[33].mxu0  ;;  %v3863_v55 = vadd.f32 %v7754_v7, %v3862_v50  ;;  %v3908_v50 = vadd.f32 %v7754_v7, %v7740_v6 }
 0x452   : > { %v7742_v44 = vpop.f32.mrb[8].mxu1 }
 0x453   : > { %v3914_v10 = vpop.f32.mrb[9].mxu1 }
 0x457   : > { %v7744_v12 = vpop.f32.mrb[10].mxu1 }
 0x458   : > { %v3919_v3 = vpop.f32.mrb[11].mxu1 }
 0x45e   : > { %v3867_v61 = vpop.f32.mrb[34].mxu0 }
 0x45f   : > { %v3869_v35 = vpop.f32.mrb[35].mxu0  ;;  %v3868_v36 = vadd.f32 %v7754_v7, %v3867_v61 }
 0x466   : > { %v7746_v63 = vpop.f32.mrb[12].mxu1 }
 0x467   : > { %v3924_v16 = vpop.f32.mrb[13].mxu1 }
 0x46a   : > { %v3872_v23 = vpop.f32.mrb[36].mxu0 }
 0x46b   : > { %v3874_v51 = vpop.f32.mrb[37].mxu0  ;;  %v3873_v19 = vadd.f32 %v7754_v7, %v3872_v23  ;;  %v3918_v23 = vadd.f32 %v7754_v7, %v7744_v12 }
 0x46c   : > { %v3913_v51 = vadd.f32 %v7754_v7, %v7742_v44  ;;  %v3923_v44 = vadd.f32 %v7754_v7, %v7746_v63 }
 0x472   : > { %v7748_v25 = vpop.f32.mrb[14].mxu1 }
 0x473   : > { %v3929_v14 = vpop.f32.mrb[15].mxu1  ;;  %v3928_v12 = vadd.f32 %v7754_v7, %v7748_v25 }
 0x477   : > { %v3877_v40 = vpop.f32.mrb[38].mxu0 }
 0x478   : > { %v3879_v38 = vpop.f32.mrb[39].mxu0  ;;  %v3878_v57 = vadd.f32 %v7754_v7, %v3877_v40 }
 0x47e   : > { %v7750_v17 = vpop.f32.mrb[16].mxu1 }
 0x47f   : > { %v3934_v34 = vpop.f32.mrb[17].mxu1  ;;  %v3933_v25 = vadd.f32 %v7754_v7, %v7750_v17 }
 0x483   : > { %v3882_v37 = vpop.f32.mrb[40].mxu0 }
 0x484   : > { %v3884_v27 = vpop.f32.mrb[41].mxu0  ;;  %v3883_v33 = vadd.f32 %v7754_v7, %v3882_v37 }
 0x48a   : > { %v7752_v5 = vpop.f32.mrb[18].mxu1 }
 0x48b   : > { %v3939_v42 = vpop.f32.mrb[19].mxu1 }
 0x48f   : > { %v3887_v30 = vpop.f32.mrb[42].mxu0 }
 0x490   : > { %v3889_v11 = vpop.f32.mrb[43].mxu0  ;;  %v3888_v8 = vadd.f32 %v7754_v7, %v3887_v30 }
 0x493   : > { %v4612_v4 = vpop.f32.mrb[44].mxu0 }
 0x494   : > { %v4093_v47 = vadd.f32 %v4612_v4, %v3868_v36  ;;  %v4087_v18 = vpop.f32.mrb[45].mxu0  ;;  %v7765_v49 = vpop.f32.mrb[20].mxu1 }
 0x495   : > { %v4088_v45 = vadd.f32 %v4087_v18, %v3863_v55  ;;  %v3944_v60 = vpop.f32.mrb[21].mxu1 }
 0x496   : > { %v4247_v39 = vmax.f32 %v4093_v47, 0.0  ;;  %v3938_v47 = vadd.f32 %v7754_v7, %v7752_v5  ;;  %v3943_v5 = vadd.f32 %v7754_v7, %v7765_v49 }
 0x497   : > { %v4246_v56 = vmax.f32 %v4088_v45, 0.0  ;;  %v4615_v53 = vpop.f32.mrb[46].mxu0 }
 0x498   : > { %4279 = vst.msk [vmem:[%s7763_s12 + $0x8] sm:$0xff] %vm1915_vm2, %v4247_v39  ;;  %v4103_v43 = vadd.f32 %v4615_v53, %v3878_v57  ;;  %v4097_v41 = vpop.f32.mrb[47].mxu0 }
 0x499   : > { %4278 = vst.msk [vmem:[%s7763_s12] sm:$0xff] %vm1915_vm2, %v4246_v56  ;;  %v4098_v32 = vadd.f32 %v4097_v41, %v3873_v19 }
 0x49a   : > { %v4249_v13 = vmax.f32 %v4103_v43, 0.0 }
 0x49b   : > { %v4248_v29 = vmax.f32 %v4098_v32, 0.0  ;;  %v3947_v26 = vpop.f32.mrb[22].mxu1  ;;  %v4618_v2 = vpop.f32.mrb[48].mxu0 }
 0x49c   : > { %4281 = vst.msk [vmem:[%s7763_s12 + $0x18] sm:$0xff] %vm1915_vm2, %v4249_v13  ;;  %v4113_v58 = vadd.f32 %v4618_v2, %v3888_v8  ;;  %v3949_v28 = vpop.f32.mrb[23].mxu1  ;;  %v4107_v46 = vpop.f32.mrb[49].mxu0  ;;  %v3948_v19 = vadd.f32 %v7754_v7, %v3947_v26 }
 0x49d   : > { %4280 = vst.msk [vmem:[%s7763_s12 + $0x10] sm:$0xff] %vm1915_vm2, %v4248_v29  ;;  %v4108_v24 = vadd.f32 %v4107_v46, %v3883_v33 }
 0x49e   : > { %v4251_v15 = vmax.f32 %v4113_v58, 0.0 }
 0x49f   : > { %v4250_v1 = vmax.f32 %v4108_v24, 0.0  ;;  %v4621_v22 = vpop.f32.mrb[50].mxu0 }
 0x4a0   : > { %4283 = vst.msk [vmem:[%s7763_s12 + $0x28] sm:$0xff] %vm1915_vm2, %v4251_v15  ;;  %v4123_v54 = vadd.f32 %v4621_v22, %v3898_v20  ;;  %v4117_v62 = vpop.f32.mrb[51].mxu0  ;;  %v3952_v52 = vpop.f32.mrb[24].mxu1 }
 0x4a1   : > { %4282 = vst.msk [vmem:[%s7763_s12 + $0x20] sm:$0xff] %vm1915_vm2, %v4250_v1  ;;  %v4118_v9 = vadd.f32 %v4117_v62, %v3893_v21  ;;  %v3954_v48 = vpop.f32.mrb[25].mxu1  ;;  %v3953_v26 = vadd.f32 %v7754_v7, %v3952_v52 }
 0x4a2   : > { %v4253_v59 = vmax.f32 %v4123_v54, 0.0 }
 0x4a3   : > { %v4252_v10 = vmax.f32 %v4118_v9, 0.0  ;;  %v4624_v3 = vpop.f32.mrb[52].mxu0 }
 0x4a4   : > { %4285 = vst.msk [vmem:[%s7763_s12 + $0x38] sm:$0xff] %vm1915_vm2, %v4253_v59  ;;  %v4133_v61 = vadd.f32 %v4624_v3, %v3908_v50  ;;  %v4127_v35 = vpop.f32.mrb[53].mxu0 }
 0x4a5   : > { %4284 = vst.msk [vmem:[%s7763_s12 + $0x30] sm:$0xff] %vm1915_vm2, %v4252_v10  ;;  %v4128_v16 = vadd.f32 %v4127_v35, %v3903_v0 }
 0x4a6   : > { %v4255_v6 = vmax.f32 %v4133_v61, 0.0 }
 0x4a7   : > { %v4254_v14 = vmax.f32 %v4128_v16, 0.0  ;;  %v4627_v31 = vpop.f32.mrb[54].mxu0  ;;  %v3957_v40 = vpop.f32.mrb[26].mxu1 }
 0x4a8   : > { %4287 = vst.msk [vmem:[%s7763_s12 + $0x48] sm:$0xff] %vm1915_vm2, %v4255_v6  ;;  %v4143_v38 = vadd.f32 %v4627_v31, %v3918_v23  ;;  %v4137_v34 = vpop.f32.mrb[55].mxu0  ;;  %v3959_v37 = vpop.f32.mrb[27].mxu1  ;;  %v3958_v13 = vadd.f32 %v7754_v7, %v3957_v40 }
 0x4a9   : > { %4286 = vst.msk [vmem:[%s7763_s12 + $0x40] sm:$0xff] %vm1915_vm2, %v4254_v14  ;;  %v4138_v27 = vadd.f32 %v4137_v34, %v3913_v51 }
 0x4aa   : > { %v4257_v42 = vmax.f32 %v4143_v38, 0.0 }
 0x4ab   : > { %v4256_v30 = vmax.f32 %v4138_v27, 0.0  ;;  %v4630_v11 = vpop.f32.mrb[56].mxu0 }
 0x4ac   : > { %4289 = vst.msk [vmem:[%s7763_s12 + $0x58] sm:$0xff] %vm1915_vm2, %v4257_v42  ;;  %v4153_v36 = vadd.f32 %v4630_v11, %v3928_v12  ;;  %v4147_v55 = vpop.f32.mrb[57].mxu0 }
 0x4ad   : > { %4288 = vst.msk [vmem:[%s7763_s12 + $0x50] sm:$0xff] %vm1915_vm2, %v4256_v30  ;;  %v4148_v4 = vadd.f32 %v4147_v55, %v3923_v44 }
 0x4ae   : > { %v4259_v18 = vmax.f32 %v4153_v36, 0.0 }
 0x4af   : > { %v4258_v63 = vmax.f32 %v4148_v4, 0.0  ;;  %v4633_v45 = vpop.f32.mrb[58].mxu0 }
 0x4b0   : > { %4291 = vst.msk [vmem:[%s7763_s12 + $0x68] sm:$0xff] %vm1915_vm2, %v4259_v18  ;;  %v4163_v57 = vadd.f32 %v4633_v45, %v3938_v47  ;;  %v4157_v39 = vpop.f32.mrb[59].mxu0 }
 0x4b1   : > { %4290 = vst.msk [vmem:[%s7763_s12 + $0x60] sm:$0xff] %vm1915_vm2, %v4258_v63  ;;  %v4158_v60 = vadd.f32 %v4157_v39, %v3933_v25 }
 0x4b2   : > { %v4261_v56 = vmax.f32 %v4163_v57, 0.0 }
 0x4b3   : > { %v4260_v53 = vmax.f32 %v4158_v60, 0.0  ;;  %v4636_v43 = vpop.f32.mrb[60].mxu0 }
 0x4b4   : > { %4293 = vst.msk [vmem:[%s7763_s12 + $0x78] sm:$0xff] %vm1915_vm2, %v4261_v56  ;;  %v4173_v17 = vadd.f32 %v4636_v43, %v3948_v19  ;;  %v4167_v41 = vpop.f32.mrb[61].mxu0 }
 0x4b5   : > { %4292 = vst.msk [vmem:[%s7763_s12 + $0x70] sm:$0xff] %vm1915_vm2, %v4260_v53  ;;  %v3962_v32 = vpop.f32.mrb[28].mxu1  ;;  %v4168_v8 = vadd.f32 %v4167_v41, %v3943_v5 }
 0x4b6   : > { %v4263_v33 = vmax.f32 %v4173_v17, 0.0  ;;  %v3964_v29 = vpop.f32.mrb[29].mxu1  ;;  %v3963_v20 = vadd.f32 %v7754_v7, %v3962_v32 }
 0x4b7   : > { %v4262_v49 = vmax.f32 %v4168_v8, 0.0  ;;  %v4639_v2 = vpop.f32.mrb[62].mxu0 }
 0x4b8   : > { %4295 = vst.msk [vmem:[%s7763_s12 + $0x88] sm:$0xff] %vm1915_vm2, %v4263_v33  ;;  %v4183_v58 = vadd.f32 %v4639_v2, %v3958_v13  ;;  %v4177_v28 = vpop.f32.mrb[63].mxu0 }
 0x4b9   : > { %4294 = vst.msk [vmem:[%s7763_s12 + $0x80] sm:$0xff] %vm1915_vm2, %v4262_v49  ;;  %v4178_v46 = vadd.f32 %v4177_v28, %v3953_v26 }
 0x4ba   : > { %v4265_v24 = vmax.f32 %v4183_v58, 0.0 }
 0x4bb   : > { %v4264_v15 = vmax.f32 %v4178_v46, 0.0  ;;  %v4642_v21 = vpop.f32.mrb[64].mxu0 }
 0x4bc   : > { %4297 = vst.msk [vmem:[%s7763_s12 + $0x98] sm:$0xff] %vm1915_vm2, %v4265_v24  ;;  %v3967_v1 = vpop.f32.mrb[30].mxu1  ;;  %v4187_v22 = vpop.f32.mrb[65].mxu0 }
 0x4bd   : > { %4296 = vst.msk [vmem:[%s7763_s12 + $0x90] sm:$0xff] %vm1915_vm2, %v4264_v15  ;;  %v3968_v54 = vadd.f32 %v7754_v7, %v3967_v1  ;;  %v3969_v62 = vpop.f32.mrb[31].mxu1  ;;  %v4188_v52 = vadd.f32 %v4187_v22, %v3963_v20 }
 0x4bf   : > { %v4193_v9 = vadd.f32 %v4642_v21, %v3968_v54  ;;  %v4266_v50 = vmax.f32 %v4188_v52, 0.0  ;;  %v4645_v59 = vpop.f32.mrb[66].mxu0 }
 0x4c0   : > { %v4197_v48 = vpop.f32.mrb[67].mxu0 }
 0x4c1   : > { %v4267_v0 = vmax.f32 %v4193_v9, 0.0  ;;  %4298 = vst.msk [vmem:[%s7763_s12 + $0xa0] sm:$0xff] %vm1915_vm2, %v4266_v50 }
 0x4c3   : > { %4299 = vst.msk [vmem:[%s7763_s12 + $0xa8] sm:$0xff] %vm1915_vm2, %v4267_v0  ;;  %v4648_v10 = vpop.f32.mrb[68].mxu0 }
 0x4c4   : > { %v4207_v3 = vpop.f32.mrb[69].mxu0 }
 0x4c7   : > { %v4651_v61 = vpop.f32.mrb[70].mxu0 }
 0x4c8   : > { %v4217_v16 = vpop.f32.mrb[71].mxu0 }
 0x4c9   : > { %v3972_v35 = vpop.f32.mrb[32].mxu1 }
 0x4ca   : > { %v3973_v23 = vadd.f32 %v7754_v7, %v3972_v35  ;;  %v3974_v6 = vpop.f32.mrb[33].mxu1 }
 0x4cb   : > { %v4654_v14 = vpop.f32.mrb[72].mxu0 }
 0x4cc   : > { %v4198_v51 = vadd.f32 %v4197_v48, %v3973_v23  ;;  %v4227_v31 = vpop.f32.mrb[73].mxu0 }
 0x4ce   : > { %v4268_v40 = vmax.f32 %v4198_v51, 0.0 }
 0x4cf   : > { %v4657_v34 = vpop.f32.mrb[74].mxu0 }
 0x4d0   : > { %4300 = vst.msk [vmem:[%s7763_s12 + $0xb0] sm:$0xff] %vm1915_vm2, %v4268_v40  ;;  %v3977_v38 = vpop.f32.mrb[34].mxu1  ;;  %v4237_v12 = vpop.f32.mrb[75].mxu0 }
 0x4d1   : > { %v3978_v37 = vadd.f32 %v7754_v7, %v3977_v38  ;;  %v3979_v27 = vpop.f32.mrb[35].mxu1 }
 0x4d3   : > { %v4203_v42 = vadd.f32 %v4645_v59, %v3978_v37 }
 0x4d5   : > { %v4269_v44 = vmax.f32 %v4203_v42, 0.0 }
 0x4d7   : > { %4301 = vst.msk [vmem:[%s7763_s12 + $0xb8] sm:$0xff] %vm1915_vm2, %v4269_v44 }
 0x4dd   : > { %v3982_v30 = vpop.f32.mrb[36].mxu1 }
 0x4de   : > { %v3983_v11 = vadd.f32 %v7754_v7, %v3982_v30  ;;  %v3984_v36 = vpop.f32.mrb[37].mxu1 }
 0x4e0   : > { %v4208_v55 = vadd.f32 %v4207_v3, %v3983_v11 }
 0x4e2   : > { %v4270_v4 = vmax.f32 %v4208_v55, 0.0 }
 0x4e4   : > { %4302 = vst.msk [vmem:[%s7763_s12 + $0xc0] sm:$0xff] %vm1915_vm2, %v4270_v4  ;;  %v3987_v47 = vpop.f32.mrb[38].mxu1 }
 0x4e5   : > { %v3988_v18 = vadd.f32 %v7754_v7, %v3987_v47  ;;  %v3989_v25 = vpop.f32.mrb[39].mxu1 }
 0x4e7   : > { %v4213_v63 = vadd.f32 %v4648_v10, %v3988_v18 }
 0x4e9   : > { %v4271_v45 = vmax.f32 %v4213_v63, 0.0 }
 0x4eb   : > { %4303 = vst.msk [vmem:[%s7763_s12 + $0xc8] sm:$0xff] %vm1915_vm2, %v4271_v45 }
 0x4f1   : > { %v3992_v57 = vpop.f32.mrb[40].mxu1 }
 0x4f2   : > { %v3993_v39 = vadd.f32 %v7754_v7, %v3992_v57  ;;  %v3994_v60 = vpop.f32.mrb[41].mxu1 }
 0x4f4   : > { %v4218_v19 = vadd.f32 %v4217_v16, %v3993_v39 }
 0x4f6   : > { %v4272_v56 = vmax.f32 %v4218_v19, 0.0 }
 0x4f8   : > { %4304 = vst.msk [vmem:[%s7763_s12 + $0xd0] sm:$0xff] %vm1915_vm2, %v4272_v56  ;;  %v3997_v5 = vpop.f32.mrb[42].mxu1 }
 0x4f9   : > { %v3998_v53 = vadd.f32 %v7754_v7, %v3997_v5  ;;  %v3999_v43 = vpop.f32.mrb[43].mxu1 }
 0x4fb   : > { %v4223_v17 = vadd.f32 %v4651_v61, %v3998_v53 }
 0x4fd   : > { %v4273_v41 = vmax.f32 %v4223_v17, 0.0 }
 0x4ff   : > { %4305 = vst.msk [vmem:[%s7763_s12 + $0xd8] sm:$0xff] %vm1915_vm2, %v4273_v41 }
 0x505   : > { %v4002_v32 = vpop.f32.mrb[44].mxu1 }
 0x506   : > { %v4003_v8 = vadd.f32 %v7754_v7, %v4002_v32  ;;  %v4004_v13 = vpop.f32.mrb[45].mxu1 }
 0x508   : > { %v4228_v33 = vadd.f32 %v4227_v31, %v4003_v8 }
 0x50a   : > { %v4274_v29 = vmax.f32 %v4228_v33, 0.0 }
 0x50c   : > { %4306 = vst.msk [vmem:[%s7763_s12 + $0xe0] sm:$0xff] %vm1915_vm2, %v4274_v29  ;;  %v4007_v26 = vpop.f32.mrb[46].mxu1 }
 0x50d   : > { %v4008_v49 = vadd.f32 %v7754_v7, %v4007_v26  ;;  %v4009_v2 = vpop.f32.mrb[47].mxu1 }
 0x50f   : > { %v4233_v58 = vadd.f32 %v4654_v14, %v4008_v49 }
 0x511   : > { %v4275_v28 = vmax.f32 %v4233_v58, 0.0  ;;  %v4012_v46 = vpop.f32.mrb[48].mxu1 }
 0x512   : > { %v4013_v24 = vadd.f32 %v7754_v7, %v4012_v46  ;;  %v4014_v20 = vpop.f32.mrb[49].mxu1 }
 0x513   : > { %4307 = vst.msk [vmem:[%s7763_s12 + $0xe8] sm:$0xff] %vm1915_vm2, %v4275_v28 }
 0x514   : > { %v4238_v15 = vadd.f32 %v4237_v12, %v4013_v24 }
 0x516   : > { %v4276_v21 = vmax.f32 %v4238_v15, 0.0 }
 0x518   : > { %4308 = vst.msk [vmem:[%s7763_s12 + $0xf0] sm:$0xff] %vm1915_vm2, %v4276_v21  ;;  %v4017_v1 = vpop.f32.mrb[50].mxu1 }
 0x519   : > { %v4018_v22 = vadd.f32 %v7754_v7, %v4017_v1  ;;  %v4019_v54 = vpop.f32.mrb[51].mxu1 }
 0x51b   : > { %v4243_v62 = vadd.f32 %v4657_v34, %v4018_v22 }
 0x51d   : > { %v4277_v52 = vmax.f32 %v4243_v62, 0.0 }
 0x51f   : > { %4309 = vst.msk [vmem:[%s7763_s12 + $0xf8] sm:$0xff] %vm1915_vm2, %v4277_v52 }
 0x520 PF: > { %s17_s18 = sadd.s32 1, %s5366_s18  }
 0x521   : > { %p14_p9 = scmp.ge.s32.totalorder %s17_s18, 4  }
 0x523   :  { %16 = sbr.rel (!%p14_p9) target bundleno = 2 (0x2), region = 83 }
 0x52a   :  { %4331 = vsyncpa [#allocation5], 1 }
 0x52b   :  { %4333 = vsyncpa [#allocation5 + $0x1], 1 }
 0x52c   :  { %4334 = vsyncpa [#allocation7], 1 }

</bundles_post_ra>
